<compile_context>
chip_gen: v7x
topology: tpu7x:2x2x1
jax: 0.10.0
libtpu: 0.0.40
codegen_flags: <defaults>
</compile_context>

<pallas_src>
import functools
import math

import jax
import jax.numpy as jnp
from jax.experimental import pallas as pl
from jax.experimental.pallas import tpu as pltpu


# ---------------------------------------------------------------------------
# small tiling helpers (always return block sizes that divide the dim and
# respect the (8, 128) block constraints, falling back to the full dim)
# ---------------------------------------------------------------------------
def _divisor_leq(n, target):
    t = max(1, min(n, target))
    while n % t:
        t -= 1
    return t


def _row_block(n, target, align=8):
    """Block for a tiled second-minor dim: divides n, multiple of `align`,
    else falls back to the full dim (full-extent blocks are always legal)."""
    if n <= target:
        return n
    t = (min(n, target) // align) * align
    while t >= align:
        if n % t == 0:
            return t
        t -= align
    return n


def _k_block(n, target):
    """Block for a lane/contraction dim: divides n, multiple of 128, else full."""
    if n <= target:
        return n
    t = (min(n, target) // 128) * 128
    while t >= 128:
        if n % t == 0:
            return t
        t -= 128
    return n


# ---------------------------------------------------------------------------
# Kernel 1: single-shot matmul + bias (+ReLU), M-tiled (used for the tiny conv1)
# ---------------------------------------------------------------------------
def _mm_bias_act_kernel(x_ref, w_ref, b_ref, o_ref, *, relu):
    y = jnp.dot(x_ref[...], w_ref[...], preferred_element_type=jnp.float32)
    y = y + b_ref[...]
    if relu:
        y = jnp.maximum(y, 0.0)
    o_ref[...] = y.astype(o_ref.dtype)


def matmul_bias_act(x, w, b, *, relu, tm_target=1024):
    M, K = x.shape
    K2, N = w.shape
    assert K == K2
    tm = _row_block(M, tm_target)
    b2 = b.reshape(1, N).astype(jnp.float32)
    return pl.pallas_call(
        functools.partial(_mm_bias_act_kernel, relu=relu),
        out_shape=jax.ShapeDtypeStruct((M, N), jnp.float32),
        grid_spec=pltpu.PrefetchScalarGridSpec(
            num_scalar_prefetch=0,
            grid=(M // tm,),
            in_specs=[
                pl.BlockSpec((tm, K), lambda m: (m, 0)),
                pl.BlockSpec((K, N), lambda m: (0, 0)),
                pl.BlockSpec((1, N), lambda m: (0, 0)),
            ],
            out_specs=pl.BlockSpec((tm, N), lambda m: (m, 0)),
        ),
        compiler_params=pltpu.CompilerParams(
            dimension_semantics=("parallel",)),
    )(x, w, b2)


# ---------------------------------------------------------------------------
# Kernel 2: 3x3 valid conv with fused im2col + bias + ReLU (used for conv2)
#   x block: (TB, H, W, Cin) resident in VMEM; each of the 9 taps is a shifted
#   window load of that block (no HBM patch tensor), reshaped (layout no-op,
#   Wo % 8 == 0) to 2D and fed to the MXU; accumulation stays local (f32),
#   one bf16 store at the end.
# ---------------------------------------------------------------------------
def _conv3x3_kernel(x_ref, w_ref, b_ref, o_ref):
    TB, H, W, Cin = x_ref.shape
    Ho, Wo = H - 2, W - 2
    acc = None
    for t in range(9):
        di, dj = divmod(t, 3)
        patch = x_ref[:, di:di + Ho, dj:dj + Wo, :]           # (TB, Ho, Wo, Cin)
        patch = patch.reshape(TB * Ho * Wo, Cin)              # layout-preserving
        w_t = w_ref[t]                                        # (Cin, Cout) bf16
        d = jnp.dot(patch.astype(w_t.dtype), w_t,
                    preferred_element_type=jnp.float32)
        acc = d if acc is None else acc + d
    o_ref[...] = jnp.maximum(acc + b_ref[...], 0.0).astype(o_ref.dtype)


def conv3x3_bias_relu(x_nhwc, w_taps, b, *, out_dtype=jnp.bfloat16, tb_target=8):
    N, H, W, Cin = x_nhwc.shape
    T, Cin2, Cout = w_taps.shape
    assert T == 9 and Cin2 == Cin
    Ho, Wo = H - 2, W - 2
    assert Wo % 8 == 0, "fused conv kernel relies on a layout-preserving reshape"
    tb = _divisor_leq(N, tb_target)
    b2 = b.reshape(1, Cout).astype(jnp.float32)
    out = pl.pallas_call(
        _conv3x3_kernel,
        out_shape=jax.ShapeDtypeStruct((N * Ho * Wo, Cout), out_dtype),
        grid_spec=pltpu.PrefetchScalarGridSpec(
            num_scalar_prefetch=0,
            grid=(N // tb,),
            in_specs=[
                pl.BlockSpec((tb, H, W, Cin), lambda i: (i, 0, 0, 0)),
                pl.BlockSpec((9, Cin, Cout), lambda i: (0, 0, 0)),
                pl.BlockSpec((1, Cout), lambda i: (0, 0)),
            ],
            out_specs=pl.BlockSpec((tb * Ho * Wo, Cout), lambda i: (i, 0)),
        ),
        compiler_params=pltpu.CompilerParams(
            dimension_semantics=("parallel",)),
    )(x_nhwc, w_taps, b2)
    return out.reshape(N, Ho, Wo, Cout)


# ---------------------------------------------------------------------------
# Kernel 3: 2x2 max pool, stride 2 — lane-dense (last dim = Wo*C), M-tiled,
#   bf16 in / bf16 out so fc1 reads half the bytes.
# ---------------------------------------------------------------------------
def _max4_kernel(a_ref, b_ref, c_ref, d_ref, o_ref):
    m = jnp.maximum(jnp.maximum(a_ref[...], b_ref[...]),
                    jnp.maximum(c_ref[...], d_ref[...]))
    o_ref[...] = m.astype(o_ref.dtype)


def maxpool2x2(x, *, out_dtype=jnp.bfloat16, tm_target=256):
    N, H, W, C = x.shape
    Ho, Wo = H // 2, W // 2
    M, L = N * Ho, Wo * C                      # lane-dense: 12*64 = 768 lanes
    views = [x[:, i::2, j::2, :].reshape(M, L)
             for i in range(2) for j in range(2)]
    tm = _row_block(M, tm_target, align=16)    # bf16-friendly sublane packing
    out = pl.pallas_call(
        _max4_kernel,
        out_shape=jax.ShapeDtypeStruct((M, L), out_dtype),
        grid_spec=pltpu.PrefetchScalarGridSpec(
            num_scalar_prefetch=0,
            grid=(M // tm,),
            in_specs=[pl.BlockSpec((tm, L), lambda i: (i, 0))] * 4,
            out_specs=pl.BlockSpec((tm, L), lambda i: (i, 0)),
        ),
        compiler_params=pltpu.CompilerParams(
            dimension_semantics=("parallel",)),
    )(*views)
    return out.reshape(N, Ho, Wo, C)


# ---------------------------------------------------------------------------
# Kernel 4: fused fc1 (K-tiled, ReLU) + fc2 (tiny 128x10 dot in the finalize)
# ---------------------------------------------------------------------------
def _fc_fused_kernel(x_ref, w1_ref, b1_ref, w2_ref, b2_ref, o_ref, acc_ref):
    k = pl.program_id(1)

    @pl.when(k == 0)
    def _():
        acc_ref[...] = jnp.zeros_like(acc_ref)

    acc_ref[...] += jnp.dot(x_ref[...], w1_ref[...],
                            preferred_element_type=jnp.float32)

    @pl.when(k == pl.num_programs(1) - 1)
    def _():
        h = jnp.maximum(acc_ref[...] + b1_ref[...], 0.0)
        w2 = w2_ref[...]
        logits = jnp.dot(h.astype(w2.dtype), w2,
                         preferred_element_type=jnp.float32)
        o_ref[...] = logits + b2_ref[...]


def fc1_relu_fc2(x, w1, b1, w2, b2, *, tm_target=512, tk_target=1152):
    M, K = x.shape
    K2, Hdim = w1.shape
    H2, Nout = w2.shape
    assert K == K2 and Hdim == H2
    tm = _row_block(M, tm_target, align=16)
    tk = _k_block(K, tk_target)
    b1_2 = b1.reshape(1, Hdim).astype(jnp.float32)
    b2_2 = b2.reshape(1, Nout).astype(jnp.float32)
    return pl.pallas_call(
        _fc_fused_kernel,
        out_shape=jax.ShapeDtypeStruct((M, Nout), jnp.float32),
        grid_spec=pltpu.PrefetchScalarGridSpec(
            num_scalar_prefetch=0,
            grid=(M // tm, K // tk),
            in_specs=[
                pl.BlockSpec((tm, tk), lambda m, k: (m, k)),
                pl.BlockSpec((tk, Hdim), lambda m, k: (k, 0)),
                pl.BlockSpec((1, Hdim), lambda m, k: (0, 0)),
                pl.BlockSpec((Hdim, Nout), lambda m, k: (0, 0)),
                pl.BlockSpec((1, Nout), lambda m, k: (0, 0)),
            ],
            out_specs=pl.BlockSpec((tm, Nout), lambda m, k: (m, 0)),
            scratch_shapes=[pltpu.VMEM((tm, Hdim), jnp.float32)],
        ),
        compiler_params=pltpu.CompilerParams(
            dimension_semantics=("parallel", "arbitrary")),
    )(x, w1, b1_2, w2, b2_2)


# ---------------------------------------------------------------------------
# Parameter sampling (ProbConv2d / ProbLinear) + one-time layout/dtype transforms
# ---------------------------------------------------------------------------
def init_prob_layer(key, w_shape, b_shape, fan_in, rho_prior):
    """mu ~ trunc_normal(0, sigma, +-2*sigma), bias mu = 0,
    sampled weight = mu + softplus(rho_prior) * eps."""
    k1, k2, k3 = jax.random.split(key, 3)
    sigma_w = 1.0 / math.sqrt(fan_in)
    w_mu = sigma_w * jax.random.truncated_normal(k1, -2.0, 2.0, w_shape,
                                                 jnp.float32)
    b_mu = jnp.zeros(b_shape, jnp.float32)
    sigma = math.log1p(math.exp(rho_prior))        # softplus(rho_prior)
    w = w_mu + sigma * jax.random.normal(k2, w_shape, jnp.float32)
    b = b_mu + sigma * jax.random.normal(k3, b_shape, jnp.float32)
    return w, b


def make_params(key, width=1, sigma_prior=0.03):
    rho_prior = math.log(math.exp(sigma_prior) - 1.0)
    k1, k2, k3, k4 = jax.random.split(key, 4)
    c1, c2 = 32 * width, 64 * width
    feat = 9216 * width
    w1, b1 = init_prob_layer(k1, (c1, 1, 3, 3), (c1,), 1 * 9, rho_prior)
    w2, b2 = init_prob_layer(k2, (c2, c1, 3, 3), (c2,), c1 * 9, rho_prior)
    wfc1, bfc1 = init_prob_layer(k3, (128, feat), (128,), feat, rho_prior)
    wfc2, bfc2 = init_prob_layer(k4, (10, 128), (10,), 128, rho_prior)

    # One-time layout / dtype transforms (kept out of the jitted forward):
    # conv taps: (Cout, Cin, 3, 3) -> (tap = di*3+dj, Cin, Cout)
    w1_mat = jnp.transpose(w1, (2, 3, 1, 0)).reshape(9, c1)            # Cin = 1
    w2_taps = (jnp.transpose(w2, (2, 3, 1, 0))
                  .reshape(9, c1, c2).astype(jnp.bfloat16))
    # fc1: torch flattens pooled activations in (C, H, W) order; our activation
    # is flattened (H, W, C) -> permute the weight rows once here.
    hw = int(math.isqrt(feat // c2))                                   # = 12
    wfc1_t = (wfc1.reshape(128, c2, hw, hw)
                   .transpose(2, 3, 1, 0)
                   .reshape(feat, 128)
                   .astype(jnp.bfloat16))
    wfc2_t = jnp.transpose(wfc2, (1, 0)).astype(jnp.bfloat16)          # (128, 10)
    return dict(w1=w1_mat, b1=b1, w2=w2_taps, b2=b2,
                wfc1=wfc1_t, bfc1=bfc1, wfc2=wfc2_t, bfc2=bfc2)


# ---------------------------------------------------------------------------
# Forward pass
# ---------------------------------------------------------------------------
def prob_cnnet4l_forward(params, x_nchw):
    """x_nchw: (N, 1, 28, 28) float32 -> logits (N, 10) float32."""
    N = x_nchw.shape[0]
    x = x_nchw[:, 0, :, :]                                    # (N, 28, 28), Cin=1
    H, W = x.shape[1], x.shape[2]
    Ho1, Wo1 = H - 2, W - 2

    # conv1 + ReLU:  K = 1*3*3 = 9 is tiny, so the 9-tap gather stays in XLA
    # (a few KB/sample) and the matmul+bias+ReLU runs in a Pallas kernel.
    taps = [x[:, di:di + Ho1, dj:dj + Wo1]
            for di in range(3) for dj in range(3)]
    p1 = jnp.stack(taps, axis=-1).reshape(N * Ho1 * Wo1, 9)
    h1 = matmul_bias_act(p1, params["w1"], params["b1"], relu=True)
    h1 = h1.reshape(N, Ho1, Wo1, params["w1"].shape[1])       # (N, 26, 26, 32) f32

    # conv2 + ReLU: im2col fused inside the kernel (no HBM patch tensor),
    # bf16 output halves the conv2 -> pool round trip.
    h2 = conv3x3_bias_relu(h1, params["w2"], params["b2"])    # (N, 24, 24, 64) bf16

    # 2x2 max pool (lane-dense kernel), bf16 output feeds fc1.
    p = maxpool2x2(h2)                                        # (N, 12, 12, 64) bf16
    xf = p.reshape(N, -1)                                     # (N, 9216), (h,w,c)

    # fc1 + ReLU + fc2 fused (wfc1 rows pre-permuted to (h,w,c) order at init).
    return fc1_relu_fc2(xf, params["wfc1"], params["bfc1"],
                        params["wfc2"], params["bfc2"])       # (N, 10) f32


if __name__ == "__main__":
    key = jax.random.PRNGKey(0)
    kx, kp = jax.random.split(key)
    params = make_params(kp, width=1, sigma_prior=0.03)

    # MNIST-shaped input (the module hardcodes 1x28x28 via fc1 = 9216 features)
    x = jax.random.normal(kx, (2, 1, 28, 28), jnp.float32)

    fwd = jax.jit(prob_cnnet4l_forward)
    out = jax.block_until_ready(fwd(params, x))
    assert out.shape == (2, 10) and out.dtype == jnp.float32
    assert bool(jnp.all(jnp.isfinite(out)))
    print("KERNEL_OK")
</pallas_src>

<mosaic_0001>
module attributes {stable_mosaic.version = 11 : i64} {
  func.func @_mm_bias_act_kernel(%arg0: i32, %arg1: memref<104x9xf32, #tpu.memory_space<vmem>>, %arg2: memref<9x32xf32, #tpu.memory_space<vmem>>, %arg3: memref<1x32xf32, #tpu.memory_space<vmem>>, %arg4: memref<104x32xf32, #tpu.memory_space<vmem>>) attributes {dimension_semantics = [#tpu.dimension_semantics<parallel>], iteration_bounds = array<i64: 13>, scalar_prefetch = 0 : i64, scratch_operands = 0 : i64, tpu.core_type = #tpu.core_type<tc>, window_params = [{transform_indices = @transform_0, window_bounds = array<i64: 104, 9>}, {pipeline_mode = #tpu.pipeline_mode<synchronous>, transform_indices = @transform_1, window_bounds = array<i64: 9, 32>}, {pipeline_mode = #tpu.pipeline_mode<synchronous>, transform_indices = @transform_2, window_bounds = array<i64: 1, 32>}, {transform_indices = @transform_3, window_bounds = array<i64: 104, 32>}]} {
    %c0 = arith.constant 0 : index
    %c0_0 = arith.constant 0 : index
    %0 = vector.load %arg1[%c0, %c0_0] : memref<104x9xf32, #tpu.memory_space<vmem>>, vector<104x9xf32>
    %c0_1 = arith.constant 0 : index
    %c0_2 = arith.constant 0 : index
    %1 = vector.load %arg2[%c0_1, %c0_2] : memref<9x32xf32, #tpu.memory_space<vmem>>, vector<9x32xf32>
    %cst = arith.constant dense<0.000000e+00> : vector<104x32xf32>
    %2 = tpu.matmul %0, %1, %cst {dimension_numbers = #tpu.dot_dimension_numbers<[1], [0], [0], [1], [0, 0, 1, 1], [], []>} : vector<104x9xf32>, vector<9x32xf32>, vector<104x32xf32> -> vector<104x32xf32>
    %c0_3 = arith.constant 0 : index
    %c0_4 = arith.constant 0 : index
    %3 = vector.load %arg3[%c0_3, %c0_4] : memref<1x32xf32, #tpu.memory_space<vmem>>, vector<1x32xf32>
    %4 = vector.broadcast %3 : vector<1x32xf32> to vector<104x32xf32>
    %5 = arith.addf %2, %4 : vector<104x32xf32>
    %cst_5 = arith.constant 0.000000e+00 : f32
    %6 = vector.broadcast %cst_5 : f32 to vector<104x32xf32>
    %7 = arith.maximumf %5, %6 : vector<104x32xf32>
    %c0_6 = arith.constant 0 : index
    %c0_7 = arith.constant 0 : index
    %8 = vector.load %arg4[%c0_6, %c0_7] : memref<104x32xf32, #tpu.memory_space<vmem>>, vector<104x32xf32>
    tpu.vector_store %arg4[%c0_6, %c0_7], %7 {strides = array<i32>} : memref<104x32xf32, #tpu.memory_space<vmem>>, vector<104x32xf32>,
    return
  }
  func.func @transform_0(%arg0: i32) -> (i32, i32) {
    %c0_i32 = arith.constant 0 : i32
    %c0_i32_0 = arith.constant 0 : i32
    return %arg0, %c0_i32 : i32, i32
  }
  func.func @transform_1(%arg0: i32) -> (i32, i32) {
    %c0_i32 = arith.constant 0 : i32
    %c0_i32_0 = arith.constant 0 : i32
    %c0_i32_1 = arith.constant 0 : i32
    return %c0_i32, %c0_i32_0 : i32, i32
  }
  func.func @transform_2(%arg0: i32) -> (i32, i32) {
    %c0_i32 = arith.constant 0 : i32
    %c0_i32_0 = arith.constant 0 : i32
    %c0_i32_1 = arith.constant 0 : i32
    return %c0_i32, %c0_i32_0 : i32, i32
  }
  func.func @transform_3(%arg0: i32) -> (i32, i32) {
    %c0_i32 = arith.constant 0 : i32
    %c0_i32_0 = arith.constant 0 : i32
    return %arg0, %c0_i32 : i32, i32
  }
}

module attributes {stable_mosaic.version = 11 : i64} {
  func.func @_conv3x3_kernel(%arg0: i32, %arg1: memref<2x26x26x32xf32, #tpu.memory_space<vmem>>, %arg2: memref<9x32x64xbf16, #tpu.memory_space<vmem>>, %arg3: memref<1x64xf32, #tpu.memory_space<vmem>>, %arg4: memref<1152x64xbf16, #tpu.memory_space<vmem>>) attributes {dimension_semantics = [#tpu.dimension_semantics<parallel>], iteration_bounds = array<i64: 1>, scalar_prefetch = 0 : i64, scratch_operands = 0 : i64, tpu.core_type = #tpu.core_type<tc>, window_params = [{transform_indices = @transform_0, window_bounds = array<i64: 2, 26, 26, 32>}, {pipeline_mode = #tpu.pipeline_mode<synchronous>, transform_indices = @transform_1, window_bounds = array<i64: 9, 32, 64>}, {pipeline_mode = #tpu.pipeline_mode<synchronous>, transform_indices = @transform_2, window_bounds = array<i64: 1, 64>}, {transform_indices = @transform_3, window_bounds = array<i64: 1152, 64>}]} {
    %c0 = arith.constant 0 : index
    %c0_0 = arith.constant 0 : index
    %c0_1 = arith.constant 0 : index
    %c0_2 = arith.constant 0 : index
    %0 = vector.load %arg1[%c0, %c0_0, %c0_1, %c0_2] : memref<2x26x26x32xf32, #tpu.memory_space<vmem>>, vector<2x24x24x32xf32>
    %1 = vector.shape_cast %0 : vector<2x24x24x32xf32> to vector<1152x32xf32>
    %c0_3 = arith.constant 0 : index
    %c0_4 = arith.constant 0 : index
    %c0_5 = arith.constant 0 : index
    %2 = vector.load %arg2[%c0_3, %c0_4, %c0_5] : memref<9x32x64xbf16, #tpu.memory_space<vmem>>, vector<1x32x64xbf16>
    %3 = vector.shape_cast %2 : vector<1x32x64xbf16> to vector<32x64xbf16>
    %4 = arith.truncf %1 : vector<1152x32xf32> to vector<1152x32xbf16>
    %cst = arith.constant dense<0.000000e+00> : vector<1152x64xf32>
    %5 = tpu.matmul %4, %3, %cst {dimension_numbers = #tpu.dot_dimension_numbers<[1], [0], [0], [1], [0, 0, 1, 1], [], []>} : vector<1152x32xbf16>, vector<32x64xbf16>, vector<1152x64xf32> -> vector<1152x64xf32>
    %c0_6 = arith.constant 0 : index
    %c0_7 = arith.constant 0 : index
    %c1 = arith.constant 1 : index
    %c0_8 = arith.constant 0 : index
    %6 = vector.load %arg1[%c0_6, %c0_7, %c1, %c0_8] : memref<2x26x26x32xf32, #tpu.memory_space<vmem>>, vector<2x24x24x32xf32>
    %7 = vector.shape_cast %6 : vector<2x24x24x32xf32> to vector<1152x32xf32>
    %c1_9 = arith.constant 1 : index
    %c0_10 = arith.constant 0 : index
    %c0_11 = arith.constant 0 : index
    %8 = vector.load %arg2[%c1_9, %c0_10, %c0_11] : memref<9x32x64xbf16, #tpu.memory_space<vmem>>, vector<1x32x64xbf16>
    %9 = vector.shape_cast %8 : vector<1x32x64xbf16> to vector<32x64xbf16>
    %10 = arith.truncf %7 : vector<1152x32xf32> to vector<1152x32xbf16>
    %cst_12 = arith.constant dense<0.000000e+00> : vector<1152x64xf32>
    %11 = tpu.matmul %10, %9, %cst_12 {dimension_numbers = #tpu.dot_dimension_numbers<[1], [0], [0], [1], [0, 0, 1, 1], [], []>} : vector<1152x32xbf16>, vector<32x64xbf16>, vector<1152x64xf32> -> vector<1152x64xf32>
    %12 = arith.addf %5, %11 : vector<1152x64xf32>
    %c0_13 = arith.constant 0 : index
    %c0_14 = arith.constant 0 : index
    %c2 = arith.constant 2 : index
    %c0_15 = arith.constant 0 : index
    %13 = vector.load %arg1[%c0_13, %c0_14, %c2, %c0_15] : memref<2x26x26x32xf32, #tpu.memory_space<vmem>>, vector<2x24x24x32xf32>
    %14 = vector.shape_cast %13 : vector<2x24x24x32xf32> to vector<1152x32xf32>
    %c2_16 = arith.constant 2 : index
    %c0_17 = arith.constant 0 : index
    %c0_18 = arith.constant 0 : index
    %15 = vector.load %arg2[%c2_16, %c0_17, %c0_18] : memref<9x32x64xbf16, #tpu.memory_space<vmem>>, vector<1x32x64xbf16>
    %16 = vector.shape_cast %15 : vector<1x32x64xbf16> to vector<32x64xbf16>
    %17 = arith.truncf %14 : vector<1152x32xf32> to vector<1152x32xbf16>
    %cst_19 = arith.constant dense<0.000000e+00> : vector<1152x64xf32>
    %18 = tpu.matmul %17, %16, %cst_19 {dimension_numbers = #tpu.dot_dimension_numbers<[1], [0], [0], [1], [0, 0, 1, 1], [], []>} : vector<1152x32xbf16>, vector<32x64xbf16>, vector<1152x64xf32> -> vector<1152x64xf32>
    %19 = arith.addf %12, %18 : vector<1152x64xf32>
    %c0_20 = arith.constant 0 : index
    %c1_21 = arith.constant 1 : index
    %c0_22 = arith.constant 0 : index
    %c0_23 = arith.constant 0 : index
    %20 = vector.load %arg1[%c0_20, %c1_21, %c0_22, %c0_23] : memref<2x26x26x32xf32, #tpu.memory_space<vmem>>, vector<2x24x24x32xf32>
    %21 = vector.shape_cast %20 : vector<2x24x24x32xf32> to vector<1152x32xf32>
    %c3 = arith.constant 3 : index
    %c0_24 = arith.constant 0 : index
    %c0_25 = arith.constant 0 : index
    %22 = vector.load %arg2[%c3, %c0_24, %c0_25] : memref<9x32x64xbf16, #tpu.memory_space<vmem>>, vector<1x32x64xbf16>
    %23 = vector.shape_cast %22 : vector<1x32x64xbf16> to vector<32x64xbf16>
    %24 = arith.truncf %21 : vector<1152x32xf32> to vector<1152x32xbf16>
    %cst_26 = arith.constant dense<0.000000e+00> : vector<1152x64xf32>
    %25 = tpu.matmul %24, %23, %cst_26 {dimension_numbers = #tpu.dot_dimension_numbers<[1], [0], [0], [1], [0, 0, 1, 1], [], []>} : vector<1152x32xbf16>, vector<32x64xbf16>, vector<1152x64xf32> -> vector<1152x64xf32>
    %26 = arith.addf %19, %25 : vector<1152x64xf32>
    %c0_27 = arith.constant 0 : index
    %c1_28 = arith.constant 1 : index
    %c1_29 = arith.constant 1 : index
    %c0_30 = arith.constant 0 : index
    %27 = vector.load %arg1[%c0_27, %c1_28, %c1_29, %c0_30] : memref<2x26x26x32xf32, #tpu.memory_space<vmem>>, vector<2x24x24x32xf32>
    %28 = vector.shape_cast %27 : vector<2x24x24x32xf32> to vector<1152x32xf32>
    %c4 = arith.constant 4 : index
    %c0_31 = arith.constant 0 : index
    %c0_32 = arith.constant 0 : index
    %29 = vector.load %arg2[%c4, %c0_31, %c0_32] : memref<9x32x64xbf16, #tpu.memory_space<vmem>>, vector<1x32x64xbf16>
    %30 = vector.shape_cast %29 : vector<1x32x64xbf16> to vector<32x64xbf16>
    %31 = arith.truncf %28 : vector<1152x32xf32> to vector<1152x32xbf16>
    %cst_33 = arith.constant dense<0.000000e+00> : vector<1152x64xf32>
    %32 = tpu.matmul %31, %30, %cst_33 {dimension_numbers = #tpu.dot_dimension_numbers<[1], [0], [0], [1], [0, 0, 1, 1], [], []>} : vector<1152x32xbf16>, vector<32x64xbf16>, vector<1152x64xf32> -> vector<1152x64xf32>
    %33 = arith.addf %26, %32 : vector<1152x64xf32>
    %c0_34 = arith.constant 0 : index
    %c1_35 = arith.constant 1 : index
    %c2_36 = arith.constant 2 : index
    %c0_37 = arith.constant 0 : index
    %34 = vector.load %arg1[%c0_34, %c1_35, %c2_36, %c0_37] : memref<2x26x26x32xf32, #tpu.memory_space<vmem>>, vector<2x24x24x32xf32>
    %35 = vector.shape_cast %34 : vector<2x24x24x32xf32> to vector<1152x32xf32>
    %c5 = arith.constant 5 : index
    %c0_38 = arith.constant 0 : index
    %c0_39 = arith.constant 0 : index
    %36 = vector.load %arg2[%c5, %c0_38, %c0_39] : memref<9x32x64xbf16, #tpu.memory_space<vmem>>, vector<1x32x64xbf16>
    %37 = vector.shape_cast %36 : vector<1x32x64xbf16> to vector<32x64xbf16>
    %38 = arith.truncf %35 : vector<1152x32xf32> to vector<1152x32xbf16>
    %cst_40 = arith.constant dense<0.000000e+00> : vector<1152x64xf32>
    %39 = tpu.matmul %38, %37, %cst_40 {dimension_numbers = #tpu.dot_dimension_numbers<[1], [0], [0], [1], [0, 0, 1, 1], [], []>} : vector<1152x32xbf16>, vector<32x64xbf16>, vector<1152x64xf32> -> vector<1152x64xf32>
    %40 = arith.addf %33, %39 : vector<1152x64xf32>
    %c0_41 = arith.constant 0 : index
    %c2_42 = arith.constant 2 : index
    %c0_43 = arith.constant 0 : index
    %c0_44 = arith.constant 0 : index
    %41 = vector.load %arg1[%c0_41, %c2_42, %c0_43, %c0_44] : memref<2x26x26x32xf32, #tpu.memory_space<vmem>>, vector<2x24x24x32xf32>
    %42 = vector.shape_cast %41 : vector<2x24x24x32xf32> to vector<1152x32xf32>
    %c6 = arith.constant 6 : index
    %c0_45 = arith.constant 0 : index
    %c0_46 = arith.constant 0 : index
    %43 = vector.load %arg2[%c6, %c0_45, %c0_46] : memref<9x32x64xbf16, #tpu.memory_space<vmem>>, vector<1x32x64xbf16>
    %44 = vector.shape_cast %43 : vector<1x32x64xbf16> to vector<32x64xbf16>
    %45 = arith.truncf %42 : vector<1152x32xf32> to vector<1152x32xbf16>
    %cst_47 = arith.constant dense<0.000000e+00> : vector<1152x64xf32>
    %46 = tpu.matmul %45, %44, %cst_47 {dimension_numbers = #tpu.dot_dimension_numbers<[1], [0], [0], [1], [0, 0, 1, 1], [], []>} : vector<1152x32xbf16>, vector<32x64xbf16>, vector<1152x64xf32> -> vector<1152x64xf32>
    %47 = arith.addf %40, %46 : vector<1152x64xf32>
    %c0_48 = arith.constant 0 : index
    %c2_49 = arith.constant 2 : index
    %c1_50 = arith.constant 1 : index
    %c0_51 = arith.constant 0 : index
    %48 = vector.load %arg1[%c0_48, %c2_49, %c1_50, %c0_51] : memref<2x26x26x32xf32, #tpu.memory_space<vmem>>, vector<2x24x24x32xf32>
    %49 = vector.shape_cast %48 : vector<2x24x24x32xf32> to vector<1152x32xf32>
    %c7 = arith.constant 7 : index
    %c0_52 = arith.constant 0 : index
    %c0_53 = arith.constant 0 : index
    %50 = vector.load %arg2[%c7, %c0_52, %c0_53] : memref<9x32x64xbf16, #tpu.memory_space<vmem>>, vector<1x32x64xbf16>
    %51 = vector.shape_cast %50 : vector<1x32x64xbf16> to vector<32x64xbf16>
    %52 = arith.truncf %49 : vector<1152x32xf32> to vector<1152x32xbf16>
    %cst_54 = arith.constant dense<0.000000e+00> : vector<1152x64xf32>
    %53 = tpu.matmul %52, %51, %cst_54 {dimension_numbers = #tpu.dot_dimension_numbers<[1], [0], [0], [1], [0, 0, 1, 1], [], []>} : vector<1152x32xbf16>, vector<32x64xbf16>, vector<1152x64xf32> -> vector<1152x64xf32>
    %54 = arith.addf %47, %53 : vector<1152x64xf32>
    %c0_55 = arith.constant 0 : index
    %c2_56 = arith.constant 2 : index
    %c2_57 = arith.constant 2 : index
    %c0_58 = arith.constant 0 : index
    %55 = vector.load %arg1[%c0_55, %c2_56, %c2_57, %c0_58] : memref<2x26x26x32xf32, #tpu.memory_space<vmem>>, vector<2x24x24x32xf32>
    %56 = vector.shape_cast %55 : vector<2x24x24x32xf32> to vector<1152x32xf32>
    %c8 = arith.constant 8 : index
    %c0_59 = arith.constant 0 : index
    %c0_60 = arith.constant 0 : index
    %57 = vector.load %arg2[%c8, %c0_59, %c0_60] : memref<9x32x64xbf16, #tpu.memory_space<vmem>>, vector<1x32x64xbf16>
    %58 = vector.shape_cast %57 : vector<1x32x64xbf16> to vector<32x64xbf16>
    %59 = arith.truncf %56 : vector<1152x32xf32> to vector<1152x32xbf16>
    %cst_61 = arith.constant dense<0.000000e+00> : vector<1152x64xf32>
    %60 = tpu.matmul %59, %58, %cst_61 {dimension_numbers = #tpu.dot_dimension_numbers<[1], [0], [0], [1], [0, 0, 1, 1], [], []>} : vector<1152x32xbf16>, vector<32x64xbf16>, vector<1152x64xf32> -> vector<1152x64xf32>
    %61 = arith.addf %54, %60 : vector<1152x64xf32>
    %c0_62 = arith.constant 0 : index
    %c0_63 = arith.constant 0 : index
    %62 = vector.load %arg3[%c0_62, %c0_63] : memref<1x64xf32, #tpu.memory_space<vmem>>, vector<1x64xf32>
    %63 = vector.broadcast %62 : vector<1x64xf32> to vector<1152x64xf32>
    %64 = arith.addf %61, %63 : vector<1152x64xf32>
    %cst_64 = arith.constant 0.000000e+00 : f32
    %65 = vector.broadcast %cst_64 : f32 to vector<1152x64xf32>
    %66 = arith.maximumf %64, %65 : vector<1152x64xf32>
    %67 = arith.truncf %66 : vector<1152x64xf32> to vector<1152x64xbf16>
    %c0_65 = arith.constant 0 : index
    %c0_66 = arith.constant 0 : index
    %68 = vector.load %arg4[%c0_65, %c0_66] : memref<1152x64xbf16, #tpu.memory_space<vmem>>, vector<1152x64xbf16>
    tpu.vector_store %arg4[%c0_65, %c0_66], %67 {strides = array<i32>} : memref<1152x64xbf16, #tpu.memory_space<vmem>>, vector<1152x64xbf16>,
    return
  }
  func.func @transform_0(%arg0: i32) -> (i32, i32, i32, i32) {
    %c0_i32 = arith.constant 0 : i32
    %c0_i32_0 = arith.constant 0 : i32
    %c0_i32_1 = arith.constant 0 : i32
    %c0_i32_2 = arith.constant 0 : i32
    return %arg0, %c0_i32, %c0_i32_0, %c0_i32_1 : i32, i32, i32, i32
  }
  func.func @transform_1(%arg0: i32) -> (i32, i32, i32) {
    %c0_i32 = arith.constant 0 : i32
    %c0_i32_0 = arith.constant 0 : i32
    %c0_i32_1 = arith.constant 0 : i32
    %c0_i32_2 = arith.constant 0 : i32
    return %c0_i32, %c0_i32_0, %c0_i32_1 : i32, i32, i32
  }
  func.func @transform_2(%arg0: i32) -> (i32, i32) {
    %c0_i32 = arith.constant 0 : i32
    %c0_i32_0 = arith.constant 0 : i32
    %c0_i32_1 = arith.constant 0 : i32
    return %c0_i32, %c0_i32_0 : i32, i32
  }
  func.func @transform_3(%arg0: i32) -> (i32, i32) {
    %c0_i32 = arith.constant 0 : i32
    %c0_i32_0 = arith.constant 0 : i32
    return %arg0, %c0_i32 : i32, i32
  }
}

module attributes {stable_mosaic.version = 11 : i64} {
  func.func @_max4_kernel(%arg0: i32, %arg1: memref<24x768xbf16, #tpu.memory_space<vmem>>, %arg2: memref<24x768xbf16, #tpu.memory_space<vmem>>, %arg3: memref<24x768xbf16, #tpu.memory_space<vmem>>, %arg4: memref<24x768xbf16, #tpu.memory_space<vmem>>, %arg5: memref<24x768xbf16, #tpu.memory_space<vmem>>) attributes {dimension_semantics = [#tpu.dimension_semantics<parallel>], iteration_bounds = array<i64: 1>, scalar_prefetch = 0 : i64, scratch_operands = 0 : i64, tpu.core_type = #tpu.core_type<tc>, window_params = [{transform_indices = @transform_0, window_bounds = array<i64: 24, 768>}, {transform_indices = @transform_1, window_bounds = array<i64: 24, 768>}, {transform_indices = @transform_2, window_bounds = array<i64: 24, 768>}, {transform_indices = @transform_3, window_bounds = array<i64: 24, 768>}, {transform_indices = @transform_4, window_bounds = array<i64: 24, 768>}]} {
    %c0 = arith.constant 0 : index
    %c0_0 = arith.constant 0 : index
    %0 = vector.load %arg1[%c0, %c0_0] : memref<24x768xbf16, #tpu.memory_space<vmem>>, vector<24x768xbf16>
    %c0_1 = arith.constant 0 : index
    %c0_2 = arith.constant 0 : index
    %1 = vector.load %arg2[%c0_1, %c0_2] : memref<24x768xbf16, #tpu.memory_space<vmem>>, vector<24x768xbf16>
    %2 = arith.maximumf %0, %1 : vector<24x768xbf16>
    %c0_3 = arith.constant 0 : index
    %c0_4 = arith.constant 0 : index
    %3 = vector.load %arg3[%c0_3, %c0_4] : memref<24x768xbf16, #tpu.memory_space<vmem>>, vector<24x768xbf16>
    %c0_5 = arith.constant 0 : index
    %c0_6 = arith.constant 0 : index
    %4 = vector.load %arg4[%c0_5, %c0_6] : memref<24x768xbf16, #tpu.memory_space<vmem>>, vector<24x768xbf16>
    %5 = arith.maximumf %3, %4 : vector<24x768xbf16>
    %6 = arith.maximumf %2, %5 : vector<24x768xbf16>
    %c0_7 = arith.constant 0 : index
    %c0_8 = arith.constant 0 : index
    %7 = vector.load %arg5[%c0_7, %c0_8] : memref<24x768xbf16, #tpu.memory_space<vmem>>, vector<24x768xbf16>
    tpu.vector_store %arg5[%c0_7, %c0_8], %6 {strides = array<i32>} : memref<24x768xbf16, #tpu.memory_space<vmem>>, vector<24x768xbf16>,
    return
  }
  func.func @transform_0(%arg0: i32) -> (i32, i32) {
    %c0_i32 = arith.constant 0 : i32
    %c0_i32_0 = arith.constant 0 : i32
    return %arg0, %c0_i32 : i32, i32
  }
  func.func @transform_1(%arg0: i32) -> (i32, i32) {
    %c0_i32 = arith.constant 0 : i32
    %c0_i32_0 = arith.constant 0 : i32
    return %arg0, %c0_i32 : i32, i32
  }
  func.func @transform_2(%arg0: i32) -> (i32, i32) {
    %c0_i32 = arith.constant 0 : i32
    %c0_i32_0 = arith.constant 0 : i32
    return %arg0, %c0_i32 : i32, i32
  }
  func.func @transform_3(%arg0: i32) -> (i32, i32) {
    %c0_i32 = arith.constant 0 : i32
    %c0_i32_0 = arith.constant 0 : i32
    return %arg0, %c0_i32 : i32, i32
  }
  func.func @transform_4(%arg0: i32) -> (i32, i32) {
    %c0_i32 = arith.constant 0 : i32
    %c0_i32_0 = arith.constant 0 : i32
    return %arg0, %c0_i32 : i32, i32
  }
}

module attributes {stable_mosaic.version = 11 : i64} {
  func.func @_fc_fused_kernel(%arg0: i32, %arg1: i32, %arg2: memref<2x1152xbf16, #tpu.memory_space<vmem>>, %arg3: memref<1152x128xbf16, #tpu.memory_space<vmem>>, %arg4: memref<1x128xf32, #tpu.memory_space<vmem>>, %arg5: memref<128x10xbf16, #tpu.memory_space<vmem>>, %arg6: memref<1x10xf32, #tpu.memory_space<vmem>>, %arg7: memref<2x10xf32, #tpu.memory_space<vmem>>, %arg8: memref<2x128xf32, #tpu.memory_space<vmem>>) attributes {dimension_semantics = [#tpu.dimension_semantics<parallel>, #tpu.dimension_semantics<arbitrary>], iteration_bounds = array<i64: 1, 8>, scalar_prefetch = 0 : i64, scratch_operands = 1 : i64, tpu.core_type = #tpu.core_type<tc>, window_params = [{transform_indices = @transform_0, window_bounds = array<i64: 2, 1152>}, {transform_indices = @transform_1, window_bounds = array<i64: 1152, 128>}, {pipeline_mode = #tpu.pipeline_mode<synchronous>, transform_indices = @transform_2, window_bounds = array<i64: 1, 128>}, {pipeline_mode = #tpu.pipeline_mode<synchronous>, transform_indices = @transform_3, window_bounds = array<i64: 128, 10>}, {pipeline_mode = #tpu.pipeline_mode<synchronous>, transform_indices = @transform_4, window_bounds = array<i64: 1, 10>}, {transform_indices = @transform_5, window_bounds = array<i64: 2, 10>}]} {
    %c0_i32 = arith.constant 0 : i32
    %0 = arith.cmpi eq, %arg1, %c0_i32 : i32
    %1 = arith.extui %0 : i1 to i32
    %c0_i32_0 = arith.constant 0 : i32
    %2 = arith.cmpi ne, %1, %c0_i32_0 : i32
    scf.if %2 {
      %cst_9 = arith.constant 0.000000e+00 : f32
      %12 = vector.broadcast %cst_9 : f32 to vector<2x128xf32>
      %c0_10 = arith.constant 0 : index
      %c0_11 = arith.constant 0 : index
      %13 = vector.load %arg8[%c0_10, %c0_11] : memref<2x128xf32, #tpu.memory_space<vmem>>, vector<2x128xf32>
      tpu.vector_store %arg8[%c0_10, %c0_11], %12 {strides = array<i32>} : memref<2x128xf32, #tpu.memory_space<vmem>>, vector<2x128xf32>,
    } else {
    }
    %c0 = arith.constant 0 : index
    %c0_1 = arith.constant 0 : index
    %3 = vector.load %arg8[%c0, %c0_1] : memref<2x128xf32, #tpu.memory_space<vmem>>, vector<2x128xf32>
    %c0_2 = arith.constant 0 : index
    %c0_3 = arith.constant 0 : index
    %4 = vector.load %arg2[%c0_2, %c0_3] : memref<2x1152xbf16, #tpu.memory_space<vmem>>, vector<2x1152xbf16>
    %c0_4 = arith.constant 0 : index
    %c0_5 = arith.constant 0 : index
    %5 = vector.load %arg3[%c0_4, %c0_5] : memref<1152x128xbf16, #tpu.memory_space<vmem>>, vector<1152x128xbf16>
    %cst = arith.constant dense<0.000000e+00> : vector<2x128xf32>
    %6 = tpu.matmul %4, %5, %cst {dimension_numbers = #tpu.dot_dimension_numbers<[1], [0], [0], [1], [0, 0, 1, 1], [], []>} : vector<2x1152xbf16>, vector<1152x128xbf16>, vector<2x128xf32> -> vector<2x128xf32>
    %7 = arith.addf %3, %6 : vector<2x128xf32>
    %c0_6 = arith.constant 0 : index
    %c0_7 = arith.constant 0 : index
    %8 = vector.load %arg8[%c0_6, %c0_7] : memref<2x128xf32, #tpu.memory_space<vmem>>, vector<2x128xf32>
    tpu.vector_store %arg8[%c0_6, %c0_7], %7 {strides = array<i32>} : memref<2x128xf32, #tpu.memory_space<vmem>>, vector<2x128xf32>,
    %c7_i32 = arith.constant 7 : i32
    %9 = arith.cmpi eq, %arg1, %c7_i32 : i32
    %10 = arith.extui %9 : i1 to i32
    %c0_i32_8 = arith.constant 0 : i32
    %11 = arith.cmpi ne, %10, %c0_i32_8 : i32
    scf.if %11 {
      %c0_9 = arith.constant 0 : index
      %c0_10 = arith.constant 0 : index
      %12 = vector.load %arg8[%c0_9, %c0_10] : memref<2x128xf32, #tpu.memory_space<vmem>>, vector<2x128xf32>
      %c0_11 = arith.constant 0 : index
      %c0_12 = arith.constant 0 : index
      %13 = vector.load %arg4[%c0_11, %c0_12] : memref<1x128xf32, #tpu.memory_space<vmem>>, vector<1x128xf32>
      %14 = vector.broadcast %13 : vector<1x128xf32> to vector<2x128xf32>
      %15 = arith.addf %12, %14 : vector<2x128xf32>
      %cst_13 = arith.constant 0.000000e+00 : f32
      %16 = vector.broadcast %cst_13 : f32 to vector<2x128xf32>
      %17 = arith.maximumf %15, %16 : vector<2x128xf32>
      %c0_14 = arith.constant 0 : index
      %c0_15 = arith.constant 0 : index
      %18 = vector.load %arg5[%c0_14, %c0_15] : memref<128x10xbf16, #tpu.memory_space<vmem>>, vector<128x10xbf16>
      %19 = arith.truncf %17 : vector<2x128xf32> to vector<2x128xbf16>
      %cst_16 = arith.constant dense<0.000000e+00> : vector<2x10xf32>
      %20 = tpu.matmul %19, %18, %cst_16 {dimension_numbers = #tpu.dot_dimension_numbers<[1], [0], [0], [1], [0, 0, 1, 1], [], []>} : vector<2x128xbf16>, vector<128x10xbf16>, vector<2x10xf32> -> vector<2x10xf32>
      %c0_17 = arith.constant 0 : index
      %c0_18 = arith.constant 0 : index
      %21 = vector.load %arg6[%c0_17, %c0_18] : memref<1x10xf32, #tpu.memory_space<vmem>>, vector<1x10xf32>
      %22 = vector.broadcast %21 : vector<1x10xf32> to vector<2x10xf32>
      %23 = arith.addf %20, %22 : vector<2x10xf32>
      %c0_19 = arith.constant 0 : index
      %c0_20 = arith.constant 0 : index
      %24 = vector.load %arg7[%c0_19, %c0_20] : memref<2x10xf32, #tpu.memory_space<vmem>>, vector<2x10xf32>
      tpu.vector_store %arg7[%c0_19, %c0_20], %23 {strides = array<i32>} : memref<2x10xf32, #tpu.memory_space<vmem>>, vector<2x10xf32>,
    } else {
    }
    return
  }
  func.func @transform_0(%arg0: i32, %arg1: i32) -> (i32, i32) {
    %c0_i32 = arith.constant 0 : i32
    return %arg0, %arg1 : i32, i32
  }
  func.func @transform_1(%arg0: i32, %arg1: i32) -> (i32, i32) {
    %c0_i32 = arith.constant 0 : i32
    %c0_i32_0 = arith.constant 0 : i32
    return %arg1, %c0_i32 : i32, i32
  }
  func.func @transform_2(%arg0: i32, %arg1: i32) -> (i32, i32) {
    %c0_i32 = arith.constant 0 : i32
    %c0_i32_0 = arith.constant 0 : i32
    %c0_i32_1 = arith.constant 0 : i32
    return %c0_i32, %c0_i32_0 : i32, i32
  }
  func.func @transform_3(%arg0: i32, %arg1: i32) -> (i32, i32) {
    %c0_i32 = arith.constant 0 : i32
    %c0_i32_0 = arith.constant 0 : i32
    %c0_i32_1 = arith.constant 0 : i32
    return %c0_i32, %c0_i32_0 : i32, i32
  }
  func.func @transform_4(%arg0: i32, %arg1: i32) -> (i32, i32) {
    %c0_i32 = arith.constant 0 : i32
    %c0_i32_0 = arith.constant 0 : i32
    %c0_i32_1 = arith.constant 0 : i32
    return %c0_i32, %c0_i32_0 : i32, i32
  }
  func.func @transform_5(%arg0: i32, %arg1: i32) -> (i32, i32) {
    %c0_i32 = arith.constant 0 : i32
    %c0_i32_0 = arith.constant 0 : i32
    return %arg0, %c0_i32 : i32, i32
  }
}

</mosaic_0001>

<bundles_post_ra>
// kernel: prob_cnnet4l_forward.4
= control target key start
LH: loop header
LB: loop body
LE: loop exit
PB: predicated region body
PF: predicated region fallthrough
CT: control target
= control target key end

     0   :  { %s585_s12 = smov 0   ;;  %s702_s0 = inlined_call_operand.vmem [shape: f32[1352,9], index: 0, kind: input, shape index: {}]   ;;  %s703_s1 = inlined_call_operand.vmem [shape: f32[9,32], index: 1, kind: input, shape index: {}]   ;;  %s704_s2 = inlined_call_operand.vmem [shape: f32[1,32], index: 2, kind: input, shape index: {}]   ;;  %s705_s3 = inlined_call_operand.vmem [shape: f32[1352,32], index: 3, kind: output, shape index: {}]  }
   0x1 LB: > { %s453_s13 = sadd.s32 4294967295, %s559_s12   ;;  %p457_p0 = scmp.ge.s32.totalorder %s559_s12, 1  ;;  %s559_s12 = sphi %s585_s12, %s13_s12  }
   0x2   : > { %p138_p1 = scmp.lt.s32.totalorder %s559_s12, 14 }
   0x4   : > { %p139_p2 = pnand %p457_p0, %p138_p1 }
   0x5   : > { %v187_v0 = vld [vmem:[%s703_s1] sm:$0xff] (!%p139_p2)  ;;  %v188_v1 = vld [vmem:[%s703_s1 + $0x8] sm:$0x1] (!%p139_p2)  ;;  %vm236_vm0 = vcmask (!%p139_p2), 1040384   ;;  %v561_v2 = vmov (!%p139_p2), 0.0|0.0   ;;  %vm562_vm1 = vmmov (!%p139_p2), 1  }
   0x6   : > { %142 = sbr.rel (%p139_p2) target bundleno = 258 (0x102), region = 32  ;;  %535 = vmatprep.subr.bf16.mxu0 (!%p139_p2), %v561_v2  ;;  %v536_v3 = vpack.c.bf16 (!%p139_p2), %v188_v1, %v187_v0  ;;  %vm537_vm2 = vmpackc.low (!%p139_p2), %vm236_vm0, %vm562_vm1  ;;  %539 = vmatprep.subr.bf16.mxu1 (!%p139_p2), %v561_v2  ;;  %vm563_vm3 = vmmov (!%p139_p2), 0   ;;  %v564_v4 = vmov (!%p139_p2), 0.0   ;;  %vm196_vm4 = vcmask (!%p139_p2), 72704   ;;  %v651_v18 = vld [vmem:[%s704_s2] ss:$0 sm:$0xff] (!%p139_p2) }
   0x7   : > { %s162_s18 = smul.u32 (!%p139_p2), 13, %s453_s13  ;;  %496 = vmatprep.mubr.msk.f32.mxu0 (!%p139_p2), %vm563_vm3, %v564_v4  ;;  %517 = vmatprep.mubr.msk.f32.mxu1 (!%p139_p2), %vm563_vm3, %v564_v4  ;;  %vm383_vm5 = vcmask (!%p139_p2), 261120  }
   0x8   : > { %538 = vmatpush3.bf16.msk.msra.mxu0 (!%p139_p2), %vm537_vm2, %v536_v3  ;;  %540 = vmatpush3.bf16.msk.msra.mxu1 (!%p139_p2), %vm537_vm2, %v536_v3 }
   0x9   : > { %p163_p3 = scmp.lt.s32.totalorder (!%p139_p2), %s162_s18, 168 }
   0xd   : > { %s707_s18 = smov (!%p163_p3, %s162_s18), 168 }
   0xe   : > { %s458_s19 = sshll.u32 %s707_s18, 3 }
   0xf   : > { %s609_s22 = scalar_lea.vmem %s702_s0, %s458_s19  ;;  %s660_s27 = scalar_lea.vmem %s705_s3, %s458_s19 }
  0x10   : > { %v174_v5 = vld [vmem:[%s609_s22] sm:$0xff]  ;;  %v181_v6 = vld [vmem:[%s609_s22 + $0x38] sm:$0xff]  ;;  %v175_v7 = vld [vmem:[%s609_s22 + $0x8] sm:$0xff] }
  0x11   : > { %497 = vmatmul.mubr.msk.f32.vlgmr.msra.gmra.mrb[0].mxu0 %vm196_vm4, %v174_v5  ;;  %518 = vmatmul.mubr.msk.f32.vlgmr.msra.gmra.mrb[0].mxu1 %vm196_vm4, %v181_v6  ;;  %v182_v8 = vld [vmem:[%s609_s22 + $0x40] sm:$0xff]  ;;  %v176_v9 = vld [vmem:[%s609_s22 + $0x10] sm:$0xff]  ;;  %v183_v10 = vld [vmem:[%s609_s22 + $0x48] sm:$0xff] }
  0x12   : > { %499 = vmatprep.mubr.msk.f32.mxu0 %vm563_vm3, %v564_v4  ;;  %520 = vmatprep.mubr.msk.f32.mxu1 %vm563_vm3, %v564_v4  ;;  %v177_v11 = vld [vmem:[%s609_s22 + $0x18] sm:$0xff]  ;;  %v184_v12 = vld [vmem:[%s609_s22 + $0x50] sm:$0xff]  ;;  %v178_v13 = vld [vmem:[%s609_s22 + $0x20] sm:$0xff] }
  0x13   : > { %v185_v14 = vld [vmem:[%s609_s22 + $0x58] sm:$0xff]  ;;  %v179_v15 = vld [vmem:[%s609_s22 + $0x28] sm:$0xff]  ;;  %v186_v16 = vld [vmem:[%s609_s22 + $0x60] sm:$0xff] }
  0x14   : > { %v180_v17 = vld [vmem:[%s609_s22 + $0x30] sm:$0xff] }
  0x15   : > { %500 = vmatmul.mubr.msk.f32.gmra.mrb[2].mxu0 %vm196_vm4, %v175_v7  ;;  %521 = vmatmul.mubr.msk.f32.gmra.mrb[2].mxu1 %vm196_vm4, %v182_v8 }
  0x16   : > { %502 = vmatprep.mubr.msk.f32.mxu0 %vm563_vm3, %v564_v4  ;;  %523 = vmatprep.mubr.msk.f32.mxu1 %vm563_vm3, %v564_v4 }
  0x19   : > { %503 = vmatmul.mubr.msk.f32.gmra.mrb[4].mxu0 %vm196_vm4, %v176_v9  ;;  %524 = vmatmul.mubr.msk.f32.gmra.mrb[4].mxu1 %vm196_vm4, %v183_v10 }
  0x1a   : > { %505 = vmatprep.mubr.msk.f32.mxu0 %vm563_vm3, %v564_v4  ;;  %526 = vmatprep.mubr.msk.f32.mxu1 %vm563_vm3, %v564_v4 }
  0x1d   : > { %506 = vmatmul.mubr.msk.f32.gmra.mrb[6].mxu0 %vm196_vm4, %v177_v11  ;;  %527 = vmatmul.mubr.msk.f32.gmra.mrb[6].mxu1 %vm196_vm4, %v184_v12 }
  0x1e   : > { %508 = vmatprep.mubr.msk.f32.mxu0 %vm563_vm3, %v564_v4  ;;  %529 = vmatprep.mubr.msk.f32.mxu1 %vm563_vm3, %v564_v4 }
  0x21   : > { %509 = vmatmul.mubr.msk.f32.gmra.mrb[8].mxu0 %vm196_vm4, %v178_v13  ;;  %530 = vmatmul.mubr.msk.f32.gmra.mrb[8].mxu1 %vm196_vm4, %v185_v14 }
  0x22   : > { %511 = vmatprep.mubr.msk.f32.mxu0 %vm563_vm3, %v564_v4  ;;  %532 = vmatprep.mubr.msk.f32.mxu1 %vm563_vm3, %v564_v4 }
  0x25   : > { %512 = vmatmul.mubr.msk.f32.gmra.mrb[10].mxu0 %vm196_vm4, %v179_v15  ;;  %533 = vmatmul.mubr.msk.f32.gmra.mrb[10].mxu1 %vm196_vm4, %v186_v16 }
  0x26   : > { %514 = vmatprep.mubr.msk.f32.mxu0 %vm563_vm3, %v564_v4 }
  0x29   : > { %515 = vmatmul.mubr.msk.f32.gmra.mrb[12].mxu0 %vm196_vm4, %v180_v17 }
  0xe4   : > { %v306_v19 = vpop.f32.mrb[0].mxu0  ;;  %v341_v20 = vpop.f32.mrb[0].mxu1 }
  0xe5   : > { %v307_v21 = vadd.f32 %v651_v18, %v306_v19  ;;  %v498_v22 = vpop.f32.mrb[1].mxu0  ;;  %v342_v23 = vadd.f32 %v651_v18, %v341_v20  ;;  %v519_v24 = vpop.f32.mrb[1].mxu1 }
  0xe7   : > { %v370_v25 = vmax.f32 %v307_v21, 0.0  ;;  %v377_v26 = vmax.f32 %v342_v23, 0.0 }
  0xe8   : > { %v311_v27 = vpop.f32.mrb[2].mxu0  ;;  %v346_v28 = vpop.f32.mrb[2].mxu1 }
  0xe9   : > { %384 = vst.msk [vmem:[%s660_s27] sm:$0xff] %vm383_vm5, %v370_v25  ;;  %391 = vst.msk [vmem:[%s660_s27 + $0x38] sm:$0xff] %vm383_vm5, %v377_v26  ;;  %v312_v29 = vadd.f32 %v651_v18, %v311_v27  ;;  %v501_v30 = vpop.f32.mrb[3].mxu0  ;;  %v347_v31 = vadd.f32 %v651_v18, %v346_v28  ;;  %v522_v32 = vpop.f32.mrb[3].mxu1 }
  0xeb   : > { %v371_v33 = vmax.f32 %v312_v29, 0.0  ;;  %v378_v34 = vmax.f32 %v347_v31, 0.0 }
  0xec   : > { %v316_v35 = vpop.f32.mrb[4].mxu0  ;;  %v351_v36 = vpop.f32.mrb[4].mxu1 }
  0xed   : > { %385 = vst.msk [vmem:[%s660_s27 + $0x8] sm:$0xff] %vm383_vm5, %v371_v33  ;;  %392 = vst.msk [vmem:[%s660_s27 + $0x40] sm:$0xff] %vm383_vm5, %v378_v34  ;;  %v317_v37 = vadd.f32 %v651_v18, %v316_v35  ;;  %v504_v38 = vpop.f32.mrb[5].mxu0  ;;  %v352_v39 = vadd.f32 %v651_v18, %v351_v36  ;;  %v525_v40 = vpop.f32.mrb[5].mxu1 }
  0xef   : > { %v372_v41 = vmax.f32 %v317_v37, 0.0  ;;  %v379_v42 = vmax.f32 %v352_v39, 0.0 }
  0xf0   : > { %v321_v43 = vpop.f32.mrb[6].mxu0  ;;  %v356_v44 = vpop.f32.mrb[6].mxu1 }
  0xf1   : > { %386 = vst.msk [vmem:[%s660_s27 + $0x10] sm:$0xff] %vm383_vm5, %v372_v41  ;;  %393 = vst.msk [vmem:[%s660_s27 + $0x48] sm:$0xff] %vm383_vm5, %v379_v42  ;;  %v322_v45 = vadd.f32 %v651_v18, %v321_v43  ;;  %v507_v46 = vpop.f32.mrb[7].mxu0  ;;  %v357_v47 = vadd.f32 %v651_v18, %v356_v44  ;;  %v528_v48 = vpop.f32.mrb[7].mxu1 }
  0xf3   : > { %v373_v49 = vmax.f32 %v322_v45, 0.0  ;;  %v380_v50 = vmax.f32 %v357_v47, 0.0 }
  0xf4   : > { %v326_v51 = vpop.f32.mrb[8].mxu0  ;;  %v361_v52 = vpop.f32.mrb[8].mxu1 }
  0xf5   : > { %387 = vst.msk [vmem:[%s660_s27 + $0x18] sm:$0xff] %vm383_vm5, %v373_v49  ;;  %394 = vst.msk [vmem:[%s660_s27 + $0x50] sm:$0xff] %vm383_vm5, %v380_v50  ;;  %v327_v53 = vadd.f32 %v651_v18, %v326_v51  ;;  %v510_v54 = vpop.f32.mrb[9].mxu0  ;;  %v362_v55 = vadd.f32 %v651_v18, %v361_v52  ;;  %v531_v56 = vpop.f32.mrb[9].mxu1 }
  0xf7   : > { %v374_v57 = vmax.f32 %v327_v53, 0.0  ;;  %v381_v58 = vmax.f32 %v362_v55, 0.0 }
  0xf8   : > { %v331_v59 = vpop.f32.mrb[10].mxu0  ;;  %v366_v60 = vpop.f32.mrb[10].mxu1 }
  0xf9   : > { %388 = vst.msk [vmem:[%s660_s27 + $0x20] sm:$0xff] %vm383_vm5, %v374_v57  ;;  %395 = vst.msk [vmem:[%s660_s27 + $0x58] sm:$0xff] %vm383_vm5, %v381_v58  ;;  %v332_v61 = vadd.f32 %v651_v18, %v331_v59  ;;  %v513_v62 = vpop.f32.mrb[11].mxu0  ;;  %v367_v63 = vadd.f32 %v651_v18, %v366_v60  ;;  %v534_v0 = vpop.f32.mrb[11].mxu1 }
  0xfb   : > { %v375_v1 = vmax.f32 %v332_v61, 0.0  ;;  %v382_v2 = vmax.f32 %v367_v63, 0.0 }
  0xfc   : > { %v336_v3 = vpop.f32.mrb[12].mxu0 }
  0xfd   : > { %389 = vst.msk [vmem:[%s660_s27 + $0x28] sm:$0xff] %vm383_vm5, %v375_v1  ;;  %396 = vst.msk [vmem:[%s660_s27 + $0x60] sm:$0xff] %vm383_vm5, %v382_v2  ;;  %v337_v4 = vadd.f32 %v651_v18, %v336_v3  ;;  %v516_v5 = vpop.f32.mrb[13].mxu0 }
  0xff   : > { %v376_v6 = vmax.f32 %v337_v4, 0.0 }
 0x101   : > { %390 = vst.msk [vmem:[%s660_s27 + $0x30] sm:$0xff] %vm383_vm5, %v376_v6 }
 0x102 PF: > { %s13_s12 = sadd.s32 1, %s559_s12  }
 0x103   : > { %p10_p4 = scmp.ge.s32.totalorder %s13_s12, 15  }
 0x105   :  { %12 = sbr.rel (!%p10_p4) target bundleno = 1 (0x1), region = 62 }

// kernel: prob_cnnet4l_forward.6
= control target key start
LH: loop header
LB: loop body
LE: loop exit
PB: predicated region body
PF: predicated region fallthrough
CT: control target
= control target key end

     0   :  { %s253_s0 = inlined_call_operand.vmem [shape: bf16[24,768], index: 0, kind: input, shape index: {}]   ;;  %s254_s1 = inlined_call_operand.vmem [shape: bf16[24,768], index: 1, kind: input, shape index: {}]   ;;  %s255_s2 = inlined_call_operand.vmem [shape: bf16[24,768], index: 2, kind: input, shape index: {}]   ;;  %s256_s3 = inlined_call_operand.vmem [shape: bf16[24,768], index: 3, kind: input, shape index: {}]   ;;  %s257_s4 = inlined_call_operand.vmem [shape: bf16[24,768], index: 4, kind: output, shape index: {}]  }
   0x1   :  { %v17_v0 = vld [vmem:[%s253_s0] sm:$0xff]  ;;  %v18_v5 = vld [vmem:[%s253_s0 + $0x8] sm:$0xff]  ;;  %v19_v11 = vld [vmem:[%s253_s0 + $0x10] sm:$0xff] }
   0x2   :  { %v26_v1 = vld [vmem:[%s254_s1] sm:$0xff]  ;;  %v27_v6 = vld [vmem:[%s254_s1 + $0x8] sm:$0xff]  ;;  %v28_v13 = vld [vmem:[%s254_s1 + $0x10] sm:$0xff] }
   0x3   :  { %v44_v2 = vld [vmem:[%s255_s2] sm:$0xff]  ;;  %v35_v3 = vmax.bf16 %v26_v1, %v17_v0  ;;  %v36_v8 = vmax.bf16 %v27_v6, %v18_v5  ;;  %v45_v9 = vld [vmem:[%s255_s2 + $0x8] sm:$0xff]  ;;  %v46_v14 = vld [vmem:[%s255_s2 + $0x10] sm:$0xff]  ;;  %v37_v17 = vmax.bf16 %v28_v13, %v19_v11 }
   0x4   :  { %v53_v4 = vld [vmem:[%s256_s3] sm:$0xff]  ;;  %v54_v10 = vld [vmem:[%s256_s3 + $0x8] sm:$0xff]  ;;  %v55_v15 = vld [vmem:[%s256_s3 + $0x10] sm:$0xff] }
   0x5   :  { %v62_v7 = vmax.bf16 %v53_v4, %v44_v2  ;;  %v63_v12 = vmax.bf16 %v54_v10, %v45_v9  ;;  %v64_v18 = vmax.bf16 %v55_v15, %v46_v14  ;;  %v20_v19 = vld [vmem:[%s253_s0 + $0x18] sm:$0xff]  ;;  %v21_v25 = vld [vmem:[%s253_s0 + $0x20] sm:$0xff]  ;;  %v22_v32 = vld [vmem:[%s253_s0 + $0x28] sm:$0xff] }
   0x6   :  { %v29_v20 = vld [vmem:[%s254_s1 + $0x18] sm:$0xff]  ;;  %v30_v26 = vld [vmem:[%s254_s1 + $0x20] sm:$0xff]  ;;  %v31_v34 = vld [vmem:[%s254_s1 + $0x28] sm:$0xff] }
   0x7   :  { %v71_v16 = vmax.bf16 %v62_v7, %v35_v3  ;;  %v47_v21 = vld [vmem:[%s255_s2 + $0x18] sm:$0xff]  ;;  %v72_v22 = vmax.bf16 %v63_v12, %v36_v8  ;;  %v38_v23 = vmax.bf16 %v29_v20, %v20_v19  ;;  %v73_v27 = vmax.bf16 %v64_v18, %v37_v17  ;;  %v48_v30 = vld [vmem:[%s255_s2 + $0x20] sm:$0xff]  ;;  %v49_v35 = vld [vmem:[%s255_s2 + $0x28] sm:$0xff] }
   0x8   :  { %v56_v24 = vld [vmem:[%s256_s3 + $0x18] sm:$0xff]  ;;  %v39_v29 = vmax.bf16 %v30_v26, %v21_v25  ;;  %v57_v31 = vld [vmem:[%s256_s3 + $0x20] sm:$0xff]  ;;  %v58_v36 = vld [vmem:[%s256_s3 + $0x28] sm:$0xff]  ;;  %v40_v38 = vmax.bf16 %v31_v34, %v22_v32 }
   0x9   :  { %80 = vst [vmem:[%s257_s4] sm:$0xff] %v71_v16  ;;  %v65_v28 = vmax.bf16 %v56_v24, %v47_v21  ;;  %81 = vst [vmem:[%s257_s4 + $0x8] sm:$0xff] %v72_v22  ;;  %v66_v33 = vmax.bf16 %v57_v31, %v48_v30  ;;  %v67_v39 = vmax.bf16 %v58_v36, %v49_v35  ;;  %v23_v40 = vld [vmem:[%s253_s0 + $0x30] sm:$0xff]  ;;  %v24_v46 = vld [vmem:[%s253_s0 + $0x38] sm:$0xff] }
   0xa   :  { %82 = vst [vmem:[%s257_s4 + $0x10] sm:$0xff] %v73_v27  ;;  %v32_v41 = vld [vmem:[%s254_s1 + $0x30] sm:$0xff]  ;;  %v33_v47 = vld [vmem:[%s254_s1 + $0x38] sm:$0xff]  ;;  %v25_v53 = vld [vmem:[%s253_s0 + $0x40] sm:$0xff] }
   0xb   :  { %v74_v37 = vmax.bf16 %v65_v28, %v38_v23  ;;  %v50_v42 = vld [vmem:[%s255_s2 + $0x30] sm:$0xff]  ;;  %v75_v43 = vmax.bf16 %v66_v33, %v39_v29  ;;  %v41_v44 = vmax.bf16 %v32_v41, %v23_v40  ;;  %v76_v48 = vmax.bf16 %v67_v39, %v40_v38  ;;  %v51_v51 = vld [vmem:[%s255_s2 + $0x38] sm:$0xff]  ;;  %v34_v55 = vld [vmem:[%s254_s1 + $0x40] sm:$0xff] }
   0xc   :  { %v59_v45 = vld [vmem:[%s256_s3 + $0x30] sm:$0xff]  ;;  %v42_v50 = vmax.bf16 %v33_v47, %v24_v46  ;;  %v60_v52 = vld [vmem:[%s256_s3 + $0x38] sm:$0xff]  ;;  %v52_v56 = vld [vmem:[%s255_s2 + $0x40] sm:$0xff]  ;;  %v43_v59 = vmax.bf16 %v34_v55, %v25_v53 }
   0xd   :  { %83 = vst [vmem:[%s257_s4 + $0x18] sm:$0xff] %v74_v37  ;;  %v68_v49 = vmax.bf16 %v59_v45, %v50_v42  ;;  %84 = vst [vmem:[%s257_s4 + $0x20] sm:$0xff] %v75_v43  ;;  %v69_v54 = vmax.bf16 %v60_v52, %v51_v51  ;;  %v61_v57 = vld [vmem:[%s256_s3 + $0x40] sm:$0xff] }
   0xe   :  { %85 = vst [vmem:[%s257_s4 + $0x28] sm:$0xff] %v76_v48  ;;  %v70_v60 = vmax.bf16 %v61_v57, %v52_v56 }
   0xf   :  { %v77_v58 = vmax.bf16 %v68_v49, %v41_v44  ;;  %v78_v61 = vmax.bf16 %v69_v54, %v42_v50 }
  0x10   :  { %v79_v62 = vmax.bf16 %v70_v60, %v43_v59 }
  0x11   :  { %86 = vst [vmem:[%s257_s4 + $0x30] sm:$0xff] %v77_v58  ;;  %87 = vst [vmem:[%s257_s4 + $0x38] sm:$0xff] %v78_v61 }
  0x12   :  { %88 = vst [vmem:[%s257_s4 + $0x40] sm:$0xff] %v79_v62 }

// kernel: prob_cnnet4l_forward.7
= control target key start
LH: loop header
LB: loop body
LE: loop exit
PB: predicated region body
PF: predicated region fallthrough
CT: control target
= control target key end

     0   :  { %10 = vsyncpa [#allocation4], 0  ;;  %s1775_s18 = smov 0   ;;  %s1777_s19 = smov 0   ;;  %s1965_s0 = inlined_call_operand.vmem [shape: bf16[2,9216], index: 0, kind: input, shape index: {}]   ;;  %s1966_s1 = inlined_call_operand.vmem [shape: bf16[9216,128], index: 1, kind: input, shape index: {}]   ;;  %s1967_s2 = inlined_call_operand.vmem [shape: f32[1,128], index: 2, kind: input, shape index: {}]   ;;  %s1968_s3 = inlined_call_operand.vmem [shape: bf16[128,10], index: 3, kind: input, shape index: {}]   ;;  %s1969_s4 = inlined_call_operand.vmem [shape: f32[1,10], index: 4, kind: input, shape index: {}]   ;;  %s1970_s5 = inlined_call_operand.hbm [shape: f32[2,10], index: 5, kind: output, shape index: {}]  }
   0x1   :  { %s1779_s20 = smov 0  }
   0x2 LB: > { %s1326_s21 = sadd.s32 4294967295, %s1736_s20   ;;  %s25_s22 = sadd.s32 1, %s1732_s19  ;;  %s1736_s20 = sphi %s1779_s20, %s16_s20   ;;  %s1732_s19 = sphi %s1777_s19, %s1973_s19   ;;  %s1728_s18 = sphi %s1775_s18, %s1972_s18  }
   0x3   : > { %p26_p0 = scmp.ge.s32.totalorder %s25_s22, 8  ;;  %p1329_p1 = scmp.ge.s32.totalorder %s1736_s20, 1 }
   0x4   : > { %p217_p2 = scmp.lt.s32.totalorder %s1736_s20, 9 }
   0x5   : > { %s1975_s22 = smov (%p26_p0, %s25_s22), 0 }
   0x6   : > { %p218_p3 = pnand %p1329_p1, %p217_p2 }
   0x7   : > { %s248_s23 = smul.u32 (!%p218_p3), 9, %s1728_s18  ;;  %p1331_p6 = scmp.ne.s32.totalorder (!%p218_p3), %s1728_s18, 0 }
   0x8   : > { %221 = sbr.rel (%p218_p3) target bundleno = 592 (0x250), region = 40 }
   0x9   : > { %s257_s24 = smul.u32 (!%p218_p3), 144, %s1728_s18  ;;  %p251_p4 = scmp.lt.s32.totalorder (!%p218_p3), %s248_s23, 71 }
   0xb   : > { %p258_p5 = scmp.lt.s32.totalorder (!%p218_p3), %s257_s24, 1151 }
   0xf   : > { %s1977_s23 = smov (!%p251_p4, %s248_s23), 71  ;;  %s1979_s24 = smov (!%p258_p5, %s257_s24), 1151 }
  0x10   : > { %s1801_s27 = scalar_lea.vmem %s1965_s0, %s1977_s23  ;;  %s1330_s28 = sshll.u32 %s1979_s24, 2  ;;  %v1738_v0 = vmov (!%p1331_p6), 0.0  }
  0x11   : > { %s1806_s6 = scalar_lea.vmem %s1966_s1, %s1330_s28  ;;  %267 = sbr.rel (%p1331_p6) target bundleno = 24 (0x18), region = 44  ;;  %268 = vst [vmem:[#allocation2] sm:$0x3] (!%p1331_p6), %v1738_v0 }
  0x18 PF: > { %v1603_v1 = vld [vmem:[%s1806_s6 + $0x40] sm:$0xff]   ;;  %v1607_v5 = vld [vmem:[%s1806_s6 + $0x48] sm:$0xff]   ;;  %v1611_v9 = vld [vmem:[%s1806_s6 + $0x50] sm:$0xff]   ;;  %v422_v30 = vlaneseq  ;;  %v1739_v36 = vmov 1966171168   ;;  %vm1741_vm0 = vmmov 0  }
  0x19   : > { %v1604_v2 = vld [vmem:[%s1806_s6 + $0xc0] sm:$0xff]   ;;  %1420 = vmatprep.subr.bf16.mxu0 %v1603_v1  ;;  %v1608_v6 = vld [vmem:[%s1806_s6 + $0xc8] sm:$0xff]   ;;  %v1612_v10 = vld [vmem:[%s1806_s6 + $0xd0] sm:$0xff]   ;;  %v420_v37 = vunpack.c.l.s4 %v1739_v36  ;;  %p1405_p7 = scmp.ne.s32.totalorder %s1728_s18, 7 }
  0x1a   : > { %v1605_v3 = vld [vmem:[%s1806_s6] sm:$0xff]   ;;  %1442 = vmatprep.subr.bf16.mxu1 %v1604_v2  ;;  %v1609_v7 = vld [vmem:[%s1806_s6 + $0x8] sm:$0xff]   ;;  %v1613_v11 = vld [vmem:[%s1806_s6 + $0x10] sm:$0xff]   ;;  %v423_v34 = vshrl.u32 %v422_v30, 7  ;;  %vm1743_vm1 = vmmov (!%p1405_p7), 0   ;;  %vm1250_vm2 = vcmask (!%p1405_p7), 74752  }
  0x1b   : > { %v1606_v4 = vld [vmem:[%s1806_s6 + $0x80] sm:$0xff]   ;;  %1421 = vmatpush3.bf16.msra.mxu0 %v1605_v3  ;;  %v1610_v8 = vld [vmem:[%s1806_s6 + $0x88] sm:$0xff]   ;;  %v1614_v12 = vld [vmem:[%s1806_s6 + $0x90] sm:$0xff]   ;;  %v421_v40 = vunpack.c.0.s8 %v420_v37 }
  0x1c   : > { %1443 = vmatpush3.bf16.msra.mxu1 %v1606_v4  ;;  %1422 = vmatprep.subr.bf16.mxu0 %v1607_v5  ;;  %v1615_v13 = vld [vmem:[%s1806_s6 + $0x58] sm:$0xff]   ;;  %v1619_v17 = vld [vmem:[%s1806_s6 + $0x60] sm:$0xff]   ;;  %v1623_v21 = vld [vmem:[%s1806_s6 + $0x68] sm:$0xff]  }
  0x1d   : > { %1444 = vmatprep.subr.bf16.mxu1 %v1608_v6  ;;  %v1616_v14 = vld [vmem:[%s1806_s6 + $0xd8] sm:$0xff]   ;;  %v1620_v18 = vld [vmem:[%s1806_s6 + $0xe0] sm:$0xff]   ;;  %v1624_v22 = vld [vmem:[%s1806_s6 + $0xe8] sm:$0xff]   ;;  %v1844_v42 = vsub.s32 %v421_v40, %v423_v34 }
  0x1e   : > { %v1617_v15 = vld [vmem:[%s1806_s6 + $0x18] sm:$0xff]   ;;  %v1621_v19 = vld [vmem:[%s1806_s6 + $0x20] sm:$0xff]   ;;  %v1625_v23 = vld [vmem:[%s1806_s6 + $0x28] sm:$0xff]  }
  0x1f   : > { %1423 = vmatpush3.bf16.msra.mxu0 %v1609_v7  ;;  %v1618_v16 = vld [vmem:[%s1806_s6 + $0x98] sm:$0xff]   ;;  %v1622_v20 = vld [vmem:[%s1806_s6 + $0xa0] sm:$0xff]   ;;  %v1626_v24 = vld [vmem:[%s1806_s6 + $0xa8] sm:$0xff]  }
  0x20   : > { %1445 = vmatpush3.bf16.msra.mxu1 %v1610_v8  ;;  %1424 = vmatprep.subr.bf16.mxu0 %v1611_v9  ;;  %v1627_v25 = vld [vmem:[%s1806_s6 + $0x70] sm:$0xff]   ;;  %v1631_v29 = vld [vmem:[%s1806_s6 + $0x78] sm:$0xff]   ;;  %v1636_v35 = vld [vmem:[%s1806_s6 + $0x140] sm:$0xff]  }
  0x21   : > { %1446 = vmatprep.subr.bf16.mxu1 %v1612_v10  ;;  %v1628_v26 = vld [vmem:[%s1806_s6 + $0xf0] sm:$0xff]   ;;  %v1632_v31 = vld [vmem:[%s1806_s6 + $0xf8] sm:$0xff]   ;;  %v270_v38 = vld [vmem:[%s1801_s27] sm:$0xff] }
  0x22   : > { %v1629_v27 = vld [vmem:[%s1806_s6 + $0x30] sm:$0xff]   ;;  %v1633_v32 = vld [vmem:[%s1806_s6 + $0x38] sm:$0xff]   ;;  %v418_v39 = vcombine.high %v270_v38, %v270_v38  ;;  %v1638_v41 = vld [vmem:[%s1806_s6 + $0x1c0] sm:$0xff]   ;;  %v425_v43 = vrot.slane %v270_v38, %v1844_v42 }
  0x23   : > { %1425 = vmatpush3.bf16.msra.mxu0 %v1613_v11  ;;  %v1630_v28 = vld [vmem:[%s1806_s6 + $0xb0] sm:$0xff]   ;;  %v1634_v33 = vld [vmem:[%s1806_s6 + $0xb8] sm:$0xff]   ;;  %v1637_v49 = vld [vmem:[%s1806_s6 + $0x100] sm:$0xff]  }
  0x24   : > { %1447 = vmatpush3.bf16.msra.mxu1 %v1614_v12  ;;  %1426 = vmatprep.subr.bf16.mxu0 %v1615_v13  ;;  %v1848_v44 = vrot.slane %v418_v39, %v1844_v42  ;;  %v433_v45 = vcombine.high %v425_v43, %v425_v43  ;;  %v441_v46 = vrot.slane %v425_v43, %v1844_v42  ;;  %v1640_v52 = vld [vmem:[%s1806_s6 + $0x148] sm:$0xff]   ;;  %v1639_v54 = vld [vmem:[%s1806_s6 + $0x180] sm:$0xff]   ;;  %v1644_v58 = vld [vmem:[%s1806_s6 + $0x150] sm:$0xff]  }
  0x25   : > { %1448 = vmatprep.subr.bf16.mxu1 %v1616_v14  ;;  %v1642_v55 = vld [vmem:[%s1806_s6 + $0x1c8] sm:$0xff]   ;;  %v1646_v60 = vld [vmem:[%s1806_s6 + $0x1d0] sm:$0xff]   ;;  %v1648_v62 = vld [vmem:[%s1806_s6 + $0x158] sm:$0xff]  }
  0x26   : > { %v434_v47 = vcombine.high %v1848_v44, %v1848_v44  ;;  %v455_v48 = vrot.slane %v433_v45, %v1844_v42  ;;  %v463_v51 = vcombine.high %v441_v46, %v441_v46  ;;  %v1641_v57 = vld [vmem:[%s1806_s6 + $0x108] sm:$0xff]   ;;  %v1645_v61 = vld [vmem:[%s1806_s6 + $0x110] sm:$0xff]   ;;  %v1650_v0 = vld [vmem:[%s1806_s6 + $0x1d8] sm:$0xff]  }
  0x27   : > { %1427 = vmatpush3.bf16.msra.mxu0 %v1617_v15  ;;  %v1643_v59 = vld [vmem:[%s1806_s6 + $0x188] sm:$0xff]   ;;  %v1647_v63 = vld [vmem:[%s1806_s6 + $0x190] sm:$0xff]   ;;  %v1649_v1 = vld [vmem:[%s1806_s6 + $0x118] sm:$0xff]  }
  0x28   : > { %1449 = vmatpush3.bf16.msra.mxu1 %v1618_v16  ;;  %1428 = vmatprep.subr.bf16.mxu0 %v1619_v17  ;;  %v462_v50 = vrot.slane %v434_v47, %v1844_v42  ;;  %v465_v53 = vcombine.high %v455_v48, %v455_v48  ;;  %v1652_v2 = vld [vmem:[%s1806_s6 + $0x160] sm:$0xff]   ;;  %v1651_v3 = vld [vmem:[%s1806_s6 + $0x198] sm:$0xff]   ;;  %v1656_v6 = vld [vmem:[%s1806_s6 + $0x168] sm:$0xff]  }
  0x29   : > { %1450 = vmatprep.subr.bf16.mxu1 %v1620_v18  ;;  %954 = vmatprep.mubr.bf16.mxu0 %v455_v48  ;;  %v1654_v4 = vld [vmem:[%s1806_s6 + $0x1e0] sm:$0xff]   ;;  %v1658_v8 = vld [vmem:[%s1806_s6 + $0x1e8] sm:$0xff]   ;;  %v1660_v10 = vld [vmem:[%s1806_s6 + $0x170] sm:$0xff]   ;;  %v448_v18 = vrot.slane %v1848_v44, %v1844_v42 }
  0x2a   : > { %v466_v56 = vcombine.high %v462_v50, %v462_v50  ;;  %994 = vmatprep.mubr.bf16.mxu1 %v465_v53  ;;  %v1653_v5 = vld [vmem:[%s1806_s6 + $0x120] sm:$0xff]   ;;  %v1657_v9 = vld [vmem:[%s1806_s6 + $0x128] sm:$0xff]   ;;  %v1662_v12 = vld [vmem:[%s1806_s6 + $0x1f0] sm:$0xff]  }
  0x2b   : > { %1429 = vmatpush3.bf16.msra.mxu0 %v1621_v19  ;;  %v1655_v7 = vld [vmem:[%s1806_s6 + $0x1a0] sm:$0xff]   ;;  %v1659_v11 = vld [vmem:[%s1806_s6 + $0x1a8] sm:$0xff]   ;;  %v1661_v13 = vld [vmem:[%s1806_s6 + $0x130] sm:$0xff]  }
  0x2c   : > { %1451 = vmatpush3.bf16.msra.mxu1 %v1622_v20  ;;  %1430 = vmatprep.subr.bf16.mxu0 %v1623_v21  ;;  %v1664_v14 = vld [vmem:[%s1806_s6 + $0x178] sm:$0xff]   ;;  %v1663_v15 = vld [vmem:[%s1806_s6 + $0x1b0] sm:$0xff]   ;;  %v1668_v20 = vld [vmem:[%s1806_s6 + $0x200] sm:$0xff]   ;;  %v1740_v21 = vmov 0.0  }
  0x2d   : > { %1452 = vmatprep.subr.bf16.mxu1 %v1624_v22  ;;  %v1666_v16 = vld [vmem:[%s1806_s6 + $0x1f8] sm:$0xff]   ;;  %v464_v22 = vcombine.high %v448_v18, %v448_v18  ;;  %v1332_v30 = vld.sshfl [vmem:[%s1801_s27 + $0x8] sm:$0x1 pattern:$0x75316420] }
  0x2e   : > { %v1665_v17 = vld [vmem:[%s1806_s6 + $0x138] sm:$0xff]  }
  0x2f   : > { %1431 = vmatpush3.bf16.msra.mxu0 %v1625_v23  ;;  %v1667_v19 = vld [vmem:[%s1806_s6 + $0x1b8] sm:$0xff]   ;;  %v1669_v23 = vld [vmem:[%s1806_s6 + $0x208] sm:$0xff]  }
  0x30   : > { %1453 = vmatpush3.bf16.msra.mxu1 %v1626_v24  ;;  %1432 = vmatprep.subr.bf16.mxu0 %v1627_v25  ;;  %v1670_v24 = vld [vmem:[%s1806_s6 + $0x210] sm:$0xff]   ;;  %v1671_v25 = vld [vmem:[%s1806_s6 + $0x218] sm:$0xff]  }
  0x31   : > { %1454 = vmatprep.subr.bf16.mxu1 %v1628_v26  ;;  %v1672_v26 = vld [vmem:[%s1806_s6 + $0x220] sm:$0xff]  }
  0x33   : > { %1433 = vmatpush3.bf16.msra.mxu0 %v1629_v27  ;;  %v1673_v27 = vld [vmem:[%s1806_s6 + $0x228] sm:$0xff]  }
  0x34   : > { %1455 = vmatpush3.bf16.msra.mxu1 %v1630_v28  ;;  %1434 = vmatprep.subr.bf16.mxu0 %v1631_v29  ;;  %v1674_v28 = vld [vmem:[%s1806_s6 + $0x230] sm:$0xff]   ;;  %v1675_v29 = vld [vmem:[%s1806_s6 + $0x238] sm:$0xff]  }
  0x35   : > { %1456 = vmatprep.subr.bf16.mxu1 %v1632_v31  ;;  %v480_v31 = vrot.slane %v1332_v30, %v1844_v42 }
  0x37   : > { %1435 = vmatpush3.bf16.msra.mxu0 %v1633_v32 }
  0x38   : > { %1457 = vmatpush3.bf16.msra.mxu1 %v1634_v33  ;;  %1464 = vmatprep.subr.bf16.mxu0 %v1636_v35 }
  0x39   : > { %1486 = vmatprep.subr.bf16.mxu1 %v1638_v41 }
  0x3a   : > { %955 = vmatmul.mubr.bf16.vlgmr.msra.gmra.mrb[0].mxu0 %v441_v46 }
  0x3b   : > { %1465 = vmatpush3.bf16.msra.mxu0 %v1637_v49  ;;  %995 = vmatmul.mubr.bf16.vlgmr.msra.gmra.mrb[0].mxu1 %v463_v51 }
  0x3c   : > { %1466 = vmatprep.subr.bf16.mxu0 %v1640_v52  ;;  %1487 = vmatpush3.bf16.msra.mxu1 %v1639_v54 }
  0x3d   : > { %1034 = vmatprep.mubr.bf16.mxu0 %v462_v50  ;;  %1488 = vmatprep.subr.bf16.mxu1 %v1642_v55  ;;  %v269_v55 = vld [vmem:[#allocation2] sm:$0x3] }
  0x3e   : > { %1074 = vmatprep.mubr.bf16.mxu1 %v466_v56 }
  0x3f   : > { %1467 = vmatpush3.bf16.msra.mxu0 %v1641_v57 }
  0x40   : > { %1468 = vmatprep.subr.bf16.mxu0 %v1644_v58  ;;  %1489 = vmatpush3.bf16.msra.mxu1 %v1643_v59 }
  0x41   : > { %1490 = vmatprep.subr.bf16.mxu1 %v1646_v60 }
  0x43   : > { %1469 = vmatpush3.bf16.msra.mxu0 %v1645_v61 }
  0x44   : > { %1470 = vmatprep.subr.bf16.mxu0 %v1648_v62  ;;  %1491 = vmatpush3.bf16.msra.mxu1 %v1647_v63  ;;  %v1676_v62 = vld [vmem:[%s1968_s3] sm:$0xff] (!%p1405_p7)   ;;  %v1742_v63 = vmov (!%p1405_p7), 0.0  }
  0x45   : > { %1492 = vmatprep.subr.bf16.mxu1 %v1650_v0  ;;  %v1677_v0 = vld [vmem:[%s1968_s3 + $0x8] sm:$0xff] (!%p1405_p7)  }
  0x47   : > { %1471 = vmatpush3.bf16.msra.mxu0 %v1649_v1  ;;  %v1678_v1 = vld [vmem:[%s1968_s3 + $0x10] sm:$0xff] (!%p1405_p7)  }
  0x48   : > { %1472 = vmatprep.subr.bf16.mxu0 %v1652_v2  ;;  %1493 = vmatpush3.bf16.msra.mxu1 %v1651_v3  ;;  %v1679_v2 = vld [vmem:[%s1968_s3 + $0x18] sm:$0xff] (!%p1405_p7)   ;;  %v1680_v3 = vld [vmem:[%s1968_s3 + $0x20] sm:$0xff] (!%p1405_p7)  }
  0x49   : > { %1494 = vmatprep.subr.bf16.mxu1 %v1654_v4  ;;  %v1681_v4 = vld [vmem:[%s1968_s3 + $0x28] sm:$0xff] (!%p1405_p7)  }
  0x4b   : > { %1473 = vmatpush3.bf16.msra.mxu0 %v1653_v5 }
  0x4c   : > { %1474 = vmatprep.subr.bf16.mxu0 %v1656_v6  ;;  %1495 = vmatpush3.bf16.msra.mxu1 %v1655_v7  ;;  %v1406_v6 = vld [vmem:[%s1967_s2] ss:$0 sm:$0xff] (!%p1405_p7) }
  0x4d   : > { %1496 = vmatprep.subr.bf16.mxu1 %v1658_v8  ;;  %v1682_v8 = vld [vmem:[%s1968_s3 + $0x30] sm:$0xff] (!%p1405_p7)  }
  0x4f   : > { %1475 = vmatpush3.bf16.msra.mxu0 %v1657_v9 }
  0x50   : > { %1476 = vmatprep.subr.bf16.mxu0 %v1660_v10  ;;  %1497 = vmatpush3.bf16.msra.mxu1 %v1659_v11  ;;  %v1683_v10 = vld [vmem:[%s1968_s3 + $0x38] sm:$0xff] (!%p1405_p7)  }
  0x51   : > { %1498 = vmatprep.subr.bf16.mxu1 %v1662_v12  ;;  %v1407_v12 = vld [vmem:[%s1969_s4] ss:$0 sm:$0xff] (!%p1405_p7) }
  0x53   : > { %1477 = vmatpush3.bf16.msra.mxu0 %v1661_v13 }
  0x54   : > { %1478 = vmatprep.subr.bf16.mxu0 %v1664_v14  ;;  %1499 = vmatpush3.bf16.msra.mxu1 %v1663_v15 }
  0x55   : > { %1500 = vmatprep.subr.bf16.mxu1 %v1666_v16 }
  0x57   : > { %1479 = vmatpush3.bf16.msra.mxu0 %v1665_v17 }
  0x58   : > { %1526 = vmatprep.subr.bf16.mxu0 %v1740_v21  ;;  %1501 = vmatpush3.bf16.msra.mxu1 %v1667_v19 }
  0x5a   : > { %1035 = vmatmul.mubr.bf16.vlgmr.msra.gmra.mrb[4].mxu0 %v448_v18 }
  0x5b   : > { %1527 = vmatpush3.bf16.msra.mxu0 %v1668_v20  ;;  %1542 = vmatprep.mubr.msk.bf16.mxu0 %vm1741_vm0, %v1740_v21 }
  0x5c   : > { %1075 = vmatmul.mubr.bf16.vlgmr.msra.gmra.mrb[4].mxu1 %v464_v22  ;;  %1528 = vmatprep.subr.bf16.mxu0 %v1740_v21 }
  0x5f   : > { %1529 = vmatpush3.bf16.msra.mxu0 %v1669_v23 }
  0x60   : > { %1530 = vmatprep.subr.bf16.mxu0 %v1740_v21 }
  0x63   : > { %1531 = vmatpush3.bf16.msra.mxu0 %v1670_v24 }
  0x64   : > { %1532 = vmatprep.subr.bf16.mxu0 %v1740_v21 }
  0x67   : > { %1533 = vmatpush3.bf16.msra.mxu0 %v1671_v25 }
  0x68   : > { %1534 = vmatprep.subr.bf16.mxu0 %v1740_v21 }
  0x6b   : > { %1535 = vmatpush3.bf16.msra.mxu0 %v1672_v26 }
  0x6c   : > { %1536 = vmatprep.subr.bf16.mxu0 %v1740_v21 }
  0x6f   : > { %1537 = vmatpush3.bf16.msra.mxu0 %v1673_v27 }
  0x70   : > { %1538 = vmatprep.subr.bf16.mxu0 %v1740_v21 }
  0x73   : > { %1539 = vmatpush3.bf16.msra.mxu0 %v1674_v28 }
  0x74   : > { %1540 = vmatprep.subr.bf16.mxu0 %v1740_v21 }
  0x77   : > { %1541 = vmatpush3.bf16.msra.mxu0 %v1675_v29 }
  0x78   : > { %1546 = vmatprep.subr.bf16.mxu0 (!%p1405_p7), %v1742_v63 }
  0x7a   : > { %1543 = vmatmul.mubr.bf16.vlgmr.msra.gmra.mrb[8].mxu0 %v480_v31 }
  0x7b   : > { %1547 = vmatpush3.bf16.msra.mxu0 (!%p1405_p7), %v1676_v62  ;;  %1562 = vmatprep.mubr.msk.bf16.mxu0 (!%p1405_p7), %vm1743_vm1, %v1742_v63 }
  0x7c   : > { %1548 = vmatprep.subr.bf16.mxu0 (!%p1405_p7), %v1742_v63 }
  0x7f   : > { %1549 = vmatpush3.bf16.msra.mxu0 (!%p1405_p7), %v1677_v0 }
  0x80   : > { %1550 = vmatprep.subr.bf16.mxu0 (!%p1405_p7), %v1742_v63 }
  0x83   : > { %1551 = vmatpush3.bf16.msra.mxu0 (!%p1405_p7), %v1678_v1 }
  0x84   : > { %1552 = vmatprep.subr.bf16.mxu0 (!%p1405_p7), %v1742_v63 }
  0x87   : > { %1553 = vmatpush3.bf16.msra.mxu0 (!%p1405_p7), %v1679_v2 }
  0x88   : > { %1554 = vmatprep.subr.bf16.mxu0 (!%p1405_p7), %v1742_v63 }
  0x8b   : > { %1555 = vmatpush3.bf16.msra.mxu0 (!%p1405_p7), %v1680_v3 }
  0x8c   : > { %1556 = vmatprep.subr.bf16.mxu0 (!%p1405_p7), %v1742_v63 }
  0x8f   : > { %1557 = vmatpush3.bf16.msra.mxu0 (!%p1405_p7), %v1681_v4 }
  0x90   : > { %1558 = vmatprep.subr.bf16.mxu0 (!%p1405_p7), %v1742_v63 }
  0x93   : > { %1559 = vmatpush3.bf16.msra.mxu0 (!%p1405_p7), %v1682_v8 }
  0x94   : > { %1560 = vmatprep.subr.bf16.mxu0 (!%p1405_p7), %v1742_v63 }
  0x97   : > { %1561 = vmatpush3.bf16.msra.mxu0 (!%p1405_p7), %v1683_v10 }
 0x10d   : > { %v1436_v32 = vpop.f32.mrb[0].mxu0 }
 0x10e   : > { %v1437_v33 = vpop.f32.mrb[1].mxu0  ;;  %v1458_v34 = vpop.f32.mrb[0].mxu1 }
 0x10f   : > { %v1438_v35 = vadd.f32 %v1437_v33, %v1436_v32  ;;  %v1439_v36 = vpop.f32.mrb[2].mxu0  ;;  %v1459_v37 = vpop.f32.mrb[1].mxu1 }
 0x110   : > { %v1440_v38 = vpop.f32.mrb[3].mxu0  ;;  %v1460_v39 = vadd.f32 %v1459_v37, %v1458_v34  ;;  %v1461_v40 = vpop.f32.mrb[2].mxu1 }
 0x111   : > { %v1462_v41 = vpop.f32.mrb[3].mxu1 }
 0x112   : > { %v997_v43 = vadd.f32 %v1460_v39, %v1438_v35 }
 0x12d   : > { %v1480_v44 = vpop.f32.mrb[4].mxu0 }
 0x12e   : > { %v1481_v45 = vpop.f32.mrb[5].mxu0 }
 0x12f   : > { %v1482_v46 = vadd.f32 %v1481_v45, %v1480_v44  ;;  %v1483_v47 = vpop.f32.mrb[6].mxu0  ;;  %v1502_v48 = vpop.f32.mrb[4].mxu1 }
 0x130   : > { %v1484_v49 = vpop.f32.mrb[7].mxu0  ;;  %v1503_v42 = vpop.f32.mrb[5].mxu1 }
 0x131   : > { %v1037_v50 = vadd.f32 %v1482_v46, %v997_v43  ;;  %v1504_v51 = vadd.f32 %v1503_v42, %v1502_v48  ;;  %v1505_v52 = vpop.f32.mrb[6].mxu1 }
 0x132   : > { %v1506_v53 = vpop.f32.mrb[7].mxu1 }
 0x133   : > { %v1077_v54 = vadd.f32 %v1504_v51, %v1037_v50 }
 0x14c   : > { %1127 = sbr.rel (%p1405_p7) target bundleno = 567 (0x237), region = 48 }
 0x14d   : > { %v1116_v56 = vpop.f32.mrb[8].mxu0 }
 0x14e   : > { %v1117_v57 = vadd.f32 %v1116_v56, %v1077_v54  ;;  %v1544_v58 = vpop.f32.mrb[9].mxu0 }
 0x14f   : > { %v1119_v59 = vpop.f32.mrb[10].mxu0 }
 0x150   : > { %v1122_v60 = vadd.f32 %v1117_v57, %v269_v55  ;;  %v1545_v61 = vpop.f32.mrb[11].mxu0 }
 0x152   : > { %1123 = vst [vmem:[#allocation2] sm:$0x3] %v1122_v60 }
 0x159   : > { %v1128_v5 = vld [vmem:[#allocation2] sm:$0x3] }
 0x15a   : > { %v1136_v7 = vadd.f32 %v1406_v6, %v1128_v5 }
 0x15c   : > { %v1137_v9 = vmax.f32 %v1136_v7, 0.0 }
 0x15e   : > { %v1154_v11 = vpack.c.bf16 %v1137_v9, %v1137_v9 }
 0x160   : > { %1563 = vmatmul.mubr.bf16.vlgmr.msra.gmra.mrb[0].mxu0 %v1154_v11 }
 0x233   : > { %v1244_v13 = vpop.f32.mrb[0].mxu0 }
 0x234   : > { %v1245_v14 = vadd.f32 %v1407_v12, %v1244_v13  ;;  %v1564_v15 = vpop.f32.mrb[1].mxu0 }
 0x235   : > { %v1247_v16 = vpop.f32.mrb[2].mxu0 }
 0x236   : > { %1251 = vst.msk [vmem:[#allocation3] sm:$0x3] %vm1250_vm2, %v1245_v14  ;;  %v1565_v17 = vpop.f32.mrb[3].mxu0 }
 0x237 PF: > { %p1930_p8 = scmp.eq.s32.totalorder %s1326_s21, 7  ;;  %s1744_s7 = smov [#allocation3]  }
 0x238   : > { %s1261_s8 = sshll.u32 %s1744_s7, 4  ;;  %s1262_s8 = int_to_ptr.vmem [resolvable:$true] %s1261_s8 }
 0x239   : > { %s1684_s9 = scalar_lea.vmem %s1262_s8, 32  ;;  %p1691_p12 = scmp.lt.s32.totalorder %s1262_s8, %s1262_s8 }
 0x23a   : > { %p1685_p9 = scmp.ne.s32.totalorder %s1262_s8, %s1684_s9  ;;  %p1692_p13 = scmp.lt.s32.totalorder %s1684_s9, %s1684_s9 }
 0x23c   : > { %p1686_p10 = pnand %p1685_p9, %p1930_p8  ;;  %p1693_p0 = por %p1692_p13, %p1691_p12 }
 0x23e   : > { %p1687_p11 = pneg %p1686_p10 }
 0x240   : > { %p1694_p1 = pnand %p1693_p0, %p1687_p11 }
 0x242   : > { %1697 = shalt.err (!%p1694_p1)
}
 0x243   : > { %s1698_s21 = scalar_lea.hbm %s1970_s5, 32 }
 0x244   : > { %p1699_p2 = scmp.ne.s32.totalorder %s1970_s5, %s1698_s21  ;;  %p1704_p5 = scmp.lt.u32.totalorder %s1698_s21, %s1970_s5 }
 0x246   : > { %p1700_p3 = pnand %p1699_p2, %p1930_p8 }
 0x248   : > { %p1701_p4 = pneg %p1700_p3 }
 0x24a   : > { %p1706_p6 = pnand %p1704_p5, %p1701_p4 }
 0x24c   : > { %1709 = shalt.err (!%p1706_p6)
}
 0x24d   : > { %1567 = dma.vmem_to_hbm [thread:$0]  (%p1930_p8), %s1262_s8, 32, %s1970_s5, [#allocation4]  }
 0x24e   : > { %1723 = dma.done.wait (%p1930_p8), [#allocation4], 32  }
 0x24f   : > { %1725 = vsyncadd (%p1930_p8), [#allocation4], 4294967264 }
 0x250 PF: > { %s16_s20 = sadd.s32 1, %s1736_s20   ;;  %s1972_s18 = smov %s1732_s19 }
 0x251   : > { %p13_p7 = scmp.ge.s32.totalorder %s16_s20, 10   ;;  %s1973_s19 = smov %s1975_s22 }
 0x253   :  { %15 = sbr.rel (!%p13_p7) target bundleno = 2 (0x2), region = 79 }
 0x25a   :  { %1274 = vsyncpa [#allocation4], 1 }
 0x25b   :  { %1276 = vsyncpa [#allocation4 + $0x1], 1 }

// kernel: prob_cnnet4l_forward.5
= control target key start
LH: loop header
LB: loop body
LE: loop exit
PB: predicated region body
PF: predicated region fallthrough
CT: control target
= control target key end

     0   :  { %vm468_vm0 = vcmask 261120   ;;  %vm11418_vm1 = vcmask 519168   ;;  %s21840_s1 = inlined_call_operand.vmem [shape: bf16[9,32,64], index: 1, kind: input, shape index: {}]   ;;  %s21841_s0 = inlined_call_operand.vmem [shape: f32[2,26,26,32], index: 0, kind: input, shape index: {}]   ;;  %s21842_s2 = inlined_call_operand.vmem [shape: f32[1,64], index: 2, kind: input, shape index: {}]   ;;  %s21843_s3 = inlined_call_operand.vmem [shape: bf16[1152,64], index: 3, kind: output, shape index: {}]  }
   0x1   :  { %v16572_v0 = vld [vmem:[%s21840_s1 + $0x10] sm:$0xff]   ;;  %v16573_v1 = vld [vmem:[%s21840_s1 + $0x40] sm:$0xff]   ;;  %v16574_v2 = vld [vmem:[%s21840_s1 + $0x18] sm:$0xff]  }
   0x2   :  { %14084 = vmatprep.subr.bf16.mxu1 %v16572_v0  ;;  %14676 = vmatprep.subr.bf16.mxu0 %v16573_v1  ;;  %v16575_v3 = vld [vmem:[%s21840_s1 + $0x48] sm:$0xff]   ;;  %v237_v9 = vld [vmem:[%s21841_s0 + $0x11] sm:$0xff]  ;;  %v16576_v12 = vld [vmem:[%s21840_s1] sm:$0xff]  }
   0x3   :  { %14085 = vmatpush3.bf16.msra.mxu1 %v16572_v0  ;;  %14677 = vmatpush3.bf16.msra.mxu0 %v16573_v1  ;;  %v235_v4 = vld [vmem:[%s21841_s0 + $0x1] sm:$0xff]  ;;  %v236_v5 = vld [vmem:[%s21841_s0 + $0x9] sm:$0xff]  ;;  %v12021_v13 = vld [vmem:[%s21841_s0 + $0x31] sm:$0xff] }
   0x4   :  { %14086 = vmatprep.subr.bf16.mxu1 %v16574_v2  ;;  %v12019_v6 = vld [vmem:[%s21841_s0 + $0x21] sm:$0xff]  ;;  %14678 = vmatprep.subr.bf16.mxu0 %v16575_v3  ;;  %v384_v7 = vpack.c.bf16 %v236_v5, %v235_v4  ;;  %v12020_v8 = vld [vmem:[%s21841_s0 + $0x29] sm:$0xff]  ;;  %v12024_v19 = vld [vmem:[%s21841_s0 + $0x51] sm:$0xff] }
   0x5   :  { %v4685_v10 = vpack.c.bf16 %v12020_v8, %v12019_v6  ;;  %v385_v11 = vpack.c.bf16 %v12019_v6, %v237_v9  ;;  %v12022_v14 = vld [vmem:[%s21841_s0 + $0x41] sm:$0xff]  ;;  %v16577_v16 = vld [vmem:[%s21840_s1 + $0x50] sm:$0xff]   ;;  %v386_v17 = vpack.c.bf16 %v12021_v13, %v12020_v8  ;;  %v16578_v33 = vld [vmem:[%s21840_s1 + $0x58] sm:$0xff]  }
   0x6   :  { %14088 = vmatprep.mubr.msk.bf16.mxu1 %vm468_vm0, %v384_v7  ;;  %v4686_v15 = vpack.c.bf16 %v12022_v14, %v12021_v13  ;;  %v12023_v18 = vld [vmem:[%s21841_s0 + $0x49] sm:$0xff]  ;;  %v12025_v21 = vld [vmem:[%s21841_s0 + $0x61] sm:$0xff]  ;;  %v12027_v23 = vld [vmem:[%s21841_s0 + $0x71] sm:$0xff] }
   0x7   :  { %14087 = vmatpush3.bf16.msra.mxu1 %v16574_v2  ;;  %14679 = vmatpush3.bf16.msra.mxu0 %v16575_v3  ;;  %v4687_v20 = vpack.c.bf16 %v12024_v19, %v12023_v18  ;;  %v12026_v22 = vld [vmem:[%s21841_s0 + $0x69] sm:$0xff]  ;;  %v12028_v24 = vld [vmem:[%s21841_s0 + $0x81] sm:$0xff]  ;;  %v387_v25 = vpack.c.bf16 %v12023_v18, %v12022_v14  ;;  %v388_v27 = vpack.c.bf16 %v12025_v21, %v12024_v19  ;;  %v12030_v30 = vld [vmem:[%s21841_s0 + $0x91] sm:$0xff] }
   0x8   :  { %14680 = vmatprep.mubr.msk.bf16.mxu0 %vm468_vm0, %v4685_v10  ;;  %14232 = vmatprep.subr.bf16.mxu1 %v16576_v12  ;;  %v4688_v26 = vpack.c.bf16 %v12026_v22, %v12025_v21  ;;  %v4689_v28 = vpack.c.bf16 %v12028_v24, %v12027_v23  ;;  %v12029_v29 = vld [vmem:[%s21841_s0 + $0x89] sm:$0xff]  ;;  %v12031_v31 = vld [vmem:[%s21841_s0 + $0xa1] sm:$0xff]  ;;  %v389_v34 = vpack.c.bf16 %v12027_v23, %v12026_v22  ;;  %v12033_v38 = vld [vmem:[%s21841_s0 + $0xb1] sm:$0xff] }
   0x9   :  { %14824 = vmatprep.subr.bf16.mxu0 %v16577_v16  ;;  %v12032_v32 = vld [vmem:[%s21841_s0 + $0xa9] sm:$0xff]  ;;  %v4690_v35 = vpack.c.bf16 %v12030_v30, %v12029_v29  ;;  %v390_v36 = vpack.c.bf16 %v12029_v29, %v12028_v24  ;;  %v12034_v39 = vld [vmem:[%s21841_s0 + $0xc1] sm:$0xff]  ;;  %v12036_v41 = vld [vmem:[%s21841_s0 + $0xd1] sm:$0xff]  ;;  %v391_v42 = vpack.c.bf16 %v12031_v31, %v12030_v30 }
   0xa   :  { %14089 = vmatmul.mubr.msk.bf16.vlgmr.msra.gmra.mrb[0].mxu1 %vm468_vm0, %v385_v11  ;;  %14681 = vmatmul.mubr.msk.bf16.vlgmr.msra.gmra.mrb[0].mxu0 %vm468_vm0, %v4686_v15  ;;  %v4691_v37 = vpack.c.bf16 %v12032_v32, %v12031_v31  ;;  %v12035_v40 = vld [vmem:[%s21841_s0 + $0xc9] sm:$0xff]  ;;  %v4692_v43 = vpack.c.bf16 %v12034_v39, %v12033_v38  ;;  %v392_v44 = vpack.c.bf16 %v12033_v38, %v12032_v32  ;;  %v12037_v47 = vld [vmem:[%s21841_s0 + $0xe1] sm:$0xff]  ;;  %v12039_v50 = vld [vmem:[%s21841_s0 + $0xf1] sm:$0xff] }
   0xb   :  { %14233 = vmatpush3.bf16.msra.mxu1 %v16576_v12  ;;  %14825 = vmatpush3.bf16.msra.mxu0 %v16577_v16  ;;  %v4693_v45 = vpack.c.bf16 %v12036_v41, %v12035_v40  ;;  %v16579_v46 = vld [vmem:[%s21840_s1 + $0x8] sm:$0xff]   ;;  %v16728_v49 = vld [vmem:[%s21840_s1 + $0x60] sm:$0xff]   ;;  %v393_v52 = vpack.c.bf16 %v12035_v40, %v12034_v39  ;;  %v394_v54 = vpack.c.bf16 %v12037_v47, %v12036_v41  ;;  %v12042_v57 = vld [vmem:[%s21841_s0 + $0x111] sm:$0xff] }
   0xc   :  { %14092 = vmatprep.mubr.msk.bf16.mxu1 %vm468_vm0, %v386_v17  ;;  %14684 = vmatprep.mubr.msk.bf16.mxu0 %vm468_vm0, %v4687_v20  ;;  %v12038_v48 = vld [vmem:[%s21841_s0 + $0xe9] sm:$0xff]  ;;  %v12040_v51 = vld [vmem:[%s21841_s0 + $0x101] sm:$0xff]  ;;  %v12045_v0 = vld [vmem:[%s21841_s0 + $0x131] sm:$0xff] }
   0xd   :  { %14826 = vmatprep.subr.bf16.mxu0 %v16578_v33  ;;  %14234 = vmatprep.subr.bf16.mxu1 %v16579_v46  ;;  %v4694_v53 = vpack.c.bf16 %v12038_v48, %v12037_v47  ;;  %v4695_v55 = vpack.c.bf16 %v12040_v51, %v12039_v50  ;;  %v12041_v56 = vld [vmem:[%s21841_s0 + $0x109] sm:$0xff]  ;;  %v12043_v58 = vld [vmem:[%s21841_s0 + $0x121] sm:$0xff]  ;;  %v395_v60 = vpack.c.bf16 %v12039_v50, %v12038_v48  ;;  %v12048_v3 = vld [vmem:[%s21841_s0 + $0x151] sm:$0xff] }
   0xe   :  { %v12044_v59 = vld [vmem:[%s21841_s0 + $0x129] sm:$0xff]  ;;  %v4696_v61 = vpack.c.bf16 %v12042_v57, %v12041_v56  ;;  %v396_v62 = vpack.c.bf16 %v12041_v56, %v12040_v51  ;;  %v12046_v1 = vld [vmem:[%s21841_s0 + $0x141] sm:$0xff]  ;;  %v397_v4 = vpack.c.bf16 %v12043_v58, %v12042_v57  ;;  %v12051_v10 = vld [vmem:[%s21841_s0 + $0x171] sm:$0xff] }
   0xf   :  { %14827 = vmatpush3.bf16.msra.mxu0 %v16578_v33  ;;  %14235 = vmatpush3.bf16.msra.mxu1 %v16579_v46  ;;  %v4697_v63 = vpack.c.bf16 %v12044_v59, %v12043_v58  ;;  %v12047_v2 = vld [vmem:[%s21841_s0 + $0x149] sm:$0xff]  ;;  %v4698_v5 = vpack.c.bf16 %v12046_v1, %v12045_v0  ;;  %v398_v6 = vpack.c.bf16 %v12045_v0, %v12044_v59  ;;  %v12049_v8 = vld [vmem:[%s21841_s0 + $0x161] sm:$0xff]  ;;  %v12054_v17 = vld [vmem:[%s21841_s0 + $0x191] sm:$0xff] }
  0x10   :  { %14972 = vmatprep.subr.bf16.mxu0 %v16728_v49  ;;  %v4699_v7 = vpack.c.bf16 %v12048_v3, %v12047_v2  ;;  %v12050_v9 = vld [vmem:[%s21841_s0 + $0x169] sm:$0xff]  ;;  %v12052_v11 = vld [vmem:[%s21841_s0 + $0x181] sm:$0xff]  ;;  %v399_v12 = vpack.c.bf16 %v12047_v2, %v12046_v1  ;;  %v400_v14 = vpack.c.bf16 %v12049_v8, %v12048_v3  ;;  %v12057_v24 = vld [vmem:[%s21841_s0 + $0x1b1] sm:$0xff] }
  0x11   :  { %v4700_v13 = vpack.c.bf16 %v12050_v9, %v12049_v8  ;;  %v4701_v15 = vpack.c.bf16 %v12052_v11, %v12051_v10  ;;  %v12053_v16 = vld [vmem:[%s21841_s0 + $0x189] sm:$0xff]  ;;  %v12055_v18 = vld [vmem:[%s21841_s0 + $0x1a1] sm:$0xff]  ;;  %v401_v20 = vpack.c.bf16 %v12051_v10, %v12050_v9  ;;  %v12066_v41 = vld [vmem:[%s21841_s0 + $0x211] sm:$0xff] }
  0x12   :  { %14093 = vmatmul.mubr.msk.bf16.gmra.mrb[4].mxu1 %vm468_vm0, %v387_v25  ;;  %14685 = vmatmul.mubr.msk.bf16.gmra.mrb[4].mxu0 %vm468_vm0, %v4688_v26  ;;  %v12056_v19 = vld [vmem:[%s21841_s0 + $0x1a9] sm:$0xff]  ;;  %v4702_v21 = vpack.c.bf16 %v12054_v17, %v12053_v16  ;;  %v402_v22 = vpack.c.bf16 %v12053_v16, %v12052_v11  ;;  %v12058_v25 = vld [vmem:[%s21841_s0 + $0x1c1] sm:$0xff]  ;;  %v12069_v48 = vld [vmem:[%s21841_s0 + $0x231] sm:$0xff] }
  0x13   :  { %14096 = vmatprep.mubr.msk.bf16.mxu1 %vm468_vm0, %v388_v27  ;;  %14688 = vmatprep.mubr.msk.bf16.mxu0 %vm468_vm0, %v4689_v28  ;;  %v4703_v23 = vpack.c.bf16 %v12056_v19, %v12055_v18  ;;  %v12059_v26 = vld [vmem:[%s21841_s0 + $0x1c9] sm:$0xff]  ;;  %v12060_v27 = vld [vmem:[%s21841_s0 + $0x1d1] sm:$0xff]  ;;  %v403_v28 = vpack.c.bf16 %v12055_v18, %v12054_v17  ;;  %v4704_v29 = vpack.c.bf16 %v12058_v25, %v12057_v24  ;;  %v12061_v32 = vld [vmem:[%s21841_s0 + $0x1e1] sm:$0xff] }
  0x14   :  { %v404_v30 = vpack.c.bf16 %v12057_v24, %v12056_v19  ;;  %v4705_v31 = vpack.c.bf16 %v12060_v27, %v12059_v26  ;;  %v12062_v33 = vld [vmem:[%s21841_s0 + $0x1e9] sm:$0xff]  ;;  %v406_v38 = vpack.c.bf16 %v12061_v32, %v12060_v27  ;;  %v12070_v50 = vld [vmem:[%s21841_s0 + $0x241] sm:$0xff]  ;;  %v12075_v59 = vld [vmem:[%s21841_s0 + $0x271] sm:$0xff] }
  0x15   :  { %v12065_v40 = vld [vmem:[%s21841_s0 + $0x209] sm:$0xff]  ;;  %v12073_v57 = vld [vmem:[%s21841_s0 + $0x261] sm:$0xff]  ;;  %v12078_v2 = vld [vmem:[%s21841_s0 + $0x291] sm:$0xff] }
  0x16   :  { %v12071_v51 = vld [vmem:[%s21841_s0 + $0x249] sm:$0xff]  ;;  %v12079_v3 = vld [vmem:[%s21841_s0 + $0x2a1] sm:$0xff]  ;;  %v12081_v9 = vld [vmem:[%s21841_s0 + $0x2b1] sm:$0xff] }
  0x17   :  { %v12074_v58 = vld [vmem:[%s21841_s0 + $0x269] sm:$0xff]  ;;  %v12082_v10 = vld [vmem:[%s21841_s0 + $0x2c1] sm:$0xff]  ;;  %v12087_v19 = vld [vmem:[%s21841_s0 + $0x2f1] sm:$0xff] }
  0x18   :  { %v12077_v1 = vld [vmem:[%s21841_s0 + $0x289] sm:$0xff]  ;;  %v12085_v17 = vld [vmem:[%s21841_s0 + $0x2e1] sm:$0xff] }
  0x19   :  { %v12083_v11 = vld [vmem:[%s21841_s0 + $0x2c9] sm:$0xff]  ;;  %v307_v27 = vld [vmem:[%s21841_s0 + $0x341] sm:$0xff] }
  0x1a   :  { %14097 = vmatmul.mubr.msk.bf16.gmra.mrb[8].mxu1 %vm468_vm0, %v389_v34  ;;  %14689 = vmatmul.mubr.msk.bf16.gmra.mrb[8].mxu0 %vm468_vm0, %v4690_v35  ;;  %v12063_v34 = vld [vmem:[%s21841_s0 + $0x1f1] sm:$0xff]  ;;  %v12064_v35 = vld [vmem:[%s21841_s0 + $0x201] sm:$0xff]  ;;  %v12086_v18 = vld [vmem:[%s21841_s0 + $0x2e9] sm:$0xff] }
  0x1b   :  { %14100 = vmatprep.mubr.msk.bf16.mxu1 %vm468_vm0, %v390_v36  ;;  %14692 = vmatprep.mubr.msk.bf16.mxu0 %vm468_vm0, %v4691_v37  ;;  %v405_v36 = vpack.c.bf16 %v12059_v26, %v12058_v25  ;;  %v4706_v37 = vpack.c.bf16 %v12062_v33, %v12061_v32  ;;  %v4707_v39 = vpack.c.bf16 %v12064_v35, %v12063_v34  ;;  %v12089_v25 = vld [vmem:[%s21841_s0 + $0x309] sm:$0xff]  ;;  %v12090_v26 = vld [vmem:[%s21841_s0 + $0x311] sm:$0xff] }
  0x1c   :  { %v408_v46 = vpack.c.bf16 %v12065_v40, %v12064_v35  ;;  %v4720_v32 = vpack.c.bf16 %v12090_v26, %v12089_v25  ;;  %v309_v35 = vld [vmem:[%s21841_s0 + $0x351] sm:$0xff]  ;;  %v328_v26 = vld [vmem:[%s21841_s0 + $0x421] sm:$0xff] }
  0x1d   :  { %v327_v25 = vld [vmem:[%s21841_s0 + $0x411] sm:$0xff] }
  0x22   :  { %14101 = vmatmul.mubr.msk.bf16.gmra.mrb[12].mxu1 %vm468_vm0, %v391_v42  ;;  %14693 = vmatmul.mubr.msk.bf16.gmra.mrb[12].mxu0 %vm468_vm0, %v4692_v43  ;;  %v12067_v42 = vld [vmem:[%s21841_s0 + $0x221] sm:$0xff]  ;;  %v12068_v43 = vld [vmem:[%s21841_s0 + $0x229] sm:$0xff] }
  0x23   :  { %14104 = vmatprep.mubr.msk.bf16.mxu1 %vm468_vm0, %v392_v44  ;;  %14696 = vmatprep.mubr.msk.bf16.mxu0 %vm468_vm0, %v4693_v45  ;;  %v407_v44 = vpack.c.bf16 %v12063_v34, %v12062_v33  ;;  %v4708_v45 = vpack.c.bf16 %v12066_v41, %v12065_v40  ;;  %v4709_v47 = vpack.c.bf16 %v12068_v43, %v12067_v42  ;;  %v312_v40 = vld [vmem:[%s21841_s0 + $0x371] sm:$0xff] }
  0x2a   :  { %14105 = vmatmul.mubr.msk.bf16.gmra.mrb[16].mxu1 %vm468_vm0, %v393_v52  ;;  %14697 = vmatmul.mubr.msk.bf16.gmra.mrb[16].mxu0 %vm468_vm0, %v4694_v53  ;;  %v12072_v52 = vld [vmem:[%s21841_s0 + $0x251] sm:$0xff]  ;;  %v409_v53 = vpack.c.bf16 %v12067_v42, %v12066_v41 }
  0x2b   :  { %14108 = vmatprep.mubr.msk.bf16.mxu1 %vm468_vm0, %v394_v54  ;;  %14700 = vmatprep.mubr.msk.bf16.mxu0 %vm468_vm0, %v4695_v55  ;;  %v4710_v54 = vpack.c.bf16 %v12070_v50, %v12069_v48  ;;  %v410_v55 = vpack.c.bf16 %v12069_v48, %v12068_v43  ;;  %v4711_v56 = vpack.c.bf16 %v12072_v52, %v12071_v51  ;;  %v12245_v41 = vld [vmem:[%s21841_s0 + $0x4a] sm:$0xff]  ;;  %v12246_v42 = vld [vmem:[%s21841_s0 + $0x52] sm:$0xff] }
  0x2c   :  { %v314_v48 = vld [vmem:[%s21841_s0 + $0x389] sm:$0xff] }
  0x32   :  { %14109 = vmatmul.mubr.msk.bf16.gmra.mrb[20].mxu1 %vm468_vm0, %v395_v60  ;;  %14701 = vmatmul.mubr.msk.bf16.gmra.mrb[20].mxu0 %vm468_vm0, %v4696_v61  ;;  %v12076_v60 = vld [vmem:[%s21841_s0 + $0x281] sm:$0xff]  ;;  %v411_v61 = vpack.c.bf16 %v12071_v51, %v12070_v50  ;;  %v12248_v51 = vld [vmem:[%s21841_s0 + $0x6a] sm:$0xff] }
  0x33   :  { %14112 = vmatprep.mubr.msk.bf16.mxu1 %vm468_vm0, %v396_v62  ;;  %14704 = vmatprep.mubr.msk.bf16.mxu0 %vm468_vm0, %v4697_v63  ;;  %v4712_v62 = vpack.c.bf16 %v12074_v58, %v12073_v57  ;;  %v412_v63 = vpack.c.bf16 %v12073_v57, %v12072_v52  ;;  %v4713_v0 = vpack.c.bf16 %v12076_v60, %v12075_v59  ;;  %v12247_v50 = vld [vmem:[%s21841_s0 + $0x62] sm:$0xff]  ;;  %v315_v52 = vld [vmem:[%s21841_s0 + $0x391] sm:$0xff] }
  0x3a   :  { %14113 = vmatmul.mubr.msk.bf16.gmra.mrb[24].mxu1 %vm468_vm0, %v397_v4  ;;  %14705 = vmatmul.mubr.msk.bf16.gmra.mrb[24].mxu0 %vm468_vm0, %v4698_v5  ;;  %v12080_v4 = vld [vmem:[%s21841_s0 + $0x2a9] sm:$0xff]  ;;  %v413_v5 = vpack.c.bf16 %v12075_v59, %v12074_v58 }
  0x3b   :  { %14116 = vmatprep.mubr.msk.bf16.mxu1 %vm468_vm0, %v398_v6  ;;  %14708 = vmatprep.mubr.msk.bf16.mxu0 %vm468_vm0, %v4699_v7  ;;  %v4714_v6 = vpack.c.bf16 %v12078_v2, %v12077_v1  ;;  %v414_v7 = vpack.c.bf16 %v12077_v1, %v12076_v60  ;;  %v4715_v8 = vpack.c.bf16 %v12080_v4, %v12079_v3  ;;  %v317_v59 = vld [vmem:[%s21841_s0 + $0x3a9] sm:$0xff]  ;;  %v318_v60 = vld [vmem:[%s21841_s0 + $0x3b1] sm:$0xff] }
  0x3c   :  { %v12253_v1 = vld [vmem:[%s21841_s0 + $0xa2] sm:$0xff] }
  0x42   :  { %14117 = vmatmul.mubr.msk.bf16.gmra.mrb[28].mxu1 %vm468_vm0, %v399_v12  ;;  %14709 = vmatmul.mubr.msk.bf16.gmra.mrb[28].mxu0 %vm468_vm0, %v4700_v13  ;;  %v12084_v12 = vld [vmem:[%s21841_s0 + $0x2d1] sm:$0xff]  ;;  %v415_v13 = vpack.c.bf16 %v12079_v3, %v12078_v2  ;;  %v425_v3 = vpack.c.bf16 %v318_v60, %v317_v59  ;;  %v12271_v59 = vld [vmem:[%s21841_s0 + $0x162] sm:$0xff] }
  0x43   :  { %14120 = vmatprep.mubr.msk.bf16.mxu1 %vm468_vm0, %v400_v14  ;;  %14712 = vmatprep.mubr.msk.bf16.mxu0 %vm468_vm0, %v4701_v15  ;;  %v4716_v14 = vpack.c.bf16 %v12082_v10, %v12081_v9  ;;  %v416_v15 = vpack.c.bf16 %v12081_v9, %v12080_v4  ;;  %v4717_v16 = vpack.c.bf16 %v12084_v12, %v12083_v11  ;;  %v12254_v2 = vld [vmem:[%s21841_s0 + $0xaa] sm:$0xff]  ;;  %v322_v9 = vld [vmem:[%s21841_s0 + $0x3e1] sm:$0xff] }
  0x44   :  { %v12272_v60 = vld [vmem:[%s21841_s0 + $0x16a] sm:$0xff] }
  0x4a   :  { %14121 = vmatmul.mubr.msk.bf16.gmra.mrb[32].mxu1 %vm468_vm0, %v401_v20  ;;  %14713 = vmatmul.mubr.msk.bf16.gmra.mrb[32].mxu0 %vm468_vm0, %v4702_v21  ;;  %v12088_v20 = vld [vmem:[%s21841_s0 + $0x301] sm:$0xff]  ;;  %v417_v21 = vpack.c.bf16 %v12083_v11, %v12082_v10  ;;  %v12255_v10 = vld [vmem:[%s21841_s0 + $0xb2] sm:$0xff] }
  0x4b   :  { %14124 = vmatprep.mubr.msk.bf16.mxu1 %vm468_vm0, %v402_v22  ;;  %14716 = vmatprep.mubr.msk.bf16.mxu0 %vm468_vm0, %v4703_v23  ;;  %v4718_v22 = vpack.c.bf16 %v12086_v18, %v12085_v17  ;;  %v418_v23 = vpack.c.bf16 %v12085_v17, %v12084_v12  ;;  %v4719_v24 = vpack.c.bf16 %v12088_v20, %v12087_v19  ;;  %v16582_v11 = vld [vmem:[%s21840_s1 + $0x68] sm:$0xff]  }
  0x4c   :  { %v12256_v12 = vld [vmem:[%s21841_s0 + $0xc2] sm:$0xff] }
  0x52   :  { %14125 = vmatmul.mubr.msk.bf16.gmra.mrb[36].mxu1 %vm468_vm0, %v403_v28  ;;  %14717 = vmatmul.mubr.msk.bf16.gmra.mrb[36].mxu0 %vm468_vm0, %v4704_v29  ;;  %v308_v28 = vld [vmem:[%s21841_s0 + $0x349] sm:$0xff] }
  0x53   :  { %14128 = vmatprep.mubr.msk.bf16.mxu1 %vm468_vm0, %v404_v30  ;;  %14720 = vmatprep.mubr.msk.bf16.mxu0 %vm468_vm0, %v4705_v31  ;;  %v12241_v29 = vld [vmem:[%s21841_s0 + $0x22] sm:$0xff]  ;;  %v12242_v30 = vld [vmem:[%s21841_s0 + $0x2a] sm:$0xff]  ;;  %v419_v31 = vpack.c.bf16 %v12087_v19, %v12086_v18  ;;  %v420_v33 = vpack.c.bf16 %v308_v28, %v307_v27  ;;  %v5894_v18 = vpack.c.bf16 %v12256_v12, %v12255_v10  ;;  %v12261_v27 = vld [vmem:[%s21841_s0 + $0xf2] sm:$0xff] }
  0x54   :  { %v5887_v34 = vpack.c.bf16 %v12242_v30, %v12241_v29  ;;  %v12262_v28 = vld [vmem:[%s21841_s0 + $0x102] sm:$0xff] }
  0x55   :  { %v343_v10 = vld [vmem:[%s21841_s0 + $0x4c1] sm:$0xff] }
  0x56   :  { %v12277_v12 = vld [vmem:[%s21841_s0 + $0x1a2] sm:$0xff] }
  0x5a   :  { %14129 = vmatmul.mubr.msk.bf16.gmra.mrb[40].mxu1 %vm468_vm0, %v405_v36  ;;  %14721 = vmatmul.mubr.msk.bf16.gmra.mrb[40].mxu0 %vm468_vm0, %v4706_v37  ;;  %v310_v36 = vld [vmem:[%s21841_s0 + $0x361] sm:$0xff]  ;;  %v12243_v37 = vld [vmem:[%s21841_s0 + $0x32] sm:$0xff] }
  0x5b   :  { %14132 = vmatprep.mubr.msk.bf16.mxu1 %vm468_vm0, %v406_v38  ;;  %14724 = vmatprep.mubr.msk.bf16.mxu0 %vm468_vm0, %v4707_v39  ;;  %v12244_v38 = vld [vmem:[%s21841_s0 + $0x42] sm:$0xff]  ;;  %v421_v43 = vpack.c.bf16 %v310_v36, %v309_v35  ;;  %v12263_v35 = vld [vmem:[%s21841_s0 + $0x10a] sm:$0xff]  ;;  %v12264_v36 = vld [vmem:[%s21841_s0 + $0x112] sm:$0xff] }
  0x5c   :  { %v311_v39 = vld [vmem:[%s21841_s0 + $0x369] sm:$0xff] }
  0x62   :  { %14133 = vmatmul.mubr.msk.bf16.gmra.mrb[44].mxu1 %vm468_vm0, %v407_v44  ;;  %14725 = vmatmul.mubr.msk.bf16.gmra.mrb[44].mxu0 %vm468_vm0, %v4708_v45  ;;  %v5888_v44 = vpack.c.bf16 %v12244_v38, %v12243_v37  ;;  %v422_v45 = vpack.c.bf16 %v312_v40, %v311_v39  ;;  %v331_v37 = vld [vmem:[%s21841_s0 + $0x441] sm:$0xff]  ;;  %v332_v38 = vld [vmem:[%s21841_s0 + $0x449] sm:$0xff] }
  0x63   :  { %14136 = vmatprep.mubr.msk.bf16.mxu1 %vm468_vm0, %v408_v46  ;;  %14728 = vmatprep.mubr.msk.bf16.mxu0 %vm468_vm0, %v4709_v47  ;;  %v5889_v46 = vpack.c.bf16 %v12246_v42, %v12245_v41  ;;  %v313_v47 = vld [vmem:[%s21841_s0 + $0x381] sm:$0xff]  ;;  %v12266_v40 = vld [vmem:[%s21841_s0 + $0x12a] sm:$0xff]  ;;  %v5898_v42 = vpack.c.bf16 %v12264_v36, %v12263_v35  ;;  %v12285_v36 = vld [vmem:[%s21841_s0 + $0x1f2] sm:$0xff] }
  0x64   :  { %v12265_v39 = vld [vmem:[%s21841_s0 + $0x122] sm:$0xff] }
  0x65   :  { %v352_v35 = vld [vmem:[%s21841_s0 + $0x521] sm:$0xff] }
  0x6a   :  { %14137 = vmatmul.mubr.msk.bf16.gmra.mrb[48].mxu1 %vm468_vm0, %v409_v53  ;;  %14729 = vmatmul.mubr.msk.bf16.gmra.mrb[48].mxu0 %vm468_vm0, %v4710_v54  ;;  %v316_v53 = vld [vmem:[%s21841_s0 + $0x3a1] sm:$0xff]  ;;  %v12249_v54 = vld [vmem:[%s21841_s0 + $0x72] sm:$0xff] }
  0x6b   :  { %14140 = vmatprep.mubr.msk.bf16.mxu1 %vm468_vm0, %v410_v55  ;;  %14732 = vmatprep.mubr.msk.bf16.mxu0 %vm468_vm0, %v4711_v56  ;;  %v423_v55 = vpack.c.bf16 %v314_v48, %v313_v47  ;;  %v5890_v56 = vpack.c.bf16 %v12248_v51, %v12247_v50  ;;  %v424_v57 = vpack.c.bf16 %v316_v53, %v315_v52  ;;  %v12267_v47 = vld [vmem:[%s21841_s0 + $0x132] sm:$0xff]  ;;  %v12268_v48 = vld [vmem:[%s21841_s0 + $0x142] sm:$0xff]  ;;  %v12269_v52 = vld [vmem:[%s21841_s0 + $0x14a] sm:$0xff] }
  0x6c   :  { %v335_v50 = vld [vmem:[%s21841_s0 + $0x469] sm:$0xff]  ;;  %v336_v51 = vld [vmem:[%s21841_s0 + $0x471] sm:$0xff] }
  0x6d   :  { %v12270_v53 = vld [vmem:[%s21841_s0 + $0x152] sm:$0xff] }
  0x72   :  { %14141 = vmatmul.mubr.msk.bf16.gmra.mrb[52].mxu1 %vm468_vm0, %v411_v61  ;;  %14733 = vmatmul.mubr.msk.bf16.gmra.mrb[52].mxu0 %vm468_vm0, %v4712_v62  ;;  %v12251_v61 = vld [vmem:[%s21841_s0 + $0x8a] sm:$0xff]  ;;  %v12252_v62 = vld [vmem:[%s21841_s0 + $0x92] sm:$0xff] }
  0x73   :  { %14144 = vmatprep.mubr.msk.bf16.mxu1 %vm468_vm0, %v412_v63  ;;  %14736 = vmatprep.mubr.msk.bf16.mxu0 %vm468_vm0, %v4713_v0  ;;  %v319_v63 = vld [vmem:[%s21841_s0 + $0x3c1] sm:$0xff]  ;;  %v320_v0 = vld [vmem:[%s21841_s0 + $0x3c9] sm:$0xff]  ;;  %v5892_v4 = vpack.c.bf16 %v12252_v62, %v12251_v61  ;;  %v339_v61 = vld [vmem:[%s21841_s0 + $0x491] sm:$0xff] }
  0x74   :  { %v340_v62 = vld [vmem:[%s21841_s0 + $0x4a1] sm:$0xff] }
  0x7a   :  { %14145 = vmatmul.mubr.msk.bf16.gmra.mrb[56].mxu1 %vm468_vm0, %v413_v5  ;;  %14737 = vmatmul.mubr.msk.bf16.gmra.mrb[56].mxu0 %vm468_vm0, %v4714_v6  ;;  %v426_v5 = vpack.c.bf16 %v320_v0, %v319_v63  ;;  %v5893_v6 = vpack.c.bf16 %v12254_v2, %v12253_v1  ;;  %v12273_v63 = vld [vmem:[%s21841_s0 + $0x172] sm:$0xff]  ;;  %v12274_v0 = vld [vmem:[%s21841_s0 + $0x182] sm:$0xff]  ;;  %v5902_v2 = vpack.c.bf16 %v12272_v60, %v12271_v59  ;;  %v12293_v60 = vld [vmem:[%s21841_s0 + $0x24a] sm:$0xff] }
  0x7b   :  { %14148 = vmatprep.mubr.msk.bf16.mxu1 %vm468_vm0, %v414_v7  ;;  %14740 = vmatprep.mubr.msk.bf16.mxu0 %vm468_vm0, %v4715_v8  ;;  %v321_v7 = vld [vmem:[%s21841_s0 + $0x3d1] sm:$0xff]  ;;  %v17043_v8 = vld [vmem:[%s21840_s1 + $0x20] sm:$0xff]  }
  0x7c   :  { %14380 = vmatprep.subr.bf16.mxu1 %v17043_v8  ;;  %v427_v17 = vpack.c.bf16 %v322_v9, %v321_v7  ;;  %v12275_v7 = vld [vmem:[%s21841_s0 + $0x18a] sm:$0xff]  ;;  %v12276_v9 = vld [vmem:[%s21841_s0 + $0x192] sm:$0xff] }
  0x7d   :  { %v360_v59 = vld [vmem:[%s21841_s0 + $0x571] sm:$0xff] }
  0x82   :  { %14149 = vmatmul.mubr.msk.bf16.gmra.mrb[60].mxu1 %vm468_vm0, %v415_v13  ;;  %14741 = vmatmul.mubr.msk.bf16.gmra.mrb[60].mxu0 %vm468_vm0, %v4716_v14  ;;  %v323_v13 = vld [vmem:[%s21841_s0 + $0x3e9] sm:$0xff]  ;;  %v324_v14 = vld [vmem:[%s21841_s0 + $0x3f1] sm:$0xff] }
  0x83   :  { %14152 = vmatprep.mubr.msk.bf16.mxu1 %vm468_vm0, %v416_v15  ;;  %14744 = vmatprep.mubr.msk.bf16.mxu0 %vm468_vm0, %v4717_v16  ;;  %v12257_v15 = vld [vmem:[%s21841_s0 + $0xca] sm:$0xff]  ;;  %v12258_v16 = vld [vmem:[%s21841_s0 + $0xd2] sm:$0xff]  ;;  %v428_v19 = vpack.c.bf16 %v324_v14, %v323_v13 }
  0x84   :  { %v5895_v20 = vpack.c.bf16 %v12258_v16, %v12257_v15  ;;  %v12278_v13 = vld [vmem:[%s21841_s0 + $0x1aa] sm:$0xff]  ;;  %v5904_v15 = vpack.c.bf16 %v12276_v9, %v12275_v7  ;;  %v364_v7 = vld [vmem:[%s21841_s0 + $0x5a1] sm:$0xff]  ;;  %v12297_v9 = vld [vmem:[%s21841_s0 + $0x272] sm:$0xff] }
  0x8a   :  { %14153 = vmatmul.mubr.msk.bf16.gmra.mrb[64].mxu1 %vm468_vm0, %v417_v21  ;;  %14745 = vmatmul.mubr.msk.bf16.gmra.mrb[64].mxu0 %vm468_vm0, %v4718_v22  ;;  %v325_v21 = vld [vmem:[%s21841_s0 + $0x401] sm:$0xff]  ;;  %v326_v22 = vld [vmem:[%s21841_s0 + $0x409] sm:$0xff] }
  0x8b   :  { %14156 = vmatprep.mubr.msk.bf16.mxu1 %vm468_vm0, %v418_v23  ;;  %14748 = vmatprep.mubr.msk.bf16.mxu0 %vm468_vm0, %v4719_v24  ;;  %v12259_v23 = vld [vmem:[%s21841_s0 + $0xe2] sm:$0xff]  ;;  %v12260_v24 = vld [vmem:[%s21841_s0 + $0xea] sm:$0xff]  ;;  %v429_v29 = vpack.c.bf16 %v326_v22, %v325_v21 }
  0x8c   :  { %v5896_v30 = vpack.c.bf16 %v12260_v24, %v12259_v23  ;;  %v12280_v21 = vld [vmem:[%s21841_s0 + $0x1c2] sm:$0xff]  ;;  %v348_v23 = vld [vmem:[%s21841_s0 + $0x4f1] sm:$0xff] }
  0x8d   :  { %v347_v22 = vld [vmem:[%s21841_s0 + $0x4e9] sm:$0xff] }
  0x8e   :  { %v12281_v24 = vld [vmem:[%s21841_s0 + $0x1ca] sm:$0xff] }
  0x92   :  { %14157 = vmatmul.mubr.msk.bf16.gmra.mrb[68].mxu1 %vm468_vm0, %v419_v31  ;;  %14749 = vmatmul.mubr.msk.bf16.gmra.mrb[68].mxu0 %vm468_vm0, %v4720_v32  ;;  %v430_v31 = vpack.c.bf16 %v328_v26, %v327_v25  ;;  %v5897_v32 = vpack.c.bf16 %v12262_v28, %v12261_v27  ;;  %v12282_v25 = vld [vmem:[%s21841_s0 + $0x1d2] sm:$0xff]  ;;  %v440_v28 = vpack.c.bf16 %v348_v23, %v347_v22  ;;  %v12302_v22 = vld [vmem:[%s21841_s0 + $0x2aa] sm:$0xff] }
  0x93   :  { %14160 = vmatprep.mubr.msk.bf16.mxu1 %vm468_vm0, %v420_v33  ;;  %14828 = vmatprep.mubr.msk.bf16.mxu0 %vm468_vm0, %v5887_v34  ;;  %v329_v33 = vld [vmem:[%s21841_s0 + $0x429] sm:$0xff]  ;;  %v330_v34 = vld [vmem:[%s21841_s0 + $0x431] sm:$0xff] }
  0x94   :  { %v431_v41 = vpack.c.bf16 %v330_v34, %v329_v33  ;;  %v12284_v33 = vld [vmem:[%s21841_s0 + $0x1ea] sm:$0xff] }
  0x95   :  { %v351_v34 = vld [vmem:[%s21841_s0 + $0x511] sm:$0xff] }
  0x9a   :  { %14161 = vmatmul.mubr.msk.bf16.gmra.mrb[72].mxu1 %vm468_vm0, %v421_v43  ;;  %14829 = vmatmul.mubr.msk.bf16.vlgmr.msra.gmra.mrb[0].mxu0 %vm468_vm0, %v5888_v44  ;;  %v432_v43 = vpack.c.bf16 %v332_v38, %v331_v37  ;;  %v5899_v44 = vpack.c.bf16 %v12266_v40, %v12265_v39  ;;  %v12286_v37 = vld [vmem:[%s21841_s0 + $0x202] sm:$0xff]  ;;  %v442_v40 = vpack.c.bf16 %v352_v35, %v351_v34  ;;  %v12306_v34 = vld [vmem:[%s21841_s0 + $0x2d2] sm:$0xff] }
  0x9b   :  { %14164 = vmatprep.mubr.msk.bf16.mxu1 %vm468_vm0, %v422_v45  ;;  %14973 = vmatpush3.bf16.msra.mxu0 %v16728_v49  ;;  %v12250_v49 = vld [vmem:[%s21841_s0 + $0x82] sm:$0xff]  ;;  %v333_v45 = vld [vmem:[%s21841_s0 + $0x451] sm:$0xff] }
  0x9c   :  { %14832 = vmatprep.mubr.msk.bf16.mxu0 %vm468_vm0, %v5889_v46  ;;  %v5891_v58 = vpack.c.bf16 %v12250_v49, %v12249_v54  ;;  %14974 = vmatprep.subr.bf16.mxu0 %v16582_v11  ;;  %v334_v46 = vld [vmem:[%s21841_s0 + $0x461] sm:$0xff]  ;;  %v5900_v49 = vpack.c.bf16 %v12268_v48, %v12267_v47  ;;  %v356_v47 = vld [vmem:[%s21841_s0 + $0x549] sm:$0xff] }
  0x9d   :  { %v433_v54 = vpack.c.bf16 %v334_v46, %v333_v45  ;;  %v12288_v45 = vld [vmem:[%s21841_s0 + $0x212] sm:$0xff]  ;;  %v355_v46 = vld [vmem:[%s21841_s0 + $0x541] sm:$0xff] }
  0x9e   :  { %v12289_v48 = vld [vmem:[%s21841_s0 + $0x222] sm:$0xff] }
  0x9f   :  { %14975 = vmatpush3.bf16.msra.mxu0 %v16582_v11  ;;  %v344_v11 = vld [vmem:[%s21841_s0 + $0x4c9] sm:$0xff] }
  0xa0   :  { %v438_v16 = vpack.c.bf16 %v344_v11, %v343_v10  ;;  %v12298_v10 = vld [vmem:[%s21841_s0 + $0x282] sm:$0xff] }
  0xa2   :  { %14165 = vmatmul.mubr.msk.bf16.gmra.mrb[76].mxu1 %vm468_vm0, %v423_v55  ;;  %14833 = vmatmul.mubr.msk.bf16.gmra.mrb[4].mxu0 %vm468_vm0, %v5890_v56  ;;  %v434_v55 = vpack.c.bf16 %v336_v51, %v335_v50  ;;  %v5901_v56 = vpack.c.bf16 %v12270_v53, %v12269_v52  ;;  %v12290_v50 = vld [vmem:[%s21841_s0 + $0x22a] sm:$0xff]  ;;  %v444_v53 = vpack.c.bf16 %v356_v47, %v355_v46  ;;  %v12310_v46 = vld [vmem:[%s21841_s0 + $0x302] sm:$0xff] }
  0xa3   :  { %14168 = vmatprep.mubr.msk.bf16.mxu1 %vm468_vm0, %v424_v57  ;;  %14836 = vmatprep.mubr.msk.bf16.mxu0 %vm468_vm0, %v5891_v58  ;;  %v337_v57 = vld [vmem:[%s21841_s0 + $0x481] sm:$0xff]  ;;  %v338_v58 = vld [vmem:[%s21841_s0 + $0x489] sm:$0xff] }
  0xa4   :  { %v435_v1 = vpack.c.bf16 %v338_v58, %v337_v57  ;;  %v12292_v57 = vld [vmem:[%s21841_s0 + $0x242] sm:$0xff] }
  0xa5   :  { %v359_v58 = vld [vmem:[%s21841_s0 + $0x569] sm:$0xff] }
  0xaa   :  { %14169 = vmatmul.mubr.msk.bf16.gmra.mrb[80].mxu1 %vm468_vm0, %v425_v3  ;;  %14837 = vmatmul.mubr.msk.bf16.gmra.mrb[8].mxu0 %vm468_vm0, %v5892_v4  ;;  %v436_v3 = vpack.c.bf16 %v340_v62, %v339_v61  ;;  %v5903_v4 = vpack.c.bf16 %v12274_v0, %v12273_v63  ;;  %v12294_v61 = vld [vmem:[%s21841_s0 + $0x252] sm:$0xff]  ;;  %v446_v0 = vpack.c.bf16 %v360_v59, %v359_v58  ;;  %v12314_v58 = vld [vmem:[%s21841_s0 + $0x36a] sm:$0xff] }
  0xab   :  { %14172 = vmatprep.mubr.msk.bf16.mxu1 %vm468_vm0, %v426_v5  ;;  %14840 = vmatprep.mubr.msk.bf16.mxu0 %vm468_vm0, %v5893_v6  ;;  %v341_v5 = vld [vmem:[%s21841_s0 + $0x4a9] sm:$0xff]  ;;  %v342_v6 = vld [vmem:[%s21841_s0 + $0x4b1] sm:$0xff] }
  0xac   :  { %v437_v14 = vpack.c.bf16 %v342_v6, %v341_v5  ;;  %v12296_v5 = vld [vmem:[%s21841_s0 + $0x26a] sm:$0xff] }
  0xad   :  { %v363_v6 = vld [vmem:[%s21841_s0 + $0x591] sm:$0xff] }
  0xb2   :  { %14173 = vmatmul.mubr.msk.bf16.gmra.mrb[84].mxu1 %vm468_vm0, %v427_v17  ;;  %14841 = vmatmul.mubr.msk.bf16.gmra.mrb[12].mxu0 %vm468_vm0, %v5894_v18  ;;  %v5905_v17 = vpack.c.bf16 %v12278_v13, %v12277_v12  ;;  %v345_v18 = vld [vmem:[%s21841_s0 + $0x4d1] sm:$0xff]  ;;  %v448_v13 = vpack.c.bf16 %v364_v7, %v363_v6 }
  0xb3   :  { %14176 = vmatprep.mubr.msk.bf16.mxu1 %vm468_vm0, %v428_v19  ;;  %14844 = vmatprep.mubr.msk.bf16.mxu0 %vm468_vm0, %v5895_v20  ;;  %v346_v19 = vld [vmem:[%s21841_s0 + $0x4e1] sm:$0xff]  ;;  %v12279_v20 = vld [vmem:[%s21841_s0 + $0x1b2] sm:$0xff] }
  0xb4   :  { %v439_v26 = vpack.c.bf16 %v346_v19, %v345_v18  ;;  %v5906_v27 = vpack.c.bf16 %v12280_v21, %v12279_v20  ;;  %v12300_v18 = vld [vmem:[%s21841_s0 + $0x292] sm:$0xff]  ;;  %v367_v19 = vld [vmem:[%s21841_s0 + $0x5c1] sm:$0xff]  ;;  %v368_v20 = vld [vmem:[%s21841_s0 + $0x5c9] sm:$0xff] }
  0xb5   :  { %v12301_v21 = vld [vmem:[%s21841_s0 + $0x2a2] sm:$0xff]  ;;  %v12318_v6 = vld [vmem:[%s21841_s0 + $0x392] sm:$0xff] }
  0xba   :  { %14177 = vmatmul.mubr.msk.bf16.gmra.mrb[88].mxu1 %vm468_vm0, %v429_v29  ;;  %14845 = vmatmul.mubr.msk.bf16.gmra.mrb[16].mxu0 %vm468_vm0, %v5896_v30  ;;  %v5907_v29 = vpack.c.bf16 %v12282_v25, %v12281_v24  ;;  %v349_v30 = vld [vmem:[%s21841_s0 + $0x501] sm:$0xff]  ;;  %v450_v25 = vpack.c.bf16 %v368_v20, %v367_v19 }
  0xbb   :  { %14180 = vmatprep.mubr.msk.bf16.mxu1 %vm468_vm0, %v430_v31  ;;  %14848 = vmatprep.mubr.msk.bf16.mxu0 %vm468_vm0, %v5897_v32  ;;  %v350_v31 = vld [vmem:[%s21841_s0 + $0x509] sm:$0xff] }
  0xbc   :  { %v12283_v32 = vld [vmem:[%s21841_s0 + $0x1e2] sm:$0xff]  ;;  %v441_v38 = vpack.c.bf16 %v350_v31, %v349_v30 }
  0xbd   :  { %v5908_v39 = vpack.c.bf16 %v12284_v33, %v12283_v32  ;;  %v12304_v30 = vld [vmem:[%s21841_s0 + $0x2c2] sm:$0xff]  ;;  %v372_v32 = vld [vmem:[%s21841_s0 + $0x5f1] sm:$0xff] }
  0xbe   :  { %v371_v31 = vld [vmem:[%s21841_s0 + $0x5e9] sm:$0xff] }
  0xbf   :  { %v12305_v33 = vld [vmem:[%s21841_s0 + $0x2ca] sm:$0xff] }
  0xc2   :  { %14181 = vmatmul.mubr.msk.bf16.gmra.mrb[92].mxu1 %vm468_vm0, %v431_v41  ;;  %14849 = vmatmul.mubr.msk.bf16.gmra.mrb[20].mxu0 %vm468_vm0, %v5898_v42  ;;  %v5909_v41 = vpack.c.bf16 %v12286_v37, %v12285_v36  ;;  %v353_v42 = vld [vmem:[%s21841_s0 + $0x529] sm:$0xff]  ;;  %v452_v37 = vpack.c.bf16 %v372_v32, %v371_v31 }
  0xc3   :  { %14184 = vmatprep.mubr.msk.bf16.mxu1 %vm468_vm0, %v432_v43  ;;  %14852 = vmatprep.mubr.msk.bf16.mxu0 %vm468_vm0, %v5899_v44  ;;  %v354_v43 = vld [vmem:[%s21841_s0 + $0x531] sm:$0xff] }
  0xc4   :  { %v12287_v44 = vld [vmem:[%s21841_s0 + $0x20a] sm:$0xff]  ;;  %v443_v51 = vpack.c.bf16 %v354_v43, %v353_v42 }
  0xc5   :  { %v5910_v52 = vpack.c.bf16 %v12288_v45, %v12287_v44  ;;  %v12308_v42 = vld [vmem:[%s21841_s0 + $0x2ea] sm:$0xff]  ;;  %v376_v44 = vld [vmem:[%s21841_s0 + $0x621] sm:$0xff]  ;;  %v12309_v45 = vld [vmem:[%s21841_s0 + $0x2f2] sm:$0xff] }
  0xc6   :  { %v375_v43 = vld [vmem:[%s21841_s0 + $0x611] sm:$0xff] }
  0xca   :  { %14185 = vmatmul.mubr.msk.bf16.gmra.mrb[96].mxu1 %vm468_vm0, %v433_v54  ;;  %14853 = vmatmul.mubr.msk.bf16.gmra.mrb[24].mxu0 %vm468_vm0, %v5900_v49  ;;  %v5911_v54 = vpack.c.bf16 %v12290_v50, %v12289_v48  ;;  %v357_v49 = vld [vmem:[%s21841_s0 + $0x551] sm:$0xff]  ;;  %v454_v50 = vpack.c.bf16 %v376_v44, %v375_v43 }
  0xcb   :  { %14188 = vmatprep.mubr.msk.bf16.mxu1 %vm468_vm0, %v434_v55  ;;  %14856 = vmatprep.mubr.msk.bf16.mxu0 %vm468_vm0, %v5901_v56  ;;  %v358_v55 = vld [vmem:[%s21841_s0 + $0x561] sm:$0xff]  ;;  %v12291_v56 = vld [vmem:[%s21841_s0 + $0x232] sm:$0xff]  ;;  %v12329_v43 = vld [vmem:[%s21841_s0 + $0x40a] sm:$0xff] }
  0xcc   :  { %v445_v62 = vpack.c.bf16 %v358_v55, %v357_v49  ;;  %v5912_v63 = vpack.c.bf16 %v12292_v57, %v12291_v56  ;;  %v12312_v49 = vld [vmem:[%s21841_s0 + $0x312] sm:$0xff]  ;;  %v15_v55 = vld [vmem:[%s21841_s0] sm:$0xff]  ;;  %v16_v56 = vld [vmem:[%s21841_s0 + $0x8] sm:$0xff] }
  0xcd   :  { %v12313_v57 = vld [vmem:[%s21841_s0 + $0x362] sm:$0xff]  ;;  %v12330_v44 = vld [vmem:[%s21841_s0 + $0x412] sm:$0xff] }
  0xd2   :  { %14189 = vmatmul.mubr.msk.bf16.gmra.mrb[100].mxu1 %vm468_vm0, %v435_v1  ;;  %14857 = vmatmul.mubr.msk.bf16.gmra.mrb[28].mxu0 %vm468_vm0, %v5902_v2  ;;  %v5913_v1 = vpack.c.bf16 %v12294_v61, %v12293_v60  ;;  %v361_v2 = vld [vmem:[%s21841_s0 + $0x581] sm:$0xff]  ;;  %v163_v61 = vpack.c.bf16 %v16_v56, %v15_v55  ;;  %v12333_v55 = vld [vmem:[%s21841_s0 + $0x432] sm:$0xff] }
  0xd3   :  { %14192 = vmatprep.mubr.msk.bf16.mxu1 %vm468_vm0, %v436_v3  ;;  %14860 = vmatprep.mubr.msk.bf16.mxu0 %vm468_vm0, %v5903_v4  ;;  %v362_v3 = vld [vmem:[%s21841_s0 + $0x589] sm:$0xff] }
  0xd4   :  { %v12295_v4 = vld [vmem:[%s21841_s0 + $0x262] sm:$0xff]  ;;  %v447_v11 = vpack.c.bf16 %v362_v3, %v361_v2 }
  0xd5   :  { %v5914_v12 = vpack.c.bf16 %v12296_v5, %v12295_v4  ;;  %v12316_v2 = vld [vmem:[%s21841_s0 + $0x382] sm:$0xff]  ;;  %v20_v4 = vld [vmem:[%s21841_s0 + $0x30] sm:$0xff] }
  0xd6   :  { %v19_v3 = vld [vmem:[%s21841_s0 + $0x28] sm:$0xff] }
  0xd7   :  { %v12317_v5 = vld [vmem:[%s21841_s0 + $0x38a] sm:$0xff]  ;;  %v12334_v56 = vld [vmem:[%s21841_s0 + $0x442] sm:$0xff] }
  0xda   :  { %14193 = vmatmul.mubr.msk.bf16.gmra.mrb[104].mxu1 %vm468_vm0, %v437_v14  ;;  %14861 = vmatmul.mubr.msk.bf16.gmra.mrb[32].mxu0 %vm468_vm0, %v5904_v15  ;;  %v5915_v14 = vpack.c.bf16 %v12298_v10, %v12297_v9  ;;  %v365_v15 = vld [vmem:[%s21841_s0 + $0x5a9] sm:$0xff]  ;;  %v165_v10 = vpack.c.bf16 %v20_v4, %v19_v3 }
  0xdb   :  { %14196 = vmatprep.mubr.msk.bf16.mxu1 %vm468_vm0, %v438_v16  ;;  %14864 = vmatprep.mubr.msk.bf16.mxu0 %vm468_vm0, %v5905_v17  ;;  %v366_v16 = vld [vmem:[%s21841_s0 + $0x5b1] sm:$0xff]  ;;  %v12337_v3 = vld [vmem:[%s21841_s0 + $0x462] sm:$0xff] }
  0xdc   :  { %v12299_v17 = vld [vmem:[%s21841_s0 + $0x28a] sm:$0xff]  ;;  %v449_v23 = vpack.c.bf16 %v366_v16, %v365_v15  ;;  %v24_v16 = vld [vmem:[%s21841_s0 + $0x60] sm:$0xff] }
  0xdd   :  { %v5916_v24 = vpack.c.bf16 %v12300_v18, %v12299_v17  ;;  %v23_v15 = vld [vmem:[%s21841_s0 + $0x50] sm:$0xff]  ;;  %v12322_v18 = vld [vmem:[%s21841_s0 + $0x3c2] sm:$0xff] }
  0xde   :  { %v12321_v17 = vld [vmem:[%s21841_s0 + $0x3b2] sm:$0xff]  ;;  %v12338_v4 = vld [vmem:[%s21841_s0 + $0x46a] sm:$0xff] }
  0xe2   :  { %14197 = vmatmul.mubr.msk.bf16.gmra.mrb[108].mxu1 %vm468_vm0, %v439_v26  ;;  %14865 = vmatmul.mubr.msk.bf16.gmra.mrb[36].mxu0 %vm468_vm0, %v5906_v27  ;;  %v5917_v26 = vpack.c.bf16 %v12302_v22, %v12301_v21  ;;  %v369_v27 = vld [vmem:[%s21841_s0 + $0x5d1] sm:$0xff]  ;;  %v17524_v21 = vpack.c.bf16 %v24_v16, %v23_v15  ;;  %v5927_v22 = vpack.c.bf16 %v12322_v18, %v12321_v17 }
  0xe3   :  { %14200 = vmatprep.mubr.msk.bf16.mxu1 %vm468_vm0, %v440_v28  ;;  %14868 = vmatprep.mubr.msk.bf16.mxu0 %vm468_vm0, %v5907_v29  ;;  %v370_v28 = vld [vmem:[%s21841_s0 + $0x5e1] sm:$0xff]  ;;  %v12303_v29 = vld [vmem:[%s21841_s0 + $0x2b2] sm:$0xff]  ;;  %v12341_v15 = vld [vmem:[%s21841_s0 + $0x48a] sm:$0xff] }
  0xe4   :  { %v451_v35 = vpack.c.bf16 %v370_v28, %v369_v27  ;;  %v5918_v36 = vpack.c.bf16 %v12304_v30, %v12303_v29  ;;  %v27_v27 = vld [vmem:[%s21841_s0 + $0x80] sm:$0xff]  ;;  %v28_v28 = vld [vmem:[%s21841_s0 + $0x88] sm:$0xff]  ;;  %v12342_v16 = vld [vmem:[%s21841_s0 + $0x492] sm:$0xff] }
  0xe5   :  { %v12325_v29 = vld [vmem:[%s21841_s0 + $0x3e2] sm:$0xff]  ;;  %v12326_v30 = vld [vmem:[%s21841_s0 + $0x3ea] sm:$0xff] }
  0xea   :  { %14201 = vmatmul.mubr.msk.bf16.gmra.mrb[112].mxu1 %vm468_vm0, %v441_v38  ;;  %14869 = vmatmul.mubr.msk.bf16.gmra.mrb[40].mxu0 %vm468_vm0, %v5908_v39  ;;  %v5919_v38 = vpack.c.bf16 %v12306_v34, %v12305_v33  ;;  %v373_v39 = vld [vmem:[%s21841_s0 + $0x601] sm:$0xff]  ;;  %v17558_v33 = vpack.c.bf16 %v28_v28, %v27_v27  ;;  %v5929_v34 = vpack.c.bf16 %v12326_v30, %v12325_v29  ;;  %v47_v27 = vld [vmem:[%s21841_s0 + $0x150] sm:$0xff] }
  0xeb   :  { %14204 = vmatprep.mubr.msk.bf16.mxu1 %vm468_vm0, %v442_v40  ;;  %14872 = vmatprep.mubr.msk.bf16.mxu0 %vm468_vm0, %v5909_v41  ;;  %v374_v40 = vld [vmem:[%s21841_s0 + $0x609] sm:$0xff]  ;;  %v48_v28 = vld [vmem:[%s21841_s0 + $0x160] sm:$0xff]  ;;  %v12345_v29 = vld [vmem:[%s21841_s0 + $0x4b2] sm:$0xff] }
  0xec   :  { %v12307_v41 = vld [vmem:[%s21841_s0 + $0x2e2] sm:$0xff]  ;;  %v453_v47 = vpack.c.bf16 %v374_v40, %v373_v39  ;;  %v17580_v39 = vld [vmem:[%s21840_s1 + $0x70] sm:$0xff]  }
  0xed   :  { %v5920_v48 = vpack.c.bf16 %v12308_v42, %v12307_v41  ;;  %v12328_v40 = vld [vmem:[%s21841_s0 + $0x402] sm:$0xff]  ;;  %v32_v42 = vld [vmem:[%s21841_s0 + $0xb0] sm:$0xff]  ;;  %15120 = vmatprep.subr.bf16.mxu0 %v17580_v39 }
  0xee   :  { %v31_v41 = vld [vmem:[%s21841_s0 + $0xa8] sm:$0xff] }
  0xef   :  { %v12346_v30 = vld [vmem:[%s21841_s0 + $0x4c2] sm:$0xff] }
  0xf2   :  { %14205 = vmatmul.mubr.msk.bf16.gmra.mrb[116].mxu1 %vm468_vm0, %v443_v51  ;;  %14873 = vmatmul.mubr.msk.bf16.gmra.mrb[44].mxu0 %vm468_vm0, %v5910_v52  ;;  %v5921_v51 = vpack.c.bf16 %v12310_v46, %v12309_v45  ;;  %v377_v52 = vld [vmem:[%s21841_s0 + $0x629] sm:$0xff] }
  0xf3   :  { %14208 = vmatprep.mubr.msk.bf16.mxu1 %vm468_vm0, %v444_v53  ;;  %14876 = vmatprep.mubr.msk.bf16.mxu0 %vm468_vm0, %v5911_v54  ;;  %v378_v53 = vld [vmem:[%s21841_s0 + $0x631] sm:$0xff] }
  0xf4   :  { %v12311_v54 = vld [vmem:[%s21841_s0 + $0x30a] sm:$0xff]  ;;  %v455_v59 = vpack.c.bf16 %v378_v53, %v377_v52  ;;  %v12331_v52 = vld [vmem:[%s21841_s0 + $0x422] sm:$0xff] }
  0xf5   :  { %v5922_v60 = vpack.c.bf16 %v12312_v49, %v12311_v54  ;;  %v12332_v53 = vld [vmem:[%s21841_s0 + $0x42a] sm:$0xff]  ;;  %v36_v49 = vld [vmem:[%s21841_s0 + $0xe0] sm:$0xff] }
  0xf6   :  { %v35_v54 = vld [vmem:[%s21841_s0 + $0xd0] sm:$0xff] }
  0xfa   :  { %14209 = vmatmul.mubr.msk.bf16.gmra.mrb[120].mxu1 %vm468_vm0, %v445_v62  ;;  %14877 = vmatmul.mubr.msk.bf16.gmra.mrb[48].mxu0 %vm468_vm0, %v5912_v63  ;;  %v5923_v62 = vpack.c.bf16 %v12314_v58, %v12313_v57  ;;  %v17_v63 = vld [vmem:[%s21841_s0 + $0x10] sm:$0xff]  ;;  %v5932_v58 = vpack.c.bf16 %v12332_v53, %v12331_v52 }
  0xfb   :  { %14212 = vmatprep.mubr.msk.bf16.mxu1 %vm468_vm0, %v446_v0  ;;  %14880 = vmatprep.mubr.msk.bf16.mxu0 %vm468_vm0, %v5913_v1  ;;  %v18_v0 = vld [vmem:[%s21841_s0 + $0x20] sm:$0xff]  ;;  %v12315_v1 = vld [vmem:[%s21841_s0 + $0x372] sm:$0xff] }
  0xfc   :  { %v164_v7 = vpack.c.bf16 %v18_v0, %v17_v63  ;;  %v5924_v9 = vpack.c.bf16 %v12316_v2, %v12315_v1  ;;  %v12335_v63 = vld [vmem:[%s21841_s0 + $0x44a] sm:$0xff]  ;;  %v12336_v0 = vld [vmem:[%s21841_s0 + $0x452] sm:$0xff]  ;;  %v39_v1 = vld [vmem:[%s21841_s0 + $0x100] sm:$0xff] }
  0xfd   :  { %v40_v2 = vld [vmem:[%s21841_s0 + $0x108] sm:$0xff]  ;;  %v53_v53 = vld [vmem:[%s21841_s0 + $0x190] sm:$0xff] }
 0x102   :  { %14213 = vmatmul.mubr.msk.bf16.gmra.mrb[124].mxu1 %vm468_vm0, %v447_v11  ;;  %14881 = vmatmul.mubr.msk.bf16.gmra.mrb[52].mxu0 %vm468_vm0, %v5914_v12  ;;  %v5925_v11 = vpack.c.bf16 %v12318_v6, %v12317_v5  ;;  %v21_v12 = vld [vmem:[%s21841_s0 + $0x40] sm:$0xff]  ;;  %v5934_v6 = vpack.c.bf16 %v12336_v0, %v12335_v63 }
 0x103   :  { %14216 = vmatprep.mubr.msk.bf16.mxu1 %vm468_vm0, %v448_v13  ;;  %14884 = vmatprep.mubr.msk.bf16.mxu0 %vm468_vm0, %v5915_v14  ;;  %v22_v13 = vld [vmem:[%s21841_s0 + $0x48] sm:$0xff] }
 0x104   :  { %v12319_v14 = vld [vmem:[%s21841_s0 + $0x3a2] sm:$0xff]  ;;  %v17522_v19 = vpack.c.bf16 %v22_v13, %v21_v12  ;;  %v12339_v12 = vld [vmem:[%s21841_s0 + $0x472] sm:$0xff] }
 0x105   :  { %v12340_v13 = vld [vmem:[%s21841_s0 + $0x482] sm:$0xff] }
 0x106   :  { %v5936_v18 = vpack.c.bf16 %v12340_v13, %v12339_v12  ;;  %v12358_v12 = vld [vmem:[%s21841_s0 + $0x542] sm:$0xff] }
 0x10a   :  { %14217 = vmatmul.mubr.msk.bf16.gmra.mrb[128].mxu1 %vm468_vm0, %v449_v23  ;;  %14885 = vmatmul.mubr.msk.bf16.gmra.mrb[56].mxu0 %vm468_vm0, %v5916_v24  ;;  %v25_v23 = vld [vmem:[%s21841_s0 + $0x68] sm:$0xff]  ;;  %v26_v24 = vld [vmem:[%s21841_s0 + $0x70] sm:$0xff] }
 0x10b   :  { %14220 = vmatprep.mubr.msk.bf16.mxu1 %vm468_vm0, %v450_v25  ;;  %14888 = vmatprep.mubr.msk.bf16.mxu0 %vm468_vm0, %v5917_v26  ;;  %v12323_v25 = vld [vmem:[%s21841_s0 + $0x3ca] sm:$0xff]  ;;  %v12324_v26 = vld [vmem:[%s21841_s0 + $0x3d2] sm:$0xff]  ;;  %v17556_v31 = vpack.c.bf16 %v26_v24, %v25_v23  ;;  %v45_v23 = vld [vmem:[%s21841_s0 + $0x140] sm:$0xff] }
 0x10c   :  { %v5928_v32 = vpack.c.bf16 %v12324_v26, %v12323_v25  ;;  %v46_v24 = vld [vmem:[%s21841_s0 + $0x148] sm:$0xff] }
 0x10d   :  { %v12343_v25 = vld [vmem:[%s21841_s0 + $0x4a2] sm:$0xff]  ;;  %v12344_v26 = vld [vmem:[%s21841_s0 + $0x4aa] sm:$0xff] }
 0x112   :  { %14221 = vmatmul.mubr.msk.bf16.gmra.mrb[132].mxu1 %vm468_vm0, %v451_v35  ;;  %14889 = vmatmul.mubr.msk.bf16.gmra.mrb[60].mxu0 %vm468_vm0, %v5918_v36  ;;  %v29_v35 = vld [vmem:[%s21841_s0 + $0x90] sm:$0xff]  ;;  %v16583_v36 = vld [vmem:[%s21840_s1 + $0x28] sm:$0xff]  }
 0x113   :  { %14224 = vmatprep.mubr.msk.bf16.mxu1 %vm468_vm0, %v452_v37  ;;  %14892 = vmatprep.mubr.msk.bf16.mxu0 %vm468_vm0, %v5919_v38  ;;  %v30_v37 = vld [vmem:[%s21841_s0 + $0xa0] sm:$0xff]  ;;  %v12327_v38 = vld [vmem:[%s21841_s0 + $0x3f2] sm:$0xff] }
 0x114   :  { %v17599_v45 = vpack.c.bf16 %v30_v37, %v29_v35  ;;  %v5930_v46 = vpack.c.bf16 %v12328_v40, %v12327_v38  ;;  %v17737_v35 = vpack.c.bf16 %v48_v28, %v47_v27  ;;  %v49_v37 = vld [vmem:[%s21841_s0 + $0x168] sm:$0xff]  ;;  %v50_v38 = vld [vmem:[%s21841_s0 + $0x170] sm:$0xff] }
 0x115   :  { %v12347_v40 = vld [vmem:[%s21841_s0 + $0x4ca] sm:$0xff] }
 0x116   :  { %v12362_v27 = vld [vmem:[%s21841_s0 + $0x56a] sm:$0xff] }
 0x11a   :  { %14225 = vmatmul.mubr.msk.bf16.gmra.mrb[136].mxu1 %vm468_vm0, %v453_v47  ;;  %14893 = vmatmul.mubr.msk.bf16.gmra.mrb[64].mxu0 %vm468_vm0, %v5920_v48  ;;  %v17601_v47 = vpack.c.bf16 %v32_v42, %v31_v41  ;;  %v5931_v48 = vpack.c.bf16 %v12330_v44, %v12329_v43  ;;  %v12348_v41 = vld [vmem:[%s21841_s0 + $0x4d2] sm:$0xff]  ;;  %v51_v42 = vld [vmem:[%s21841_s0 + $0x180] sm:$0xff]  ;;  %v52_v43 = vld [vmem:[%s21841_s0 + $0x188] sm:$0xff] }
 0x11b   :  { %14228 = vmatprep.mubr.msk.bf16.mxu1 %vm468_vm0, %v454_v50  ;;  %14896 = vmatprep.mubr.msk.bf16.mxu0 %vm468_vm0, %v5921_v51  ;;  %v33_v50 = vld [vmem:[%s21841_s0 + $0xc0] sm:$0xff]  ;;  %v34_v51 = vld [vmem:[%s21841_s0 + $0xc8] sm:$0xff] }
 0x11c   :  { %v17633_v57 = vpack.c.bf16 %v34_v51, %v33_v50  ;;  %v12349_v44 = vld [vmem:[%s21841_s0 + $0x4e2] sm:$0xff]  ;;  %v5940_v50 = vpack.c.bf16 %v12348_v41, %v12347_v40  ;;  %v17771_v51 = vpack.c.bf16 %v52_v43, %v51_v42  ;;  %v68_v42 = vld [vmem:[%s21841_s0 + $0x230] sm:$0xff] }
 0x11d   :  { %v12364_v40 = vld [vmem:[%s21841_s0 + $0x582] sm:$0xff]  ;;  %v12365_v43 = vld [vmem:[%s21841_s0 + $0x58a] sm:$0xff] }
 0x11e   :  { %v67_v41 = vld [vmem:[%s21841_s0 + $0x228] sm:$0xff] }
 0x122   :  { %14229 = vmatmul.mubr.msk.bf16.gmra.mrb[140].mxu1 %vm468_vm0, %v455_v59  ;;  %14897 = vmatmul.mubr.msk.bf16.gmra.mrb[68].mxu0 %vm468_vm0, %v5922_v60  ;;  %v17635_v59 = vpack.c.bf16 %v36_v49, %v35_v54  ;;  %v5933_v60 = vpack.c.bf16 %v12334_v56, %v12333_v55  ;;  %v54_v54 = vld [vmem:[%s21841_s0 + $0x1a0] sm:$0xff]  ;;  %v12351_v49 = vld [vmem:[%s21841_s0 + $0x4f2] sm:$0xff]  ;;  %v55_v56 = vld [vmem:[%s21841_s0 + $0x1a8] sm:$0xff] }
 0x123   :  { %14236 = vmatprep.mubr.msk.bf16.mxu1 %vm468_vm0, %v163_v61  ;;  %14900 = vmatprep.mubr.msk.bf16.mxu0 %vm468_vm0, %v5923_v62  ;;  %v37_v61 = vld [vmem:[%s21841_s0 + $0xe8] sm:$0xff]  ;;  %v38_v62 = vld [vmem:[%s21841_s0 + $0xf0] sm:$0xff] }
 0x124   :  { %v17667_v5 = vpack.c.bf16 %v38_v62, %v37_v61  ;;  %v12352_v55 = vld [vmem:[%s21841_s0 + $0x502] sm:$0xff]  ;;  %v12354_v61 = vld [vmem:[%s21841_s0 + $0x512] sm:$0xff]  ;;  %v17803_v62 = vpack.c.bf16 %v54_v54, %v53_v53 }
 0x125   :  { %v5942_v63 = vpack.c.bf16 %v12352_v55, %v12351_v49  ;;  %v69_v54 = vld [vmem:[%s21841_s0 + $0x240] sm:$0xff]  ;;  %v70_v49 = vld [vmem:[%s21841_s0 + $0x248] sm:$0xff] }
 0x126   :  { %v12367_v55 = vld [vmem:[%s21841_s0 + $0x5a2] sm:$0xff] }
 0x12a   :  { %14237 = vmatmul.mubr.msk.bf16.vlgmr.msra.gmra.mrb[0].mxu1 %vm468_vm0, %v164_v7  ;;  %14901 = vmatmul.mubr.msk.bf16.gmra.mrb[72].mxu0 %vm468_vm0, %v5924_v9  ;;  %v17669_v7 = vpack.c.bf16 %v40_v2, %v39_v1  ;;  %v5935_v9 = vpack.c.bf16 %v12338_v4, %v12337_v3  ;;  %v57_v2 = vld [vmem:[%s21841_s0 + $0x1c0] sm:$0xff]  ;;  %v58_v3 = vld [vmem:[%s21841_s0 + $0x1c8] sm:$0xff] }
 0x12b   :  { %14381 = vmatpush3.bf16.msra.mxu1 %v17043_v8  ;;  %14240 = vmatprep.mubr.msk.bf16.mxu1 %vm468_vm0, %v165_v10  ;;  %v12320_v8 = vld [vmem:[%s21841_s0 + $0x3aa] sm:$0xff]  ;;  %v12355_v4 = vld [vmem:[%s21841_s0 + $0x522] sm:$0xff]  ;;  %v17837_v13 = vpack.c.bf16 %v58_v3, %v57_v2 }
 0x12c   :  { %14904 = vmatprep.mubr.msk.bf16.mxu0 %vm468_vm0, %v5925_v11  ;;  %v5926_v20 = vpack.c.bf16 %v12320_v8, %v12319_v14  ;;  %14382 = vmatprep.subr.bf16.mxu1 %v16583_v36  ;;  %v41_v10 = vld [vmem:[%s21841_s0 + $0x110] sm:$0xff]  ;;  %v42_v11 = vld [vmem:[%s21841_s0 + $0x120] sm:$0xff]  ;;  %v43_v14 = vld [vmem:[%s21841_s0 + $0x128] sm:$0xff] }
 0x12d   :  { %v44_v8 = vld [vmem:[%s21841_s0 + $0x130] sm:$0xff]  ;;  %v17701_v17 = vpack.c.bf16 %v42_v11, %v41_v10  ;;  %v60_v10 = vld [vmem:[%s21841_s0 + $0x1e0] sm:$0xff] }
 0x12e   :  { %v12357_v11 = vld [vmem:[%s21841_s0 + $0x532] sm:$0xff] }
 0x12f   :  { %14383 = vmatpush3.bf16.msra.mxu1 %v16583_v36  ;;  %v5939_v36 = vpack.c.bf16 %v12346_v30, %v12345_v29 }
 0x132   :  { %14241 = vmatmul.mubr.msk.bf16.gmra.mrb[4].mxu1 %vm468_vm0, %v17522_v19  ;;  %14905 = vmatmul.mubr.msk.bf16.gmra.mrb[76].mxu0 %vm468_vm0, %v5926_v20  ;;  %v17703_v20 = vpack.c.bf16 %v44_v8, %v43_v14 }
 0x133   :  { %14244 = vmatprep.mubr.msk.bf16.mxu1 %vm468_vm0, %v17524_v21  ;;  %14908 = vmatprep.mubr.msk.bf16.mxu0 %vm468_vm0, %v5927_v22  ;;  %v5937_v22 = vpack.c.bf16 %v12342_v16, %v12341_v15  ;;  %v5945_v15 = vpack.c.bf16 %v12358_v12, %v12357_v11  ;;  %v61_v16 = vld [vmem:[%s21841_s0 + $0x1e8] sm:$0xff]  ;;  %v12372_v11 = vld [vmem:[%s21841_s0 + $0x5d2] sm:$0xff]  ;;  %v75_v12 = vld [vmem:[%s21841_s0 + $0x280] sm:$0xff] }
 0x13a   :  { %14245 = vmatmul.mubr.msk.bf16.gmra.mrb[8].mxu1 %vm468_vm0, %v17556_v31  ;;  %14909 = vmatmul.mubr.msk.bf16.gmra.mrb[80].mxu0 %vm468_vm0, %v5928_v32  ;;  %v17735_v32 = vpack.c.bf16 %v46_v24, %v45_v23  ;;  %v12360_v23 = vld [vmem:[%s21841_s0 + $0x552] sm:$0xff]  ;;  %v63_v24 = vld [vmem:[%s21841_s0 + $0x200] sm:$0xff] }
 0x13b   :  { %14248 = vmatprep.mubr.msk.bf16.mxu1 %vm468_vm0, %v17558_v33  ;;  %14912 = vmatprep.mubr.msk.bf16.mxu0 %vm468_vm0, %v5929_v34  ;;  %v5938_v34 = vpack.c.bf16 %v12344_v26, %v12343_v25  ;;  %v64_v25 = vld [vmem:[%s21841_s0 + $0x208] sm:$0xff] }
 0x13c   :  { %v12361_v26 = vld [vmem:[%s21841_s0 + $0x562] sm:$0xff]  ;;  %v17873_v30 = vpack.c.bf16 %v64_v25, %v63_v24  ;;  %v77_v25 = vld [vmem:[%s21841_s0 + $0x290] sm:$0xff] }
 0x142   :  { %14249 = vmatmul.mubr.msk.bf16.gmra.mrb[12].mxu1 %vm468_vm0, %v17599_v45  ;;  %14913 = vmatmul.mubr.msk.bf16.gmra.mrb[84].mxu0 %vm468_vm0, %v5930_v46  ;;  %v12350_v46 = vld [vmem:[%s21841_s0 + $0x4ea] sm:$0xff] }
 0x143   :  { %14252 = vmatprep.mubr.msk.bf16.mxu1 %vm468_vm0, %v17601_v47  ;;  %14916 = vmatprep.mubr.msk.bf16.mxu0 %vm468_vm0, %v5931_v48  ;;  %v17769_v48 = vpack.c.bf16 %v50_v38, %v49_v37  ;;  %v5941_v52 = vpack.c.bf16 %v12350_v46, %v12349_v44  ;;  %v66_v37 = vld [vmem:[%s21841_s0 + $0x220] sm:$0xff]  ;;  %v12363_v38 = vld [vmem:[%s21841_s0 + $0x572] sm:$0xff] }
 0x144   :  { %v12366_v44 = vld [vmem:[%s21841_s0 + $0x592] sm:$0xff] }
 0x145   :  { %v5949_v53 = vpack.c.bf16 %v12366_v44, %v12365_v43  ;;  %v81_v44 = vld [vmem:[%s21841_s0 + $0x2c0] sm:$0xff] }
 0x14a   :  { %14253 = vmatmul.mubr.msk.bf16.gmra.mrb[16].mxu1 %vm468_vm0, %v17633_v57  ;;  %14917 = vmatmul.mubr.msk.bf16.gmra.mrb[88].mxu0 %vm468_vm0, %v5932_v58  ;;  %v56_v58 = vld [vmem:[%s21841_s0 + $0x1b0] sm:$0xff] }
 0x14b   :  { %14256 = vmatprep.mubr.msk.bf16.mxu1 %vm468_vm0, %v17635_v59  ;;  %14920 = vmatprep.mubr.msk.bf16.mxu0 %vm468_vm0, %v5933_v60  ;;  %v12353_v60 = vld [vmem:[%s21841_s0 + $0x50a] sm:$0xff]  ;;  %v17805_v0 = vpack.c.bf16 %v56_v58, %v55_v56 }
 0x14c   :  { %v5943_v1 = vpack.c.bf16 %v12354_v61, %v12353_v60  ;;  %v12368_v56 = vld [vmem:[%s21841_s0 + $0x5aa] sm:$0xff]  ;;  %v72_v60 = vld [vmem:[%s21841_s0 + $0x260] sm:$0xff]  ;;  %v12369_v61 = vld [vmem:[%s21841_s0 + $0x5b2] sm:$0xff] }
 0x14d   :  { %v71_v58 = vld [vmem:[%s21841_s0 + $0x250] sm:$0xff]  ;;  %v5950_v2 = vpack.c.bf16 %v12368_v56, %v12367_v55  ;;  %v84_v55 = vld [vmem:[%s21841_s0 + $0x2e0] sm:$0xff] }
 0x14e   :  { %v17941_v3 = vpack.c.bf16 %v72_v60, %v71_v58  ;;  %v12381_v56 = vld [vmem:[%s21841_s0 + $0x632] sm:$0xff]  ;;  %v12382_v58 = vld [vmem:[%s21841_s0 + $0x642] sm:$0xff] }
 0x152   :  { %14257 = vmatmul.mubr.msk.bf16.gmra.mrb[20].mxu1 %vm468_vm0, %v17667_v5  ;;  %14921 = vmatmul.mubr.msk.bf16.gmra.mrb[92].mxu0 %vm468_vm0, %v5934_v6  ;;  %v12356_v6 = vld [vmem:[%s21841_s0 + $0x52a] sm:$0xff] }
 0x153   :  { %14260 = vmatprep.mubr.msk.bf16.mxu1 %vm468_vm0, %v17669_v7  ;;  %14924 = vmatprep.mubr.msk.bf16.mxu0 %vm468_vm0, %v5935_v9  ;;  %v59_v9 = vld [vmem:[%s21841_s0 + $0x1d0] sm:$0xff]  ;;  %v5944_v14 = vpack.c.bf16 %v12356_v6, %v12355_v4  ;;  %v73_v6 = vld [vmem:[%s21841_s0 + $0x268] sm:$0xff] }
 0x154   :  { %v17839_v8 = vpack.c.bf16 %v60_v10, %v59_v9  ;;  %v74_v9 = vld [vmem:[%s21841_s0 + $0x270] sm:$0xff] }
 0x155   :  { %v12371_v10 = vld [vmem:[%s21841_s0 + $0x5ca] sm:$0xff] }
 0x15a   :  { %14261 = vmatmul.mubr.msk.bf16.gmra.mrb[24].mxu1 %vm468_vm0, %v17701_v17  ;;  %14925 = vmatmul.mubr.msk.bf16.gmra.mrb[96].mxu0 %vm468_vm0, %v5936_v18  ;;  %v62_v18 = vld [vmem:[%s21841_s0 + $0x1f0] sm:$0xff] }
 0x15b   :  { %14264 = vmatprep.mubr.msk.bf16.mxu1 %vm468_vm0, %v17703_v20  ;;  %14928 = vmatprep.mubr.msk.bf16.mxu0 %vm468_vm0, %v5937_v22  ;;  %v12359_v22 = vld [vmem:[%s21841_s0 + $0x54a] sm:$0xff]  ;;  %v17871_v28 = vpack.c.bf16 %v62_v18, %v61_v16  ;;  %v17973_v18 = vpack.c.bf16 %v74_v9, %v73_v6 }
 0x15c   :  { %v5946_v29 = vpack.c.bf16 %v12360_v23, %v12359_v22  ;;  %v12374_v16 = vld [vmem:[%s21841_s0 + $0x5ea] sm:$0xff]  ;;  %v5952_v22 = vpack.c.bf16 %v12372_v11, %v12371_v10  ;;  %v12384_v10 = vld [vmem:[%s21841_s0 + $0x652] sm:$0xff]  ;;  %v87_v11 = vld [vmem:[%s21841_s0 + $0x340] sm:$0xff] }
 0x15d   :  { %v86_v6 = vld [vmem:[%s21841_s0 + $0x2f0] sm:$0xff] }
 0x15e   :  { %v12383_v9 = vld [vmem:[%s21841_s0 + $0x64a] sm:$0xff] }
 0x162   :  { %14265 = vmatmul.mubr.msk.bf16.gmra.mrb[28].mxu1 %vm468_vm0, %v17735_v32  ;;  %14929 = vmatmul.mubr.msk.bf16.gmra.mrb[100].mxu0 %vm468_vm0, %v5938_v34  ;;  %v5947_v34 = vpack.c.bf16 %v12362_v27, %v12361_v26  ;;  %v78_v26 = vld [vmem:[%s21841_s0 + $0x2a0] sm:$0xff]  ;;  %v12375_v27 = vld [vmem:[%s21841_s0 + $0x5f2] sm:$0xff] }
 0x163   :  { %14268 = vmatprep.mubr.msk.bf16.mxu1 %vm468_vm0, %v17737_v35  ;;  %14932 = vmatprep.mubr.msk.bf16.mxu0 %vm468_vm0, %v5939_v36  ;;  %v65_v36 = vld [vmem:[%s21841_s0 + $0x210] sm:$0xff] }
 0x164   :  { %v17905_v46 = vpack.c.bf16 %v66_v37, %v65_v36  ;;  %v80_v36 = vld [vmem:[%s21841_s0 + $0x2b0] sm:$0xff] }
 0x165   :  { %v12377_v37 = vld [vmem:[%s21841_s0 + $0x60a] sm:$0xff] }
 0x16a   :  { %14269 = vmatmul.mubr.msk.bf16.gmra.mrb[32].mxu1 %vm468_vm0, %v17769_v48  ;;  %14933 = vmatmul.mubr.msk.bf16.gmra.mrb[104].mxu0 %vm468_vm0, %v5940_v50  ;;  %v5948_v50 = vpack.c.bf16 %v12364_v40, %v12363_v38  ;;  %v12378_v38 = vld [vmem:[%s21841_s0 + $0x612] sm:$0xff]  ;;  %v18007_v40 = vpack.c.bf16 %v78_v26, %v77_v25  ;;  %v91_v25 = vld [vmem:[%s21841_s0 + $0x368] sm:$0xff] }
 0x16b   :  { %14272 = vmatprep.mubr.msk.bf16.mxu1 %vm468_vm0, %v17771_v51  ;;  %14936 = vmatprep.mubr.msk.bf16.mxu0 %vm468_vm0, %v5941_v52  ;;  %v17907_v52 = vpack.c.bf16 %v68_v42, %v67_v41  ;;  %v5955_v43 = vpack.c.bf16 %v12378_v38, %v12377_v37  ;;  %v92_v26 = vld [vmem:[%s21841_s0 + $0x370] sm:$0xff] }
 0x172   :  { %14273 = vmatmul.mubr.msk.bf16.gmra.mrb[36].mxu1 %vm468_vm0, %v17803_v62  ;;  %14937 = vmatmul.mubr.msk.bf16.gmra.mrb[108].mxu0 %vm468_vm0, %v5942_v63  ;;  %v12370_v63 = vld [vmem:[%s21841_s0 + $0x5c2] sm:$0xff] }
 0x173   :  { %14276 = vmatprep.mubr.msk.bf16.mxu1 %vm468_vm0, %v17805_v0  ;;  %14940 = vmatprep.mubr.msk.bf16.mxu0 %vm468_vm0, %v5943_v1  ;;  %v17939_v1 = vpack.c.bf16 %v70_v49, %v69_v54  ;;  %v5951_v4 = vpack.c.bf16 %v12370_v63, %v12369_v61  ;;  %v12380_v54 = vld [vmem:[%s21841_s0 + $0x62a] sm:$0xff] }
 0x174   :  { %v83_v49 = vld [vmem:[%s21841_s0 + $0x2d0] sm:$0xff] }
 0x175   :  { %v18043_v63 = vpack.c.bf16 %v84_v55, %v83_v49  ;;  %v104_v49 = vld [vmem:[%s21841_s0 + $0x3f0] sm:$0xff] }
 0x17a   :  { %14277 = vmatmul.mubr.msk.bf16.gmra.mrb[40].mxu1 %vm468_vm0, %v17837_v13  ;;  %14941 = vmatmul.mubr.msk.bf16.gmra.mrb[112].mxu0 %vm468_vm0, %v5944_v14  ;;  %v76_v14 = vld [vmem:[%s21841_s0 + $0x288] sm:$0xff] }
 0x17b   :  { %14280 = vmatprep.mubr.msk.bf16.mxu1 %vm468_vm0, %v17839_v8  ;;  %14944 = vmatprep.mubr.msk.bf16.mxu0 %vm468_vm0, %v5945_v15  ;;  %v12373_v15 = vld [vmem:[%s21841_s0 + $0x5e2] sm:$0xff]  ;;  %v17975_v23 = vpack.c.bf16 %v76_v14, %v75_v12 }
 0x17c   :  { %v5953_v24 = vpack.c.bf16 %v12374_v16, %v12373_v15  ;;  %v88_v12 = vld [vmem:[%s21841_s0 + $0x348] sm:$0xff]  ;;  %v5958_v15 = vpack.c.bf16 %v12384_v10, %v12383_v9  ;;  %v111_v9 = vld [vmem:[%s21841_s0 + $0x440] sm:$0xff] }
 0x17d   :  { %v199_v16 = vpack.c.bf16 %v88_v12, %v87_v11  ;;  %v114_v12 = vld [vmem:[%s21841_s0 + $0x460] sm:$0xff] }
 0x182   :  { %14281 = vmatmul.mubr.msk.bf16.gmra.mrb[44].mxu1 %vm468_vm0, %v17871_v28  ;;  %14945 = vmatmul.mubr.msk.bf16.gmra.mrb[116].mxu0 %vm468_vm0, %v5946_v29  ;;  %v12376_v29 = vld [vmem:[%s21841_s0 + $0x602] sm:$0xff] }
 0x183   :  { %14284 = vmatprep.mubr.msk.bf16.mxu1 %vm468_vm0, %v17873_v30  ;;  %14948 = vmatprep.mubr.msk.bf16.mxu0 %vm468_vm0, %v5947_v34  ;;  %v79_v34 = vld [vmem:[%s21841_s0 + $0x2a8] sm:$0xff]  ;;  %v5954_v41 = vpack.c.bf16 %v12376_v29, %v12375_v27  ;;  %v201_v29 = vpack.c.bf16 %v92_v26, %v91_v25  ;;  %v119_v25 = vld [vmem:[%s21841_s0 + $0x490] sm:$0xff] }
 0x184   :  { %v18009_v42 = vpack.c.bf16 %v80_v36, %v79_v34  ;;  %v94_v34 = vld [vmem:[%s21841_s0 + $0x388] sm:$0xff]  ;;  %v95_v36 = vld [vmem:[%s21841_s0 + $0x390] sm:$0xff] }
 0x18a   :  { %14285 = vmatmul.mubr.msk.bf16.gmra.mrb[48].mxu1 %vm468_vm0, %v17905_v46  ;;  %14949 = vmatmul.mubr.msk.bf16.gmra.mrb[120].mxu0 %vm468_vm0, %v5948_v50  ;;  %v82_v50 = vld [vmem:[%s21841_s0 + $0x2c8] sm:$0xff] }
 0x18b   :  { %14288 = vmatprep.mubr.msk.bf16.mxu1 %vm468_vm0, %v17907_v52  ;;  %14952 = vmatprep.mubr.msk.bf16.mxu0 %vm468_vm0, %v5949_v53  ;;  %v12379_v53 = vld [vmem:[%s21841_s0 + $0x622] sm:$0xff]  ;;  %v18041_v60 = vpack.c.bf16 %v82_v50, %v81_v44  ;;  %v18141_v50 = vld [vmem:[%s21840_s1 + $0x30] sm:$0xff]  }
 0x18c   :  { %v5956_v61 = vpack.c.bf16 %v12380_v54, %v12379_v53  ;;  %v102_v53 = vld [vmem:[%s21841_s0 + $0x3e0] sm:$0xff]  ;;  %v16586_v54 = vld [vmem:[%s21840_s1 + $0x78] sm:$0xff]   ;;  %14528 = vmatprep.subr.bf16.mxu1 %v18141_v50 }
 0x192   :  { %14289 = vmatmul.mubr.msk.bf16.gmra.mrb[52].mxu1 %vm468_vm0, %v17939_v1  ;;  %14953 = vmatmul.mubr.msk.bf16.gmra.mrb[124].mxu0 %vm468_vm0, %v5950_v2  ;;  %v5957_v2 = vpack.c.bf16 %v12382_v58, %v12381_v56  ;;  %v106_v58 = vld [vmem:[%s21841_s0 + $0x408] sm:$0xff] }
 0x193   :  { %14292 = vmatprep.mubr.msk.bf16.mxu1 %vm468_vm0, %v17941_v3  ;;  %14956 = vmatprep.mubr.msk.bf16.mxu0 %vm468_vm0, %v5951_v4  ;;  %v85_v4 = vld [vmem:[%s21841_s0 + $0x2e8] sm:$0xff] }
 0x194   :  { %v18069_v14 = vpack.c.bf16 %v86_v6, %v85_v4  ;;  %v110_v6 = vld [vmem:[%s21841_s0 + $0x430] sm:$0xff] }
 0x19a   :  { %14293 = vmatmul.mubr.msk.bf16.gmra.mrb[56].mxu1 %vm468_vm0, %v17973_v18  ;;  %14957 = vmatmul.mubr.msk.bf16.gmra.mrb[128].mxu0 %vm468_vm0, %v5952_v22  ;;  %v89_v22 = vld [vmem:[%s21841_s0 + $0x350] sm:$0xff] }
 0x19b   :  { %14296 = vmatprep.mubr.msk.bf16.mxu1 %vm468_vm0, %v17975_v23  ;;  %14960 = vmatprep.mubr.msk.bf16.mxu0 %vm468_vm0, %v5953_v24  ;;  %v90_v24 = vld [vmem:[%s21841_s0 + $0x360] sm:$0xff] }
 0x19c   :  { %v200_v27 = vpack.c.bf16 %v90_v24, %v89_v22  ;;  %v118_v24 = vld [vmem:[%s21841_s0 + $0x488] sm:$0xff] }
 0x1a2   :  { %14297 = vmatmul.mubr.msk.bf16.gmra.mrb[60].mxu1 %vm468_vm0, %v18007_v40  ;;  %14961 = vmatmul.mubr.msk.bf16.gmra.mrb[132].mxu0 %vm468_vm0, %v5954_v41  ;;  %v99_v41 = vld [vmem:[%s21841_s0 + $0x3c0] sm:$0xff] }
 0x1a3   :  { %14300 = vmatprep.mubr.msk.bf16.mxu1 %vm468_vm0, %v18009_v42  ;;  %14964 = vmatprep.mubr.msk.bf16.mxu0 %vm468_vm0, %v5955_v43 }
 0x1aa   :  { %14301 = vmatmul.mubr.msk.bf16.gmra.mrb[64].mxu1 %vm468_vm0, %v18041_v60  ;;  %14965 = vmatmul.mubr.msk.bf16.gmra.mrb[136].mxu0 %vm468_vm0, %v5956_v61  ;;  %v107_v61 = vld [vmem:[%s21841_s0 + $0x410] sm:$0xff] }
 0x1ab   :  { %14304 = vmatprep.mubr.msk.bf16.mxu1 %vm468_vm0, %v18043_v63  ;;  %14968 = vmatprep.mubr.msk.bf16.mxu0 %vm468_vm0, %v5957_v2 }
 0x1b2   :  { %14305 = vmatmul.mubr.msk.bf16.gmra.mrb[68].mxu1 %vm468_vm0, %v18069_v14  ;;  %14969 = vmatmul.mubr.msk.bf16.gmra.mrb[140].mxu0 %vm468_vm0, %v5958_v15  ;;  %v115_v15 = vld [vmem:[%s21841_s0 + $0x468] sm:$0xff] }
 0x1b3   :  { %14308 = vmatprep.mubr.msk.bf16.mxu1 %vm468_vm0, %v199_v16  ;;  %14976 = vmatprep.mubr.msk.bf16.mxu0 %vm468_vm0, %v17522_v19  ;;  %v93_v19 = vld [vmem:[%s21841_s0 + $0x380] sm:$0xff] }
 0x1b4   :  { %v18108_v37 = vpack.c.bf16 %v94_v34, %v93_v19  ;;  %v123_v19 = vld [vmem:[%s21841_s0 + $0x4c0] sm:$0xff] }
 0x1ba   :  { %14309 = vmatmul.mubr.msk.bf16.gmra.mrb[72].mxu1 %vm468_vm0, %v200_v27  ;;  %14977 = vmatmul.mubr.msk.bf16.vlgmr.msra.gmra.mrb[0].mxu0 %vm468_vm0, %v17524_v21  ;;  %v96_v21 = vld [vmem:[%s21841_s0 + $0x3a0] sm:$0xff] }
 0x1bb   :  { %14312 = vmatprep.mubr.msk.bf16.mxu1 %vm468_vm0, %v201_v29  ;;  %15121 = vmatpush3.bf16.msra.mxu0 %v17580_v39  ;;  %v18110_v38 = vpack.c.bf16 %v96_v21, %v95_v36  ;;  %v98_v39 = vld [vmem:[%s21841_s0 + $0x3b0] sm:$0xff]  ;;  %v126_v21 = vld [vmem:[%s21841_s0 + $0x4e0] sm:$0xff] }
 0x1bc   :  { %14980 = vmatprep.mubr.msk.bf16.mxu0 %vm468_vm0, %v17556_v31  ;;  %v97_v31 = vld [vmem:[%s21841_s0 + $0x3a8] sm:$0xff]  ;;  %15122 = vmatprep.subr.bf16.mxu0 %v16586_v54  ;;  %v122_v29 = vld [vmem:[%s21841_s0 + $0x4b0] sm:$0xff] }
 0x1bd   :  { %v18132_v43 = vpack.c.bf16 %v98_v39, %v97_v31  ;;  %v127_v31 = vld [vmem:[%s21841_s0 + $0x4e8] sm:$0xff] }
 0x1bf   :  { %15123 = vmatpush3.bf16.msra.mxu0 %v16586_v54 }
 0x1c2   :  { %14313 = vmatmul.mubr.msk.bf16.gmra.mrb[76].mxu1 %vm468_vm0, %v18108_v37  ;;  %14981 = vmatmul.mubr.msk.bf16.gmra.mrb[4].mxu0 %vm468_vm0, %v17558_v33  ;;  %v100_v33 = vld [vmem:[%s21841_s0 + $0x3c8] sm:$0xff] }
 0x1c3   :  { %14316 = vmatprep.mubr.msk.bf16.mxu1 %vm468_vm0, %v18110_v38  ;;  %14984 = vmatprep.mubr.msk.bf16.mxu0 %vm468_vm0, %v17599_v45  ;;  %v18134_v44 = vpack.c.bf16 %v100_v33, %v99_v41  ;;  %v101_v45 = vld [vmem:[%s21841_s0 + $0x3d0] sm:$0xff]  ;;  %v130_v33 = vld [vmem:[%s21841_s0 + $0x508] sm:$0xff] }
 0x1c4   :  { %v18165_v55 = vpack.c.bf16 %v102_v53, %v101_v45  ;;  %v131_v45 = vld [vmem:[%s21841_s0 + $0x510] sm:$0xff] }
 0x1ca   :  { %14317 = vmatmul.mubr.msk.bf16.gmra.mrb[80].mxu1 %vm468_vm0, %v18132_v43  ;;  %14985 = vmatmul.mubr.msk.bf16.gmra.mrb[8].mxu0 %vm468_vm0, %v17601_v47  ;;  %v103_v47 = vld [vmem:[%s21841_s0 + $0x3e8] sm:$0xff] }
 0x1cb   :  { %14320 = vmatprep.mubr.msk.bf16.mxu1 %vm468_vm0, %v18134_v44  ;;  %14988 = vmatprep.mubr.msk.bf16.mxu0 %vm468_vm0, %v17633_v57  ;;  %v18167_v56 = vpack.c.bf16 %v104_v49, %v103_v47  ;;  %v105_v57 = vld [vmem:[%s21841_s0 + $0x400] sm:$0xff]  ;;  %v134_v47 = vld [vmem:[%s21841_s0 + $0x530] sm:$0xff] }
 0x1cc   :  { %v18189_v2 = vpack.c.bf16 %v106_v58, %v105_v57  ;;  %v135_v49 = vld [vmem:[%s21841_s0 + $0x540] sm:$0xff] }
 0x1d2   :  { %14321 = vmatmul.mubr.msk.bf16.gmra.mrb[84].mxu1 %vm468_vm0, %v18165_v55  ;;  %14989 = vmatmul.mubr.msk.bf16.gmra.mrb[12].mxu0 %vm468_vm0, %v17635_v59  ;;  %v108_v59 = vld [vmem:[%s21841_s0 + $0x420] sm:$0xff] }
 0x1d3   :  { %14324 = vmatprep.mubr.msk.bf16.mxu1 %vm468_vm0, %v18167_v56  ;;  %14992 = vmatprep.mubr.msk.bf16.mxu0 %vm468_vm0, %v17667_v5  ;;  %v18191_v4 = vpack.c.bf16 %v108_v59, %v107_v61  ;;  %v109_v5 = vld [vmem:[%s21841_s0 + $0x428] sm:$0xff]  ;;  %v138_v61 = vld [vmem:[%s21841_s0 + $0x560] sm:$0xff] }
 0x1d4   :  { %v18213_v10 = vpack.c.bf16 %v110_v6, %v109_v5  ;;  %v139_v59 = vld [vmem:[%s21841_s0 + $0x568] sm:$0xff] }
 0x1da   :  { %14325 = vmatmul.mubr.msk.bf16.gmra.mrb[88].mxu1 %vm468_vm0, %v18189_v2  ;;  %14993 = vmatmul.mubr.msk.bf16.gmra.mrb[16].mxu0 %vm468_vm0, %v17669_v7  ;;  %v112_v7 = vld [vmem:[%s21841_s0 + $0x448] sm:$0xff] }
 0x1db   :  { %14328 = vmatprep.mubr.msk.bf16.mxu1 %vm468_vm0, %v18191_v4  ;;  %14996 = vmatprep.mubr.msk.bf16.mxu0 %vm468_vm0, %v17701_v17  ;;  %v18215_v11 = vpack.c.bf16 %v112_v7, %v111_v9  ;;  %v113_v17 = vld [vmem:[%s21841_s0 + $0x450] sm:$0xff]  ;;  %v142_v9 = vld [vmem:[%s21841_s0 + $0x588] sm:$0xff] }
 0x1dc   :  { %v18237_v16 = vpack.c.bf16 %v114_v12, %v113_v17  ;;  %v143_v7 = vld [vmem:[%s21841_s0 + $0x590] sm:$0xff] }
 0x1e2   :  { %14329 = vmatmul.mubr.msk.bf16.gmra.mrb[92].mxu1 %vm468_vm0, %v18213_v10  ;;  %14997 = vmatmul.mubr.msk.bf16.gmra.mrb[20].mxu0 %vm468_vm0, %v17703_v20  ;;  %v116_v20 = vld [vmem:[%s21841_s0 + $0x470] sm:$0xff] }
 0x1e3   :  { %14332 = vmatprep.mubr.msk.bf16.mxu1 %vm468_vm0, %v18215_v11  ;;  %15000 = vmatprep.mubr.msk.bf16.mxu0 %vm468_vm0, %v17735_v32  ;;  %v18239_v22 = vpack.c.bf16 %v116_v20, %v115_v15  ;;  %v117_v32 = vld [vmem:[%s21841_s0 + $0x480] sm:$0xff]  ;;  %v146_v15 = vld [vmem:[%s21841_s0 + $0x5b0] sm:$0xff] }
 0x1e4   :  { %v18261_v26 = vpack.c.bf16 %v118_v24, %v117_v32  ;;  %v147_v20 = vld [vmem:[%s21841_s0 + $0x5c0] sm:$0xff] }
 0x1ea   :  { %14333 = vmatmul.mubr.msk.bf16.gmra.mrb[96].mxu1 %vm468_vm0, %v18237_v16  ;;  %15001 = vmatmul.mubr.msk.bf16.gmra.mrb[24].mxu0 %vm468_vm0, %v17737_v35  ;;  %v120_v35 = vld [vmem:[%s21841_s0 + $0x4a0] sm:$0xff] }
 0x1eb   :  { %14336 = vmatprep.mubr.msk.bf16.mxu1 %vm468_vm0, %v18239_v22  ;;  %15004 = vmatprep.mubr.msk.bf16.mxu0 %vm468_vm0, %v17769_v48  ;;  %v18263_v27 = vpack.c.bf16 %v120_v35, %v119_v25  ;;  %v121_v48 = vld [vmem:[%s21841_s0 + $0x4a8] sm:$0xff]  ;;  %v150_v25 = vld [vmem:[%s21841_s0 + $0x5e0] sm:$0xff] }
 0x1ec   :  { %v18285_v34 = vpack.c.bf16 %v122_v29, %v121_v48  ;;  %v151_v35 = vld [vmem:[%s21841_s0 + $0x5e8] sm:$0xff] }
 0x1f2   :  { %14337 = vmatmul.mubr.msk.bf16.gmra.mrb[100].mxu1 %vm468_vm0, %v18261_v26  ;;  %15005 = vmatmul.mubr.msk.bf16.gmra.mrb[28].mxu0 %vm468_vm0, %v17771_v51  ;;  %v124_v51 = vld [vmem:[%s21841_s0 + $0x4c8] sm:$0xff] }
 0x1f3   :  { %14340 = vmatprep.mubr.msk.bf16.mxu1 %vm468_vm0, %v18263_v27  ;;  %15008 = vmatprep.mubr.msk.bf16.mxu0 %vm468_vm0, %v17803_v62  ;;  %v18287_v36 = vpack.c.bf16 %v124_v51, %v123_v19  ;;  %v125_v62 = vld [vmem:[%s21841_s0 + $0x4d0] sm:$0xff]  ;;  %v154_v19 = vld [vmem:[%s21841_s0 + $0x608] sm:$0xff]  ;;  %v12529_v51 = vld [vmem:[%s21841_s0 + $0x300] sm:$0xff] }
 0x1f4   :  { %v18309_v39 = vpack.c.bf16 %v126_v21, %v125_v62  ;;  %v155_v62 = vld [vmem:[%s21841_s0 + $0x610] sm:$0xff]  ;;  %v156_v21 = vld [vmem:[%s21841_s0 + $0x620] sm:$0xff] }
 0x1fa   :  { %14341 = vmatmul.mubr.msk.bf16.gmra.mrb[104].mxu1 %vm468_vm0, %v18285_v34  ;;  %15009 = vmatmul.mubr.msk.bf16.gmra.mrb[32].mxu0 %vm468_vm0, %v17805_v0  ;;  %v128_v0 = vld [vmem:[%s21841_s0 + $0x4f0] sm:$0xff] }
 0x1fb   :  { %14344 = vmatprep.mubr.msk.bf16.mxu1 %vm468_vm0, %v18287_v36  ;;  %15012 = vmatprep.mubr.msk.bf16.mxu0 %vm468_vm0, %v17837_v13  ;;  %v18311_v41 = vpack.c.bf16 %v128_v0, %v127_v31  ;;  %v129_v13 = vld [vmem:[%s21841_s0 + $0x500] sm:$0xff]  ;;  %v12531_v31 = vld [vmem:[%s21841_s0 + $0x310] sm:$0xff] }
 0x1fc   :  { %v18333_v53 = vpack.c.bf16 %v130_v33, %v129_v13  ;;  %v18491_v33 = vpack.c.bf16 %v156_v21, %v155_v62  ;;  %v2148_v62 = vld [vmem:[%s21841_s0 + $0xb2] sm:$0xff] }
 0x202   :  { %14345 = vmatmul.mubr.msk.bf16.gmra.mrb[108].mxu1 %vm468_vm0, %v18309_v39  ;;  %15013 = vmatmul.mubr.msk.bf16.gmra.mrb[36].mxu0 %vm468_vm0, %v17839_v8  ;;  %v132_v8 = vld [vmem:[%s21841_s0 + $0x520] sm:$0xff] }
 0x203   :  { %14348 = vmatprep.mubr.msk.bf16.mxu1 %vm468_vm0, %v18311_v41  ;;  %15016 = vmatprep.mubr.msk.bf16.mxu0 %vm468_vm0, %v17871_v28  ;;  %v18335_v54 = vpack.c.bf16 %v132_v8, %v131_v45  ;;  %v133_v28 = vld [vmem:[%s21841_s0 + $0x528] sm:$0xff] }
 0x204   :  { %v18357_v57 = vpack.c.bf16 %v134_v47, %v133_v28  ;;  %v157_v8 = vld [vmem:[%s21841_s0 + $0x628] sm:$0xff]  ;;  %v158_v28 = vld [vmem:[%s21841_s0 + $0x630] sm:$0xff] }
 0x205   :  { %v12533_v47 = vld [vmem:[%s21841_s0 + $0x328] sm:$0xff] }
 0x20a   :  { %14349 = vmatmul.mubr.msk.bf16.gmra.mrb[112].mxu1 %vm468_vm0, %v18333_v53  ;;  %15017 = vmatmul.mubr.msk.bf16.gmra.mrb[40].mxu0 %vm468_vm0, %v17873_v30  ;;  %v136_v30 = vld [vmem:[%s21841_s0 + $0x548] sm:$0xff] }
 0x20b   :  { %14352 = vmatprep.mubr.msk.bf16.mxu1 %vm468_vm0, %v18335_v54  ;;  %15020 = vmatprep.mubr.msk.bf16.mxu0 %vm468_vm0, %v17905_v46  ;;  %v18359_v58 = vpack.c.bf16 %v136_v30, %v135_v49  ;;  %v137_v46 = vld [vmem:[%s21841_s0 + $0x550] sm:$0xff]  ;;  %v2131_v30 = vld [vmem:[%s21841_s0 + $0x2] sm:$0xff] }
 0x20c   :  { %v18381_v5 = vpack.c.bf16 %v138_v61, %v137_v46  ;;  %v12534_v49 = vld [vmem:[%s21841_s0 + $0x330] sm:$0xff]  ;;  %v18517_v61 = vpack.c.bf16 %v158_v28, %v157_v8 }
 0x20d   :  { %v2132_v46 = vld [vmem:[%s21841_s0 + $0xa] sm:$0xff] }
 0x212   :  { %14353 = vmatmul.mubr.msk.bf16.gmra.mrb[116].mxu1 %vm468_vm0, %v18357_v57  ;;  %15021 = vmatmul.mubr.msk.bf16.gmra.mrb[44].mxu0 %vm468_vm0, %v17907_v52  ;;  %v140_v52 = vld [vmem:[%s21841_s0 + $0x570] sm:$0xff] }
 0x213   :  { %14356 = vmatprep.mubr.msk.bf16.mxu1 %vm468_vm0, %v18359_v58  ;;  %15024 = vmatprep.mubr.msk.bf16.mxu0 %vm468_vm0, %v17939_v1  ;;  %v18383_v6 = vpack.c.bf16 %v140_v52, %v139_v59  ;;  %v141_v1 = vld [vmem:[%s21841_s0 + $0x580] sm:$0xff]  ;;  %v7125_v59 = vpack.c.bf16 %v12534_v49, %v12533_v47  ;;  %v2280_v52 = vpack.c.bf16 %v2132_v46, %v2131_v30  ;;  %v2154_v47 = vld [vmem:[%s21841_s0 + $0xf2] sm:$0xff] }
 0x214   :  { %v18405_v17 = vpack.c.bf16 %v142_v9, %v141_v1  ;;  %v2133_v1 = vld [vmem:[%s21841_s0 + $0x12] sm:$0xff]  ;;  %v2134_v9 = vld [vmem:[%s21841_s0 + $0x22] sm:$0xff] }
 0x215   :  { %v2155_v49 = vld [vmem:[%s21841_s0 + $0x102] sm:$0xff] }
 0x21a   :  { %14357 = vmatmul.mubr.msk.bf16.gmra.mrb[120].mxu1 %vm468_vm0, %v18381_v5  ;;  %15025 = vmatmul.mubr.msk.bf16.gmra.mrb[48].mxu0 %vm468_vm0, %v17941_v3  ;;  %v144_v3 = vld [vmem:[%s21841_s0 + $0x5a0] sm:$0xff] }
 0x21b   :  { %14360 = vmatprep.mubr.msk.bf16.mxu1 %vm468_vm0, %v18383_v6  ;;  %15028 = vmatprep.mubr.msk.bf16.mxu0 %vm468_vm0, %v17973_v18  ;;  %v18407_v12 = vpack.c.bf16 %v144_v3, %v143_v7  ;;  %v145_v18 = vld [vmem:[%s21841_s0 + $0x5a8] sm:$0xff]  ;;  %v2136_v3 = vld [vmem:[%s21841_s0 + $0x32] sm:$0xff] }
 0x21c   :  { %v18429_v32 = vpack.c.bf16 %v146_v15, %v145_v18  ;;  %v2135_v7 = vld [vmem:[%s21841_s0 + $0x2a] sm:$0xff]  ;;  %v2281_v18 = vpack.c.bf16 %v2134_v9, %v2133_v1 }
 0x21d   :  { %v2282_v15 = vpack.c.bf16 %v2136_v3, %v2135_v7  ;;  %v2162_v7 = vld [vmem:[%s21841_s0 + $0x14a] sm:$0xff]  ;;  %v2163_v3 = vld [vmem:[%s21841_s0 + $0x152] sm:$0xff] }
 0x222   :  { %14361 = vmatmul.mubr.msk.bf16.gmra.mrb[124].mxu1 %vm468_vm0, %v18405_v17  ;;  %15029 = vmatmul.mubr.msk.bf16.gmra.mrb[52].mxu0 %vm468_vm0, %v17975_v23  ;;  %v148_v23 = vld [vmem:[%s21841_s0 + $0x5c8] sm:$0xff] }
 0x223   :  { %14364 = vmatprep.mubr.msk.bf16.mxu1 %vm468_vm0, %v18407_v12  ;;  %15032 = vmatprep.mubr.msk.bf16.mxu0 %vm468_vm0, %v18007_v40  ;;  %v18431_v24 = vpack.c.bf16 %v148_v23, %v147_v20  ;;  %v149_v40 = vld [vmem:[%s21841_s0 + $0x5d0] sm:$0xff] }
 0x224   :  { %v18453_v48 = vpack.c.bf16 %v150_v25, %v149_v40  ;;  %v2138_v20 = vld [vmem:[%s21841_s0 + $0x4a] sm:$0xff]  ;;  %v2139_v23 = vld [vmem:[%s21841_s0 + $0x52] sm:$0xff] }
 0x225   :  { %v2142_v25 = vld [vmem:[%s21841_s0 + $0x72] sm:$0xff] }
 0x22a   :  { %14365 = vmatmul.mubr.msk.bf16.gmra.mrb[128].mxu1 %vm468_vm0, %v18429_v32  ;;  %15033 = vmatmul.mubr.msk.bf16.gmra.mrb[56].mxu0 %vm468_vm0, %v18009_v42  ;;  %v152_v42 = vld [vmem:[%s21841_s0 + $0x5f0] sm:$0xff] }
 0x22b   :  { %14368 = vmatprep.mubr.msk.bf16.mxu1 %vm468_vm0, %v18431_v24  ;;  %15036 = vmatprep.mubr.msk.bf16.mxu0 %vm468_vm0, %v18041_v60  ;;  %v18455_v29 = vpack.c.bf16 %v152_v42, %v151_v35  ;;  %v153_v60 = vld [vmem:[%s21841_s0 + $0x600] sm:$0xff] }
 0x22c   :  { %v18489_v0 = vpack.c.bf16 %v154_v19, %v153_v60  ;;  %v2143_v35 = vld [vmem:[%s21841_s0 + $0x82] sm:$0xff]  ;;  %v16587_v19 = vld [vmem:[%s21840_s1 + $0x38] sm:$0xff]  }
 0x232   :  { %14369 = vmatmul.mubr.msk.bf16.gmra.mrb[132].mxu1 %vm468_vm0, %v18453_v48  ;;  %15037 = vmatmul.mubr.msk.bf16.gmra.mrb[60].mxu0 %vm468_vm0, %v18043_v63  ;;  %v12530_v63 = vld [vmem:[%s21841_s0 + $0x308] sm:$0xff] }
 0x233   :  { %14372 = vmatprep.mubr.msk.bf16.mxu1 %vm468_vm0, %v18455_v29  ;;  %15040 = vmatprep.mubr.msk.bf16.mxu0 %vm468_vm0, %v18069_v14  ;;  %v12532_v14 = vld [vmem:[%s21841_s0 + $0x320] sm:$0xff]  ;;  %v7123_v13 = vpack.c.bf16 %v12530_v63, %v12529_v51 }
 0x234   :  { %v7124_v45 = vpack.c.bf16 %v12532_v14, %v12531_v31  ;;  %v2146_v51 = vld [vmem:[%s21841_s0 + $0xa2] sm:$0xff] }
 0x235   :  { %v18590_v63 = vld [vmem:[%s21840_s1 + $0x80] sm:$0xff]  }
 0x236   :  { %15268 = vmatprep.subr.bf16.mxu0 %v18590_v63  ;;  %v18604_v31 = vld [vmem:[%s21840_s1 + $0x40] sm:$0xff]  }
 0x237   :  { %v2149_v14 = vld [vmem:[%s21841_s0 + $0xc2] sm:$0xff] }
 0x23a   :  { %14373 = vmatmul.mubr.msk.bf16.gmra.mrb[136].mxu1 %vm468_vm0, %v18489_v0  ;;  %15041 = vmatmul.mubr.msk.bf16.gmra.mrb[64].mxu0 %vm468_vm0, %v7123_v13  ;;  %v2150_v13 = vld [vmem:[%s21841_s0 + $0xca] sm:$0xff] }
 0x23b   :  { %14376 = vmatprep.mubr.msk.bf16.mxu1 %vm468_vm0, %v18491_v33  ;;  %15044 = vmatprep.mubr.msk.bf16.mxu0 %vm468_vm0, %v7124_v45  ;;  %v2151_v45 = vld [vmem:[%s21841_s0 + $0xd2] sm:$0xff]  ;;  %v2289_v8 = vpack.c.bf16 %v2150_v13, %v2149_v14  ;;  %v2186_v13 = vld [vmem:[%s21841_s0 + $0x24a] sm:$0xff] }
 0x242   :  { %14377 = vmatmul.mubr.msk.bf16.gmra.mrb[140].mxu1 %vm468_vm0, %v18517_v61  ;;  %15045 = vmatmul.mubr.msk.bf16.gmra.mrb[68].mxu0 %vm468_vm0, %v7125_v59  ;;  %v2158_v59 = vld [vmem:[%s21841_s0 + $0x122] sm:$0xff] }
 0x243   :  { %14384 = vmatprep.mubr.msk.bf16.mxu1 %vm468_vm0, %v2280_v52  ;;  %15048 = vmatprep.mubr.msk.bf16.mxu0 %vm468_vm0, %v18108_v37  ;;  %v2137_v37 = vld [vmem:[%s21841_s0 + $0x42] sm:$0xff]  ;;  %v2159_v52 = vld [vmem:[%s21841_s0 + $0x12a] sm:$0xff] }
 0x24a   :  { %14385 = vmatmul.mubr.msk.bf16.vlgmr.msra.gmra.mrb[0].mxu1 %vm468_vm0, %v2281_v18  ;;  %15049 = vmatmul.mubr.msk.bf16.gmra.mrb[72].mxu0 %vm468_vm0, %v18110_v38  ;;  %v2140_v38 = vld [vmem:[%s21841_s0 + $0x62] sm:$0xff] }
 0x24b   :  { %14529 = vmatpush3.bf16.msra.mxu1 %v18141_v50  ;;  %14388 = vmatprep.mubr.msk.bf16.mxu1 %vm468_vm0, %v2282_v15  ;;  %v2283_v50 = vpack.c.bf16 %v2138_v20, %v2137_v37  ;;  %v2284_v40 = vpack.c.bf16 %v2140_v38, %v2139_v23  ;;  %v2166_v37 = vld [vmem:[%s21841_s0 + $0x172] sm:$0xff]  ;;  %v2167_v20 = vld [vmem:[%s21841_s0 + $0x182] sm:$0xff] }
 0x24c   :  { %15052 = vmatprep.mubr.msk.bf16.mxu0 %vm468_vm0, %v18132_v43  ;;  %v2141_v43 = vld [vmem:[%s21841_s0 + $0x6a] sm:$0xff]  ;;  %14530 = vmatprep.subr.bf16.mxu1 %v16587_v19 }
 0x24d   :  { %v2285_v42 = vpack.c.bf16 %v2142_v25, %v2141_v43 }
 0x24f   :  { %14531 = vmatpush3.bf16.msra.mxu1 %v16587_v19  ;;  %v2178_v19 = vld [vmem:[%s21841_s0 + $0x1f2] sm:$0xff] }
 0x250   :  { %15416 = vmatprep.subr.bf16.mxu1 %v18604_v31 }
 0x252   :  { %14389 = vmatmul.mubr.msk.bf16.gmra.mrb[4].mxu1 %vm468_vm0, %v2283_v50  ;;  %15053 = vmatmul.mubr.msk.bf16.gmra.mrb[76].mxu0 %vm468_vm0, %v18134_v44  ;;  %v2144_v44 = vld [vmem:[%s21841_s0 + $0x8a] sm:$0xff]  ;;  %v2170_v50 = vld [vmem:[%s21841_s0 + $0x1a2] sm:$0xff] }
 0x253   :  { %14392 = vmatprep.mubr.msk.bf16.mxu1 %vm468_vm0, %v2284_v40  ;;  %15056 = vmatprep.mubr.msk.bf16.mxu0 %vm468_vm0, %v18165_v55  ;;  %v2286_v60 = vpack.c.bf16 %v2144_v44, %v2143_v35  ;;  %v2145_v55 = vld [vmem:[%s21841_s0 + $0x92] sm:$0xff]  ;;  %v2171_v40 = vld [vmem:[%s21841_s0 + $0x1aa] sm:$0xff] }
 0x254   :  { %v2287_v21 = vpack.c.bf16 %v2146_v51, %v2145_v55  ;;  %v2174_v35 = vld [vmem:[%s21841_s0 + $0x1ca] sm:$0xff]  ;;  %v2175_v44 = vld [vmem:[%s21841_s0 + $0x1d2] sm:$0xff]  ;;  %v2179_v55 = vld [vmem:[%s21841_s0 + $0x202] sm:$0xff] }
 0x25a   :  { %14393 = vmatmul.mubr.msk.bf16.gmra.mrb[8].mxu1 %vm468_vm0, %v2285_v42  ;;  %15057 = vmatmul.mubr.msk.bf16.gmra.mrb[80].mxu0 %vm468_vm0, %v18167_v56  ;;  %v2147_v56 = vld [vmem:[%s21841_s0 + $0xaa] sm:$0xff] }
 0x25b   :  { %14396 = vmatprep.mubr.msk.bf16.mxu1 %vm468_vm0, %v2286_v60  ;;  %15060 = vmatprep.mubr.msk.bf16.mxu0 %vm468_vm0, %v18189_v2  ;;  %v2288_v2 = vpack.c.bf16 %v2148_v62, %v2147_v56  ;;  %v2182_v62 = vld [vmem:[%s21841_s0 + $0x222] sm:$0xff] }
 0x262   :  { %14397 = vmatmul.mubr.msk.bf16.gmra.mrb[12].mxu1 %vm468_vm0, %v2287_v21  ;;  %15061 = vmatmul.mubr.msk.bf16.gmra.mrb[84].mxu0 %vm468_vm0, %v18191_v4  ;;  %v2152_v4 = vld [vmem:[%s21841_s0 + $0xe2] sm:$0xff]  ;;  %v2183_v21 = vld [vmem:[%s21841_s0 + $0x22a] sm:$0xff] }
 0x263   :  { %14400 = vmatprep.mubr.msk.bf16.mxu1 %vm468_vm0, %v2288_v2  ;;  %15064 = vmatprep.mubr.msk.bf16.mxu0 %vm468_vm0, %v18213_v10  ;;  %v2290_v28 = vpack.c.bf16 %v2152_v4, %v2151_v45  ;;  %v2153_v10 = vld [vmem:[%s21841_s0 + $0xea] sm:$0xff]  ;;  %v2187_v45 = vld [vmem:[%s21841_s0 + $0x252] sm:$0xff] }
 0x264   :  { %v2291_v30 = vpack.c.bf16 %v2154_v47, %v2153_v10  ;;  %v2191_v10 = vld [vmem:[%s21841_s0 + $0x282] sm:$0xff] }
 0x26a   :  { %14401 = vmatmul.mubr.msk.bf16.gmra.mrb[16].mxu1 %vm468_vm0, %v2289_v8  ;;  %15065 = vmatmul.mubr.msk.bf16.gmra.mrb[88].mxu0 %vm468_vm0, %v18215_v11  ;;  %v2156_v11 = vld [vmem:[%s21841_s0 + $0x10a] sm:$0xff] }
 0x26b   :  { %14404 = vmatprep.mubr.msk.bf16.mxu1 %vm468_vm0, %v2290_v28  ;;  %15068 = vmatprep.mubr.msk.bf16.mxu0 %vm468_vm0, %v18237_v16  ;;  %v2292_v46 = vpack.c.bf16 %v2156_v11, %v2155_v49  ;;  %v2157_v16 = vld [vmem:[%s21841_s0 + $0x112] sm:$0xff]  ;;  %v2194_v11 = vld [vmem:[%s21841_s0 + $0x2a2] sm:$0xff] }
 0x26c   :  { %v2293_v1 = vpack.c.bf16 %v2158_v59, %v2157_v16  ;;  %v2190_v28 = vld [vmem:[%s21841_s0 + $0x272] sm:$0xff]  ;;  %v2198_v59 = vld [vmem:[%s21841_s0 + $0x2ca] sm:$0xff] }
 0x272   :  { %14405 = vmatmul.mubr.msk.bf16.gmra.mrb[20].mxu1 %vm468_vm0, %v2291_v30  ;;  %15069 = vmatmul.mubr.msk.bf16.gmra.mrb[92].mxu0 %vm468_vm0, %v18239_v22  ;;  %v2160_v22 = vld [vmem:[%s21841_s0 + $0x132] sm:$0xff]  ;;  %v2195_v30 = vld [vmem:[%s21841_s0 + $0x2aa] sm:$0xff] }
 0x273   :  { %14408 = vmatprep.mubr.msk.bf16.mxu1 %vm468_vm0, %v2292_v46  ;;  %15072 = vmatprep.mubr.msk.bf16.mxu0 %vm468_vm0, %v18261_v26  ;;  %v2294_v9 = vpack.c.bf16 %v2160_v22, %v2159_v52  ;;  %v2161_v26 = vld [vmem:[%s21841_s0 + $0x142] sm:$0xff]  ;;  %v2199_v22 = vld [vmem:[%s21841_s0 + $0x2d2] sm:$0xff] }
 0x274   :  { %v2295_v18 = vpack.c.bf16 %v2162_v7, %v2161_v26  ;;  %v12601_v52 = vld [vmem:[%s21841_s0 + $0x640] sm:$0xff] }
 0x27a   :  { %14409 = vmatmul.mubr.msk.bf16.gmra.mrb[24].mxu1 %vm468_vm0, %v2293_v1  ;;  %15073 = vmatmul.mubr.msk.bf16.gmra.mrb[96].mxu0 %vm468_vm0, %v18263_v27  ;;  %v2164_v27 = vld [vmem:[%s21841_s0 + $0x162] sm:$0xff] }
 0x27b   :  { %14412 = vmatprep.mubr.msk.bf16.mxu1 %vm468_vm0, %v2294_v9  ;;  %15076 = vmatprep.mubr.msk.bf16.mxu0 %vm468_vm0, %v18285_v34  ;;  %v2296_v15 = vpack.c.bf16 %v2164_v27, %v2163_v3  ;;  %v2165_v34 = vld [vmem:[%s21841_s0 + $0x16a] sm:$0xff]  ;;  %v2200_v1 = vld [vmem:[%s21841_s0 + $0x2e2] sm:$0xff] }
 0x27c   :  { %v2297_v23 = vpack.c.bf16 %v2166_v37, %v2165_v34  ;;  %v12603_v9 = vld [vmem:[%s21841_s0 + $0x650] sm:$0xff]  ;;  %v2314_v3 = vpack.c.bf16 %v2200_v1, %v2199_v22  ;;  %v12605_v34 = vld [vmem:[%s21841_s0 + $0x668] sm:$0xff] }
 0x27d   :  { %v12606_v37 = vld [vmem:[%s21841_s0 + $0x670] sm:$0xff] }
 0x27e   :  { %v12701_v22 = vld [vmem:[%s21841_s0 + $0xe9] sm:$0xff]  ;;  %v12702_v1 = vld [vmem:[%s21841_s0 + $0xf1] sm:$0xff] }
 0x282   :  { %14413 = vmatmul.mubr.msk.bf16.gmra.mrb[28].mxu1 %vm468_vm0, %v2295_v18  ;;  %15077 = vmatmul.mubr.msk.bf16.gmra.mrb[100].mxu0 %vm468_vm0, %v18287_v36  ;;  %v2168_v36 = vld [vmem:[%s21841_s0 + $0x18a] sm:$0xff] }
 0x283   :  { %14416 = vmatprep.mubr.msk.bf16.mxu1 %vm468_vm0, %v2296_v15  ;;  %15080 = vmatprep.mubr.msk.bf16.mxu0 %vm468_vm0, %v18309_v39  ;;  %v2298_v38 = vpack.c.bf16 %v2168_v36, %v2167_v20  ;;  %v2169_v39 = vld [vmem:[%s21841_s0 + $0x192] sm:$0xff]  ;;  %v2201_v18 = vld [vmem:[%s21841_s0 + $0x2ea] sm:$0xff]  ;;  %v2203_v20 = vld [vmem:[%s21841_s0 + $0x342] sm:$0xff] }
 0x284   :  { %v2299_v43 = vpack.c.bf16 %v2170_v50, %v2169_v39  ;;  %v2202_v15 = vld [vmem:[%s21841_s0 + $0x2f2] sm:$0xff]  ;;  %v2204_v36 = vld [vmem:[%s21841_s0 + $0x34a] sm:$0xff]  ;;  %v7161_v50 = vpack.c.bf16 %v12606_v37, %v12605_v34  ;;  %v2224_v37 = vld [vmem:[%s21841_s0 + $0x422] sm:$0xff] }
 0x285   :  { %v2315_v39 = vpack.c.bf16 %v2202_v15, %v2201_v18  ;;  %v12703_v18 = vld [vmem:[%s21841_s0 + $0x101] sm:$0xff]  ;;  %v12704_v15 = vld [vmem:[%s21841_s0 + $0x109] sm:$0xff]  ;;  %v2223_v34 = vld [vmem:[%s21841_s0 + $0x412] sm:$0xff] }
 0x28a   :  { %14417 = vmatmul.mubr.msk.bf16.gmra.mrb[32].mxu1 %vm468_vm0, %v2297_v23  ;;  %15081 = vmatmul.mubr.msk.bf16.gmra.mrb[104].mxu0 %vm468_vm0, %v18311_v41  ;;  %v2172_v41 = vld [vmem:[%s21841_s0 + $0x1b2] sm:$0xff]  ;;  %v12685_v23 = vld [vmem:[%s21841_s0 + $0x41] sm:$0xff] }
 0x28b   :  { %14420 = vmatprep.mubr.msk.bf16.mxu1 %vm468_vm0, %v2298_v38  ;;  %15084 = vmatprep.mubr.msk.bf16.mxu0 %vm468_vm0, %v18333_v53  ;;  %v2300_v25 = vpack.c.bf16 %v2172_v41, %v2171_v40  ;;  %v2173_v53 = vld [vmem:[%s21841_s0 + $0x1c2] sm:$0xff]  ;;  %v2316_v40 = vpack.c.bf16 %v2204_v36, %v2203_v20  ;;  %v12705_v20 = vld [vmem:[%s21841_s0 + $0x111] sm:$0xff] }
 0x28c   :  { %v2301_v42 = vpack.c.bf16 %v2174_v35, %v2173_v53  ;;  %v12686_v38 = vld [vmem:[%s21841_s0 + $0x49] sm:$0xff]  ;;  %v12687_v53 = vld [vmem:[%s21841_s0 + $0x51] sm:$0xff]  ;;  %v12688_v35 = vld [vmem:[%s21841_s0 + $0x61] sm:$0xff] }
 0x28d   :  { %v8292_v41 = vpack.c.bf16 %v12686_v38, %v12685_v23  ;;  %v12706_v36 = vld [vmem:[%s21841_s0 + $0x121] sm:$0xff]  ;;  %v8301_v38 = vpack.c.bf16 %v12704_v15, %v12703_v18  ;;  %v2244_v18 = vld [vmem:[%s21841_s0 + $0x4f2] sm:$0xff]  ;;  %v12725_v15 = vld [vmem:[%s21841_s0 + $0x1e9] sm:$0xff] }
 0x292   :  { %14421 = vmatmul.mubr.msk.bf16.gmra.mrb[36].mxu1 %vm468_vm0, %v2299_v43  ;;  %15085 = vmatmul.mubr.msk.bf16.gmra.mrb[108].mxu0 %vm468_vm0, %v18335_v54  ;;  %v2176_v54 = vld [vmem:[%s21841_s0 + $0x1e2] sm:$0xff]  ;;  %v2205_v43 = vld [vmem:[%s21841_s0 + $0x352] sm:$0xff] }
 0x293   :  { %14424 = vmatprep.mubr.msk.bf16.mxu1 %vm468_vm0, %v2300_v25  ;;  %15088 = vmatprep.mubr.msk.bf16.mxu0 %vm468_vm0, %v18357_v57  ;;  %v2302_v60 = vpack.c.bf16 %v2176_v54, %v2175_v44  ;;  %v2177_v57 = vld [vmem:[%s21841_s0 + $0x1ea] sm:$0xff]  ;;  %v2206_v25 = vld [vmem:[%s21841_s0 + $0x362] sm:$0xff]  ;;  %v2208_v54 = vld [vmem:[%s21841_s0 + $0x372] sm:$0xff] }
 0x294   :  { %v2303_v51 = vpack.c.bf16 %v2178_v19, %v2177_v57  ;;  %v2207_v44 = vld [vmem:[%s21841_s0 + $0x36a] sm:$0xff]  ;;  %v2317_v57 = vpack.c.bf16 %v2206_v25, %v2205_v43  ;;  %v8293_v19 = vpack.c.bf16 %v12688_v35, %v12687_v53  ;;  %v2227_v53 = vld [vmem:[%s21841_s0 + $0x442] sm:$0xff] }
 0x295   :  { %v12707_v43 = vld [vmem:[%s21841_s0 + $0x129] sm:$0xff]  ;;  %v12708_v25 = vld [vmem:[%s21841_s0 + $0x131] sm:$0xff] }
 0x296   :  { %v2228_v35 = vld [vmem:[%s21841_s0 + $0x44a] sm:$0xff] }
 0x29a   :  { %14425 = vmatmul.mubr.msk.bf16.gmra.mrb[40].mxu1 %vm468_vm0, %v2301_v42  ;;  %15089 = vmatmul.mubr.msk.bf16.gmra.mrb[112].mxu0 %vm468_vm0, %v18359_v58  ;;  %v2180_v58 = vld [vmem:[%s21841_s0 + $0x20a] sm:$0xff] }
 0x29b   :  { %14428 = vmatprep.mubr.msk.bf16.mxu1 %vm468_vm0, %v2302_v60  ;;  %15092 = vmatprep.mubr.msk.bf16.mxu0 %vm468_vm0, %v18381_v5  ;;  %v2304_v56 = vpack.c.bf16 %v2180_v58, %v2179_v55  ;;  %v2181_v5 = vld [vmem:[%s21841_s0 + $0x212] sm:$0xff]  ;;  %v12689_v42 = vld [vmem:[%s21841_s0 + $0x69] sm:$0xff]  ;;  %v2318_v55 = vpack.c.bf16 %v2208_v54, %v2207_v44  ;;  %v12709_v44 = vld [vmem:[%s21841_s0 + $0x141] sm:$0xff] }
 0x29c   :  { %v2305_v2 = vpack.c.bf16 %v2182_v62, %v2181_v5  ;;  %v12690_v60 = vld [vmem:[%s21841_s0 + $0x71] sm:$0xff]  ;;  %v12691_v5 = vld [vmem:[%s21841_s0 + $0x81] sm:$0xff]  ;;  %v12692_v62 = vld [vmem:[%s21841_s0 + $0x89] sm:$0xff] }
 0x29d   :  { %v8294_v58 = vpack.c.bf16 %v12690_v60, %v12689_v42  ;;  %v12710_v54 = vld [vmem:[%s21841_s0 + $0x149] sm:$0xff]  ;;  %v8303_v60 = vpack.c.bf16 %v12708_v25, %v12707_v43  ;;  %v12729_v25 = vld [vmem:[%s21841_s0 + $0x211] sm:$0xff] }
 0x29e   :  { %v2248_v43 = vld [vmem:[%s21841_s0 + $0x522] sm:$0xff] }
 0x2a2   :  { %14429 = vmatmul.mubr.msk.bf16.gmra.mrb[44].mxu1 %vm468_vm0, %v2303_v51  ;;  %15093 = vmatmul.mubr.msk.bf16.gmra.mrb[116].mxu0 %vm468_vm0, %v18383_v6  ;;  %v2184_v6 = vld [vmem:[%s21841_s0 + $0x232] sm:$0xff]  ;;  %v2209_v51 = vld [vmem:[%s21841_s0 + $0x382] sm:$0xff] }
 0x2a3   :  { %14432 = vmatprep.mubr.msk.bf16.mxu1 %vm468_vm0, %v2304_v56  ;;  %15096 = vmatprep.mubr.msk.bf16.mxu0 %vm468_vm0, %v18405_v17  ;;  %v2306_v14 = vpack.c.bf16 %v2184_v6, %v2183_v21  ;;  %v2185_v17 = vld [vmem:[%s21841_s0 + $0x242] sm:$0xff]  ;;  %v2210_v56 = vld [vmem:[%s21841_s0 + $0x38a] sm:$0xff]  ;;  %v2211_v21 = vld [vmem:[%s21841_s0 + $0x392] sm:$0xff] }
 0x2a4   :  { %v2307_v4 = vpack.c.bf16 %v2186_v13, %v2185_v17  ;;  %v2212_v6 = vld [vmem:[%s21841_s0 + $0x3a2] sm:$0xff]  ;;  %v8295_v17 = vpack.c.bf16 %v12692_v62, %v12691_v5  ;;  %v2231_v5 = vld [vmem:[%s21841_s0 + $0x46a] sm:$0xff]  ;;  %v2232_v62 = vld [vmem:[%s21841_s0 + $0x472] sm:$0xff] }
 0x2a5   :  { %v2320_v13 = vpack.c.bf16 %v2212_v6, %v2211_v21  ;;  %v12713_v21 = vld [vmem:[%s21841_s0 + $0x169] sm:$0xff]  ;;  %v12714_v6 = vld [vmem:[%s21841_s0 + $0x171] sm:$0xff] }
 0x2aa   :  { %14433 = vmatmul.mubr.msk.bf16.gmra.mrb[48].mxu1 %vm468_vm0, %v2305_v2  ;;  %15097 = vmatmul.mubr.msk.bf16.gmra.mrb[120].mxu0 %vm468_vm0, %v18407_v12  ;;  %v2188_v12 = vld [vmem:[%s21841_s0 + $0x262] sm:$0xff]  ;;  %v12693_v2 = vld [vmem:[%s21841_s0 + $0x91] sm:$0xff] }
 0x2ab   :  { %14436 = vmatprep.mubr.msk.bf16.mxu1 %vm468_vm0, %v2306_v14  ;;  %15100 = vmatprep.mubr.msk.bf16.mxu0 %vm468_vm0, %v18429_v32  ;;  %v2308_v8 = vpack.c.bf16 %v2188_v12, %v2187_v45  ;;  %v2189_v32 = vld [vmem:[%s21841_s0 + $0x26a] sm:$0xff]  ;;  %v2319_v14 = vpack.c.bf16 %v2210_v56, %v2209_v51  ;;  %v12712_v56 = vld [vmem:[%s21841_s0 + $0x161] sm:$0xff] }
 0x2ac   :  { %v2309_v47 = vpack.c.bf16 %v2190_v28, %v2189_v32  ;;  %v2213_v12 = vld [vmem:[%s21841_s0 + $0x3aa] sm:$0xff]  ;;  %v2215_v28 = vld [vmem:[%s21841_s0 + $0x3c2] sm:$0xff] }
 0x2ad   :  { %v12696_v32 = vld [vmem:[%s21841_s0 + $0xb1] sm:$0xff] }
 0x2ae   :  { %v12711_v51 = vld [vmem:[%s21841_s0 + $0x151] sm:$0xff] }
 0x2b2   :  { %14437 = vmatmul.mubr.msk.bf16.gmra.mrb[52].mxu1 %vm468_vm0, %v2307_v4  ;;  %15101 = vmatmul.mubr.msk.bf16.gmra.mrb[124].mxu0 %vm468_vm0, %v18431_v24  ;;  %v2192_v24 = vld [vmem:[%s21841_s0 + $0x28a] sm:$0xff]  ;;  %v2214_v4 = vld [vmem:[%s21841_s0 + $0x3b2] sm:$0xff] }
 0x2b3   :  { %14440 = vmatprep.mubr.msk.bf16.mxu1 %vm468_vm0, %v2308_v8  ;;  %15104 = vmatprep.mubr.msk.bf16.mxu0 %vm468_vm0, %v18453_v48  ;;  %v2310_v49 = vpack.c.bf16 %v2192_v24, %v2191_v10  ;;  %v2193_v48 = vld [vmem:[%s21841_s0 + $0x292] sm:$0xff]  ;;  %v12695_v8 = vld [vmem:[%s21841_s0 + $0xa9] sm:$0xff]  ;;  %v12697_v24 = vld [vmem:[%s21841_s0 + $0xc1] sm:$0xff] }
 0x2b4   :  { %v2311_v46 = vpack.c.bf16 %v2194_v11, %v2193_v48  ;;  %v2216_v10 = vld [vmem:[%s21841_s0 + $0x3ca] sm:$0xff]  ;;  %v8297_v48 = vpack.c.bf16 %v12696_v32, %v12695_v8  ;;  %v2235_v8 = vld [vmem:[%s21841_s0 + $0x492] sm:$0xff]  ;;  %v2236_v32 = vld [vmem:[%s21841_s0 + $0x4a2] sm:$0xff] }
 0x2b5   :  { %v2322_v11 = vpack.c.bf16 %v2216_v10, %v2215_v28  ;;  %v12717_v28 = vld [vmem:[%s21841_s0 + $0x191] sm:$0xff]  ;;  %v12718_v10 = vld [vmem:[%s21841_s0 + $0x1a1] sm:$0xff] }
 0x2ba   :  { %14441 = vmatmul.mubr.msk.bf16.gmra.mrb[56].mxu1 %vm468_vm0, %v2309_v47  ;;  %15105 = vmatmul.mubr.msk.bf16.gmra.mrb[128].mxu0 %vm468_vm0, %v18455_v29  ;;  %v2196_v29 = vld [vmem:[%s21841_s0 + $0x2b2] sm:$0xff]  ;;  %v12698_v47 = vld [vmem:[%s21841_s0 + $0xc9] sm:$0xff] }
 0x2bb   :  { %14444 = vmatprep.mubr.msk.bf16.mxu1 %vm468_vm0, %v2310_v49  ;;  %15108 = vmatprep.mubr.msk.bf16.mxu0 %vm468_vm0, %v18489_v0  ;;  %v2312_v16 = vpack.c.bf16 %v2196_v29, %v2195_v30  ;;  %v2197_v0 = vld [vmem:[%s21841_s0 + $0x2c2] sm:$0xff]  ;;  %v2321_v49 = vpack.c.bf16 %v2214_v4, %v2213_v12  ;;  %v8298_v30 = vpack.c.bf16 %v12698_v47, %v12697_v24  ;;  %v2217_v29 = vld [vmem:[%s21841_s0 + $0x3d2] sm:$0xff] }
 0x2bc   :  { %v2313_v26 = vpack.c.bf16 %v2198_v59, %v2197_v0  ;;  %v16589_v0 = vld [vmem:[%s21840_s1 + $0x88] sm:$0xff]  }
 0x2bd   :  { %v12700_v59 = vld [vmem:[%s21841_s0 + $0xe1] sm:$0xff]  ;;  %v12716_v4 = vld [vmem:[%s21841_s0 + $0x189] sm:$0xff] }
 0x2be   :  { %v12715_v12 = vld [vmem:[%s21841_s0 + $0x181] sm:$0xff] }
 0x2bf   :  { %v8307_v47 = vpack.c.bf16 %v12716_v4, %v12715_v12  ;;  %v2256_v12 = vld [vmem:[%s21841_s0 + $0x572] sm:$0xff]  ;;  %v12737_v4 = vld [vmem:[%s21841_s0 + $0x269] sm:$0xff] }
 0x2c2   :  { %14445 = vmatmul.mubr.msk.bf16.gmra.mrb[60].mxu1 %vm468_vm0, %v2311_v46  ;;  %15109 = vmatmul.mubr.msk.bf16.gmra.mrb[132].mxu0 %vm468_vm0, %v18491_v33  ;;  %v12602_v33 = vld [vmem:[%s21841_s0 + $0x648] sm:$0xff] }
 0x2c3   :  { %14448 = vmatprep.mubr.msk.bf16.mxu1 %vm468_vm0, %v2312_v16  ;;  %15112 = vmatprep.mubr.msk.bf16.mxu0 %vm468_vm0, %v18517_v61  ;;  %v12604_v61 = vld [vmem:[%s21841_s0 + $0x660] sm:$0xff]  ;;  %v7159_v7 = vpack.c.bf16 %v12602_v33, %v12601_v52  ;;  %v12699_v16 = vld [vmem:[%s21841_s0 + $0xd1] sm:$0xff] }
 0x2c4   :  { %v7160_v27 = vpack.c.bf16 %v12604_v61, %v12603_v9  ;;  %v2218_v46 = vld [vmem:[%s21841_s0 + $0x3e2] sm:$0xff]  ;;  %v2219_v52 = vld [vmem:[%s21841_s0 + $0x3ea] sm:$0xff]  ;;  %v2220_v33 = vld [vmem:[%s21841_s0 + $0x3f2] sm:$0xff]  ;;  %v8299_v61 = vpack.c.bf16 %v12700_v59, %v12699_v16 }
 0x2c5   :  { %v2323_v9 = vpack.c.bf16 %v2218_v46, %v2217_v29  ;;  %v12719_v29 = vld [vmem:[%s21841_s0 + $0x1a9] sm:$0xff]  ;;  %v12720_v46 = vld [vmem:[%s21841_s0 + $0x1b1] sm:$0xff]  ;;  %v12721_v59 = vld [vmem:[%s21841_s0 + $0x1c1] sm:$0xff] }
 0x2c6   :  { %v2239_v16 = vld [vmem:[%s21841_s0 + $0x4c2] sm:$0xff] }
 0x2ca   :  { %14449 = vmatmul.mubr.msk.bf16.gmra.mrb[64].mxu1 %vm468_vm0, %v2313_v26  ;;  %15113 = vmatmul.mubr.msk.bf16.gmra.mrb[136].mxu0 %vm468_vm0, %v7159_v7  ;;  %v2324_v26 = vpack.c.bf16 %v2220_v33, %v2219_v52  ;;  %v8300_v7 = vpack.c.bf16 %v12702_v1, %v12701_v22  ;;  %v12722_v52 = vld [vmem:[%s21841_s0 + $0x1c9] sm:$0xff]  ;;  %v8309_v22 = vpack.c.bf16 %v12720_v46, %v12719_v29  ;;  %v12741_v46 = vld [vmem:[%s21841_s0 + $0x291] sm:$0xff] }
 0x2cb   :  { %14452 = vmatprep.mubr.msk.bf16.mxu1 %vm468_vm0, %v2314_v3  ;;  %15116 = vmatprep.mubr.msk.bf16.mxu0 %vm468_vm0, %v7160_v27  ;;  %v2221_v3 = vld [vmem:[%s21841_s0 + $0x402] sm:$0xff]  ;;  %v2222_v27 = vld [vmem:[%s21841_s0 + $0x40a] sm:$0xff] }
 0x2cc   :  { %v2325_v23 = vpack.c.bf16 %v2222_v27, %v2221_v3  ;;  %v12724_v3 = vld [vmem:[%s21841_s0 + $0x1e1] sm:$0xff]  ;;  %v2243_v27 = vld [vmem:[%s21841_s0 + $0x4ea] sm:$0xff] }
 0x2cd   :  { %v2260_v29 = vld [vmem:[%s21841_s0 + $0x5a2] sm:$0xff] }
 0x2d2   :  { %14453 = vmatmul.mubr.msk.bf16.gmra.mrb[68].mxu1 %vm468_vm0, %v2315_v39  ;;  %15117 = vmatmul.mubr.msk.bf16.gmra.mrb[140].mxu0 %vm468_vm0, %v7161_v50  ;;  %v2326_v39 = vpack.c.bf16 %v2224_v37, %v2223_v34  ;;  %v8302_v50 = vpack.c.bf16 %v12706_v36, %v12705_v20  ;;  %v12726_v34 = vld [vmem:[%s21841_s0 + $0x1f1] sm:$0xff]  ;;  %v2336_v36 = vpack.c.bf16 %v2244_v18, %v2243_v27  ;;  %v12746_v27 = vld [vmem:[%s21841_s0 + $0x2c9] sm:$0xff] }
 0x2d3   :  { %14456 = vmatprep.mubr.msk.bf16.mxu1 %vm468_vm0, %v2316_v40  ;;  %15124 = vmatprep.mubr.msk.bf16.mxu0 %vm468_vm0, %v8292_v41  ;;  %v2225_v40 = vld [vmem:[%s21841_s0 + $0x42a] sm:$0xff]  ;;  %v2226_v41 = vld [vmem:[%s21841_s0 + $0x432] sm:$0xff] }
 0x2d4   :  { %v2327_v42 = vpack.c.bf16 %v2226_v41, %v2225_v40  ;;  %v12728_v40 = vld [vmem:[%s21841_s0 + $0x209] sm:$0xff]  ;;  %v2247_v41 = vld [vmem:[%s21841_s0 + $0x512] sm:$0xff] }
 0x2da   :  { %14457 = vmatmul.mubr.msk.bf16.gmra.mrb[72].mxu1 %vm468_vm0, %v2317_v57  ;;  %15125 = vmatmul.mubr.msk.bf16.vlgmr.msra.gmra.mrb[0].mxu0 %vm468_vm0, %v8293_v19  ;;  %v2328_v57 = vpack.c.bf16 %v2228_v35, %v2227_v53  ;;  %v8304_v19 = vpack.c.bf16 %v12710_v54, %v12709_v44  ;;  %v12730_v53 = vld [vmem:[%s21841_s0 + $0x221] sm:$0xff]  ;;  %v2338_v54 = vpack.c.bf16 %v2248_v43, %v2247_v41  ;;  %v12750_v41 = vld [vmem:[%s21841_s0 + $0x2f1] sm:$0xff] }
 0x2db   :  { %14460 = vmatprep.mubr.msk.bf16.mxu1 %vm468_vm0, %v2318_v55  ;;  %15269 = vmatpush3.bf16.msra.mxu0 %v18590_v63  ;;  %v12694_v63 = vld [vmem:[%s21841_s0 + $0xa1] sm:$0xff]  ;;  %v2229_v55 = vld [vmem:[%s21841_s0 + $0x452] sm:$0xff] }
 0x2dc   :  { %15128 = vmatprep.mubr.msk.bf16.mxu0 %vm468_vm0, %v8294_v58  ;;  %v8296_v45 = vpack.c.bf16 %v12694_v63, %v12693_v2  ;;  %15270 = vmatprep.subr.bf16.mxu0 %v16589_v0  ;;  %v2230_v58 = vld [vmem:[%s21841_s0 + $0x462] sm:$0xff]  ;;  %v8305_v63 = vpack.c.bf16 %v12712_v56, %v12711_v51  ;;  %v2252_v51 = vld [vmem:[%s21841_s0 + $0x54a] sm:$0xff] }
 0x2dd   :  { %v2329_v2 = vpack.c.bf16 %v2230_v58, %v2229_v55  ;;  %v12732_v55 = vld [vmem:[%s21841_s0 + $0x231] sm:$0xff]  ;;  %v2251_v58 = vld [vmem:[%s21841_s0 + $0x542] sm:$0xff] }
 0x2de   :  { %v12733_v56 = vld [vmem:[%s21841_s0 + $0x241] sm:$0xff] }
 0x2df   :  { %15271 = vmatpush3.bf16.msra.mxu0 %v16589_v0  ;;  %v2240_v0 = vld [vmem:[%s21841_s0 + $0x4ca] sm:$0xff] }
 0x2e0   :  { %v2334_v1 = vpack.c.bf16 %v2240_v0, %v2239_v16  ;;  %v12742_v16 = vld [vmem:[%s21841_s0 + $0x2a1] sm:$0xff] }
 0x2e2   :  { %14461 = vmatmul.mubr.msk.bf16.gmra.mrb[76].mxu1 %vm468_vm0, %v2319_v14  ;;  %15129 = vmatmul.mubr.msk.bf16.gmra.mrb[4].mxu0 %vm468_vm0, %v8295_v17  ;;  %v2330_v14 = vpack.c.bf16 %v2232_v62, %v2231_v5  ;;  %v8306_v17 = vpack.c.bf16 %v12714_v6, %v12713_v21  ;;  %v12734_v5 = vld [vmem:[%s21841_s0 + $0x249] sm:$0xff]  ;;  %v2340_v6 = vpack.c.bf16 %v2252_v51, %v2251_v58  ;;  %v12754_v58 = vld [vmem:[%s21841_s0 + $0x321] sm:$0xff] }
 0x2e3   :  { %14464 = vmatprep.mubr.msk.bf16.mxu1 %vm468_vm0, %v2320_v13  ;;  %15132 = vmatprep.mubr.msk.bf16.mxu0 %vm468_vm0, %v8296_v45  ;;  %v2233_v13 = vld [vmem:[%s21841_s0 + $0x482] sm:$0xff]  ;;  %v2234_v45 = vld [vmem:[%s21841_s0 + $0x48a] sm:$0xff] }
 0x2e4   :  { %v2331_v24 = vpack.c.bf16 %v2234_v45, %v2233_v13  ;;  %v12736_v13 = vld [vmem:[%s21841_s0 + $0x261] sm:$0xff]  ;;  %v2255_v45 = vld [vmem:[%s21841_s0 + $0x56a] sm:$0xff] }
 0x2ea   :  { %14465 = vmatmul.mubr.msk.bf16.gmra.mrb[80].mxu1 %vm468_vm0, %v2321_v49  ;;  %15133 = vmatmul.mubr.msk.bf16.gmra.mrb[8].mxu0 %vm468_vm0, %v8297_v48  ;;  %v2332_v49 = vpack.c.bf16 %v2236_v32, %v2235_v8  ;;  %v8308_v48 = vpack.c.bf16 %v12718_v10, %v12717_v28  ;;  %v12738_v8 = vld [vmem:[%s21841_s0 + $0x271] sm:$0xff]  ;;  %v2342_v10 = vpack.c.bf16 %v2256_v12, %v2255_v45  ;;  %v12758_v45 = vld [vmem:[%s21841_s0 + $0x389] sm:$0xff] }
 0x2eb   :  { %14468 = vmatprep.mubr.msk.bf16.mxu1 %vm468_vm0, %v2322_v11  ;;  %15136 = vmatprep.mubr.msk.bf16.mxu0 %vm468_vm0, %v8298_v30  ;;  %v2237_v11 = vld [vmem:[%s21841_s0 + $0x4aa] sm:$0xff]  ;;  %v2238_v30 = vld [vmem:[%s21841_s0 + $0x4b2] sm:$0xff] }
 0x2ec   :  { %v2333_v33 = vpack.c.bf16 %v2238_v30, %v2237_v11  ;;  %v12740_v11 = vld [vmem:[%s21841_s0 + $0x289] sm:$0xff]  ;;  %v2259_v30 = vld [vmem:[%s21841_s0 + $0x592] sm:$0xff] }
 0x2f2   :  { %14469 = vmatmul.mubr.msk.bf16.gmra.mrb[84].mxu1 %vm468_vm0, %v2323_v9  ;;  %15137 = vmatmul.mubr.msk.bf16.gmra.mrb[12].mxu0 %vm468_vm0, %v8299_v61  ;;  %v8310_v9 = vpack.c.bf16 %v12722_v52, %v12721_v59  ;;  %v2241_v61 = vld [vmem:[%s21841_s0 + $0x4d2] sm:$0xff]  ;;  %v2344_v52 = vpack.c.bf16 %v2260_v29, %v2259_v30 }
 0x2f3   :  { %14472 = vmatprep.mubr.msk.bf16.mxu1 %vm468_vm0, %v2324_v26  ;;  %15140 = vmatprep.mubr.msk.bf16.mxu0 %vm468_vm0, %v8300_v7  ;;  %v2242_v26 = vld [vmem:[%s21841_s0 + $0x4e2] sm:$0xff]  ;;  %v12723_v7 = vld [vmem:[%s21841_s0 + $0x1d1] sm:$0xff] }
 0x2f4   :  { %v2335_v37 = vpack.c.bf16 %v2242_v26, %v2241_v61  ;;  %v8311_v20 = vpack.c.bf16 %v12724_v3, %v12723_v7  ;;  %v12744_v61 = vld [vmem:[%s21841_s0 + $0x2b1] sm:$0xff]  ;;  %v2263_v26 = vld [vmem:[%s21841_s0 + $0x5c2] sm:$0xff] }
 0x2f5   :  { %v2264_v7 = vld [vmem:[%s21841_s0 + $0x5ca] sm:$0xff]  ;;  %v12745_v3 = vld [vmem:[%s21841_s0 + $0x2c1] sm:$0xff] }
 0x2f6   :  { %v12762_v30 = vld [vmem:[%s21841_s0 + $0x3b1] sm:$0xff] }
 0x2fa   :  { %14473 = vmatmul.mubr.msk.bf16.gmra.mrb[88].mxu1 %vm468_vm0, %v2325_v23  ;;  %15141 = vmatmul.mubr.msk.bf16.gmra.mrb[16].mxu0 %vm468_vm0, %v8301_v38  ;;  %v8312_v23 = vpack.c.bf16 %v12726_v34, %v12725_v15  ;;  %v2245_v38 = vld [vmem:[%s21841_s0 + $0x502] sm:$0xff]  ;;  %v2346_v34 = vpack.c.bf16 %v2264_v7, %v2263_v26 }
 0x2fb   :  { %14476 = vmatprep.mubr.msk.bf16.mxu1 %vm468_vm0, %v2326_v39  ;;  %15144 = vmatprep.mubr.msk.bf16.mxu0 %vm468_vm0, %v8302_v50  ;;  %v2246_v39 = vld [vmem:[%s21841_s0 + $0x50a] sm:$0xff]  ;;  %v12727_v50 = vld [vmem:[%s21841_s0 + $0x201] sm:$0xff] }
 0x2fc   :  { %v2337_v35 = vpack.c.bf16 %v2246_v39, %v2245_v38  ;;  %v8313_v44 = vpack.c.bf16 %v12728_v40, %v12727_v50  ;;  %v12748_v38 = vld [vmem:[%s21841_s0 + $0x2e1] sm:$0xff]  ;;  %v2267_v39 = vld [vmem:[%s21841_s0 + $0x5ea] sm:$0xff]  ;;  %v2268_v50 = vld [vmem:[%s21841_s0 + $0x5f2] sm:$0xff] }
 0x2fd   :  { %v12749_v40 = vld [vmem:[%s21841_s0 + $0x2e9] sm:$0xff] }
 0x2fe   :  { %v16591_v26 = vld [vmem:[%s21840_s1 + $0x48] sm:$0xff]  }
 0x302   :  { %14477 = vmatmul.mubr.msk.bf16.gmra.mrb[92].mxu1 %vm468_vm0, %v2327_v42  ;;  %15145 = vmatmul.mubr.msk.bf16.gmra.mrb[20].mxu0 %vm468_vm0, %v8303_v60  ;;  %v8314_v42 = vpack.c.bf16 %v12730_v53, %v12729_v25  ;;  %v2249_v60 = vld [vmem:[%s21841_s0 + $0x52a] sm:$0xff]  ;;  %v2348_v53 = vpack.c.bf16 %v2268_v50, %v2267_v39 }
 0x303   :  { %14480 = vmatprep.mubr.msk.bf16.mxu1 %vm468_vm0, %v2328_v57  ;;  %15148 = vmatprep.mubr.msk.bf16.mxu0 %vm468_vm0, %v8304_v19  ;;  %v2250_v57 = vld [vmem:[%s21841_s0 + $0x532] sm:$0xff]  ;;  %v12731_v19 = vld [vmem:[%s21841_s0 + $0x229] sm:$0xff] }
 0x304   :  { %v2339_v62 = vpack.c.bf16 %v2250_v57, %v2249_v60  ;;  %v8315_v21 = vpack.c.bf16 %v12732_v55, %v12731_v19  ;;  %v12752_v60 = vld [vmem:[%s21841_s0 + $0x309] sm:$0xff]  ;;  %v2271_v57 = vld [vmem:[%s21841_s0 + $0x612] sm:$0xff] }
 0x305   :  { %v2272_v19 = vld [vmem:[%s21841_s0 + $0x622] sm:$0xff]  ;;  %v12753_v55 = vld [vmem:[%s21841_s0 + $0x311] sm:$0xff] }
 0x306   :  { %v12770_v39 = vld [vmem:[%s21841_s0 + $0x409] sm:$0xff] }
 0x30a   :  { %14481 = vmatmul.mubr.msk.bf16.gmra.mrb[96].mxu1 %vm468_vm0, %v2329_v2  ;;  %15149 = vmatmul.mubr.msk.bf16.gmra.mrb[24].mxu0 %vm468_vm0, %v8305_v63  ;;  %v8316_v2 = vpack.c.bf16 %v12734_v5, %v12733_v56  ;;  %v2253_v63 = vld [vmem:[%s21841_s0 + $0x552] sm:$0xff]  ;;  %v2350_v5 = vpack.c.bf16 %v2272_v19, %v2271_v57 }
 0x30b   :  { %14484 = vmatprep.mubr.msk.bf16.mxu1 %vm468_vm0, %v2330_v14  ;;  %15152 = vmatprep.mubr.msk.bf16.mxu0 %vm468_vm0, %v8306_v17  ;;  %v2254_v14 = vld [vmem:[%s21841_s0 + $0x562] sm:$0xff]  ;;  %v12735_v17 = vld [vmem:[%s21841_s0 + $0x251] sm:$0xff] }
 0x30c   :  { %v2341_v32 = vpack.c.bf16 %v2254_v14, %v2253_v63  ;;  %v8317_v28 = vpack.c.bf16 %v12736_v13, %v12735_v17  ;;  %v12756_v63 = vld [vmem:[%s21841_s0 + $0x331] sm:$0xff]  ;;  %v11797_v14 = vld [vmem:[%s21841_s0 + $0x20] sm:$0xff]  ;;  %v11798_v17 = vld [vmem:[%s21841_s0 + $0x28] sm:$0xff] }
 0x30d   :  { %v12757_v13 = vld [vmem:[%s21841_s0 + $0x381] sm:$0xff]  ;;  %v12774_v57 = vld [vmem:[%s21841_s0 + $0x431] sm:$0xff] }
 0x312   :  { %14485 = vmatmul.mubr.msk.bf16.gmra.mrb[100].mxu1 %vm468_vm0, %v2331_v24  ;;  %15153 = vmatmul.mubr.msk.bf16.gmra.mrb[28].mxu0 %vm468_vm0, %v8307_v47  ;;  %v8318_v24 = vpack.c.bf16 %v12738_v8, %v12737_v4  ;;  %v2257_v47 = vld [vmem:[%s21841_s0 + $0x582] sm:$0xff]  ;;  %v3483_v8 = vpack.c.bf16 %v11798_v17, %v11797_v14 }
 0x313   :  { %14488 = vmatprep.mubr.msk.bf16.mxu1 %vm468_vm0, %v2332_v49  ;;  %15156 = vmatprep.mubr.msk.bf16.mxu0 %vm468_vm0, %v8308_v48  ;;  %v2258_v49 = vld [vmem:[%s21841_s0 + $0x58a] sm:$0xff]  ;;  %v12739_v48 = vld [vmem:[%s21841_s0 + $0x281] sm:$0xff] }
 0x314   :  { %v2343_v0 = vpack.c.bf16 %v2258_v49, %v2257_v47  ;;  %v8319_v59 = vpack.c.bf16 %v12740_v11, %v12739_v48  ;;  %v12760_v47 = vld [vmem:[%s21841_s0 + $0x3a1] sm:$0xff]  ;;  %v11802_v48 = vld [vmem:[%s21841_s0 + $0x50] sm:$0xff] }
 0x315   :  { %v11801_v49 = vld [vmem:[%s21841_s0 + $0x48] sm:$0xff] }
 0x316   :  { %v12761_v11 = vld [vmem:[%s21841_s0 + $0x3a9] sm:$0xff]  ;;  %v12778_v14 = vld [vmem:[%s21841_s0 + $0x461] sm:$0xff] }
 0x31a   :  { %14489 = vmatmul.mubr.msk.bf16.gmra.mrb[104].mxu1 %vm468_vm0, %v2333_v33  ;;  %15157 = vmatmul.mubr.msk.bf16.gmra.mrb[32].mxu0 %vm468_vm0, %v8309_v22  ;;  %v8320_v33 = vpack.c.bf16 %v12742_v16, %v12741_v46  ;;  %v2261_v22 = vld [vmem:[%s21841_s0 + $0x5aa] sm:$0xff]  ;;  %v3485_v16 = vpack.c.bf16 %v11802_v48, %v11801_v49 }
 0x31b   :  { %14492 = vmatprep.mubr.msk.bf16.mxu1 %vm468_vm0, %v2334_v1  ;;  %15160 = vmatprep.mubr.msk.bf16.mxu0 %vm468_vm0, %v8310_v9  ;;  %v2262_v1 = vld [vmem:[%s21841_s0 + $0x5b2] sm:$0xff]  ;;  %v12743_v9 = vld [vmem:[%s21841_s0 + $0x2a9] sm:$0xff] }
 0x31c   :  { %v2345_v18 = vpack.c.bf16 %v2262_v1, %v2261_v22  ;;  %v8321_v15 = vpack.c.bf16 %v12744_v61, %v12743_v9  ;;  %v11805_v22 = vld [vmem:[%s21841_s0 + $0x70] sm:$0xff]  ;;  %v11806_v1 = vld [vmem:[%s21841_s0 + $0x80] sm:$0xff] }
 0x31d   :  { %v12765_v9 = vld [vmem:[%s21841_s0 + $0x3d1] sm:$0xff]  ;;  %v12766_v61 = vld [vmem:[%s21841_s0 + $0x3e1] sm:$0xff]  ;;  %v12782_v49 = vld [vmem:[%s21841_s0 + $0x489] sm:$0xff] }
 0x322   :  { %14493 = vmatmul.mubr.msk.bf16.gmra.mrb[108].mxu1 %vm468_vm0, %v2335_v37  ;;  %15161 = vmatmul.mubr.msk.bf16.gmra.mrb[36].mxu0 %vm468_vm0, %v8311_v20  ;;  %v8322_v37 = vpack.c.bf16 %v12746_v27, %v12745_v3  ;;  %v2265_v20 = vld [vmem:[%s21841_s0 + $0x5d2] sm:$0xff]  ;;  %v3487_v27 = vpack.c.bf16 %v11806_v1, %v11805_v22 }
 0x323   :  { %14496 = vmatprep.mubr.msk.bf16.mxu1 %vm468_vm0, %v2336_v36  ;;  %15164 = vmatprep.mubr.msk.bf16.mxu0 %vm468_vm0, %v8312_v23  ;;  %v2266_v36 = vld [vmem:[%s21841_s0 + $0x5e2] sm:$0xff]  ;;  %v12747_v23 = vld [vmem:[%s21841_s0 + $0x2d1] sm:$0xff] }
 0x324   :  { %v2347_v43 = vpack.c.bf16 %v2266_v36, %v2265_v20  ;;  %v8323_v25 = vpack.c.bf16 %v12748_v38, %v12747_v23  ;;  %v12768_v20 = vld [vmem:[%s21841_s0 + $0x3f1] sm:$0xff]  ;;  %v11809_v36 = vld [vmem:[%s21841_s0 + $0xa0] sm:$0xff]  ;;  %v11810_v23 = vld [vmem:[%s21841_s0 + $0xa8] sm:$0xff] }
 0x325   :  { %v12769_v38 = vld [vmem:[%s21841_s0 + $0x401] sm:$0xff]  ;;  %v12786_v22 = vld [vmem:[%s21841_s0 + $0x4b1] sm:$0xff] }
 0x32a   :  { %14497 = vmatmul.mubr.msk.bf16.gmra.mrb[112].mxu1 %vm468_vm0, %v2337_v35  ;;  %15165 = vmatmul.mubr.msk.bf16.gmra.mrb[40].mxu0 %vm468_vm0, %v8313_v44  ;;  %v8324_v35 = vpack.c.bf16 %v12750_v41, %v12749_v40  ;;  %v2269_v44 = vld [vmem:[%s21841_s0 + $0x602] sm:$0xff]  ;;  %v3489_v41 = vpack.c.bf16 %v11810_v23, %v11809_v36 }
 0x32b   :  { %14500 = vmatprep.mubr.msk.bf16.mxu1 %vm468_vm0, %v2338_v54  ;;  %15168 = vmatprep.mubr.msk.bf16.mxu0 %vm468_vm0, %v8314_v42  ;;  %v2270_v54 = vld [vmem:[%s21841_s0 + $0x60a] sm:$0xff]  ;;  %v12751_v42 = vld [vmem:[%s21841_s0 + $0x301] sm:$0xff] }
 0x32c   :  { %v2349_v51 = vpack.c.bf16 %v2270_v54, %v2269_v44  ;;  %v8325_v56 = vpack.c.bf16 %v12752_v60, %v12751_v42  ;;  %v12772_v44 = vld [vmem:[%s21841_s0 + $0x421] sm:$0xff]  ;;  %v11814_v42 = vld [vmem:[%s21841_s0 + $0xd0] sm:$0xff] }
 0x32d   :  { %v11813_v54 = vld [vmem:[%s21841_s0 + $0xc8] sm:$0xff] }
 0x32e   :  { %v12773_v60 = vld [vmem:[%s21841_s0 + $0x429] sm:$0xff] }
 0x332   :  { %14501 = vmatmul.mubr.msk.bf16.gmra.mrb[116].mxu1 %vm468_vm0, %v2339_v62  ;;  %15169 = vmatmul.mubr.msk.bf16.gmra.mrb[44].mxu0 %vm468_vm0, %v8315_v21  ;;  %v8326_v62 = vpack.c.bf16 %v12754_v58, %v12753_v55  ;;  %v2273_v21 = vld [vmem:[%s21841_s0 + $0x62a] sm:$0xff]  ;;  %v3491_v58 = vpack.c.bf16 %v11814_v42, %v11813_v54 }
 0x333   :  { %14504 = vmatprep.mubr.msk.bf16.mxu1 %vm468_vm0, %v2340_v6  ;;  %15172 = vmatprep.mubr.msk.bf16.mxu0 %vm468_vm0, %v8316_v2  ;;  %v2274_v6 = vld [vmem:[%s21841_s0 + $0x632] sm:$0xff]  ;;  %v12755_v2 = vld [vmem:[%s21841_s0 + $0x329] sm:$0xff] }
 0x334   :  { %v2351_v12 = vpack.c.bf16 %v2274_v6, %v2273_v21  ;;  %v8327_v4 = vpack.c.bf16 %v12756_v63, %v12755_v2  ;;  %v12776_v21 = vld [vmem:[%s21841_s0 + $0x449] sm:$0xff]  ;;  %v11818_v2 = vld [vmem:[%s21841_s0 + $0x100] sm:$0xff]  ;;  %v12777_v63 = vld [vmem:[%s21841_s0 + $0x451] sm:$0xff] }
 0x335   :  { %v11817_v6 = vld [vmem:[%s21841_s0 + $0xf0] sm:$0xff] }
 0x33a   :  { %14505 = vmatmul.mubr.msk.bf16.gmra.mrb[120].mxu1 %vm468_vm0, %v2341_v32  ;;  %15173 = vmatmul.mubr.msk.bf16.gmra.mrb[48].mxu0 %vm468_vm0, %v8317_v28  ;;  %v8328_v32 = vpack.c.bf16 %v12758_v45, %v12757_v13  ;;  %v11799_v28 = vld [vmem:[%s21841_s0 + $0x30] sm:$0xff]  ;;  %v3493_v45 = vpack.c.bf16 %v11818_v2, %v11817_v6 }
 0x33b   :  { %14508 = vmatprep.mubr.msk.bf16.mxu1 %vm468_vm0, %v2342_v10  ;;  %15176 = vmatprep.mubr.msk.bf16.mxu0 %vm468_vm0, %v8318_v24  ;;  %v11800_v10 = vld [vmem:[%s21841_s0 + $0x40] sm:$0xff]  ;;  %v12759_v24 = vld [vmem:[%s21841_s0 + $0x391] sm:$0xff] }
 0x33c   :  { %v3484_v29 = vpack.c.bf16 %v11800_v10, %v11799_v28  ;;  %v8329_v46 = vpack.c.bf16 %v12760_v47, %v12759_v24  ;;  %v12780_v28 = vld [vmem:[%s21841_s0 + $0x471] sm:$0xff]  ;;  %v11821_v10 = vld [vmem:[%s21841_s0 + $0x120] sm:$0xff]  ;;  %v11822_v24 = vld [vmem:[%s21841_s0 + $0x128] sm:$0xff] }
 0x33d   :  { %v12781_v47 = vld [vmem:[%s21841_s0 + $0x481] sm:$0xff] }
 0x342   :  { %14509 = vmatmul.mubr.msk.bf16.gmra.mrb[124].mxu1 %vm468_vm0, %v2343_v0  ;;  %15177 = vmatmul.mubr.msk.bf16.gmra.mrb[52].mxu0 %vm468_vm0, %v8319_v59  ;;  %v8330_v0 = vpack.c.bf16 %v12762_v30, %v12761_v11  ;;  %v11803_v59 = vld [vmem:[%s21841_s0 + $0x60] sm:$0xff]  ;;  %v3495_v30 = vpack.c.bf16 %v11822_v24, %v11821_v10 }
 0x343   :  { %14512 = vmatprep.mubr.msk.bf16.mxu1 %vm468_vm0, %v2344_v52  ;;  %15180 = vmatprep.mubr.msk.bf16.mxu0 %vm468_vm0, %v8320_v33  ;;  %v11804_v52 = vld [vmem:[%s21841_s0 + $0x68] sm:$0xff] }
 0x344   :  { %v12763_v33 = vld [vmem:[%s21841_s0 + $0x3c1] sm:$0xff]  ;;  %v3486_v7 = vpack.c.bf16 %v11804_v52, %v11803_v59 }
 0x345   :  { %v12784_v59 = vld [vmem:[%s21841_s0 + $0x4a1] sm:$0xff] }
 0x346   :  { %v11825_v52 = vld [vmem:[%s21841_s0 + $0x148] sm:$0xff] }
 0x34a   :  { %14513 = vmatmul.mubr.msk.bf16.gmra.mrb[128].mxu1 %vm468_vm0, %v2345_v18  ;;  %15181 = vmatmul.mubr.msk.bf16.gmra.mrb[56].mxu0 %vm468_vm0, %v8321_v15  ;;  %v8332_v18 = vpack.c.bf16 %v12766_v61, %v12765_v9  ;;  %v11807_v15 = vld [vmem:[%s21841_s0 + $0x88] sm:$0xff] }
 0x34b   :  { %14516 = vmatprep.mubr.msk.bf16.mxu1 %vm468_vm0, %v2346_v34  ;;  %15184 = vmatprep.mubr.msk.bf16.mxu0 %vm468_vm0, %v8322_v37  ;;  %v11808_v34 = vld [vmem:[%s21841_s0 + $0x90] sm:$0xff] }
 0x34c   :  { %v12767_v37 = vld [vmem:[%s21841_s0 + $0x3e9] sm:$0xff]  ;;  %v3488_v50 = vpack.c.bf16 %v11808_v34, %v11807_v15  ;;  %v11830_v34 = vld [vmem:[%s21841_s0 + $0x180] sm:$0xff] }
 0x34d   :  { %v8333_v40 = vpack.c.bf16 %v12768_v20, %v12767_v37  ;;  %v11829_v15 = vld [vmem:[%s21841_s0 + $0x170] sm:$0xff]  ;;  %v12790_v20 = vld [vmem:[%s21841_s0 + $0x4e1] sm:$0xff] }
 0x34e   :  { %v12789_v37 = vld [vmem:[%s21841_s0 + $0x4d1] sm:$0xff] }
 0x352   :  { %14517 = vmatmul.mubr.msk.bf16.gmra.mrb[132].mxu1 %vm468_vm0, %v2347_v43  ;;  %15185 = vmatmul.mubr.msk.bf16.gmra.mrb[60].mxu0 %vm468_vm0, %v8323_v25  ;;  %v8334_v43 = vpack.c.bf16 %v12770_v39, %v12769_v38  ;;  %v11811_v25 = vld [vmem:[%s21841_s0 + $0xb0] sm:$0xff]  ;;  %v3499_v38 = vpack.c.bf16 %v11830_v34, %v11829_v15  ;;  %v8344_v39 = vpack.c.bf16 %v12790_v20, %v12789_v37 }
 0x353   :  { %14520 = vmatprep.mubr.msk.bf16.mxu1 %vm468_vm0, %v2348_v53  ;;  %15188 = vmatprep.mubr.msk.bf16.mxu0 %vm468_vm0, %v8324_v35  ;;  %v11812_v53 = vld [vmem:[%s21841_s0 + $0xc0] sm:$0xff]  ;;  %v12771_v35 = vld [vmem:[%s21841_s0 + $0x411] sm:$0xff] }
 0x354   :  { %v3490_v19 = vpack.c.bf16 %v11812_v53, %v11811_v25  ;;  %v8335_v55 = vpack.c.bf16 %v12772_v44, %v12771_v35  ;;  %v11833_v25 = vld [vmem:[%s21841_s0 + $0x1a0] sm:$0xff]  ;;  %v11834_v53 = vld [vmem:[%s21841_s0 + $0x1a8] sm:$0xff] }
 0x355   :  { %v12793_v35 = vld [vmem:[%s21841_s0 + $0x501] sm:$0xff]  ;;  %v12794_v44 = vld [vmem:[%s21841_s0 + $0x509] sm:$0xff] }
 0x35a   :  { %14521 = vmatmul.mubr.msk.bf16.gmra.mrb[136].mxu1 %vm468_vm0, %v2349_v51  ;;  %15189 = vmatmul.mubr.msk.bf16.gmra.mrb[64].mxu0 %vm468_vm0, %v8325_v56  ;;  %v8336_v51 = vpack.c.bf16 %v12774_v57, %v12773_v60  ;;  %v11815_v56 = vld [vmem:[%s21841_s0 + $0xe0] sm:$0xff]  ;;  %v3501_v60 = vpack.c.bf16 %v11834_v53, %v11833_v25  ;;  %v8346_v57 = vpack.c.bf16 %v12794_v44, %v12793_v35 }
 0x35b   :  { %14524 = vmatprep.mubr.msk.bf16.mxu1 %vm468_vm0, %v2350_v5  ;;  %15192 = vmatprep.mubr.msk.bf16.mxu0 %vm468_vm0, %v8326_v62  ;;  %v11816_v5 = vld [vmem:[%s21841_s0 + $0xe8] sm:$0xff] }
 0x35c   :  { %v12775_v62 = vld [vmem:[%s21841_s0 + $0x441] sm:$0xff]  ;;  %v3492_v17 = vpack.c.bf16 %v11816_v5, %v11815_v56  ;;  %v11838_v5 = vld [vmem:[%s21841_s0 + $0x1d0] sm:$0xff] }
 0x35d   :  { %v8337_v13 = vpack.c.bf16 %v12776_v21, %v12775_v62  ;;  %v11837_v56 = vld [vmem:[%s21841_s0 + $0x1c8] sm:$0xff]  ;;  %v12798_v21 = vld [vmem:[%s21841_s0 + $0x531] sm:$0xff] }
 0x35e   :  { %v12797_v62 = vld [vmem:[%s21841_s0 + $0x529] sm:$0xff] }
 0x362   :  { %14525 = vmatmul.mubr.msk.bf16.gmra.mrb[140].mxu1 %vm468_vm0, %v2351_v12  ;;  %15193 = vmatmul.mubr.msk.bf16.gmra.mrb[68].mxu0 %vm468_vm0, %v8327_v4  ;;  %v8338_v12 = vpack.c.bf16 %v12778_v14, %v12777_v63  ;;  %v11819_v4 = vld [vmem:[%s21841_s0 + $0x108] sm:$0xff]  ;;  %v3503_v63 = vpack.c.bf16 %v11838_v5, %v11837_v56  ;;  %v8348_v14 = vpack.c.bf16 %v12798_v21, %v12797_v62 }
 0x363   :  { %14532 = vmatprep.mubr.msk.bf16.mxu1 %vm468_vm0, %v3483_v8  ;;  %15196 = vmatprep.mubr.msk.bf16.mxu0 %vm468_vm0, %v8328_v32  ;;  %v11820_v8 = vld [vmem:[%s21841_s0 + $0x110] sm:$0xff] }
 0x364   :  { %v12779_v32 = vld [vmem:[%s21841_s0 + $0x469] sm:$0xff]  ;;  %v3494_v48 = vpack.c.bf16 %v11820_v8, %v11819_v4  ;;  %v11842_v8 = vld [vmem:[%s21841_s0 + $0x200] sm:$0xff] }
 0x365   :  { %v8339_v11 = vpack.c.bf16 %v12780_v28, %v12779_v32  ;;  %v11841_v4 = vld [vmem:[%s21841_s0 + $0x1f0] sm:$0xff]  ;;  %v12802_v28 = vld [vmem:[%s21841_s0 + $0x561] sm:$0xff] }
 0x366   :  { %v12801_v32 = vld [vmem:[%s21841_s0 + $0x551] sm:$0xff] }
 0x36a   :  { %14533 = vmatmul.mubr.msk.bf16.vlgmr.msra.gmra.mrb[0].mxu1 %vm468_vm0, %v3484_v29  ;;  %15197 = vmatmul.mubr.msk.bf16.gmra.mrb[72].mxu0 %vm468_vm0, %v8329_v46  ;;  %v8340_v29 = vpack.c.bf16 %v12782_v49, %v12781_v47  ;;  %v11823_v46 = vld [vmem:[%s21841_s0 + $0x130] sm:$0xff]  ;;  %v3505_v47 = vpack.c.bf16 %v11842_v8, %v11841_v4  ;;  %v8350_v49 = vpack.c.bf16 %v12802_v28, %v12801_v32 }
 0x36b   :  { %15418 = vmatpush3.bf16.msra.mxu1 %v18604_v31  ;;  %14536 = vmatprep.mubr.msk.bf16.mxu1 %vm468_vm0, %v3485_v16  ;;  %v12764_v31 = vld [vmem:[%s21841_s0 + $0x3c9] sm:$0xff]  ;;  %v11824_v16 = vld [vmem:[%s21841_s0 + $0x140] sm:$0xff] }
 0x36c   :  { %15200 = vmatprep.mubr.msk.bf16.mxu0 %vm468_vm0, %v8330_v0  ;;  %15417 = vmatprep.subr.bf16.mxu1 %v16591_v26  ;;  %v8331_v3 = vpack.c.bf16 %v12764_v31, %v12763_v33  ;;  %v12783_v0 = vld [vmem:[%s21841_s0 + $0x491] sm:$0xff]  ;;  %v12785_v31 = vld [vmem:[%s21841_s0 + $0x4a9] sm:$0xff]  ;;  %v3496_v1 = vpack.c.bf16 %v11824_v16, %v11823_v46  ;;  %v11845_v46 = vld [vmem:[%s21841_s0 + $0x220] sm:$0xff] }
 0x36d   :  { %v11826_v33 = vld [vmem:[%s21841_s0 + $0x150] sm:$0xff]  ;;  %v8341_v9 = vpack.c.bf16 %v12784_v59, %v12783_v0  ;;  %v11846_v16 = vld [vmem:[%s21841_s0 + $0x228] sm:$0xff] }
 0x36e   :  { %v3497_v61 = vpack.c.bf16 %v11826_v33, %v11825_v52  ;;  %v12805_v0 = vld [vmem:[%s21841_s0 + $0x581] sm:$0xff]  ;;  %v12806_v59 = vld [vmem:[%s21841_s0 + $0x589] sm:$0xff] }
 0x36f   :  { %15419 = vmatpush3.bf16.msra.mxu1 %v16591_v26  ;;  %v8342_v26 = vpack.c.bf16 %v12786_v22, %v12785_v31  ;;  %v3507_v31 = vpack.c.bf16 %v11846_v16, %v11845_v46  ;;  %v8352_v22 = vpack.c.bf16 %v12806_v59, %v12805_v0 }
 0x372   :  { %14537 = vmatmul.mubr.msk.bf16.gmra.mrb[4].mxu1 %vm468_vm0, %v3486_v7  ;;  %15201 = vmatmul.mubr.msk.bf16.gmra.mrb[76].mxu0 %vm468_vm0, %v8331_v3  ;;  %v11827_v7 = vld [vmem:[%s21841_s0 + $0x160] sm:$0xff]  ;;  %v11828_v3 = vld [vmem:[%s21841_s0 + $0x168] sm:$0xff] }
 0x373   :  { %14540 = vmatprep.mubr.msk.bf16.mxu1 %vm468_vm0, %v3487_v27  ;;  %15204 = vmatprep.mubr.msk.bf16.mxu0 %vm468_vm0, %v8332_v18  ;;  %v12787_v27 = vld [vmem:[%s21841_s0 + $0x4c1] sm:$0xff]  ;;  %v12788_v18 = vld [vmem:[%s21841_s0 + $0x4c9] sm:$0xff]  ;;  %v3498_v36 = vpack.c.bf16 %v11828_v3, %v11827_v7 }
 0x374   :  { %v8343_v23 = vpack.c.bf16 %v12788_v18, %v12787_v27  ;;  %v11849_v7 = vld [vmem:[%s21841_s0 + $0x248] sm:$0xff]  ;;  %v11850_v3 = vld [vmem:[%s21841_s0 + $0x250] sm:$0xff] }
 0x375   :  { %v12809_v27 = vld [vmem:[%s21841_s0 + $0x5a9] sm:$0xff]  ;;  %v12810_v18 = vld [vmem:[%s21841_s0 + $0x5b1] sm:$0xff]  ;;  %v3509_v37 = vpack.c.bf16 %v11850_v3, %v11849_v7 }
 0x376   :  { %v8354_v20 = vpack.c.bf16 %v12810_v18, %v12809_v27 }
 0x37a   :  { %14541 = vmatmul.mubr.msk.bf16.gmra.mrb[8].mxu1 %vm468_vm0, %v3488_v50  ;;  %15205 = vmatmul.mubr.msk.bf16.gmra.mrb[80].mxu0 %vm468_vm0, %v8333_v40  ;;  %v11831_v50 = vld [vmem:[%s21841_s0 + $0x188] sm:$0xff]  ;;  %v11832_v40 = vld [vmem:[%s21841_s0 + $0x190] sm:$0xff] }
 0x37b   :  { %14544 = vmatprep.mubr.msk.bf16.mxu1 %vm468_vm0, %v3489_v41  ;;  %15208 = vmatprep.mubr.msk.bf16.mxu0 %vm468_vm0, %v8334_v43  ;;  %v12791_v41 = vld [vmem:[%s21841_s0 + $0x4e9] sm:$0xff]  ;;  %v12792_v43 = vld [vmem:[%s21841_s0 + $0x4f1] sm:$0xff]  ;;  %v3500_v54 = vpack.c.bf16 %v11832_v40, %v11831_v50  ;;  %v11854_v40 = vld [vmem:[%s21841_s0 + $0x280] sm:$0xff] }
 0x37c   :  { %v8345_v42 = vpack.c.bf16 %v12792_v43, %v12791_v41  ;;  %v11853_v50 = vld [vmem:[%s21841_s0 + $0x270] sm:$0xff]  ;;  %v12814_v43 = vld [vmem:[%s21841_s0 + $0x5e1] sm:$0xff] }
 0x37d   :  { %v12813_v41 = vld [vmem:[%s21841_s0 + $0x5d1] sm:$0xff]  ;;  %v3511_v35 = vpack.c.bf16 %v11854_v40, %v11853_v50 }
 0x37e   :  { %v8356_v44 = vpack.c.bf16 %v12814_v43, %v12813_v41 }
 0x382   :  { %14545 = vmatmul.mubr.msk.bf16.gmra.mrb[12].mxu1 %vm468_vm0, %v3490_v19  ;;  %15209 = vmatmul.mubr.msk.bf16.gmra.mrb[84].mxu0 %vm468_vm0, %v8335_v55  ;;  %v11835_v19 = vld [vmem:[%s21841_s0 + $0x1b0] sm:$0xff]  ;;  %v11836_v55 = vld [vmem:[%s21841_s0 + $0x1c0] sm:$0xff] }
 0x383   :  { %14548 = vmatprep.mubr.msk.bf16.mxu1 %vm468_vm0, %v3491_v58  ;;  %15212 = vmatprep.mubr.msk.bf16.mxu0 %vm468_vm0, %v8336_v51  ;;  %v12795_v58 = vld [vmem:[%s21841_s0 + $0x511] sm:$0xff]  ;;  %v12796_v51 = vld [vmem:[%s21841_s0 + $0x521] sm:$0xff]  ;;  %v3502_v6 = vpack.c.bf16 %v11836_v55, %v11835_v19 }
 0x384   :  { %v8347_v2 = vpack.c.bf16 %v12796_v51, %v12795_v58  ;;  %v11857_v19 = vld [vmem:[%s21841_s0 + $0x2a0] sm:$0xff]  ;;  %v11858_v55 = vld [vmem:[%s21841_s0 + $0x2a8] sm:$0xff] }
 0x385   :  { %v12817_v58 = vld [vmem:[%s21841_s0 + $0x601] sm:$0xff]  ;;  %v12818_v51 = vld [vmem:[%s21841_s0 + $0x609] sm:$0xff]  ;;  %v3513_v62 = vpack.c.bf16 %v11858_v55, %v11857_v19 }
 0x386   :  { %v8358_v21 = vpack.c.bf16 %v12818_v51, %v12817_v58 }
 0x38a   :  { %14549 = vmatmul.mubr.msk.bf16.gmra.mrb[16].mxu1 %vm468_vm0, %v3492_v17  ;;  %15213 = vmatmul.mubr.msk.bf16.gmra.mrb[88].mxu0 %vm468_vm0, %v8337_v13  ;;  %v11839_v17 = vld [vmem:[%s21841_s0 + $0x1e0] sm:$0xff]  ;;  %v11840_v13 = vld [vmem:[%s21841_s0 + $0x1e8] sm:$0xff] }
 0x38b   :  { %14552 = vmatprep.mubr.msk.bf16.mxu1 %vm468_vm0, %v3493_v45  ;;  %15216 = vmatprep.mubr.msk.bf16.mxu0 %vm468_vm0, %v8338_v12  ;;  %v12799_v45 = vld [vmem:[%s21841_s0 + $0x541] sm:$0xff]  ;;  %v12800_v12 = vld [vmem:[%s21841_s0 + $0x549] sm:$0xff]  ;;  %v3504_v10 = vpack.c.bf16 %v11840_v13, %v11839_v17 }
 0x38c   :  { %v8349_v24 = vpack.c.bf16 %v12800_v12, %v12799_v45  ;;  %v11861_v17 = vld [vmem:[%s21841_s0 + $0x2c8] sm:$0xff]  ;;  %v11862_v13 = vld [vmem:[%s21841_s0 + $0x2d0] sm:$0xff] }
 0x38d   :  { %v12821_v45 = vld [vmem:[%s21841_s0 + $0x629] sm:$0xff]  ;;  %v12822_v12 = vld [vmem:[%s21841_s0 + $0x631] sm:$0xff]  ;;  %v3515_v32 = vpack.c.bf16 %v11862_v13, %v11861_v17 }
 0x38e   :  { %v8360_v28 = vpack.c.bf16 %v12822_v12, %v12821_v45 }
 0x392   :  { %14553 = vmatmul.mubr.msk.bf16.gmra.mrb[20].mxu1 %vm468_vm0, %v3494_v48  ;;  %15217 = vmatmul.mubr.msk.bf16.gmra.mrb[92].mxu0 %vm468_vm0, %v8339_v11  ;;  %v11843_v48 = vld [vmem:[%s21841_s0 + $0x208] sm:$0xff]  ;;  %v11844_v11 = vld [vmem:[%s21841_s0 + $0x210] sm:$0xff] }
 0x393   :  { %14556 = vmatprep.mubr.msk.bf16.mxu1 %vm468_vm0, %v3495_v30  ;;  %15220 = vmatprep.mubr.msk.bf16.mxu0 %vm468_vm0, %v8340_v29  ;;  %v12803_v30 = vld [vmem:[%s21841_s0 + $0x569] sm:$0xff]  ;;  %v12804_v29 = vld [vmem:[%s21841_s0 + $0x571] sm:$0xff]  ;;  %v3506_v52 = vpack.c.bf16 %v11844_v11, %v11843_v48  ;;  %v11866_v11 = vld [vmem:[%s21841_s0 + $0x300] sm:$0xff] }
 0x394   :  { %v8351_v33 = vpack.c.bf16 %v12804_v29, %v12803_v30  ;;  %v11865_v48 = vld [vmem:[%s21841_s0 + $0x2f0] sm:$0xff]  ;;  %v12826_v29 = vld [vmem:[%s21841_s0 + $0x661] sm:$0xff] }
 0x395   :  { %v12825_v30 = vld [vmem:[%s21841_s0 + $0x651] sm:$0xff]  ;;  %v3517_v0 = vpack.c.bf16 %v11866_v11, %v11865_v48 }
 0x396   :  { %v8362_v59 = vpack.c.bf16 %v12826_v29, %v12825_v30 }
 0x39a   :  { %14557 = vmatmul.mubr.msk.bf16.gmra.mrb[24].mxu1 %vm468_vm0, %v3496_v1  ;;  %15221 = vmatmul.mubr.msk.bf16.gmra.mrb[96].mxu0 %vm468_vm0, %v8341_v9  ;;  %v11847_v1 = vld [vmem:[%s21841_s0 + $0x230] sm:$0xff]  ;;  %v11848_v9 = vld [vmem:[%s21841_s0 + $0x240] sm:$0xff] }
 0x39b   :  { %14560 = vmatprep.mubr.msk.bf16.mxu1 %vm468_vm0, %v3497_v61  ;;  %15224 = vmatprep.mubr.msk.bf16.mxu0 %vm468_vm0, %v8342_v26  ;;  %v12807_v61 = vld [vmem:[%s21841_s0 + $0x591] sm:$0xff]  ;;  %v12808_v26 = vld [vmem:[%s21841_s0 + $0x5a1] sm:$0xff]  ;;  %v3508_v15 = vpack.c.bf16 %v11848_v9, %v11847_v1 }
 0x39c   :  { %v8353_v34 = vpack.c.bf16 %v12808_v26, %v12807_v61  ;;  %v11869_v1 = vld [vmem:[%s21841_s0 + $0x360] sm:$0xff]  ;;  %v11870_v9 = vld [vmem:[%s21841_s0 + $0x368] sm:$0xff] }
 0x39d   :  { %v12907_v61 = vld [vmem:[%s21841_s0 + $0x42] sm:$0xff]  ;;  %v12908_v26 = vld [vmem:[%s21841_s0 + $0x4a] sm:$0xff]  ;;  %v3519_v27 = vpack.c.bf16 %v11870_v9, %v11869_v1 }
 0x39e   :  { %v9494_v18 = vpack.c.bf16 %v12908_v26, %v12907_v61 }
 0x3a2   :  { %14561 = vmatmul.mubr.msk.bf16.gmra.mrb[28].mxu1 %vm468_vm0, %v3498_v36  ;;  %15225 = vmatmul.mubr.msk.bf16.gmra.mrb[100].mxu0 %vm468_vm0, %v8343_v23  ;;  %v11851_v36 = vld [vmem:[%s21841_s0 + $0x260] sm:$0xff]  ;;  %v11852_v23 = vld [vmem:[%s21841_s0 + $0x268] sm:$0xff] }
 0x3a3   :  { %14564 = vmatprep.mubr.msk.bf16.mxu1 %vm468_vm0, %v3499_v38  ;;  %15228 = vmatprep.mubr.msk.bf16.mxu0 %vm468_vm0, %v8344_v39  ;;  %v12811_v38 = vld [vmem:[%s21841_s0 + $0x5c1] sm:$0xff]  ;;  %v12812_v39 = vld [vmem:[%s21841_s0 + $0x5c9] sm:$0xff]  ;;  %v3510_v25 = vpack.c.bf16 %v11852_v23, %v11851_v36 }
 0x3a4   :  { %v8355_v53 = vpack.c.bf16 %v12812_v39, %v12811_v38  ;;  %v11873_v36 = vld [vmem:[%s21841_s0 + $0x388] sm:$0xff]  ;;  %v11874_v23 = vld [vmem:[%s21841_s0 + $0x390] sm:$0xff] }
 0x3a5   :  { %v12911_v38 = vld [vmem:[%s21841_s0 + $0x6a] sm:$0xff]  ;;  %v12912_v39 = vld [vmem:[%s21841_s0 + $0x72] sm:$0xff]  ;;  %v3521_v41 = vpack.c.bf16 %v11874_v23, %v11873_v36 }
 0x3a6   :  { %v9496_v43 = vpack.c.bf16 %v12912_v39, %v12911_v38 }
 0x3aa   :  { %14565 = vmatmul.mubr.msk.bf16.gmra.mrb[32].mxu1 %vm468_vm0, %v3500_v54  ;;  %15229 = vmatmul.mubr.msk.bf16.gmra.mrb[104].mxu0 %vm468_vm0, %v8345_v42  ;;  %v11855_v54 = vld [vmem:[%s21841_s0 + $0x288] sm:$0xff]  ;;  %v11856_v42 = vld [vmem:[%s21841_s0 + $0x290] sm:$0xff] }
 0x3ab   :  { %14568 = vmatprep.mubr.msk.bf16.mxu1 %vm468_vm0, %v3501_v60  ;;  %15232 = vmatprep.mubr.msk.bf16.mxu0 %vm468_vm0, %v8346_v57  ;;  %v12815_v60 = vld [vmem:[%s21841_s0 + $0x5e9] sm:$0xff]  ;;  %v12816_v57 = vld [vmem:[%s21841_s0 + $0x5f1] sm:$0xff]  ;;  %v3512_v56 = vpack.c.bf16 %v11856_v42, %v11855_v54  ;;  %v11878_v42 = vld [vmem:[%s21841_s0 + $0x3c0] sm:$0xff] }
 0x3ac   :  { %v8357_v5 = vpack.c.bf16 %v12816_v57, %v12815_v60  ;;  %v11877_v54 = vld [vmem:[%s21841_s0 + $0x3b0] sm:$0xff]  ;;  %v12916_v57 = vld [vmem:[%s21841_s0 + $0xa2] sm:$0xff] }
 0x3ad   :  { %v12915_v60 = vld [vmem:[%s21841_s0 + $0x92] sm:$0xff]  ;;  %v3523_v58 = vpack.c.bf16 %v11878_v42, %v11877_v54 }
 0x3ae   :  { %v9498_v51 = vpack.c.bf16 %v12916_v57, %v12915_v60 }
 0x3b2   :  { %14569 = vmatmul.mubr.msk.bf16.gmra.mrb[36].mxu1 %vm468_vm0, %v3502_v6  ;;  %15233 = vmatmul.mubr.msk.bf16.gmra.mrb[108].mxu0 %vm468_vm0, %v8347_v2  ;;  %v11859_v6 = vld [vmem:[%s21841_s0 + $0x2b0] sm:$0xff]  ;;  %v11860_v2 = vld [vmem:[%s21841_s0 + $0x2c0] sm:$0xff] }
 0x3b3   :  { %14572 = vmatprep.mubr.msk.bf16.mxu1 %vm468_vm0, %v3503_v63  ;;  %15236 = vmatprep.mubr.msk.bf16.mxu0 %vm468_vm0, %v8348_v14  ;;  %v12819_v63 = vld [vmem:[%s21841_s0 + $0x611] sm:$0xff]  ;;  %v12820_v14 = vld [vmem:[%s21841_s0 + $0x621] sm:$0xff]  ;;  %v3514_v4 = vpack.c.bf16 %v11860_v2, %v11859_v6 }
 0x3b4   :  { %v8359_v8 = vpack.c.bf16 %v12820_v14, %v12819_v63  ;;  %v11881_v6 = vld [vmem:[%s21841_s0 + $0x3e0] sm:$0xff]  ;;  %v11882_v2 = vld [vmem:[%s21841_s0 + $0x3e8] sm:$0xff] }
 0x3b5   :  { %v12919_v63 = vld [vmem:[%s21841_s0 + $0xc2] sm:$0xff]  ;;  %v12920_v14 = vld [vmem:[%s21841_s0 + $0xca] sm:$0xff]  ;;  %v3525_v45 = vpack.c.bf16 %v11882_v2, %v11881_v6 }
 0x3b6   :  { %v9500_v12 = vpack.c.bf16 %v12920_v14, %v12919_v63 }
 0x3ba   :  { %14573 = vmatmul.mubr.msk.bf16.gmra.mrb[40].mxu1 %vm468_vm0, %v3504_v10  ;;  %15237 = vmatmul.mubr.msk.bf16.gmra.mrb[112].mxu0 %vm468_vm0, %v8349_v24  ;;  %v11863_v10 = vld [vmem:[%s21841_s0 + $0x2e0] sm:$0xff]  ;;  %v11864_v24 = vld [vmem:[%s21841_s0 + $0x2e8] sm:$0xff] }
 0x3bb   :  { %14576 = vmatprep.mubr.msk.bf16.mxu1 %vm468_vm0, %v3505_v47  ;;  %15240 = vmatprep.mubr.msk.bf16.mxu0 %vm468_vm0, %v8350_v49  ;;  %v12823_v47 = vld [vmem:[%s21841_s0 + $0x641] sm:$0xff]  ;;  %v12824_v49 = vld [vmem:[%s21841_s0 + $0x649] sm:$0xff]  ;;  %v3516_v46 = vpack.c.bf16 %v11864_v24, %v11863_v10 }
 0x3bc   :  { %v8361_v16 = vpack.c.bf16 %v12824_v49, %v12823_v47  ;;  %v11885_v10 = vld [vmem:[%s21841_s0 + $0x408] sm:$0xff]  ;;  %v11886_v24 = vld [vmem:[%s21841_s0 + $0x410] sm:$0xff] }
 0x3bd   :  { %v12923_v47 = vld [vmem:[%s21841_s0 + $0xea] sm:$0xff]  ;;  %v12924_v49 = vld [vmem:[%s21841_s0 + $0xf2] sm:$0xff]  ;;  %v3527_v30 = vpack.c.bf16 %v11886_v24, %v11885_v10 }
 0x3be   :  { %v9502_v29 = vpack.c.bf16 %v12924_v49, %v12923_v47 }
 0x3c2   :  { %14577 = vmatmul.mubr.msk.bf16.gmra.mrb[44].mxu1 %vm468_vm0, %v3506_v52  ;;  %15241 = vmatmul.mubr.msk.bf16.gmra.mrb[116].mxu0 %vm468_vm0, %v8351_v33  ;;  %v11867_v52 = vld [vmem:[%s21841_s0 + $0x308] sm:$0xff]  ;;  %v11868_v33 = vld [vmem:[%s21841_s0 + $0x310] sm:$0xff] }
 0x3c3   :  { %14580 = vmatprep.mubr.msk.bf16.mxu1 %vm468_vm0, %v3507_v31  ;;  %15244 = vmatprep.mubr.msk.bf16.mxu0 %vm468_vm0, %v8352_v22  ;;  %v12827_v31 = vld [vmem:[%s21841_s0 + $0x669] sm:$0xff]  ;;  %v12828_v22 = vld [vmem:[%s21841_s0 + $0x671] sm:$0xff]  ;;  %v3518_v7 = vpack.c.bf16 %v11868_v33, %v11867_v52  ;;  %v11890_v33 = vld [vmem:[%s21841_s0 + $0x440] sm:$0xff] }
 0x3c4   :  { %v8363_v3 = vpack.c.bf16 %v12828_v22, %v12827_v31  ;;  %v11889_v52 = vld [vmem:[%s21841_s0 + $0x430] sm:$0xff]  ;;  %v12928_v22 = vld [vmem:[%s21841_s0 + $0x122] sm:$0xff] }
 0x3c5   :  { %v12927_v31 = vld [vmem:[%s21841_s0 + $0x112] sm:$0xff]  ;;  %v3529_v61 = vpack.c.bf16 %v11890_v33, %v11889_v52 }
 0x3c6   :  { %v9504_v26 = vpack.c.bf16 %v12928_v22, %v12927_v31  ;;  %v12948_v52 = vld [vmem:[%s21841_s0 + $0x1f2] sm:$0xff] }
 0x3ca   :  { %14581 = vmatmul.mubr.msk.bf16.gmra.mrb[48].mxu1 %vm468_vm0, %v3508_v15  ;;  %15245 = vmatmul.mubr.msk.bf16.gmra.mrb[120].mxu0 %vm468_vm0, %v8353_v34  ;;  %v11871_v15 = vld [vmem:[%s21841_s0 + $0x370] sm:$0xff]  ;;  %v11872_v34 = vld [vmem:[%s21841_s0 + $0x380] sm:$0xff] }
 0x3cb   :  { %14584 = vmatprep.mubr.msk.bf16.mxu1 %vm468_vm0, %v3509_v37  ;;  %15248 = vmatprep.mubr.msk.bf16.mxu0 %vm468_vm0, %v8354_v20  ;;  %v12909_v37 = vld [vmem:[%s21841_s0 + $0x52] sm:$0xff]  ;;  %v12910_v20 = vld [vmem:[%s21841_s0 + $0x62] sm:$0xff]  ;;  %v3520_v50 = vpack.c.bf16 %v11872_v34, %v11871_v15 }
 0x3cc   :  { %v9495_v40 = vpack.c.bf16 %v12910_v20, %v12909_v37  ;;  %v11893_v15 = vld [vmem:[%s21841_s0 + $0x460] sm:$0xff]  ;;  %v11894_v34 = vld [vmem:[%s21841_s0 + $0x468] sm:$0xff] }
 0x3cd   :  { %v12931_v37 = vld [vmem:[%s21841_s0 + $0x142] sm:$0xff]  ;;  %v12932_v20 = vld [vmem:[%s21841_s0 + $0x14a] sm:$0xff]  ;;  %v3531_v38 = vpack.c.bf16 %v11894_v34, %v11893_v15 }
 0x3ce   :  { %v9506_v39 = vpack.c.bf16 %v12932_v20, %v12931_v37  ;;  %v11913_v15 = vld [vmem:[%s21841_s0 + $0x530] sm:$0xff]  ;;  %v11914_v34 = vld [vmem:[%s21841_s0 + $0x540] sm:$0xff] }
 0x3cf   :  { %v12951_v20 = vld [vmem:[%s21841_s0 + $0x212] sm:$0xff] }
 0x3d2   :  { %14585 = vmatmul.mubr.msk.bf16.gmra.mrb[52].mxu1 %vm468_vm0, %v3510_v25  ;;  %15249 = vmatmul.mubr.msk.bf16.gmra.mrb[124].mxu0 %vm468_vm0, %v8355_v53  ;;  %v11875_v25 = vld [vmem:[%s21841_s0 + $0x3a0] sm:$0xff]  ;;  %v11876_v53 = vld [vmem:[%s21841_s0 + $0x3a8] sm:$0xff] }
 0x3d3   :  { %14588 = vmatprep.mubr.msk.bf16.mxu1 %vm468_vm0, %v3511_v35  ;;  %15252 = vmatprep.mubr.msk.bf16.mxu0 %vm468_vm0, %v8356_v44  ;;  %v12913_v35 = vld [vmem:[%s21841_s0 + $0x82] sm:$0xff]  ;;  %v12914_v44 = vld [vmem:[%s21841_s0 + $0x8a] sm:$0xff]  ;;  %v3522_v19 = vpack.c.bf16 %v11876_v53, %v11875_v25 }
 0x3d4   :  { %v9497_v55 = vpack.c.bf16 %v12914_v44, %v12913_v35  ;;  %v11897_v25 = vld [vmem:[%s21841_s0 + $0x488] sm:$0xff]  ;;  %v11898_v53 = vld [vmem:[%s21841_s0 + $0x490] sm:$0xff] }
 0x3d5   :  { %v12935_v35 = vld [vmem:[%s21841_s0 + $0x16a] sm:$0xff]  ;;  %v12936_v44 = vld [vmem:[%s21841_s0 + $0x172] sm:$0xff]  ;;  %v3533_v60 = vpack.c.bf16 %v11898_v53, %v11897_v25 }
 0x3d6   :  { %v9508_v57 = vpack.c.bf16 %v12936_v44, %v12935_v35  ;;  %v11915_v25 = vld [vmem:[%s21841_s0 + $0x548] sm:$0xff]  ;;  %v11916_v53 = vld [vmem:[%s21841_s0 + $0x550] sm:$0xff] }
 0x3d7   :  { %v12953_v35 = vld [vmem:[%s21841_s0 + $0x22a] sm:$0xff]  ;;  %v12954_v44 = vld [vmem:[%s21841_s0 + $0x232] sm:$0xff] }
 0x3da   :  { %14589 = vmatmul.mubr.msk.bf16.gmra.mrb[56].mxu1 %vm468_vm0, %v3512_v56  ;;  %15253 = vmatmul.mubr.msk.bf16.gmra.mrb[128].mxu0 %vm468_vm0, %v8357_v5  ;;  %v11879_v56 = vld [vmem:[%s21841_s0 + $0x3c8] sm:$0xff]  ;;  %v11880_v5 = vld [vmem:[%s21841_s0 + $0x3d0] sm:$0xff] }
 0x3db   :  { %14592 = vmatprep.mubr.msk.bf16.mxu1 %vm468_vm0, %v3513_v62  ;;  %15256 = vmatprep.mubr.msk.bf16.mxu0 %vm468_vm0, %v8358_v21  ;;  %v12917_v62 = vld [vmem:[%s21841_s0 + $0xaa] sm:$0xff]  ;;  %v12918_v21 = vld [vmem:[%s21841_s0 + $0xb2] sm:$0xff]  ;;  %v3524_v17 = vpack.c.bf16 %v11880_v5, %v11879_v56  ;;  %v11902_v5 = vld [vmem:[%s21841_s0 + $0x4c0] sm:$0xff] }
 0x3dc   :  { %v9499_v13 = vpack.c.bf16 %v12918_v21, %v12917_v62  ;;  %v11901_v56 = vld [vmem:[%s21841_s0 + $0x4b0] sm:$0xff]  ;;  %v12940_v21 = vld [vmem:[%s21841_s0 + $0x1a2] sm:$0xff] }
 0x3dd   :  { %v12939_v62 = vld [vmem:[%s21841_s0 + $0x192] sm:$0xff]  ;;  %v3535_v63 = vpack.c.bf16 %v11902_v5, %v11901_v56  ;;  %v9517_v56 = vpack.c.bf16 %v12954_v44, %v12953_v35 }
 0x3de   :  { %v9510_v14 = vpack.c.bf16 %v12940_v21, %v12939_v62 }
 0x3e2   :  { %14593 = vmatmul.mubr.msk.bf16.gmra.mrb[60].mxu1 %vm468_vm0, %v3514_v4  ;;  %15257 = vmatmul.mubr.msk.bf16.gmra.mrb[132].mxu0 %vm468_vm0, %v8359_v8  ;;  %v11883_v4 = vld [vmem:[%s21841_s0 + $0x3f0] sm:$0xff]  ;;  %v11884_v8 = vld [vmem:[%s21841_s0 + $0x400] sm:$0xff] }
 0x3e3   :  { %14596 = vmatprep.mubr.msk.bf16.mxu1 %vm468_vm0, %v3515_v32  ;;  %15260 = vmatprep.mubr.msk.bf16.mxu0 %vm468_vm0, %v8360_v28  ;;  %v12921_v32 = vld [vmem:[%s21841_s0 + $0xd2] sm:$0xff]  ;;  %v12922_v28 = vld [vmem:[%s21841_s0 + $0xe2] sm:$0xff]  ;;  %v3526_v48 = vpack.c.bf16 %v11884_v8, %v11883_v4 }
 0x3e4   :  { %v9501_v11 = vpack.c.bf16 %v12922_v28, %v12921_v32  ;;  %v11905_v4 = vld [vmem:[%s21841_s0 + $0x4e0] sm:$0xff]  ;;  %v11906_v8 = vld [vmem:[%s21841_s0 + $0x4e8] sm:$0xff] }
 0x3e5   :  { %v12943_v32 = vld [vmem:[%s21841_s0 + $0x1c2] sm:$0xff]  ;;  %v12944_v28 = vld [vmem:[%s21841_s0 + $0x1ca] sm:$0xff]  ;;  %v3537_v47 = vpack.c.bf16 %v11906_v8, %v11905_v4  ;;  %v12960_v4 = vld [vmem:[%s21841_s0 + $0x272] sm:$0xff] }
 0x3e6   :  { %v9512_v49 = vpack.c.bf16 %v12944_v28, %v12943_v32 }
 0x3ea   :  { %14597 = vmatmul.mubr.msk.bf16.gmra.mrb[64].mxu1 %vm468_vm0, %v3516_v46  ;;  %15261 = vmatmul.mubr.msk.bf16.gmra.mrb[136].mxu0 %vm468_vm0, %v8361_v16  ;;  %v11887_v46 = vld [vmem:[%s21841_s0 + $0x420] sm:$0xff]  ;;  %v11888_v16 = vld [vmem:[%s21841_s0 + $0x428] sm:$0xff] }
 0x3eb   :  { %14600 = vmatprep.mubr.msk.bf16.mxu1 %vm468_vm0, %v3517_v0  ;;  %15264 = vmatprep.mubr.msk.bf16.mxu0 %vm468_vm0, %v8362_v59  ;;  %v12925_v0 = vld [vmem:[%s21841_s0 + $0x102] sm:$0xff]  ;;  %v12926_v59 = vld [vmem:[%s21841_s0 + $0x10a] sm:$0xff]  ;;  %v3528_v1 = vpack.c.bf16 %v11888_v16, %v11887_v46 }
 0x3ec   :  { %v9503_v9 = vpack.c.bf16 %v12926_v59, %v12925_v0  ;;  %v11909_v46 = vld [vmem:[%s21841_s0 + $0x508] sm:$0xff]  ;;  %v11910_v16 = vld [vmem:[%s21841_s0 + $0x510] sm:$0xff] }
 0x3ed   :  { %v12947_v59 = vld [vmem:[%s21841_s0 + $0x1ea] sm:$0xff] }
 0x3f2   :  { %14601 = vmatmul.mubr.msk.bf16.gmra.mrb[68].mxu1 %vm468_vm0, %v3518_v7  ;;  %15265 = vmatmul.mubr.msk.bf16.gmra.mrb[140].mxu0 %vm468_vm0, %v8363_v3  ;;  %v11891_v7 = vld [vmem:[%s21841_s0 + $0x448] sm:$0xff]  ;;  %v11892_v3 = vld [vmem:[%s21841_s0 + $0x450] sm:$0xff] }
 0x3f3   :  { %14604 = vmatprep.mubr.msk.bf16.mxu1 %vm468_vm0, %v3519_v27  ;;  %15272 = vmatprep.mubr.msk.bf16.mxu0 %vm468_vm0, %v9494_v18  ;;  %v12929_v27 = vld [vmem:[%s21841_s0 + $0x12a] sm:$0xff]  ;;  %v12930_v18 = vld [vmem:[%s21841_s0 + $0x132] sm:$0xff]  ;;  %v3530_v36 = vpack.c.bf16 %v11892_v3, %v11891_v7  ;;  %v11911_v7 = vld [vmem:[%s21841_s0 + $0x520] sm:$0xff] }
 0x3f4   :  { %v9505_v23 = vpack.c.bf16 %v12930_v18, %v12929_v27  ;;  %v11912_v3 = vld [vmem:[%s21841_s0 + $0x528] sm:$0xff] }
 0x3f5   :  { %v12949_v27 = vld [vmem:[%s21841_s0 + $0x202] sm:$0xff]  ;;  %v12950_v18 = vld [vmem:[%s21841_s0 + $0x20a] sm:$0xff] }
 0x3fa   :  { %14605 = vmatmul.mubr.msk.bf16.gmra.mrb[72].mxu1 %vm468_vm0, %v3520_v50  ;;  %15273 = vmatmul.mubr.msk.bf16.vlgmr.msra.gmra.mrb[0].mxu0 %vm468_vm0, %v9495_v40  ;;  %v11895_v50 = vld [vmem:[%s21841_s0 + $0x470] sm:$0xff]  ;;  %v11896_v40 = vld [vmem:[%s21841_s0 + $0x480] sm:$0xff] }
 0x3fb   :  { %14608 = vmatprep.mubr.msk.bf16.mxu1 %vm468_vm0, %v3521_v41  ;;  %15276 = vmatprep.mubr.msk.bf16.mxu0 %vm468_vm0, %v9496_v43  ;;  %v12933_v41 = vld [vmem:[%s21841_s0 + $0x152] sm:$0xff]  ;;  %v12934_v43 = vld [vmem:[%s21841_s0 + $0x162] sm:$0xff]  ;;  %v3532_v54 = vpack.c.bf16 %v11896_v40, %v11895_v50  ;;  %v9515_v50 = vpack.c.bf16 %v12950_v18, %v12949_v27  ;;  %v3541_v40 = vpack.c.bf16 %v11914_v34, %v11913_v15 }
 0x3fc   :  { %v9507_v42 = vpack.c.bf16 %v12934_v43, %v12933_v41  ;;  %v11927_v15 = vld [vmem:[%s21841_s0 + $0x5c8] sm:$0xff]  ;;  %v11928_v34 = vld [vmem:[%s21841_s0 + $0x5d0] sm:$0xff] }
 0x3fd   :  { %v3548_v35 = vpack.c.bf16 %v11928_v34, %v11927_v15 }
 0x402   :  { %14609 = vmatmul.mubr.msk.bf16.gmra.mrb[76].mxu1 %vm468_vm0, %v3522_v19  ;;  %15277 = vmatmul.mubr.msk.bf16.gmra.mrb[4].mxu0 %vm468_vm0, %v9497_v55  ;;  %v11899_v19 = vld [vmem:[%s21841_s0 + $0x4a0] sm:$0xff]  ;;  %v11900_v55 = vld [vmem:[%s21841_s0 + $0x4a8] sm:$0xff] }
 0x403   :  { %14612 = vmatprep.mubr.msk.bf16.mxu1 %vm468_vm0, %v3523_v58  ;;  %15280 = vmatprep.mubr.msk.bf16.mxu0 %vm468_vm0, %v9498_v51  ;;  %v12937_v58 = vld [vmem:[%s21841_s0 + $0x182] sm:$0xff]  ;;  %v12938_v51 = vld [vmem:[%s21841_s0 + $0x18a] sm:$0xff]  ;;  %v3534_v6 = vpack.c.bf16 %v11900_v55, %v11899_v19 }
 0x404   :  { %v9509_v2 = vpack.c.bf16 %v12938_v51, %v12937_v58  ;;  %v12956_v19 = vld [vmem:[%s21841_s0 + $0x24a] sm:$0xff]  ;;  %v3542_v58 = vpack.c.bf16 %v11916_v53, %v11915_v25 }
 0x405   :  { %v12968_v25 = vld [vmem:[%s21841_s0 + $0x2ca] sm:$0xff] }
 0x40a   :  { %14613 = vmatmul.mubr.msk.bf16.gmra.mrb[80].mxu1 %vm468_vm0, %v3524_v17  ;;  %15281 = vmatmul.mubr.msk.bf16.gmra.mrb[8].mxu0 %vm468_vm0, %v9499_v13  ;;  %v11903_v17 = vld [vmem:[%s21841_s0 + $0x4c8] sm:$0xff]  ;;  %v11904_v13 = vld [vmem:[%s21841_s0 + $0x4d0] sm:$0xff] }
 0x40b   :  { %14616 = vmatprep.mubr.msk.bf16.mxu1 %vm468_vm0, %v3525_v45  ;;  %15284 = vmatprep.mubr.msk.bf16.mxu0 %vm468_vm0, %v9500_v12  ;;  %v12941_v45 = vld [vmem:[%s21841_s0 + $0x1aa] sm:$0xff]  ;;  %v12942_v12 = vld [vmem:[%s21841_s0 + $0x1b2] sm:$0xff]  ;;  %v3536_v10 = vpack.c.bf16 %v11904_v13, %v11903_v17 }
 0x40c   :  { %v9511_v24 = vpack.c.bf16 %v12942_v12, %v12941_v45  ;;  %v11921_v17 = vld [vmem:[%s21841_s0 + $0x588] sm:$0xff]  ;;  %v11922_v13 = vld [vmem:[%s21841_s0 + $0x590] sm:$0xff] }
 0x40d   :  { %v12959_v12 = vld [vmem:[%s21841_s0 + $0x26a] sm:$0xff] }
 0x412   :  { %14617 = vmatmul.mubr.msk.bf16.gmra.mrb[84].mxu1 %vm468_vm0, %v3526_v48  ;;  %15285 = vmatmul.mubr.msk.bf16.gmra.mrb[12].mxu0 %vm468_vm0, %v9501_v11  ;;  %v11907_v48 = vld [vmem:[%s21841_s0 + $0x4f0] sm:$0xff]  ;;  %v11908_v11 = vld [vmem:[%s21841_s0 + $0x500] sm:$0xff] }
 0x413   :  { %14620 = vmatprep.mubr.msk.bf16.mxu1 %vm468_vm0, %v3527_v30  ;;  %15288 = vmatprep.mubr.msk.bf16.mxu0 %vm468_vm0, %v9502_v29  ;;  %v12945_v30 = vld [vmem:[%s21841_s0 + $0x1d2] sm:$0xff]  ;;  %v12946_v29 = vld [vmem:[%s21841_s0 + $0x1e2] sm:$0xff]  ;;  %v3538_v31 = vpack.c.bf16 %v11908_v11, %v11907_v48 }
 0x414   :  { %v11923_v48 = vld [vmem:[%s21841_s0 + $0x5a0] sm:$0xff]  ;;  %v11924_v11 = vld [vmem:[%s21841_s0 + $0x5a8] sm:$0xff] }
 0x41a   :  { %14621 = vmatmul.mubr.msk.bf16.gmra.mrb[88].mxu1 %vm468_vm0, %v3528_v1  ;;  %15289 = vmatmul.mubr.msk.bf16.gmra.mrb[16].mxu0 %vm468_vm0, %v9503_v9  ;;  %v9513_v1 = vpack.c.bf16 %v12946_v29, %v12945_v30  ;;  %v3539_v9 = vpack.c.bf16 %v11910_v16, %v11909_v46  ;;  %v12961_v30 = vld [vmem:[%s21841_s0 + $0x282] sm:$0xff]  ;;  %v12962_v29 = vld [vmem:[%s21841_s0 + $0x28a] sm:$0xff] }
 0x41b   :  { %14624 = vmatprep.mubr.msk.bf16.mxu1 %vm468_vm0, %v3529_v61  ;;  %15292 = vmatprep.mubr.msk.bf16.mxu0 %vm468_vm0, %v9504_v26  ;;  %v9514_v26 = vpack.c.bf16 %v12948_v52, %v12947_v59  ;;  %v11925_v46 = vld [vmem:[%s21841_s0 + $0x5b0] sm:$0xff]  ;;  %v11926_v16 = vld [vmem:[%s21841_s0 + $0x5c0] sm:$0xff] }
 0x41c   :  { %v12963_v52 = vld [vmem:[%s21841_s0 + $0x292] sm:$0xff] }
 0x422   :  { %14625 = vmatmul.mubr.msk.bf16.gmra.mrb[92].mxu1 %vm468_vm0, %v3530_v36  ;;  %15293 = vmatmul.mubr.msk.bf16.gmra.mrb[20].mxu0 %vm468_vm0, %v9505_v23  ;;  %v12952_v36 = vld [vmem:[%s21841_s0 + $0x222] sm:$0xff] }
 0x423   :  { %14628 = vmatprep.mubr.msk.bf16.mxu1 %vm468_vm0, %v3531_v38  ;;  %15296 = vmatprep.mubr.msk.bf16.mxu0 %vm468_vm0, %v9506_v39  ;;  %v3540_v38 = vpack.c.bf16 %v11912_v3, %v11911_v7  ;;  %v9516_v43 = vpack.c.bf16 %v12952_v36, %v12951_v20  ;;  %v9521_v7 = vpack.c.bf16 %v12962_v29, %v12961_v30  ;;  %v12965_v20 = vld [vmem:[%s21841_s0 + $0x2aa] sm:$0xff]  ;;  %v12966_v36 = vld [vmem:[%s21841_s0 + $0x2b2] sm:$0xff]  ;;  %v12973_v30 = vld [vmem:[%s21841_s0 + $0x302] sm:$0xff] }
 0x424   :  { %v3547_v3 = vpack.c.bf16 %v11926_v16, %v11925_v46  ;;  %v12974_v29 = vld [vmem:[%s21841_s0 + $0x30a] sm:$0xff]  ;;  %v11938_v16 = vld [vmem:[%s21841_s0 + $0x640] sm:$0xff] }
 0x425   :  { %v11937_v46 = vld [vmem:[%s21841_s0 + $0x630] sm:$0xff]  ;;  %v9527_v15 = vpack.c.bf16 %v12974_v29, %v12973_v30 }
 0x426   :  { %v3553_v34 = vpack.c.bf16 %v11938_v16, %v11937_v46  ;;  %v12983_v29 = vld [vmem:[%s21841_s0 + $0x3aa] sm:$0xff]  ;;  %v12984_v46 = vld [vmem:[%s21841_s0 + $0x3b2] sm:$0xff] }
 0x42a   :  { %14629 = vmatmul.mubr.msk.bf16.gmra.mrb[96].mxu1 %vm468_vm0, %v3532_v54  ;;  %15297 = vmatmul.mubr.msk.bf16.gmra.mrb[24].mxu0 %vm468_vm0, %v9507_v42  ;;  %v11917_v54 = vld [vmem:[%s21841_s0 + $0x560] sm:$0xff]  ;;  %v11918_v42 = vld [vmem:[%s21841_s0 + $0x568] sm:$0xff] }
 0x42b   :  { %14632 = vmatprep.mubr.msk.bf16.mxu1 %vm468_vm0, %v3533_v60  ;;  %15300 = vmatprep.mubr.msk.bf16.mxu0 %vm468_vm0, %v9508_v57  ;;  %v12955_v57 = vld [vmem:[%s21841_s0 + $0x242] sm:$0xff]  ;;  %v3543_v5 = vpack.c.bf16 %v11918_v42, %v11917_v54  ;;  %v9523_v54 = vpack.c.bf16 %v12966_v36, %v12965_v20 }
 0x42c   :  { %v9518_v21 = vpack.c.bf16 %v12956_v19, %v12955_v57 }
 0x432   :  { %14633 = vmatmul.mubr.msk.bf16.gmra.mrb[100].mxu1 %vm468_vm0, %v3534_v6  ;;  %15301 = vmatmul.mubr.msk.bf16.gmra.mrb[28].mxu0 %vm468_vm0, %v9509_v2  ;;  %v11919_v6 = vld [vmem:[%s21841_s0 + $0x570] sm:$0xff]  ;;  %v11920_v2 = vld [vmem:[%s21841_s0 + $0x580] sm:$0xff] }
 0x433   :  { %14636 = vmatprep.mubr.msk.bf16.mxu1 %vm468_vm0, %v3535_v63  ;;  %15304 = vmatprep.mubr.msk.bf16.mxu0 %vm468_vm0, %v9510_v14  ;;  %v12957_v63 = vld [vmem:[%s21841_s0 + $0x252] sm:$0xff]  ;;  %v12958_v14 = vld [vmem:[%s21841_s0 + $0x262] sm:$0xff]  ;;  %v3544_v32 = vpack.c.bf16 %v11920_v2, %v11919_v6 }
 0x434   :  { %v11933_v6 = vld [vmem:[%s21841_s0 + $0x608] sm:$0xff]  ;;  %v11934_v2 = vld [vmem:[%s21841_s0 + $0x610] sm:$0xff] }
 0x43a   :  { %14637 = vmatmul.mubr.msk.bf16.gmra.mrb[104].mxu1 %vm468_vm0, %v3536_v10  ;;  %15305 = vmatmul.mubr.msk.bf16.gmra.mrb[32].mxu0 %vm468_vm0, %v9511_v24  ;;  %v9519_v10 = vpack.c.bf16 %v12958_v14, %v12957_v63  ;;  %v3545_v24 = vpack.c.bf16 %v11922_v13, %v11921_v17  ;;  %v12971_v14 = vld [vmem:[%s21841_s0 + $0x2ea] sm:$0xff]  ;;  %v12972_v17 = vld [vmem:[%s21841_s0 + $0x2f2] sm:$0xff] }
 0x43b   :  { %14640 = vmatprep.mubr.msk.bf16.mxu1 %vm468_vm0, %v3537_v47  ;;  %15308 = vmatprep.mubr.msk.bf16.mxu0 %vm468_vm0, %v9512_v49  ;;  %v9520_v49 = vpack.c.bf16 %v12960_v4, %v12959_v12 }
 0x43d   :  { %v20171_v0 = vpop.f32.mrb[0].mxu1 }
 0x43e   :  { %v20179_v33 = vpop.f32.mrb[1].mxu1 }
 0x43f   :  { %v20181_v22 = vpop.f32.mrb[2].mxu1 }
 0x440   :  { %v20183_v61 = vpop.f32.mrb[3].mxu1 }
 0x442   :  { %14641 = vmatmul.mubr.msk.bf16.gmra.mrb[108].mxu1 %vm468_vm0, %v3538_v31  ;;  %15309 = vmatmul.mubr.msk.bf16.gmra.mrb[36].mxu0 %vm468_vm0, %v9513_v1  ;;  %v12964_v31 = vld [vmem:[%s21841_s0 + $0x2a2] sm:$0xff] }
 0x443   :  { %14644 = vmatprep.mubr.msk.bf16.mxu1 %vm468_vm0, %v3539_v9  ;;  %15312 = vmatprep.mubr.msk.bf16.mxu0 %vm468_vm0, %v9514_v26  ;;  %v3546_v9 = vpack.c.bf16 %v11924_v11, %v11923_v48  ;;  %v9522_v18 = vpack.c.bf16 %v12964_v31, %v12963_v52  ;;  %v11935_v48 = vld [vmem:[%s21841_s0 + $0x620] sm:$0xff]  ;;  %v11936_v11 = vld [vmem:[%s21841_s0 + $0x628] sm:$0xff]  ;;  %v12975_v31 = vld [vmem:[%s21841_s0 + $0x312] sm:$0xff] }
 0x445   :  { %v20207_v37 = vpop.f32.mrb[4].mxu1 }
 0x446   :  { %v20215_v23 = vpop.f32.mrb[5].mxu1 }
 0x447   :  { %v20217_v39 = vpop.f32.mrb[6].mxu1 }
 0x448   :  { %v20219_v41 = vpop.f32.mrb[7].mxu1 }
 0x44a   :  { %14645 = vmatmul.mubr.msk.bf16.gmra.mrb[112].mxu1 %vm468_vm0, %v3540_v38  ;;  %15313 = vmatmul.mubr.msk.bf16.gmra.mrb[40].mxu0 %vm468_vm0, %v9515_v50  ;;  %v11929_v38 = vld [vmem:[%s21841_s0 + $0x5e0] sm:$0xff]  ;;  %v11930_v50 = vld [vmem:[%s21841_s0 + $0x5e8] sm:$0xff] }
 0x44b   :  { %14648 = vmatprep.mubr.msk.bf16.mxu1 %vm468_vm0, %v3541_v40  ;;  %15316 = vmatprep.mubr.msk.bf16.mxu0 %vm468_vm0, %v9516_v43  ;;  %v12967_v43 = vld [vmem:[%s21841_s0 + $0x2c2] sm:$0xff]  ;;  %v3549_v42 = vpack.c.bf16 %v11930_v50, %v11929_v38  ;;  %v11940_v50 = vld [vmem:[%s21841_s0 + $0x650] sm:$0xff] }
 0x44c   :  { %v9524_v19 = vpack.c.bf16 %v12968_v25, %v12967_v43  ;;  %v11939_v38 = vld [vmem:[%s21841_s0 + $0x648] sm:$0xff]  ;;  %v12978_v25 = vld [vmem:[%s21841_s0 + $0x332] sm:$0xff] }
 0x44d   :  { %v20243_v60 = vpop.f32.mrb[8].mxu1  ;;  %v12977_v43 = vld [vmem:[%s21841_s0 + $0x32a] sm:$0xff] }
 0x44e   :  { %v20251_v55 = vpop.f32.mrb[9].mxu1 }
 0x44f   :  { %v20253_v51 = vpop.f32.mrb[10].mxu1 }
 0x450   :  { %v20255_v62 = vpop.f32.mrb[11].mxu1 }
 0x452   :  { %14649 = vmatmul.mubr.msk.bf16.gmra.mrb[116].mxu1 %vm468_vm0, %v3542_v58  ;;  %15317 = vmatmul.mubr.msk.bf16.gmra.mrb[44].mxu0 %vm468_vm0, %v9517_v56  ;;  %v11931_v58 = vld [vmem:[%s21841_s0 + $0x5f0] sm:$0xff]  ;;  %v11932_v56 = vld [vmem:[%s21841_s0 + $0x600] sm:$0xff] }
 0x453   :  { %14652 = vmatprep.mubr.msk.bf16.mxu1 %vm468_vm0, %v3543_v5  ;;  %15320 = vmatprep.mubr.msk.bf16.mxu0 %vm468_vm0, %v9518_v21  ;;  %v12969_v5 = vld [vmem:[%s21841_s0 + $0x2d2] sm:$0xff]  ;;  %v12970_v21 = vld [vmem:[%s21841_s0 + $0x2e2] sm:$0xff]  ;;  %v3550_v12 = vpack.c.bf16 %v11932_v56, %v11931_v58  ;;  %v12980_v58 = vld [vmem:[%s21841_s0 + $0x38a] sm:$0xff] }
 0x455   :  { %v20279_v45 = vpop.f32.mrb[12].mxu1 }
 0x456   :  { %v20287_v8 = vpop.f32.mrb[13].mxu1 }
 0x457   :  { %v20289_v28 = vpop.f32.mrb[14].mxu1 }
 0x458   :  { %v20291_v47 = vpop.f32.mrb[15].mxu1 }
 0x45a   :  { %14653 = vmatmul.mubr.msk.bf16.gmra.mrb[120].mxu1 %vm468_vm0, %v3544_v32  ;;  %15321 = vmatmul.mubr.msk.bf16.gmra.mrb[48].mxu0 %vm468_vm0, %v9519_v10  ;;  %v9525_v32 = vpack.c.bf16 %v12970_v21, %v12969_v5  ;;  %v3551_v10 = vpack.c.bf16 %v11934_v2, %v11933_v6  ;;  %v3554_v5 = vpack.c.bf16 %v11940_v50, %v11939_v38  ;;  %v12097_v38 = vld [vmem:[%s21841_s0 + $0x3a1] sm:$0xff]  ;;  %v12098_v50 = vld [vmem:[%s21841_s0 + $0x3a9] sm:$0xff] }
 0x45b   :  { %14656 = vmatprep.mubr.msk.bf16.mxu1 %vm468_vm0, %v3545_v24  ;;  %15324 = vmatprep.mubr.msk.bf16.mxu0 %vm468_vm0, %v9520_v49  ;;  %v9526_v49 = vpack.c.bf16 %v12972_v17, %v12971_v14  ;;  %v9529_v6 = vpack.c.bf16 %v12978_v25, %v12977_v43  ;;  %v12985_v43 = vld [vmem:[%s21841_s0 + $0x3c2] sm:$0xff]  ;;  %v12986_v25 = vld [vmem:[%s21841_s0 + $0x3ca] sm:$0xff] }
 0x45d   :  { %v20315_v59 = vpop.f32.mrb[16].mxu1 }
 0x45e   :  { %v20323_v1 = vpop.f32.mrb[17].mxu1 }
 0x45f   :  { %v20325_v26 = vpop.f32.mrb[18].mxu1 }
 0x460   :  { %v20327_v27 = vpop.f32.mrb[19].mxu1 }
 0x462   :  { %14657 = vmatmul.mubr.msk.bf16.gmra.mrb[124].mxu1 %vm468_vm0, %v3546_v9  ;;  %15325 = vmatmul.mubr.msk.bf16.gmra.mrb[52].mxu0 %vm468_vm0, %v9521_v7  ;;  %v12976_v9 = vld [vmem:[%s21841_s0 + $0x322] sm:$0xff] }
 0x463   :  { %14660 = vmatprep.mubr.msk.bf16.mxu1 %vm468_vm0, %v3547_v3  ;;  %15328 = vmatprep.mubr.msk.bf16.mxu0 %vm468_vm0, %v9522_v18  ;;  %v3552_v3 = vpack.c.bf16 %v11936_v11, %v11935_v48  ;;  %v9528_v36 = vpack.c.bf16 %v12976_v9, %v12975_v31  ;;  %v12095_v48 = vld [vmem:[%s21841_s0 + $0x389] sm:$0xff]  ;;  %v12096_v11 = vld [vmem:[%s21841_s0 + $0x391] sm:$0xff] }
 0x465   :  { %v20351_v40 = vpop.f32.mrb[20].mxu1 }
 0x466   :  { %v20359_v53 = vpop.f32.mrb[21].mxu1 }
 0x467   :  { %v20361_v44 = vpop.f32.mrb[22].mxu1 }
 0x468   :  { %v20363_v57 = vpop.f32.mrb[23].mxu1 }
 0x46a   :  { %14661 = vmatmul.mubr.msk.bf16.gmra.mrb[128].mxu1 %vm468_vm0, %v3548_v35  ;;  %15329 = vmatmul.mubr.msk.bf16.gmra.mrb[56].mxu0 %vm468_vm0, %v9523_v54  ;;  %v12091_v35 = vld [vmem:[%s21841_s0 + $0x361] sm:$0xff]  ;;  %v12092_v54 = vld [vmem:[%s21841_s0 + $0x369] sm:$0xff] }
 0x46b   :  { %14664 = vmatprep.mubr.msk.bf16.mxu1 %vm468_vm0, %v3549_v42  ;;  %15332 = vmatprep.mubr.msk.bf16.mxu0 %vm468_vm0, %v9524_v19  ;;  %v12979_v19 = vld [vmem:[%s21841_s0 + $0x382] sm:$0xff]  ;;  %v4721_v2 = vpack.c.bf16 %v12092_v54, %v12091_v35  ;;  %v12099_v35 = vld [vmem:[%s21841_s0 + $0x3b1] sm:$0xff] }
 0x46c   :  { %v9530_v17 = vpack.c.bf16 %v12980_v58, %v12979_v19  ;;  %v12100_v54 = vld [vmem:[%s21841_s0 + $0x3c1] sm:$0xff]  ;;  %v12987_v58 = vld [vmem:[%s21841_s0 + $0x3d2] sm:$0xff] }
 0x46d   :  { %v20387_v63 = vpop.f32.mrb[24].mxu1 }
 0x46e   :  { %v20395_v13 = vpop.f32.mrb[25].mxu1 }
 0x46f   :  { %v20397_v4 = vpop.f32.mrb[26].mxu1 }
 0x470   :  { %v20399_v24 = vpop.f32.mrb[27].mxu1 }
 0x472   :  { %14665 = vmatmul.mubr.msk.bf16.gmra.mrb[132].mxu1 %vm468_vm0, %v3550_v12  ;;  %15333 = vmatmul.mubr.msk.bf16.gmra.mrb[60].mxu0 %vm468_vm0, %v9525_v32  ;;  %v12093_v12 = vld [vmem:[%s21841_s0 + $0x371] sm:$0xff]  ;;  %v12094_v32 = vld [vmem:[%s21841_s0 + $0x381] sm:$0xff] }
 0x473   :  { %14668 = vmatprep.mubr.msk.bf16.mxu1 %vm468_vm0, %v3551_v10  ;;  %15336 = vmatprep.mubr.msk.bf16.mxu0 %vm468_vm0, %v9526_v49  ;;  %v12981_v10 = vld [vmem:[%s21841_s0 + $0x392] sm:$0xff]  ;;  %v12982_v49 = vld [vmem:[%s21841_s0 + $0x3a2] sm:$0xff]  ;;  %v4722_v31 = vpack.c.bf16 %v12094_v32, %v12093_v12  ;;  %v9533_v12 = vpack.c.bf16 %v12986_v25, %v12985_v43  ;;  %v4725_v32 = vpack.c.bf16 %v12100_v54, %v12099_v35 }
 0x475   :  { %v20423_v52 = vpop.f32.mrb[28].mxu1 }
 0x476   :  { %v20431_v7 = vpop.f32.mrb[29].mxu1 }
 0x477   :  { %v20433_v18 = vpop.f32.mrb[30].mxu1 }
 0x478   :  { %v20435_v20 = vpop.f32.mrb[31].mxu1 }
 0x47a   :  { %14669 = vmatmul.mubr.msk.bf16.gmra.mrb[136].mxu1 %vm468_vm0, %v3552_v3  ;;  %15337 = vmatmul.mubr.msk.bf16.gmra.mrb[64].mxu0 %vm468_vm0, %v9527_v15  ;;  %v9531_v3 = vpack.c.bf16 %v12982_v49, %v12981_v10  ;;  %v4723_v15 = vpack.c.bf16 %v12096_v11, %v12095_v48  ;;  %v12101_v48 = vld [vmem:[%s21841_s0 + $0x3c9] sm:$0xff]  ;;  %v12102_v11 = vld [vmem:[%s21841_s0 + $0x3d1] sm:$0xff] }
 0x47b   :  { %14672 = vmatprep.mubr.msk.bf16.mxu1 %vm468_vm0, %v3553_v34  ;;  %15340 = vmatprep.mubr.msk.bf16.mxu0 %vm468_vm0, %v9528_v36  ;;  %v9532_v36 = vpack.c.bf16 %v12984_v46, %v12983_v29  ;;  %v12989_v29 = vld [vmem:[%s21841_s0 + $0x3ea] sm:$0xff]  ;;  %v12990_v46 = vld [vmem:[%s21841_s0 + $0x3f2] sm:$0xff]  ;;  %v4726_v43 = vpack.c.bf16 %v12102_v11, %v12101_v48 }
 0x47c   :  { %v9535_v35 = vpack.c.bf16 %v12990_v46, %v12989_v29  ;;  %v12107_v48 = vld [vmem:[%s21841_s0 + $0x409] sm:$0xff]  ;;  %v12108_v11 = vld [vmem:[%s21841_s0 + $0x411] sm:$0xff] }
 0x47d   :  { %v20459_v42 = vpop.f32.mrb[32].mxu1  ;;  %v12995_v46 = vld [vmem:[%s21841_s0 + $0x42a] sm:$0xff] }
 0x47e   :  { %v20467_v56 = vpop.f32.mrb[33].mxu1 }
 0x47f   :  { %v20469_v21 = vpop.f32.mrb[34].mxu1 }
 0x480   :  { %v20471_v14 = vpop.f32.mrb[35].mxu1 }
 0x482   :  { %14673 = vmatmul.mubr.msk.bf16.gmra.mrb[140].mxu1 %vm468_vm0, %v3554_v5  ;;  %15341 = vmatmul.mubr.msk.bf16.gmra.mrb[68].mxu0 %vm468_vm0, %v9529_v6  ;;  %v12988_v5 = vld [vmem:[%s21841_s0 + $0x3e2] sm:$0xff] }
 0x483   :  { %14752 = vmatprep.mubr.msk.bf16.mxu1 %vm468_vm0, %v4721_v2  ;;  %15344 = vmatprep.mubr.msk.bf16.mxu0 %vm468_vm0, %v9530_v17  ;;  %v4724_v2 = vpack.c.bf16 %v12098_v50, %v12097_v38  ;;  %v9534_v49 = vpack.c.bf16 %v12988_v5, %v12987_v58  ;;  %v12992_v38 = vld [vmem:[%s21841_s0 + $0x40a] sm:$0xff] }
 0x485   :  { %v20495_v30 = vpop.f32.mrb[36].mxu1 }
 0x486   :  { %v20503_v16 = vpop.f32.mrb[37].mxu1 }
 0x487   :  { %v20505_v9 = vpop.f32.mrb[38].mxu1 }
 0x488   :  { %v20507_v34 = vpop.f32.mrb[39].mxu1 }
 0x48a   :  { %14753 = vmatmul.mubr.msk.bf16.vlgmr.msra.gmra.mrb[72].mxu1 %vm468_vm0, %v4722_v31  ;;  %15345 = vmatmul.mubr.msk.bf16.gmra.mrb[72].mxu0 %vm468_vm0, %v9531_v3  ;;  %v12103_v31 = vld [vmem:[%s21841_s0 + $0x3e1] sm:$0xff]  ;;  %v12104_v3 = vld [vmem:[%s21841_s0 + $0x3e9] sm:$0xff] }
 0x48b   :  { %14756 = vmatprep.mubr.msk.bf16.mxu1 %vm468_vm0, %v4723_v15  ;;  %15348 = vmatprep.mubr.msk.bf16.mxu0 %vm468_vm0, %v9532_v36  ;;  %v12991_v36 = vld [vmem:[%s21841_s0 + $0x402] sm:$0xff]  ;;  %v4727_v54 = vpack.c.bf16 %v12104_v3, %v12103_v31  ;;  %v12996_v31 = vld [vmem:[%s21841_s0 + $0x432] sm:$0xff] }
 0x48c   :  { %v9536_v5 = vpack.c.bf16 %v12992_v38, %v12991_v36 }
 0x48d   :  { %v20531_v19 = vpop.f32.mrb[40].mxu1 }
 0x48e   :  { %v20539_v6 = vpop.f32.mrb[41].mxu1 }
 0x48f   :  { %21844 = vst [vmem:[#allocation2_spill] sm:$0xff] %v20539_v6  ;;  %v20541_v17 = vpop.f32.mrb[42].mxu1 }
 0x490   :  { %21845 = vst [vmem:[#allocation3_spill] sm:$0xff] %v20541_v17  ;;  %v20543_v10 = vpop.f32.mrb[43].mxu1 }
 0x491   :  { %21846 = vst [vmem:[#allocation4_spill] sm:$0xff] %v20543_v10 }
 0x492   :  { %14757 = vmatmul.mubr.msk.bf16.gmra.mrb[76].mxu1 %vm468_vm0, %v4724_v2  ;;  %15349 = vmatmul.mubr.msk.bf16.gmra.mrb[76].mxu0 %vm468_vm0, %v9533_v12  ;;  %v12105_v2 = vld [vmem:[%s21841_s0 + $0x3f1] sm:$0xff]  ;;  %v12106_v12 = vld [vmem:[%s21841_s0 + $0x401] sm:$0xff] }
 0x493   :  { %14760 = vmatprep.mubr.msk.bf16.mxu1 %vm468_vm0, %v4725_v32  ;;  %15352 = vmatprep.mubr.msk.bf16.mxu0 %vm468_vm0, %v9534_v49  ;;  %v12993_v32 = vld [vmem:[%s21841_s0 + $0x412] sm:$0xff]  ;;  %v12994_v49 = vld [vmem:[%s21841_s0 + $0x422] sm:$0xff]  ;;  %v4728_v36 = vpack.c.bf16 %v12106_v12, %v12105_v2 }
 0x494   :  { %v12110_v2 = vld [vmem:[%s21841_s0 + $0x429] sm:$0xff] }
 0x495   :  { %v20567_v15 = vpop.f32.mrb[44].mxu1  ;;  %v12997_v12 = vld [vmem:[%s21841_s0 + $0x442] sm:$0xff] }
 0x496   :  { %21847 = vst [vmem:[#allocation5_spill] sm:$0xff] %v20567_v15  ;;  %v20575_v50 = vpop.f32.mrb[45].mxu1 }
 0x497   :  { %21848 = vst [vmem:[#allocation6_spill] sm:$0xff] %v20575_v50  ;;  %v20577_v25 = vpop.f32.mrb[46].mxu1 }
 0x498   :  { %21849 = vst [vmem:[#allocation7_spill] sm:$0xff] %v20577_v25  ;;  %v20579_v58 = vpop.f32.mrb[47].mxu1 }
 0x499   :  { %21850 = vst [vmem:[#allocation8_spill] sm:$0xff] %v20579_v58 }
 0x49a   :  { %14761 = vmatmul.mubr.msk.bf16.gmra.mrb[80].mxu1 %vm468_vm0, %v4726_v43  ;;  %15353 = vmatmul.mubr.msk.bf16.gmra.mrb[80].mxu0 %vm468_vm0, %v9535_v35  ;;  %v9537_v43 = vpack.c.bf16 %v12994_v49, %v12993_v32  ;;  %v4729_v35 = vpack.c.bf16 %v12108_v11, %v12107_v48  ;;  %v12998_v32 = vld [vmem:[%s21841_s0 + $0x44a] sm:$0xff]  ;;  %v12112_v48 = vld [vmem:[%s21841_s0 + $0x441] sm:$0xff] }
 0x49b   :  { %14764 = vmatprep.mubr.msk.bf16.mxu1 %vm468_vm0, %v4727_v54  ;;  %15356 = vmatprep.mubr.msk.bf16.mxu0 %vm468_vm0, %v9536_v5  ;;  %v9538_v5 = vpack.c.bf16 %v12996_v31, %v12995_v46  ;;  %v12111_v49 = vld [vmem:[%s21841_s0 + $0x431] sm:$0xff]  ;;  %v13000_v31 = vld [vmem:[%s21841_s0 + $0x462] sm:$0xff] }
 0x49c   :  { %v12999_v46 = vld [vmem:[%s21841_s0 + $0x452] sm:$0xff] }
 0x49d   :  { %v20603_v29 = vpop.f32.mrb[48].mxu1 }
 0x49e   :  { %21851 = vst [vmem:[#allocation9_spill] sm:$0xff] %v20603_v29  ;;  %v20611_v3 = vpop.f32.mrb[49].mxu1  ;;  %v12109_v29 = vld [vmem:[%s21841_s0 + $0x421] sm:$0xff] }
 0x49f   :  { %21852 = vst [vmem:[#allocation10_spill] sm:$0xff] %v20611_v3  ;;  %v20613_v38 = vpop.f32.mrb[50].mxu1  ;;  %v9540_v3 = vpack.c.bf16 %v13000_v31, %v12999_v46 }
 0x4a0   :  { %21853 = vst [vmem:[#allocation11_spill] sm:$0xff] %v20613_v38  ;;  %v20615_v54 = vpop.f32.mrb[51].mxu1 }
 0x4a1   :  { %21854 = vst [vmem:[#allocation12_spill] sm:$0xff] %v20615_v54  ;;  %v4731_v54 = vpack.c.bf16 %v12112_v48, %v12111_v49  ;;  %v13003_v48 = vld [vmem:[%s21841_s0 + $0x482] sm:$0xff] }
 0x4a2   :  { %14765 = vmatmul.mubr.msk.bf16.gmra.mrb[84].mxu1 %vm468_vm0, %v4728_v36  ;;  %15357 = vmatmul.mubr.msk.bf16.gmra.mrb[84].mxu0 %vm468_vm0, %v9537_v43  ;;  %v4730_v43 = vpack.c.bf16 %v12110_v2, %v12109_v29  ;;  %v12114_v29 = vld [vmem:[%s21841_s0 + $0x451] sm:$0xff] }
 0x4a3   :  { %14768 = vmatprep.mubr.msk.bf16.mxu1 %vm468_vm0, %v4729_v35  ;;  %15360 = vmatprep.mubr.msk.bf16.mxu0 %vm468_vm0, %v9538_v5  ;;  %v9539_v5 = vpack.c.bf16 %v12998_v32, %v12997_v12  ;;  %v13001_v2 = vld [vmem:[%s21841_s0 + $0x46a] sm:$0xff]  ;;  %v13002_v12 = vld [vmem:[%s21841_s0 + $0x472] sm:$0xff] }
 0x4a4   :  { %v12116_v32 = vld [vmem:[%s21841_s0 + $0x469] sm:$0xff] }
 0x4a5   :  { %v20639_v11 = vpop.f32.mrb[52].mxu1 }
 0x4a6   :  { %21855 = vst [vmem:[#allocation13_spill] sm:$0xff] %v20639_v11  ;;  %v20647_v36 = vpop.f32.mrb[53].mxu1  ;;  %v12113_v11 = vld [vmem:[%s21841_s0 + $0x449] sm:$0xff] }
 0x4a7   :  { %21856 = vst [vmem:[#allocation14_spill] sm:$0xff] %v20647_v36  ;;  %v20649_v35 = vpop.f32.mrb[54].mxu1  ;;  %v4732_v31 = vpack.c.bf16 %v12114_v29, %v12113_v11  ;;  %v12118_v11 = vld [vmem:[%s21841_s0 + $0x481] sm:$0xff]  ;;  %v13005_v29 = vld [vmem:[%s21841_s0 + $0x492] sm:$0xff] }
 0x4a8   :  { %21857 = vst [vmem:[#allocation15_spill] sm:$0xff] %v20649_v35  ;;  %v20651_v38 = vpop.f32.mrb[55].mxu1 }
 0x4a9   :  { %21858 = vst [vmem:[#allocation16_spill] sm:$0xff] %v20651_v38 }
 0x4aa   :  { %14769 = vmatmul.mubr.msk.bf16.gmra.mrb[88].mxu1 %vm468_vm0, %v4730_v43  ;;  %15361 = vmatmul.mubr.msk.bf16.gmra.mrb[88].mxu0 %vm468_vm0, %v9539_v5  ;;  %v9541_v5 = vpack.c.bf16 %v13002_v12, %v13001_v2  ;;  %v13006_v2 = vld [vmem:[%s21841_s0 + $0x4a2] sm:$0xff]  ;;  %v12120_v12 = vld [vmem:[%s21841_s0 + $0x491] sm:$0xff] }
 0x4ab   :  { %14772 = vmatprep.mubr.msk.bf16.mxu1 %vm468_vm0, %v4731_v54  ;;  %15364 = vmatprep.mubr.msk.bf16.mxu0 %vm468_vm0, %v9540_v3  ;;  %v12115_v54 = vld [vmem:[%s21841_s0 + $0x461] sm:$0xff]  ;;  %v13004_v3 = vld [vmem:[%s21841_s0 + $0x48a] sm:$0xff] }
 0x4ac   :  { %v4733_v38 = vpack.c.bf16 %v12116_v32, %v12115_v54  ;;  %v9542_v36 = vpack.c.bf16 %v13004_v3, %v13003_v48  ;;  %v13007_v32 = vld [vmem:[%s21841_s0 + $0x4aa] sm:$0xff] }
 0x4ad   :  { %v20675_v49 = vpop.f32.mrb[56].mxu1 }
 0x4ae   :  { %21859 = vst [vmem:[#allocation17_spill] sm:$0xff] %v20675_v49  ;;  %v20683_v46 = vpop.f32.mrb[57].mxu1  ;;  %v12117_v49 = vld [vmem:[%s21841_s0 + $0x471] sm:$0xff] }
 0x4af   :  { %21860 = vst [vmem:[#allocation18_spill] sm:$0xff] %v20683_v46  ;;  %v20685_v43 = vpop.f32.mrb[58].mxu1  ;;  %v4734_v3 = vpack.c.bf16 %v12118_v11, %v12117_v49  ;;  %v12122_v49 = vld [vmem:[%s21841_s0 + $0x4a9] sm:$0xff] }
 0x4b0   :  { %21861 = vst [vmem:[#allocation19_spill] sm:$0xff] %v20685_v43  ;;  %v20687_v35 = vpop.f32.mrb[59].mxu1  ;;  %v13009_v11 = vld [vmem:[%s21841_s0 + $0x4c2] sm:$0xff] }
 0x4b1   :  { %21862 = vst [vmem:[#allocation20_spill] sm:$0xff] %v20687_v35 }
 0x4b2   :  { %14773 = vmatmul.mubr.msk.bf16.gmra.mrb[92].mxu1 %vm468_vm0, %v4732_v31  ;;  %15365 = vmatmul.mubr.msk.bf16.gmra.mrb[92].mxu0 %vm468_vm0, %v9541_v5  ;;  %v9543_v5 = vpack.c.bf16 %v13006_v2, %v13005_v29  ;;  %v13010_v29 = vld [vmem:[%s21841_s0 + $0x4ca] sm:$0xff]  ;;  %v12124_v2 = vld [vmem:[%s21841_s0 + $0x4c1] sm:$0xff] }
 0x4b3   :  { %14776 = vmatprep.mubr.msk.bf16.mxu1 %vm468_vm0, %v4733_v38  ;;  %15368 = vmatprep.mubr.msk.bf16.mxu0 %vm468_vm0, %v9542_v36  ;;  %v12119_v38 = vld [vmem:[%s21841_s0 + $0x489] sm:$0xff]  ;;  %v13008_v36 = vld [vmem:[%s21841_s0 + $0x4b2] sm:$0xff] }
 0x4b4   :  { %v4735_v35 = vpack.c.bf16 %v12120_v12, %v12119_v38  ;;  %v9544_v46 = vpack.c.bf16 %v13008_v36, %v13007_v32  ;;  %v13011_v12 = vld [vmem:[%s21841_s0 + $0x4d2] sm:$0xff] }
 0x4b5   :  { %v20711_v54 = vpop.f32.mrb[60].mxu1 }
 0x4b6   :  { %21863 = vst [vmem:[#allocation21_spill] sm:$0xff] %v20711_v54  ;;  %v20719_v48 = vpop.f32.mrb[61].mxu1  ;;  %v12121_v54 = vld [vmem:[%s21841_s0 + $0x4a1] sm:$0xff] }
 0x4b7   :  { %21864 = vst [vmem:[#allocation22_spill] sm:$0xff] %v20719_v48  ;;  %v20721_v31 = vpop.f32.mrb[62].mxu1  ;;  %v4736_v36 = vpack.c.bf16 %v12122_v49, %v12121_v54  ;;  %v12126_v54 = vld [vmem:[%s21841_s0 + $0x4d1] sm:$0xff] }
 0x4b8   :  { %21865 = vst [vmem:[#allocation23_spill] sm:$0xff] %v20721_v31  ;;  %v20723_v43 = vpop.f32.mrb[63].mxu1  ;;  %v13013_v49 = vld [vmem:[%s21841_s0 + $0x4ea] sm:$0xff] }
 0x4b9   :  { %21866 = vst [vmem:[#allocation24_spill] sm:$0xff] %v20723_v43 }
 0x4ba   :  { %14777 = vmatmul.mubr.msk.bf16.gmra.mrb[96].mxu1 %vm468_vm0, %v4734_v3  ;;  %15369 = vmatmul.mubr.msk.bf16.gmra.mrb[96].mxu0 %vm468_vm0, %v9543_v5  ;;  %v9545_v5 = vpack.c.bf16 %v13010_v29, %v13009_v11  ;;  %v13014_v11 = vld [vmem:[%s21841_s0 + $0x4f2] sm:$0xff]  ;;  %v12128_v29 = vld [vmem:[%s21841_s0 + $0x4e9] sm:$0xff] }
 0x4bb   :  { %14780 = vmatprep.mubr.msk.bf16.mxu1 %vm468_vm0, %v4735_v35  ;;  %15372 = vmatprep.mubr.msk.bf16.mxu0 %vm468_vm0, %v9544_v46  ;;  %v12123_v35 = vld [vmem:[%s21841_s0 + $0x4b1] sm:$0xff]  ;;  %v13012_v46 = vld [vmem:[%s21841_s0 + $0x4e2] sm:$0xff] }
 0x4bc   :  { %v4737_v43 = vpack.c.bf16 %v12124_v2, %v12123_v35  ;;  %v9546_v48 = vpack.c.bf16 %v13012_v46, %v13011_v12  ;;  %v13015_v2 = vld [vmem:[%s21841_s0 + $0x502] sm:$0xff] }
 0x4bd   :  { %v20747_v38 = vpop.f32.mrb[64].mxu1 }
 0x4be   :  { %21867 = vst [vmem:[#allocation25_spill] sm:$0xff] %v20747_v38  ;;  %v20755_v32 = vpop.f32.mrb[65].mxu1  ;;  %v12125_v38 = vld [vmem:[%s21841_s0 + $0x4c9] sm:$0xff] }
 0x4bf   :  { %21868 = vst [vmem:[#allocation26_spill] sm:$0xff] %v20755_v32  ;;  %v20757_v3 = vpop.f32.mrb[66].mxu1  ;;  %v4738_v46 = vpack.c.bf16 %v12126_v54, %v12125_v38  ;;  %v12130_v38 = vld [vmem:[%s21841_s0 + $0x501] sm:$0xff]  ;;  %v13017_v54 = vld [vmem:[%s21841_s0 + $0x512] sm:$0xff] }
 0x4c0   :  { %21869 = vst [vmem:[#allocation27_spill] sm:$0xff] %v20757_v3  ;;  %v20759_v31 = vpop.f32.mrb[67].mxu1 }
 0x4c1   :  { %21870 = vst [vmem:[#allocation28_spill] sm:$0xff] %v20759_v31 }
 0x4c2   :  { %14781 = vmatmul.mubr.msk.bf16.gmra.mrb[100].mxu1 %vm468_vm0, %v4736_v36  ;;  %15373 = vmatmul.mubr.msk.bf16.gmra.mrb[100].mxu0 %vm468_vm0, %v9545_v5  ;;  %v9547_v5 = vpack.c.bf16 %v13014_v11, %v13013_v49  ;;  %v13018_v49 = vld [vmem:[%s21841_s0 + $0x522] sm:$0xff]  ;;  %v12132_v11 = vld [vmem:[%s21841_s0 + $0x511] sm:$0xff] }
 0x4c3   :  { %14784 = vmatprep.mubr.msk.bf16.mxu1 %vm468_vm0, %v4737_v43  ;;  %15376 = vmatprep.mubr.msk.bf16.mxu0 %vm468_vm0, %v9546_v48  ;;  %v12127_v43 = vld [vmem:[%s21841_s0 + $0x4e1] sm:$0xff]  ;;  %v13016_v48 = vld [vmem:[%s21841_s0 + $0x50a] sm:$0xff] }
 0x4c4   :  { %v4739_v31 = vpack.c.bf16 %v12128_v29, %v12127_v43  ;;  %v9548_v32 = vpack.c.bf16 %v13016_v48, %v13015_v2  ;;  %v13019_v43 = vld [vmem:[%s21841_s0 + $0x52a] sm:$0xff]  ;;  %v20828_v2 = vld [vmem:[%s21842_s2] ss:$0 sm:$0xff] }
 0x4c5   :  { %v20783_v35 = vpop.f32.mrb[68].mxu1 }
 0x4c6   :  { %21871 = vst [vmem:[#allocation29_spill] sm:$0xff] %v20783_v35  ;;  %v20791_v12 = vpop.f32.mrb[69].mxu1  ;;  %v12129_v35 = vld [vmem:[%s21841_s0 + $0x4f1] sm:$0xff] }
 0x4c7   :  { %21872 = vst [vmem:[#allocation30_spill] sm:$0xff] %v20791_v12  ;;  %v20793_v36 = vpop.f32.mrb[70].mxu1  ;;  %v4740_v48 = vpack.c.bf16 %v12130_v38, %v12129_v35 }
 0x4c8   :  { %21873 = vst [vmem:[#allocation31_spill] sm:$0xff] %v20793_v36  ;;  %v20795_v3 = vpop.f32.mrb[71].mxu1 }
 0x4c9   :  { %21874 = vst [vmem:[#allocation32_spill] sm:$0xff] %v20795_v3  ;;  %v9549_v3 = vpack.c.bf16 %v13018_v49, %v13017_v54 }
 0x4ca   :  { %14785 = vmatmul.mubr.msk.bf16.gmra.mrb[104].mxu1 %vm468_vm0, %v4738_v46  ;;  %15377 = vmatmul.mubr.msk.bf16.gmra.mrb[104].mxu0 %vm468_vm0, %v9547_v5 }
 0x4cb   :  { %14788 = vmatprep.mubr.msk.bf16.mxu1 %vm468_vm0, %v4739_v31  ;;  %15380 = vmatprep.mubr.msk.bf16.mxu0 %vm468_vm0, %v9548_v32  ;;  %v12131_v31 = vld [vmem:[%s21841_s0 + $0x509] sm:$0xff]  ;;  %v13020_v32 = vld [vmem:[%s21841_s0 + $0x532] sm:$0xff] }
 0x4cc   :  { %v4741_v36 = vpack.c.bf16 %v12132_v11, %v12131_v31  ;;  %v9550_v25 = vpack.c.bf16 %v13020_v32, %v13019_v43 }
 0x4cd   :  { %v15274_v29 = vpop.f32.mrb[0].mxu0 }
 0x4ce   :  { %v15420_v46 = vadd.f32 %v15274_v29, %v20171_v0  ;;  %v9828_v5 = vpop.f32.mrb[1].mxu0 }
 0x4cf   :  { %v15421_v12 = vadd.f32 %v9828_v5, %v20179_v33  ;;  %v15275_v58 = vpop.f32.mrb[2].mxu0  ;;  %v12133_v33 = vld [vmem:[%s21841_s0 + $0x521] sm:$0xff] }
 0x4d0   :  { %v10556_v50 = vadd.f32 %v15420_v46, %v20828_v2  ;;  %v15422_v15 = vadd.f32 %v15275_v58, %v20181_v22  ;;  %v9831_v10 = vpop.f32.mrb[3].mxu0  ;;  %v12134_v22 = vld [vmem:[%s21841_s0 + $0x529] sm:$0xff]  ;;  %v12135_v58 = vld [vmem:[%s21841_s0 + $0x531] sm:$0xff] }
 0x4d1   :  { %v10554_v17 = vadd.f32 %v15421_v12, %v20828_v2  ;;  %v15423_v6 = vadd.f32 %v9831_v10, %v20183_v61  ;;  %v13021_v61 = vld [vmem:[%s21841_s0 + $0x542] sm:$0xff]  ;;  %v4742_v49 = vpack.c.bf16 %v12134_v22, %v12133_v33 }
 0x4d2   :  { %14789 = vmatmul.mubr.msk.bf16.gmra.mrb[108].mxu1 %vm468_vm0, %v4740_v48  ;;  %v10700_v35 = vmax.f32 %v10556_v50, 0.0  ;;  %v10557_v0 = vadd.f32 %v15422_v15, %v20828_v2  ;;  %15381 = vmatmul.mubr.msk.bf16.gmra.mrb[108].mxu0 %vm468_vm0, %v9549_v3  ;;  %v13022_v50 = vld [vmem:[%s21841_s0 + $0x54a] sm:$0xff]  ;;  %v12136_v3 = vld [vmem:[%s21841_s0 + $0x541] sm:$0xff] }
 0x4d3   :  { %14792 = vmatprep.mubr.msk.bf16.mxu1 %vm468_vm0, %v4741_v36  ;;  %v10698_v10 = vmax.f32 %v10554_v17, 0.0  ;;  %v10555_v15 = vadd.f32 %v15423_v6, %v20828_v2  ;;  %15384 = vmatprep.mubr.msk.bf16.mxu0 %vm468_vm0, %v9550_v25  ;;  %v13023_v6 = vld [vmem:[%s21841_s0 + $0x552] sm:$0xff]  ;;  %v13024_v17 = vld [vmem:[%s21841_s0 + $0x562] sm:$0xff]  ;;  %v9551_v32 = vpack.c.bf16 %v13022_v50, %v13021_v61  ;;  %v4743_v29 = vpack.c.bf16 %v12136_v3, %v12135_v58 }
 0x4d4   :  { %v13276_v12 = vpack.c.bf16 %v10700_v35, %v10700_v35  ;;  %v10701_v36 = vmax.f32 %v10557_v0, 0.0  ;;  %v9552_v35 = vpack.c.bf16 %v13024_v17, %v13023_v6  ;;  %v13026_v3 = vld [vmem:[%s21841_s0 + $0x572] sm:$0xff] }
 0x4d5   :  { %v13274_v25 = vpack.c.bf16 %v10698_v10, %v10698_v10  ;;  %v10699_v38 = vmax.f32 %v10555_v15, 0.0  ;;  %v15278_v54 = vpop.f32.mrb[4].mxu0  ;;  %v12138_v15 = vld [vmem:[%s21841_s0 + $0x551] sm:$0xff] }
 0x4d6   :  { %11421 = vst.msk [vmem:[%s21843_s3 + $0x8] sm:$0xf] %vm11418_vm1, %v13276_v12  ;;  %v13277_v31 = vpack.c.bf16 %v10701_v36, %v10701_v36  ;;  %v15424_v11 = vadd.f32 %v15278_v54, %v20207_v37  ;;  %v9844_v43 = vpop.f32.mrb[5].mxu0  ;;  %v12139_v12 = vld [vmem:[%s21841_s0 + $0x561] sm:$0xff]  ;;  %v12140_v36 = vld [vmem:[%s21841_s0 + $0x569] sm:$0xff] }
 0x4d7   :  { %11419 = vst.msk [vmem:[%s21843_s3] sm:$0xf] %vm11418_vm1, %v13274_v25  ;;  %v13275_v48 = vpack.c.bf16 %v10699_v38, %v10699_v38  ;;  %v15425_v46 = vadd.f32 %v9844_v43, %v20215_v23  ;;  %v15279_v5 = vpop.f32.mrb[6].mxu0  ;;  %v13027_v25 = vld [vmem:[%s21841_s0 + $0x582] sm:$0xff]  ;;  %v13028_v38 = vld [vmem:[%s21841_s0 + $0x58a] sm:$0xff] }
 0x4d8   :  { %11422 = vst.msk [vmem:[%s21843_s3 + $0xc] sm:$0xf] %vm11418_vm1, %v13277_v31  ;;  %v10560_v37 = vadd.f32 %v15424_v11, %v20828_v2  ;;  %v15426_v0 = vadd.f32 %v15279_v5, %v20217_v39  ;;  %v9847_v33 = vpop.f32.mrb[7].mxu0  ;;  %v12137_v39 = vld [vmem:[%s21841_s0 + $0x549] sm:$0xff] }
 0x4d9   :  { %11420 = vst.msk [vmem:[%s21843_s3 + $0x4] sm:$0xf] %vm11418_vm1, %v13275_v48  ;;  %v10558_v22 = vadd.f32 %v15425_v46, %v20828_v2  ;;  %v15427_v23 = vadd.f32 %v9847_v33, %v20219_v41  ;;  %v13025_v41 = vld [vmem:[%s21841_s0 + $0x56a] sm:$0xff]  ;;  %v4744_v11 = vpack.c.bf16 %v12138_v15, %v12137_v39  ;;  %v4745_v46 = vpack.c.bf16 %v12140_v36, %v12139_v12  ;;  %v12142_v39 = vld [vmem:[%s21841_s0 + $0x581] sm:$0xff] }
 0x4da   :  { %14793 = vmatmul.mubr.msk.bf16.gmra.mrb[112].mxu1 %vm468_vm0, %v4742_v49  ;;  %v10704_v61 = vmax.f32 %v10560_v37, 0.0  ;;  %v10561_v10 = vadd.f32 %v15426_v0, %v20828_v2  ;;  %15385 = vmatmul.mubr.msk.bf16.gmra.mrb[112].mxu0 %vm468_vm0, %v9551_v32  ;;  %v9553_v48 = vpack.c.bf16 %v13026_v3, %v13025_v41  ;;  %v9554_v0 = vpack.c.bf16 %v13028_v38, %v13027_v25  ;;  %v12144_v3 = vld [vmem:[%s21841_s0 + $0x591] sm:$0xff] }
 0x4db   :  { %14796 = vmatprep.mubr.msk.bf16.mxu1 %vm468_vm0, %v4743_v29  ;;  %v10702_v50 = vmax.f32 %v10558_v22, 0.0  ;;  %v10559_v58 = vadd.f32 %v15427_v23, %v20828_v2  ;;  %15388 = vmatprep.mubr.msk.bf16.mxu0 %vm468_vm0, %v9552_v35 }
 0x4dc   :  { %v13280_v6 = vpack.c.bf16 %v10704_v61, %v10704_v61  ;;  %v10705_v17 = vmax.f32 %v10561_v10, 0.0 }
 0x4dd   :  { %v13278_v54 = vpack.c.bf16 %v10702_v50, %v10702_v50  ;;  %v10703_v49 = vmax.f32 %v10559_v58, 0.0  ;;  %v15282_v31 = vpop.f32.mrb[8].mxu0  ;;  %v13030_v50 = vld [vmem:[%s21841_s0 + $0x5a2] sm:$0xff] }
 0x4de   :  { %11425 = vst.msk [vmem:[%s21843_s3 + $0x18] sm:$0xf] %vm11418_vm1, %v13280_v6  ;;  %v13281_v43 = vpack.c.bf16 %v10705_v17, %v10705_v17  ;;  %v15428_v32 = vadd.f32 %v15282_v31, %v20243_v60  ;;  %v9860_v29 = vpop.f32.mrb[9].mxu0  ;;  %v12143_v58 = vld [vmem:[%s21841_s0 + $0x589] sm:$0xff]  ;;  %v13032_v17 = vld [vmem:[%s21841_s0 + $0x5b2] sm:$0xff] }
 0x4df   :  { %11423 = vst.msk [vmem:[%s21843_s3 + $0x10] sm:$0xf] %vm11418_vm1, %v13278_v54  ;;  %v13279_v5 = vpack.c.bf16 %v10703_v49, %v10703_v49  ;;  %v15429_v35 = vadd.f32 %v9860_v29, %v20251_v55  ;;  %v15283_v37 = vpop.f32.mrb[10].mxu0  ;;  %v13031_v6 = vld [vmem:[%s21841_s0 + $0x5aa] sm:$0xff]  ;;  %v4747_v29 = vpack.c.bf16 %v12144_v3, %v12143_v58 }
 0x4e0   :  { %11426 = vst.msk [vmem:[%s21843_s3 + $0x1c] sm:$0xf] %vm11418_vm1, %v13281_v43  ;;  %v10564_v60 = vadd.f32 %v15428_v32, %v20828_v2  ;;  %v15430_v33 = vadd.f32 %v15283_v37, %v20253_v51  ;;  %v9863_v22 = vpop.f32.mrb[11].mxu0  ;;  %v12141_v51 = vld [vmem:[%s21841_s0 + $0x571] sm:$0xff] }
 0x4e1   :  { %11424 = vst.msk [vmem:[%s21843_s3 + $0x14] sm:$0xf] %vm11418_vm1, %v13279_v5  ;;  %v10562_v23 = vadd.f32 %v15429_v35, %v20828_v2  ;;  %v15431_v55 = vadd.f32 %v9863_v22, %v20255_v62  ;;  %v13029_v62 = vld [vmem:[%s21841_s0 + $0x592] sm:$0xff]  ;;  %v4746_v49 = vpack.c.bf16 %v12142_v39, %v12141_v51  ;;  %v9556_v35 = vpack.c.bf16 %v13032_v17, %v13031_v6  ;;  %v12148_v39 = vld [vmem:[%s21841_s0 + $0x5c1] sm:$0xff] }
 0x4e2   :  { %14797 = vmatmul.mubr.msk.bf16.gmra.mrb[116].mxu1 %vm468_vm0, %v4744_v11  ;;  %v10708_v61 = vmax.f32 %v10564_v60, 0.0  ;;  %v10565_v10 = vadd.f32 %v15430_v33, %v20828_v2  ;;  %15389 = vmatmul.mubr.msk.bf16.gmra.mrb[116].mxu0 %vm468_vm0, %v9553_v48  ;;  %v9555_v32 = vpack.c.bf16 %v13030_v50, %v13029_v62  ;;  %v12147_v51 = vld [vmem:[%s21841_s0 + $0x5b1] sm:$0xff]  ;;  %v13036_v50 = vld [vmem:[%s21841_s0 + $0x5e2] sm:$0xff] }
 0x4e3   :  { %14800 = vmatprep.mubr.msk.bf16.mxu1 %vm468_vm0, %v4745_v46  ;;  %v10706_v15 = vmax.f32 %v10562_v23, 0.0  ;;  %v10563_v41 = vadd.f32 %v15431_v55, %v20828_v2  ;;  %15392 = vmatprep.mubr.msk.bf16.mxu0 %vm468_vm0, %v9554_v0  ;;  %v12146_v23 = vld [vmem:[%s21841_s0 + $0x5a9] sm:$0xff] }
 0x4e4   :  { %v13284_v12 = vpack.c.bf16 %v10708_v61, %v10708_v61  ;;  %v10709_v36 = vmax.f32 %v10565_v10, 0.0  ;;  %v13034_v10 = vld [vmem:[%s21841_s0 + $0x5ca] sm:$0xff] }
 0x4e5   :  { %v13282_v25 = vpack.c.bf16 %v10706_v15, %v10706_v15  ;;  %v10707_v38 = vmax.f32 %v10563_v41, 0.0  ;;  %v15286_v54 = vpop.f32.mrb[12].mxu0  ;;  %v13035_v41 = vld [vmem:[%s21841_s0 + $0x5d2] sm:$0xff] }
 0x4e6   :  { %11429 = vst.msk [vmem:[%s21843_s3 + $0x28] sm:$0xf] %vm11418_vm1, %v13284_v12  ;;  %v13285_v31 = vpack.c.bf16 %v10709_v36, %v10709_v36  ;;  %v15432_v11 = vadd.f32 %v15286_v54, %v20279_v45  ;;  %v9876_v43 = vpop.f32.mrb[13].mxu0  ;;  %v4749_v54 = vpack.c.bf16 %v12148_v39, %v12147_v51 }
 0x4e7   :  { %11427 = vst.msk [vmem:[%s21843_s3 + $0x20] sm:$0xf] %vm11418_vm1, %v13282_v25  ;;  %v13283_v48 = vpack.c.bf16 %v10707_v38, %v10707_v38  ;;  %v15433_v46 = vadd.f32 %v9876_v43, %v20287_v8  ;;  %v15287_v5 = vpop.f32.mrb[14].mxu0  ;;  %v9558_v43 = vpack.c.bf16 %v13036_v50, %v13035_v41 }
 0x4e8   :  { %11430 = vst.msk [vmem:[%s21843_s3 + $0x2c] sm:$0xf] %vm11418_vm1, %v13285_v31  ;;  %v10568_v45 = vadd.f32 %v15432_v11, %v20828_v2  ;;  %v15434_v37 = vadd.f32 %v15287_v5, %v20289_v28  ;;  %v9879_v0 = vpop.f32.mrb[15].mxu0  ;;  %v12145_v28 = vld [vmem:[%s21841_s0 + $0x5a1] sm:$0xff] }
 0x4e9   :  { %11428 = vst.msk [vmem:[%s21843_s3 + $0x24] sm:$0xf] %vm11418_vm1, %v13283_v48  ;;  %v10566_v60 = vadd.f32 %v15433_v46, %v20828_v2  ;;  %v15435_v8 = vadd.f32 %v9879_v0, %v20291_v47  ;;  %v13033_v47 = vld [vmem:[%s21841_s0 + $0x5c2] sm:$0xff]  ;;  %v4748_v36 = vpack.c.bf16 %v12146_v23, %v12145_v28  ;;  %v13038_v0 = vld [vmem:[%s21841_s0 + $0x5f2] sm:$0xff]  ;;  %v13040_v23 = vld [vmem:[%s21841_s0 + $0x60a] sm:$0xff] }
 0x4ea   :  { %14801 = vmatmul.mubr.msk.bf16.gmra.mrb[120].mxu1 %vm468_vm0, %v4746_v49  ;;  %v10712_v33 = vmax.f32 %v10568_v45, 0.0  ;;  %v10569_v22 = vadd.f32 %v15434_v37, %v20828_v2  ;;  %15393 = vmatmul.mubr.msk.bf16.gmra.mrb[120].mxu0 %vm468_vm0, %v9555_v32  ;;  %v9557_v38 = vpack.c.bf16 %v13034_v10, %v13033_v47  ;;  %v13039_v28 = vld [vmem:[%s21841_s0 + $0x602] sm:$0xff] }
 0x4eb   :  { %14804 = vmatprep.mubr.msk.bf16.mxu1 %vm468_vm0, %v4747_v29  ;;  %v10710_v55 = vmax.f32 %v10566_v60, 0.0  ;;  %v10567_v61 = vadd.f32 %v15435_v8, %v20828_v2  ;;  %15396 = vmatprep.mubr.msk.bf16.mxu0 %vm468_vm0, %v9556_v35  ;;  %v12150_v35 = vld [vmem:[%s21841_s0 + $0x5d1] sm:$0xff]  ;;  %v12151_v60 = vld [vmem:[%s21841_s0 + $0x5e1] sm:$0xff]  ;;  %v12152_v8 = vld [vmem:[%s21841_s0 + $0x5e9] sm:$0xff] }
 0x4ec   :  { %v13288_v62 = vpack.c.bf16 %v10712_v33, %v10712_v33  ;;  %v10713_v15 = vmax.f32 %v10569_v22, 0.0  ;;  %v4751_v41 = vpack.c.bf16 %v12152_v8, %v12151_v60 }
 0x4ed   :  { %v13286_v58 = vpack.c.bf16 %v10710_v55, %v10710_v55  ;;  %v10711_v3 = vmax.f32 %v10567_v61, 0.0  ;;  %v15290_v12 = vpop.f32.mrb[16].mxu0 }
 0x4ee   :  { %11433 = vst.msk [vmem:[%s21843_s3 + $0x38] sm:$0xf] %vm11418_vm1, %v13288_v62  ;;  %v13289_v6 = vpack.c.bf16 %v10713_v15, %v10713_v15  ;;  %v15436_v17 = vadd.f32 %v15290_v12, %v20315_v59  ;;  %v9892_v25 = vpop.f32.mrb[17].mxu0  ;;  %v9560_v12 = vpack.c.bf16 %v13040_v23, %v13039_v28 }
 0x4ef   :  { %11431 = vst.msk [vmem:[%s21843_s3 + $0x30] sm:$0xf] %vm11418_vm1, %v13286_v58  ;;  %v13287_v49 = vpack.c.bf16 %v10711_v3, %v10711_v3  ;;  %v15437_v31 = vadd.f32 %v9892_v25, %v20323_v1  ;;  %v15291_v11 = vpop.f32.mrb[18].mxu0 }
 0x4f0   :  { %11434 = vst.msk [vmem:[%s21843_s3 + $0x3c] sm:$0xf] %vm11418_vm1, %v13289_v6  ;;  %v10572_v59 = vadd.f32 %v15436_v17, %v20828_v2  ;;  %v15438_v32 = vadd.f32 %v15291_v11, %v20325_v26  ;;  %v9895_v29 = vpop.f32.mrb[19].mxu0  ;;  %v12149_v26 = vld [vmem:[%s21841_s0 + $0x5c9] sm:$0xff] }
 0x4f1   :  { %11432 = vst.msk [vmem:[%s21843_s3 + $0x34] sm:$0xf] %vm11418_vm1, %v13287_v49  ;;  %v10570_v48 = vadd.f32 %v15437_v31, %v20828_v2  ;;  %v15439_v1 = vadd.f32 %v9895_v29, %v20327_v27  ;;  %v13037_v27 = vld [vmem:[%s21841_s0 + $0x5ea] sm:$0xff]  ;;  %v4750_v10 = vpack.c.bf16 %v12150_v35, %v12149_v26  ;;  %v13042_v11 = vld [vmem:[%s21841_s0 + $0x622] sm:$0xff] }
 0x4f2   :  { %14805 = vmatmul.mubr.msk.bf16.gmra.mrb[124].mxu1 %vm468_vm0, %v4748_v36  ;;  %v10716_v46 = vmax.f32 %v10572_v59, 0.0  ;;  %v10573_v5 = vadd.f32 %v15438_v32, %v20828_v2  ;;  %15397 = vmatmul.mubr.msk.bf16.gmra.mrb[124].mxu0 %vm468_vm0, %v9557_v38  ;;  %v9559_v15 = vpack.c.bf16 %v13038_v0, %v13037_v27  ;;  %v12156_v59 = vld [vmem:[%s21841_s0 + $0x611] sm:$0xff] }
 0x4f3   :  { %14808 = vmatprep.mubr.msk.bf16.mxu1 %vm468_vm0, %v4749_v54  ;;  %v10714_v45 = vmax.f32 %v10570_v48, 0.0  ;;  %v10571_v37 = vadd.f32 %v15439_v1, %v20828_v2  ;;  %15400 = vmatprep.mubr.msk.bf16.mxu0 %vm468_vm0, %v9558_v43  ;;  %v12154_v54 = vld [vmem:[%s21841_s0 + $0x601] sm:$0xff]  ;;  %v12155_v43 = vld [vmem:[%s21841_s0 + $0x609] sm:$0xff]  ;;  %v13044_v1 = vld [vmem:[%s21841_s0 + $0x632] sm:$0xff] }
 0x4f4   :  { %v13292_v33 = vpack.c.bf16 %v10716_v46, %v10716_v46  ;;  %v10717_v22 = vmax.f32 %v10573_v5, 0.0  ;;  %v13043_v48 = vld [vmem:[%s21841_s0 + $0x62a] sm:$0xff]  ;;  %v4753_v60 = vpack.c.bf16 %v12156_v59, %v12155_v43 }
 0x4f5   :  { %v13290_v47 = vpack.c.bf16 %v10714_v45, %v10714_v45  ;;  %v10715_v55 = vmax.f32 %v10571_v37, 0.0  ;;  %v15294_v61 = vpop.f32.mrb[20].mxu0  ;;  %v9562_v28 = vpack.c.bf16 %v13044_v1, %v13043_v48 }
 0x4f6   :  { %11437 = vst.msk [vmem:[%s21843_s3 + $0x48] sm:$0xf] %vm11418_vm1, %v13292_v33  ;;  %v13293_v51 = vpack.c.bf16 %v10717_v22, %v10717_v22  ;;  %v15440_v39 = vadd.f32 %v15294_v61, %v20351_v40  ;;  %v9908_v62 = vpop.f32.mrb[21].mxu0 }
 0x4f7   :  { %11435 = vst.msk [vmem:[%s21843_s3 + $0x40] sm:$0xf] %vm11418_vm1, %v13290_v47  ;;  %v13291_v50 = vpack.c.bf16 %v10715_v55, %v10715_v55  ;;  %v15441_v58 = vadd.f32 %v9908_v62, %v20359_v53  ;;  %v15295_v3 = vpop.f32.mrb[22].mxu0 }
 0x4f8   :  { %11438 = vst.msk [vmem:[%s21843_s3 + $0x4c] sm:$0xf] %vm11418_vm1, %v13293_v51  ;;  %v10576_v40 = vadd.f32 %v15440_v39, %v20828_v2  ;;  %v15442_v36 = vadd.f32 %v15295_v3, %v20361_v44  ;;  %v9911_v6 = vpop.f32.mrb[23].mxu0  ;;  %v12153_v44 = vld [vmem:[%s21841_s0 + $0x5f1] sm:$0xff]  ;;  %v12158_v51 = vld [vmem:[%s21841_s0 + $0x629] sm:$0xff] }
 0x4f9   :  { %11436 = vst.msk [vmem:[%s21843_s3 + $0x44] sm:$0xf] %vm11418_vm1, %v13291_v50  ;;  %v10574_v17 = vadd.f32 %v15441_v58, %v20828_v2  ;;  %v15443_v53 = vadd.f32 %v9911_v6, %v20363_v57  ;;  %v13041_v57 = vld [vmem:[%s21841_s0 + $0x612] sm:$0xff]  ;;  %v4752_v35 = vpack.c.bf16 %v12154_v54, %v12153_v44  ;;  %v12160_v50 = vld [vmem:[%s21841_s0 + $0x641] sm:$0xff] }
 0x4fa   :  { %14809 = vmatmul.mubr.msk.bf16.gmra.mrb[128].mxu1 %vm468_vm0, %v4750_v10  ;;  %v10720_v25 = vmax.f32 %v10576_v40, 0.0  ;;  %v10577_v38 = vadd.f32 %v15442_v36, %v20828_v2  ;;  %15401 = vmatmul.mubr.msk.bf16.gmra.mrb[128].mxu0 %vm468_vm0, %v9559_v15  ;;  %v9561_v0 = vpack.c.bf16 %v13042_v11, %v13041_v57  ;;  %v13046_v15 = vld [vmem:[%s21841_s0 + $0x64a] sm:$0xff]  ;;  %v13048_v40 = vld [vmem:[%s21841_s0 + $0x662] sm:$0xff] }
 0x4fb   :  { %14812 = vmatprep.mubr.msk.bf16.mxu1 %vm468_vm0, %v4751_v41  ;;  %v10718_v49 = vmax.f32 %v10574_v17, 0.0  ;;  %v10575_v31 = vadd.f32 %v15443_v53, %v20828_v2  ;;  %15404 = vmatprep.mubr.msk.bf16.mxu0 %vm468_vm0, %v9560_v12  ;;  %v12159_v41 = vld [vmem:[%s21841_s0 + $0x631] sm:$0xff] }
 0x4fc   :  { %v13296_v32 = vpack.c.bf16 %v10720_v25, %v10720_v25  ;;  %v10721_v29 = vmax.f32 %v10577_v38, 0.0  ;;  %v13047_v12 = vld [vmem:[%s21841_s0 + $0x652] sm:$0xff]  ;;  %v4755_v57 = vpack.c.bf16 %v12160_v50, %v12159_v41 }
 0x4fd   :  { %v13294_v46 = vpack.c.bf16 %v10718_v49, %v10718_v49  ;;  %v10719_v5 = vmax.f32 %v10575_v31, 0.0  ;;  %v15298_v26 = vpop.f32.mrb[24].mxu0  ;;  %v9564_v43 = vpack.c.bf16 %v13048_v40, %v13047_v12 }
 0x4fe   :  { %11441 = vst.msk [vmem:[%s21843_s3 + $0x58] sm:$0xf] %vm11418_vm1, %v13296_v32  ;;  %v13297_v27 = vpack.c.bf16 %v10721_v29, %v10721_v29  ;;  %v15444_v45 = vadd.f32 %v15298_v26, %v20387_v63  ;;  %v9924_v37 = vpop.f32.mrb[25].mxu0  ;;  %v13049_v26 = vld [vmem:[%s21841_s0 + $0x66a] sm:$0xff] }
 0x4ff   :  { %11439 = vst.msk [vmem:[%s21843_s3 + $0x50] sm:$0xf] %vm11418_vm1, %v13294_v46  ;;  %v13295_v8 = vpack.c.bf16 %v10719_v5, %v10719_v5  ;;  %v15445_v33 = vadd.f32 %v9924_v37, %v20395_v13  ;;  %v15299_v22 = vpop.f32.mrb[26].mxu0  ;;  %v12162_v46 = vld [vmem:[%s21841_s0 + $0x651] sm:$0xff] }
 0x500   :  { %11442 = vst.msk [vmem:[%s21843_s3 + $0x5c] sm:$0xf] %vm11418_vm1, %v13297_v27  ;;  %v10580_v63 = vadd.f32 %v15444_v45, %v20828_v2  ;;  %v15446_v23 = vadd.f32 %v15299_v22, %v20397_v4  ;;  %v9927_v47 = vpop.f32.mrb[27].mxu0  ;;  %v12157_v4 = vld [vmem:[%s21841_s0 + $0x621] sm:$0xff] }
 0x501   :  { %11440 = vst.msk [vmem:[%s21843_s3 + $0x54] sm:$0xf] %vm11418_vm1, %v13295_v8  ;;  %v10578_v55 = vadd.f32 %v15445_v33, %v20828_v2  ;;  %v15447_v13 = vadd.f32 %v9927_v47, %v20399_v24  ;;  %v13045_v24 = vld [vmem:[%s21841_s0 + $0x642] sm:$0xff]  ;;  %v4754_v53 = vpack.c.bf16 %v12158_v51, %v12157_v4 }
 0x502   :  { %14813 = vmatmul.mubr.msk.bf16.gmra.mrb[132].mxu1 %vm468_vm0, %v4752_v35  ;;  %v10724_v61 = vmax.f32 %v10580_v63, 0.0  ;;  %v10581_v10 = vadd.f32 %v15446_v23, %v20828_v2  ;;  %15405 = vmatmul.mubr.msk.bf16.gmra.mrb[132].mxu0 %vm468_vm0, %v9561_v0  ;;  %v9563_v54 = vpack.c.bf16 %v13046_v15, %v13045_v24  ;;  %v13050_v35 = vld [vmem:[%s21841_s0 + $0x672] sm:$0xff] }
 0x503   :  { %14816 = vmatprep.mubr.msk.bf16.mxu1 %vm468_vm0, %v4753_v60  ;;  %v10722_v39 = vmax.f32 %v10578_v55, 0.0  ;;  %v10579_v62 = vadd.f32 %v15447_v13, %v20828_v2  ;;  %15408 = vmatprep.mubr.msk.bf16.mxu0 %vm468_vm0, %v9562_v28  ;;  %v9565_v63 = vpack.c.bf16 %v13050_v35, %v13049_v26 }
 0x504   :  { %v13300_v58 = vpack.c.bf16 %v10724_v61, %v10724_v61  ;;  %v10725_v3 = vmax.f32 %v10581_v10, 0.0 }
 0x505   :  { %v13298_v36 = vpack.c.bf16 %v10722_v39, %v10722_v39  ;;  %v10723_v6 = vmax.f32 %v10579_v62, 0.0  ;;  %v15302_v17 = vpop.f32.mrb[28].mxu0 }
 0x506   :  { %11445 = vst.msk [vmem:[%s21843_s3 + $0x68] sm:$0xf] %vm11418_vm1, %v13300_v58  ;;  %v13301_v25 = vpack.c.bf16 %v10725_v3, %v10725_v3  ;;  %v15448_v38 = vadd.f32 %v15302_v17, %v20423_v52  ;;  %v9940_v44 = vpop.f32.mrb[29].mxu0 }
 0x507   :  { %11443 = vst.msk [vmem:[%s21843_s3 + $0x60] sm:$0xf] %vm11418_vm1, %v13298_v36  ;;  %v13299_v49 = vpack.c.bf16 %v10723_v6, %v10723_v6  ;;  %v15449_v31 = vadd.f32 %v9940_v44, %v20431_v7  ;;  %v15303_v11 = vpop.f32.mrb[30].mxu0 }
 0x508   :  { %11446 = vst.msk [vmem:[%s21843_s3 + $0x6c] sm:$0xf] %vm11418_vm1, %v13301_v25  ;;  %v10584_v52 = vadd.f32 %v15448_v38, %v20828_v2  ;;  %v15450_v59 = vadd.f32 %v15303_v11, %v20433_v18  ;;  %v9943_v32 = vpop.f32.mrb[31].mxu0  ;;  %v12161_v18 = vld [vmem:[%s21841_s0 + $0x649] sm:$0xff] }
 0x509   :  { %11444 = vst.msk [vmem:[%s21843_s3 + $0x64] sm:$0xf] %vm11418_vm1, %v13299_v49  ;;  %v10582_v29 = vadd.f32 %v15449_v31, %v20828_v2  ;;  %v15451_v7 = vadd.f32 %v9943_v32, %v20435_v20  ;;  %v4756_v8 = vpack.c.bf16 %v12162_v46, %v12161_v18  ;;  %v21875_v32 = vld [vmem:[#allocation2_spill] sm:$0xff] }
 0x50a   :  { %14817 = vmatmul.mubr.msk.bf16.gmra.mrb[136].mxu1 %vm468_vm0, %v4754_v53  ;;  %v10728_v48 = vmax.f32 %v10584_v52, 0.0  ;;  %v10585_v1 = vadd.f32 %v15450_v59, %v20828_v2  ;;  %15409 = vmatmul.mubr.msk.bf16.gmra.mrb[136].mxu0 %vm468_vm0, %v9563_v54 }
 0x50b   :  { %14820 = vmatprep.mubr.msk.bf16.mxu1 %vm468_vm0, %v4755_v57  ;;  %v10726_v5 = vmax.f32 %v10582_v29, 0.0  ;;  %v10583_v20 = vadd.f32 %v15451_v7, %v20828_v2  ;;  %15412 = vmatprep.mubr.msk.bf16.mxu0 %vm468_vm0, %v9564_v43 }
 0x50c   :  { %v13304_v27 = vpack.c.bf16 %v10728_v48, %v10728_v48  ;;  %v10729_v45 = vmax.f32 %v10585_v1, 0.0  ;;  %v21876_v1 = vld [vmem:[#allocation3_spill] sm:$0xff] }
 0x50d   :  { %v13302_v37 = vpack.c.bf16 %v10726_v5, %v10726_v5  ;;  %v10727_v0 = vmax.f32 %v10583_v20, 0.0  ;;  %v15306_v60 = vpop.f32.mrb[32].mxu0  ;;  %v21877_v5 = vld [vmem:[#allocation4_spill] sm:$0xff] }
 0x50e   :  { %11449 = vst.msk [vmem:[%s21843_s3 + $0x78] sm:$0xf] %vm11418_vm1, %v13304_v27  ;;  %v13305_v33 = vpack.c.bf16 %v10729_v45, %v10729_v45  ;;  %v15452_v22 = vadd.f32 %v15306_v60, %v20459_v42  ;;  %v9956_v28 = vpop.f32.mrb[33].mxu0 }
 0x50f   :  { %11447 = vst.msk [vmem:[%s21843_s3 + $0x70] sm:$0xf] %vm11418_vm1, %v13302_v37  ;;  %v13303_v23 = vpack.c.bf16 %v10727_v0, %v10727_v0  ;;  %v15453_v47 = vadd.f32 %v9956_v28, %v20467_v56  ;;  %v15307_v55 = vpop.f32.mrb[34].mxu0  ;;  %v21878_v28 = vld [vmem:[#allocation5_spill] sm:$0xff] }
 0x510   :  { %11450 = vst.msk [vmem:[%s21843_s3 + $0x7c] sm:$0xf] %vm11418_vm1, %v13305_v33  ;;  %v10588_v13 = vadd.f32 %v15452_v22, %v20828_v2  ;;  %v15454_v42 = vadd.f32 %v15307_v55, %v20469_v21  ;;  %v9959_v61 = vpop.f32.mrb[35].mxu0  ;;  %v21879_v55 = vld [vmem:[#allocation6_spill] sm:$0xff] }
 0x511   :  { %11448 = vst.msk [vmem:[%s21843_s3 + $0x74] sm:$0xf] %vm11418_vm1, %v13303_v23  ;;  %v10586_v10 = vadd.f32 %v15453_v47, %v20828_v2  ;;  %v15455_v56 = vadd.f32 %v9959_v61, %v20471_v14 }
 0x512   :  { %14821 = vmatmul.mubr.msk.bf16.gmra.mrb[140].mxu1 %vm468_vm0, %v4756_v8  ;;  %v10732_v4 = vmax.f32 %v10588_v13, 0.0  ;;  %v10589_v51 = vadd.f32 %v15454_v42, %v20828_v2  ;;  %15413 = vmatmul.mubr.msk.bf16.gmra.mrb[140].mxu0 %vm468_vm0, %v9565_v63 }
 0x513   :  { %v10730_v24 = vmax.f32 %v10586_v10, 0.0  ;;  %v10587_v21 = vadd.f32 %v15455_v56, %v20828_v2  ;;  %v21880_v10 = vld [vmem:[#allocation7_spill] sm:$0xff] }
 0x514   :  { %v13308_v39 = vpack.c.bf16 %v10732_v4, %v10732_v4  ;;  %v10733_v62 = vmax.f32 %v10589_v51, 0.0 }
 0x515   :  { %v13306_v15 = vpack.c.bf16 %v10730_v24, %v10730_v24  ;;  %v10731_v41 = vmax.f32 %v10587_v21, 0.0  ;;  %v15310_v50 = vpop.f32.mrb[36].mxu0  ;;  %v21881_v24 = vld [vmem:[#allocation8_spill] sm:$0xff] }
 0x516   :  { %11453 = vst.msk [vmem:[%s21843_s3 + $0x88] sm:$0xf] %vm11418_vm1, %v13308_v39  ;;  %v13309_v14 = vpack.c.bf16 %v10733_v62, %v10733_v62  ;;  %v15456_v58 = vadd.f32 %v15310_v50, %v20495_v30  ;;  %v9972_v3 = vpop.f32.mrb[37].mxu0 }
 0x517   :  { %11451 = vst.msk [vmem:[%s21843_s3 + $0x80] sm:$0xf] %vm11418_vm1, %v13306_v15  ;;  %v13307_v12 = vpack.c.bf16 %v10731_v41, %v10731_v41  ;;  %v15457_v40 = vadd.f32 %v9972_v3, %v20503_v16  ;;  %v15311_v36 = vpop.f32.mrb[38].mxu0 }
 0x518   :  { %11454 = vst.msk [vmem:[%s21843_s3 + $0x8c] sm:$0xf] %vm11418_vm1, %v13309_v14  ;;  %v10592_v6 = vadd.f32 %v15456_v58, %v20828_v2  ;;  %v15458_v17 = vadd.f32 %v15311_v36, %v20505_v9  ;;  %v9975_v30 = vpop.f32.mrb[39].mxu0  ;;  %v21882_v36 = vld [vmem:[#allocation9_spill] sm:$0xff] }
 0x519   :  { %11452 = vst.msk [vmem:[%s21843_s3 + $0x84] sm:$0xf] %vm11418_vm1, %v13307_v12  ;;  %v10590_v53 = vadd.f32 %v15457_v40, %v20828_v2  ;;  %v15459_v16 = vadd.f32 %v9975_v30, %v20507_v34 }
 0x51a   :  { %v10736_v25 = vmax.f32 %v10592_v6, 0.0  ;;  %v10593_v38 = vadd.f32 %v15458_v17, %v20828_v2 }
 0x51b   :  { %v10734_v44 = vmax.f32 %v10590_v53, 0.0  ;;  %v10591_v54 = vadd.f32 %v15459_v16, %v20828_v2  ;;  %v21883_v53 = vld [vmem:[#allocation10_spill] sm:$0xff] }
 0x51c   :  { %v13312_v57 = vpack.c.bf16 %v10736_v25, %v10736_v25  ;;  %v10737_v49 = vmax.f32 %v10593_v38, 0.0 }
 0x51d   :  { %v13310_v31 = vpack.c.bf16 %v10734_v44, %v10734_v44  ;;  %v10735_v9 = vmax.f32 %v10591_v54, 0.0  ;;  %v15314_v11 = vpop.f32.mrb[40].mxu0  ;;  %v21884_v44 = vld [vmem:[#allocation11_spill] sm:$0xff] }
 0x51e   :  { %11457 = vst.msk [vmem:[%s21843_s3 + $0x98] sm:$0xf] %vm11418_vm1, %v13312_v57  ;;  %v13313_v43 = vpack.c.bf16 %v10737_v49, %v10737_v49  ;;  %v15460_v52 = vadd.f32 %v15314_v11, %v20531_v19  ;;  %v9988_v34 = vpop.f32.mrb[41].mxu0 }
 0x51f   :  { %11455 = vst.msk [vmem:[%s21843_s3 + $0x90] sm:$0xf] %vm11418_vm1, %v13310_v31  ;;  %v13311_v59 = vpack.c.bf16 %v10735_v9, %v10735_v9  ;;  %v15461_v29 = vadd.f32 %v9988_v34, %v21875_v32  ;;  %v15315_v7 = vpop.f32.mrb[42].mxu0  ;;  %v21885_v31 = vld [vmem:[#allocation12_spill] sm:$0xff] }
 0x520   :  { %11458 = vst.msk [vmem:[%s21843_s3 + $0x9c] sm:$0xf] %vm11418_vm1, %v13313_v43  ;;  %v10596_v48 = vadd.f32 %v15460_v52, %v20828_v2  ;;  %v15462_v18 = vadd.f32 %v15315_v7, %v21876_v1  ;;  %v9991_v19 = vpop.f32.mrb[43].mxu0 }
 0x521   :  { %11456 = vst.msk [vmem:[%s21843_s3 + $0x94] sm:$0xf] %vm11418_vm1, %v13311_v59  ;;  %v10594_v46 = vadd.f32 %v15461_v29, %v20828_v2  ;;  %v15463_v20 = vadd.f32 %v9991_v19, %v21877_v5 }
 0x522   :  { %v10740_v26 = vmax.f32 %v10596_v48, 0.0  ;;  %v10597_v35 = vadd.f32 %v15462_v18, %v20828_v2  ;;  %v21886_v18 = vld [vmem:[#allocation13_spill] sm:$0xff] }
 0x523   :  { %v10738_v27 = vmax.f32 %v10594_v46, 0.0  ;;  %v10595_v45 = vadd.f32 %v15463_v20, %v20828_v2  ;;  %v21887_v20 = vld [vmem:[#allocation14_spill] sm:$0xff] }
 0x524   :  { %v13316_v37 = vpack.c.bf16 %v10740_v26, %v10740_v26  ;;  %v10741_v0 = vmax.f32 %v10597_v35, 0.0 }
 0x525   :  { %v13314_v60 = vpack.c.bf16 %v10738_v27, %v10738_v27  ;;  %v10739_v8 = vmax.f32 %v10595_v45, 0.0  ;;  %v15318_v33 = vpop.f32.mrb[44].mxu0  ;;  %v21888_v45 = vld [vmem:[#allocation15_spill] sm:$0xff] }
 0x526   :  { %11461 = vst.msk [vmem:[%s21843_s3 + $0xa8] sm:$0xf] %vm11418_vm1, %v13316_v37  ;;  %v13317_v22 = vpack.c.bf16 %v10741_v0, %v10741_v0  ;;  %v15464_v63 = vadd.f32 %v15318_v33, %v21878_v28  ;;  %v10004_v23 = vpop.f32.mrb[45].mxu0 }
 0x527   :  { %11459 = vst.msk [vmem:[%s21843_s3 + $0xa0] sm:$0xf] %vm11418_vm1, %v13314_v60  ;;  %v13315_v47 = vpack.c.bf16 %v10739_v8, %v10739_v8  ;;  %v15465_v13 = vadd.f32 %v10004_v23, %v21879_v55  ;;  %v15319_v42 = vpop.f32.mrb[46].mxu0  ;;  %v21889_v8 = vld [vmem:[#allocation16_spill] sm:$0xff] }
 0x528   :  { %11462 = vst.msk [vmem:[%s21843_s3 + $0xac] sm:$0xf] %vm11418_vm1, %v13317_v22  ;;  %v10600_v61 = vadd.f32 %v15464_v63, %v20828_v2  ;;  %v15466_v56 = vadd.f32 %v15319_v42, %v21880_v10  ;;  %v10007_v4 = vpop.f32.mrb[47].mxu0 }
 0x529   :  { %11460 = vst.msk [vmem:[%s21843_s3 + $0xa4] sm:$0xf] %vm11418_vm1, %v13315_v47  ;;  %v10598_v51 = vadd.f32 %v15465_v13, %v20828_v2  ;;  %v15467_v21 = vadd.f32 %v10007_v4, %v21881_v24 }
 0x52a   :  { %v10744_v39 = vmax.f32 %v10600_v61, 0.0  ;;  %v10601_v62 = vadd.f32 %v15466_v56, %v20828_v2  ;;  %v21890_v56 = vld [vmem:[#allocation17_spill] sm:$0xff] }
 0x52b   :  { %v10742_v15 = vmax.f32 %v10598_v51, 0.0  ;;  %v10599_v41 = vadd.f32 %v15467_v21, %v20828_v2  ;;  %v21891_v21 = vld [vmem:[#allocation18_spill] sm:$0xff] }
 0x52c   :  { %v13320_v50 = vpack.c.bf16 %v10744_v39, %v10744_v39  ;;  %v10745_v14 = vmax.f32 %v10601_v62, 0.0 }
 0x52d   :  { %v13318_v58 = vpack.c.bf16 %v10742_v15, %v10742_v15  ;;  %v10743_v3 = vmax.f32 %v10599_v41, 0.0  ;;  %v15322_v12 = vpop.f32.mrb[48].mxu0  ;;  %v21892_v41 = vld [vmem:[#allocation19_spill] sm:$0xff] }
 0x52e   :  { %11465 = vst.msk [vmem:[%s21843_s3 + $0xb8] sm:$0xf] %vm11418_vm1, %v13320_v50  ;;  %v13321_v40 = vpack.c.bf16 %v10745_v14, %v10745_v14  ;;  %v15468_v6 = vadd.f32 %v15322_v12, %v21882_v36  ;;  %v10020_v17 = vpop.f32.mrb[49].mxu0 }
 0x52f   :  { %11463 = vst.msk [vmem:[%s21843_s3 + $0xb0] sm:$0xf] %vm11418_vm1, %v13318_v58  ;;  %v13319_v30 = vpack.c.bf16 %v10743_v3, %v10743_v3  ;;  %v15469_v16 = vadd.f32 %v10020_v17, %v21883_v53  ;;  %v15323_v25 = vpop.f32.mrb[50].mxu0  ;;  %v21893_v3 = vld [vmem:[#allocation20_spill] sm:$0xff] }
 0x530   :  { %11466 = vst.msk [vmem:[%s21843_s3 + $0xbc] sm:$0xf] %vm11418_vm1, %v13321_v40  ;;  %v10604_v38 = vadd.f32 %v15468_v6, %v20828_v2  ;;  %v15470_v54 = vadd.f32 %v15323_v25, %v21884_v44  ;;  %v10023_v57 = vpop.f32.mrb[51].mxu0 }
 0x531   :  { %11464 = vst.msk [vmem:[%s21843_s3 + $0xb4] sm:$0xf] %vm11418_vm1, %v13319_v30  ;;  %v10602_v49 = vadd.f32 %v15469_v16, %v20828_v2  ;;  %v15471_v9 = vadd.f32 %v10023_v57, %v21885_v31 }
 0x532   :  { %v10748_v11 = vmax.f32 %v10604_v38, 0.0  ;;  %v10605_v43 = vadd.f32 %v15470_v54, %v20828_v2  ;;  %v21894_v54 = vld [vmem:[#allocation21_spill] sm:$0xff] }
 0x533   :  { %v10746_v52 = vmax.f32 %v10602_v49, 0.0  ;;  %v10603_v34 = vadd.f32 %v15471_v9, %v20828_v2  ;;  %v21895_v9 = vld [vmem:[#allocation22_spill] sm:$0xff] }
 0x534   :  { %v13324_v59 = vpack.c.bf16 %v10748_v11, %v10748_v11  ;;  %v10749_v32 = vmax.f32 %v10605_v43, 0.0 }
 0x535   :  { %v13322_v29 = vpack.c.bf16 %v10746_v52, %v10746_v52  ;;  %v10747_v7 = vmax.f32 %v10603_v34, 0.0  ;;  %v15326_v48 = vpop.f32.mrb[52].mxu0  ;;  %v21896_v34 = vld [vmem:[#allocation23_spill] sm:$0xff] }
 0x536   :  { %11469 = vst.msk [vmem:[%s21843_s3 + $0xc8] sm:$0xf] %vm11418_vm1, %v13324_v59  ;;  %v13325_v1 = vpack.c.bf16 %v10749_v32, %v10749_v32  ;;  %v15472_v19 = vadd.f32 %v15326_v48, %v21886_v18  ;;  %v10036_v46 = vpop.f32.mrb[53].mxu0 }
 0x537   :  { %11467 = vst.msk [vmem:[%s21843_s3 + $0xc0] sm:$0xf] %vm11418_vm1, %v13322_v29  ;;  %v13323_v5 = vpack.c.bf16 %v10747_v7, %v10747_v7  ;;  %v15473_v26 = vadd.f32 %v10036_v46, %v21887_v20  ;;  %v15327_v35 = vpop.f32.mrb[54].mxu0  ;;  %v21897_v7 = vld [vmem:[#allocation24_spill] sm:$0xff] }
 0x538   :  { %11470 = vst.msk [vmem:[%s21843_s3 + $0xcc] sm:$0xf] %vm11418_vm1, %v13325_v1  ;;  %v10608_v27 = vadd.f32 %v15472_v19, %v20828_v2  ;;  %v15474_v37 = vadd.f32 %v15327_v35, %v21888_v45  ;;  %v10039_v0 = vpop.f32.mrb[55].mxu0 }
 0x539   :  { %11468 = vst.msk [vmem:[%s21843_s3 + $0xc4] sm:$0xf] %vm11418_vm1, %v13323_v5  ;;  %v10606_v60 = vadd.f32 %v15473_v26, %v20828_v2  ;;  %v15475_v33 = vadd.f32 %v10039_v0, %v21889_v8  ;;  %v21899_v8 = vld [vmem:[#allocation26_spill] sm:$0xff] }
 0x53a   :  { %v10752_v22 = vmax.f32 %v10608_v27, 0.0  ;;  %v10609_v28 = vadd.f32 %v15474_v37, %v20828_v2  ;;  %v21898_v37 = vld [vmem:[#allocation25_spill] sm:$0xff] }
 0x53b   :  { %v10750_v63 = vmax.f32 %v10606_v60, 0.0  ;;  %v10607_v23 = vadd.f32 %v15475_v33, %v20828_v2 }
 0x53c   :  { %v13328_v47 = vpack.c.bf16 %v10752_v22, %v10752_v22  ;;  %v10753_v55 = vmax.f32 %v10609_v28, 0.0  ;;  %v21429_v28 = vld [vmem:[%s21842_s2] ss:$0 sm:$0xff] }
 0x53d   :  { %v13326_v13 = vpack.c.bf16 %v10750_v63, %v10750_v63  ;;  %v10751_v42 = vmax.f32 %v10607_v23, 0.0  ;;  %v15330_v61 = vpop.f32.mrb[56].mxu0  ;;  %v21900_v23 = vld [vmem:[#allocation27_spill] sm:$0xff] }
 0x53e   :  { %11473 = vst.msk [vmem:[%s21843_s3 + $0xd8] sm:$0xf] %vm11418_vm1, %v13328_v47  ;;  %v13329_v10 = vpack.c.bf16 %v10753_v55, %v10753_v55  ;;  %v15476_v4 = vadd.f32 %v15330_v61, %v21890_v56  ;;  %v10052_v51 = vpop.f32.mrb[57].mxu0 }
 0x53f   :  { %11471 = vst.msk [vmem:[%s21843_s3 + $0xd0] sm:$0xf] %vm11418_vm1, %v13326_v13  ;;  %v13327_v24 = vpack.c.bf16 %v10751_v42, %v10751_v42  ;;  %v15477_v39 = vadd.f32 %v10052_v51, %v21891_v21  ;;  %v15331_v62 = vpop.f32.mrb[58].mxu0  ;;  %v21901_v42 = vld [vmem:[#allocation28_spill] sm:$0xff] }
 0x540   :  { %11474 = vst.msk [vmem:[%s21843_s3 + $0xdc] sm:$0xf] %vm11418_vm1, %v13329_v10  ;;  %v10612_v15 = vadd.f32 %v15476_v4, %v20828_v2  ;;  %v15478_v50 = vadd.f32 %v15331_v62, %v21892_v41  ;;  %v10055_v14 = vpop.f32.mrb[59].mxu0 }
 0x541   :  { %11472 = vst.msk [vmem:[%s21843_s3 + $0xd4] sm:$0xf] %vm11418_vm1, %v13327_v24  ;;  %v10610_v58 = vadd.f32 %v15477_v39, %v20828_v2  ;;  %v15479_v12 = vadd.f32 %v10055_v14, %v21893_v3 }
 0x542   :  { %v10756_v40 = vmax.f32 %v10612_v15, 0.0  ;;  %v10613_v36 = vadd.f32 %v15478_v50, %v20828_v2  ;;  %v21902_v50 = vld [vmem:[#allocation29_spill] sm:$0xff] }
 0x543   :  { %v10754_v6 = vmax.f32 %v10610_v58, 0.0  ;;  %v10611_v17 = vadd.f32 %v15479_v12, %v20828_v2  ;;  %v21903_v12 = vld [vmem:[#allocation30_spill] sm:$0xff] }
 0x544   :  { %v13332_v30 = vpack.c.bf16 %v10756_v40, %v10756_v40  ;;  %v10757_v53 = vmax.f32 %v10613_v36, 0.0 }
 0x545   :  { %v13330_v16 = vpack.c.bf16 %v10754_v6, %v10754_v6  ;;  %v10755_v25 = vmax.f32 %v10611_v17, 0.0  ;;  %v15334_v38 = vpop.f32.mrb[60].mxu0  ;;  %v21904_v17 = vld [vmem:[#allocation31_spill] sm:$0xff] }
 0x546   :  { %11477 = vst.msk [vmem:[%s21843_s3 + $0xe8] sm:$0xf] %vm11418_vm1, %v13332_v30  ;;  %v13333_v44 = vpack.c.bf16 %v10757_v53, %v10757_v53  ;;  %v15480_v57 = vadd.f32 %v15334_v38, %v21894_v54  ;;  %v10068_v49 = vpop.f32.mrb[61].mxu0 }
 0x547   :  { %11475 = vst.msk [vmem:[%s21843_s3 + $0xe0] sm:$0xf] %vm11418_vm1, %v13330_v16  ;;  %v13331_v31 = vpack.c.bf16 %v10755_v25, %v10755_v25  ;;  %v15481_v11 = vadd.f32 %v10068_v49, %v21895_v9  ;;  %v15335_v43 = vpop.f32.mrb[62].mxu0  ;;  %v21905_v25 = vld [vmem:[#allocation32_spill] sm:$0xff] }
 0x548   :  { %11478 = vst.msk [vmem:[%s21843_s3 + $0xec] sm:$0xf] %vm11418_vm1, %v13333_v44  ;;  %v10616_v52 = vadd.f32 %v15480_v57, %v20828_v2  ;;  %v15482_v59 = vadd.f32 %v15335_v43, %v21896_v34  ;;  %v10071_v32 = vpop.f32.mrb[63].mxu0 }
 0x549   :  { %11476 = vst.msk [vmem:[%s21843_s3 + $0xe4] sm:$0xf] %vm11418_vm1, %v13331_v31  ;;  %v10614_v29 = vadd.f32 %v15481_v11, %v20828_v2  ;;  %v15483_v48 = vadd.f32 %v10071_v32, %v21897_v7 }
 0x54a   :  { %v10760_v1 = vmax.f32 %v10616_v52, 0.0  ;;  %v10617_v18 = vadd.f32 %v15482_v59, %v20828_v2 }
 0x54b   :  { %v10758_v19 = vmax.f32 %v10614_v29, 0.0  ;;  %v10615_v46 = vadd.f32 %v15483_v48, %v20828_v2 }
 0x54c   :  { %v13336_v5 = vpack.c.bf16 %v10760_v1, %v10760_v1  ;;  %v10761_v20 = vmax.f32 %v10617_v18, 0.0 }
 0x54d   :  { %v13334_v26 = vpack.c.bf16 %v10758_v19, %v10758_v19  ;;  %v10759_v35 = vmax.f32 %v10615_v46, 0.0  ;;  %v15338_v27 = vpop.f32.mrb[64].mxu0 }
 0x54e   :  { %11481 = vst.msk [vmem:[%s21843_s3 + $0xf8] sm:$0xf] %vm11418_vm1, %v13336_v5  ;;  %v13337_v45 = vpack.c.bf16 %v10761_v20, %v10761_v20  ;;  %v15484_v0 = vadd.f32 %v15338_v27, %v21898_v37  ;;  %v10084_v60 = vpop.f32.mrb[65].mxu0 }
 0x54f   :  { %11479 = vst.msk [vmem:[%s21843_s3 + $0xf0] sm:$0xf] %vm11418_vm1, %v13334_v26  ;;  %v13335_v2 = vpack.c.bf16 %v10759_v35, %v10759_v35  ;;  %v15485_v33 = vadd.f32 %v10084_v60, %v21899_v8  ;;  %v15339_v22 = vpop.f32.mrb[66].mxu0 }
 0x550   :  { %11482 = vst.msk [vmem:[%s21843_s3 + $0xfc] sm:$0xf] %vm11418_vm1, %v13337_v45  ;;  %v10620_v63 = vadd.f32 %v21429_v28, %v15484_v0  ;;  %v15486_v47 = vadd.f32 %v15339_v22, %v21900_v23  ;;  %v10087_v55 = vpop.f32.mrb[67].mxu0 }
 0x551   :  { %11480 = vst.msk [vmem:[%s21843_s3 + $0xf4] sm:$0xf] %vm11418_vm1, %v13335_v2  ;;  %v10618_v13 = vadd.f32 %v21429_v28, %v15485_v33  ;;  %v15487_v61 = vadd.f32 %v10087_v55, %v21901_v42 }
 0x552   :  { %v10764_v10 = vmax.f32 %v10620_v63, 0.0  ;;  %v10621_v56 = vadd.f32 %v21429_v28, %v15486_v47 }
 0x553   :  { %v10762_v4 = vmax.f32 %v10618_v13, 0.0  ;;  %v10619_v51 = vadd.f32 %v21429_v28, %v15487_v61 }
 0x554   :  { %v13340_v24 = vpack.c.bf16 %v10764_v10, %v10764_v10  ;;  %v10765_v21 = vmax.f32 %v10621_v56, 0.0 }
 0x555   :  { %v13338_v39 = vpack.c.bf16 %v10762_v4, %v10762_v4  ;;  %v10763_v62 = vmax.f32 %v10619_v51, 0.0  ;;  %v15342_v15 = vpop.f32.mrb[68].mxu0 }
 0x556   :  { %11485 = vst.msk [vmem:[%s21843_s3 + $0x108] sm:$0xf] %vm11418_vm1, %v13340_v24  ;;  %v13341_v41 = vpack.c.bf16 %v10765_v21, %v10765_v21  ;;  %v15488_v14 = vadd.f32 %v15342_v15, %v21902_v50  ;;  %v10100_v58 = vpop.f32.mrb[69].mxu0 }
 0x557   :  { %11483 = vst.msk [vmem:[%s21843_s3 + $0x100] sm:$0xf] %vm11418_vm1, %v13338_v39  ;;  %v13339_v3 = vpack.c.bf16 %v10763_v62, %v10763_v62  ;;  %v15489_v40 = vadd.f32 %v10100_v58, %v21903_v12  ;;  %v15343_v36 = vpop.f32.mrb[70].mxu0 }
 0x558   :  { %11486 = vst.msk [vmem:[%s21843_s3 + $0x10c] sm:$0xf] %vm11418_vm1, %v13341_v41  ;;  %v10624_v6 = vadd.f32 %v21429_v28, %v15488_v14  ;;  %v15490_v30 = vadd.f32 %v15343_v36, %v21904_v17  ;;  %v10103_v53 = vpop.f32.mrb[71].mxu0 }
 0x559   :  { %11484 = vst.msk [vmem:[%s21843_s3 + $0x104] sm:$0xf] %vm11418_vm1, %v13339_v3  ;;  %v10622_v16 = vadd.f32 %v21429_v28, %v15489_v40  ;;  %v15491_v38 = vadd.f32 %v10103_v53, %v21905_v25 }
 0x55a   :  { %v10768_v44 = vmax.f32 %v10624_v6, 0.0  ;;  %v10625_v54 = vadd.f32 %v21429_v28, %v15490_v30 }
 0x55b   :  { %v10766_v57 = vmax.f32 %v10622_v16, 0.0  ;;  %v10623_v49 = vadd.f32 %v21429_v28, %v15491_v38 }
 0x55c   :  { %v13344_v31 = vpack.c.bf16 %v10768_v44, %v10768_v44  ;;  %v10769_v9 = vmax.f32 %v10625_v54, 0.0 }
 0x55d   :  { %v14754_v11 = vpop.f32.mrb[72].mxu1  ;;  %v13342_v43 = vpack.c.bf16 %v10766_v57, %v10766_v57  ;;  %v10767_v52 = vmax.f32 %v10623_v49, 0.0  ;;  %v15346_v34 = vpop.f32.mrb[72].mxu0 }
 0x55e   :  { %v5307_v59 = vpop.f32.mrb[73].mxu1  ;;  %11489 = vst.msk [vmem:[%s21843_s3 + $0x118] sm:$0xf] %vm11418_vm1, %v13344_v31  ;;  %v13345_v32 = vpack.c.bf16 %v10769_v9, %v10769_v9  ;;  %v15492_v29 = vadd.f32 %v15346_v34, %v14754_v11  ;;  %v10116_v7 = vpop.f32.mrb[73].mxu0 }
 0x55f   :  { %v14755_v48 = vpop.f32.mrb[74].mxu1  ;;  %11487 = vst.msk [vmem:[%s21843_s3 + $0x110] sm:$0xf] %vm11418_vm1, %v13342_v43  ;;  %v13343_v1 = vpack.c.bf16 %v10767_v52, %v10767_v52  ;;  %v15493_v18 = vadd.f32 %v10116_v7, %v5307_v59  ;;  %v15347_v19 = vpop.f32.mrb[74].mxu0 }
 0x560   :  { %v5310_v46 = vpop.f32.mrb[75].mxu1  ;;  %11490 = vst.msk [vmem:[%s21843_s3 + $0x11c] sm:$0xf] %vm11418_vm1, %v13345_v32  ;;  %v10628_v5 = vadd.f32 %v21429_v28, %v15492_v29  ;;  %v15494_v20 = vadd.f32 %v15347_v19, %v14755_v48  ;;  %v10119_v26 = vpop.f32.mrb[75].mxu0 }
 0x561   :  { %11488 = vst.msk [vmem:[%s21843_s3 + $0x114] sm:$0xf] %vm11418_vm1, %v13343_v1  ;;  %v10626_v35 = vadd.f32 %v21429_v28, %v15493_v18  ;;  %v15495_v27 = vadd.f32 %v10119_v26, %v5310_v46 }
 0x562   :  { %v10772_v45 = vmax.f32 %v10628_v5, 0.0  ;;  %v10629_v37 = vadd.f32 %v21429_v28, %v15494_v20 }
 0x563   :  { %v10770_v0 = vmax.f32 %v10626_v35, 0.0  ;;  %v10627_v60 = vadd.f32 %v21429_v28, %v15495_v27 }
 0x564   :  { %v13348_v2 = vpack.c.bf16 %v10772_v45, %v10772_v45  ;;  %v10773_v8 = vmax.f32 %v10629_v37, 0.0 }
 0x565   :  { %v14758_v33 = vpop.f32.mrb[76].mxu1  ;;  %v13346_v22 = vpack.c.bf16 %v10770_v0, %v10770_v0  ;;  %v10771_v63 = vmax.f32 %v10627_v60, 0.0  ;;  %v15350_v23 = vpop.f32.mrb[76].mxu0 }
 0x566   :  { %v5323_v47 = vpop.f32.mrb[77].mxu1  ;;  %11493 = vst.msk [vmem:[%s21843_s3 + $0x128] sm:$0xf] %vm11418_vm1, %v13348_v2  ;;  %v13349_v55 = vpack.c.bf16 %v10773_v8, %v10773_v8  ;;  %v15496_v13 = vadd.f32 %v15350_v23, %v14758_v33  ;;  %v10132_v42 = vpop.f32.mrb[77].mxu0 }
 0x567   :  { %v14759_v61 = vpop.f32.mrb[78].mxu1  ;;  %11491 = vst.msk [vmem:[%s21843_s3 + $0x120] sm:$0xf] %vm11418_vm1, %v13346_v22  ;;  %v13347_v10 = vpack.c.bf16 %v10771_v63, %v10771_v63  ;;  %v15497_v56 = vadd.f32 %v10132_v42, %v5323_v47  ;;  %v15351_v4 = vpop.f32.mrb[78].mxu0 }
 0x568   :  { %v5326_v51 = vpop.f32.mrb[79].mxu1  ;;  %11494 = vst.msk [vmem:[%s21843_s3 + $0x12c] sm:$0xf] %vm11418_vm1, %v13349_v55  ;;  %v10632_v24 = vadd.f32 %v21429_v28, %v15496_v13  ;;  %v15498_v21 = vadd.f32 %v15351_v4, %v14759_v61  ;;  %v10135_v39 = vpop.f32.mrb[79].mxu0 }
 0x569   :  { %11492 = vst.msk [vmem:[%s21843_s3 + $0x124] sm:$0xf] %vm11418_vm1, %v13347_v10  ;;  %v10630_v62 = vadd.f32 %v21429_v28, %v15497_v56  ;;  %v15499_v15 = vadd.f32 %v10135_v39, %v5326_v51 }
 0x56a   :  { %v10776_v41 = vmax.f32 %v10632_v24, 0.0  ;;  %v10633_v50 = vadd.f32 %v21429_v28, %v15498_v21 }
 0x56b   :  { %v10774_v14 = vmax.f32 %v10630_v62, 0.0  ;;  %v10631_v58 = vadd.f32 %v21429_v28, %v15499_v15 }
 0x56c   :  { %v13352_v3 = vpack.c.bf16 %v10776_v41, %v10776_v41  ;;  %v10777_v12 = vmax.f32 %v10633_v50, 0.0 }
 0x56d   :  { %v14762_v40 = vpop.f32.mrb[80].mxu1  ;;  %v13350_v36 = vpack.c.bf16 %v10774_v14, %v10774_v14  ;;  %v10775_v6 = vmax.f32 %v10631_v58, 0.0  ;;  %v15354_v17 = vpop.f32.mrb[80].mxu0 }
 0x56e   :  { %v5339_v30 = vpop.f32.mrb[81].mxu1  ;;  %11497 = vst.msk [vmem:[%s21843_s3 + $0x138] sm:$0xf] %vm11418_vm1, %v13352_v3  ;;  %v13353_v53 = vpack.c.bf16 %v10777_v12, %v10777_v12  ;;  %v15500_v16 = vadd.f32 %v15354_v17, %v14762_v40  ;;  %v10148_v25 = vpop.f32.mrb[81].mxu0 }
 0x56f   :  { %v14763_v38 = vpop.f32.mrb[82].mxu1  ;;  %11495 = vst.msk [vmem:[%s21843_s3 + $0x130] sm:$0xf] %vm11418_vm1, %v13350_v36  ;;  %v13351_v44 = vpack.c.bf16 %v10775_v6, %v10775_v6  ;;  %v15501_v54 = vadd.f32 %v10148_v25, %v5339_v30  ;;  %v15355_v57 = vpop.f32.mrb[82].mxu0 }
 0x570   :  { %v5342_v49 = vpop.f32.mrb[83].mxu1  ;;  %11498 = vst.msk [vmem:[%s21843_s3 + $0x13c] sm:$0xf] %vm11418_vm1, %v13353_v53  ;;  %v10636_v31 = vadd.f32 %v21429_v28, %v15500_v16  ;;  %v15502_v9 = vadd.f32 %v15355_v57, %v14763_v38  ;;  %v10151_v11 = vpop.f32.mrb[83].mxu0 }
 0x571   :  { %11496 = vst.msk [vmem:[%s21843_s3 + $0x134] sm:$0xf] %vm11418_vm1, %v13351_v44  ;;  %v10634_v43 = vadd.f32 %v21429_v28, %v15501_v54  ;;  %v15503_v52 = vadd.f32 %v10151_v11, %v5342_v49 }
 0x572   :  { %v10780_v34 = vmax.f32 %v10636_v31, 0.0  ;;  %v10637_v59 = vadd.f32 %v21429_v28, %v15502_v9 }
 0x573   :  { %v10778_v32 = vmax.f32 %v10634_v43, 0.0  ;;  %v10635_v29 = vadd.f32 %v21429_v28, %v15503_v52 }
 0x574   :  { %v13356_v7 = vpack.c.bf16 %v10780_v34, %v10780_v34  ;;  %v10781_v48 = vmax.f32 %v10637_v59, 0.0 }
 0x575   :  { %v14766_v1 = vpop.f32.mrb[84].mxu1  ;;  %v13354_v18 = vpack.c.bf16 %v10778_v32, %v10778_v32  ;;  %v10779_v19 = vmax.f32 %v10635_v29, 0.0  ;;  %v15358_v46 = vpop.f32.mrb[84].mxu0 }
 0x576   :  { %v5355_v5 = vpop.f32.mrb[85].mxu1  ;;  %11501 = vst.msk [vmem:[%s21843_s3 + $0x148] sm:$0xf] %vm11418_vm1, %v13356_v7  ;;  %v13357_v20 = vpack.c.bf16 %v10781_v48, %v10781_v48  ;;  %v15504_v26 = vadd.f32 %v15358_v46, %v14766_v1  ;;  %v10164_v35 = vpop.f32.mrb[85].mxu0 }
 0x577   :  { %v14767_v27 = vpop.f32.mrb[86].mxu1  ;;  %11499 = vst.msk [vmem:[%s21843_s3 + $0x140] sm:$0xf] %vm11418_vm1, %v13354_v18  ;;  %v13355_v45 = vpack.c.bf16 %v10779_v19, %v10779_v19  ;;  %v15505_v37 = vadd.f32 %v10164_v35, %v5355_v5  ;;  %v15359_v0 = vpop.f32.mrb[86].mxu0 }
 0x578   :  { %v5358_v60 = vpop.f32.mrb[87].mxu1  ;;  %11502 = vst.msk [vmem:[%s21843_s3 + $0x14c] sm:$0xf] %vm11418_vm1, %v13357_v20  ;;  %v10640_v2 = vadd.f32 %v21429_v28, %v15504_v26  ;;  %v15506_v8 = vadd.f32 %v15359_v0, %v14767_v27  ;;  %v10167_v33 = vpop.f32.mrb[87].mxu0 }
 0x579   :  { %11500 = vst.msk [vmem:[%s21843_s3 + $0x144] sm:$0xf] %vm11418_vm1, %v13355_v45  ;;  %v10638_v22 = vadd.f32 %v21429_v28, %v15505_v37  ;;  %v15507_v63 = vadd.f32 %v10167_v33, %v5358_v60 }
 0x57a   :  { %v10784_v23 = vmax.f32 %v10640_v2, 0.0  ;;  %v10641_v47 = vadd.f32 %v21429_v28, %v15506_v8 }
 0x57b   :  { %v10782_v55 = vmax.f32 %v10638_v22, 0.0  ;;  %v10639_v13 = vadd.f32 %v21429_v28, %v15507_v63 }
 0x57c   :  { %v13360_v42 = vpack.c.bf16 %v10784_v23, %v10784_v23  ;;  %v10785_v61 = vmax.f32 %v10641_v47, 0.0 }
 0x57d   :  { %v14770_v10 = vpop.f32.mrb[88].mxu1  ;;  %v13358_v56 = vpack.c.bf16 %v10782_v55, %v10782_v55  ;;  %v10783_v4 = vmax.f32 %v10639_v13, 0.0  ;;  %v15362_v51 = vpop.f32.mrb[88].mxu0 }
 0x57e   :  { %v5371_v24 = vpop.f32.mrb[89].mxu1  ;;  %11505 = vst.msk [vmem:[%s21843_s3 + $0x158] sm:$0xf] %vm11418_vm1, %v13360_v42  ;;  %v13361_v21 = vpack.c.bf16 %v10785_v61, %v10785_v61  ;;  %v15508_v39 = vadd.f32 %v15362_v51, %v14770_v10  ;;  %v10180_v62 = vpop.f32.mrb[89].mxu0 }
 0x57f   :  { %v14771_v15 = vpop.f32.mrb[90].mxu1  ;;  %11503 = vst.msk [vmem:[%s21843_s3 + $0x150] sm:$0xf] %vm11418_vm1, %v13358_v56  ;;  %v13359_v41 = vpack.c.bf16 %v10783_v4, %v10783_v4  ;;  %v15509_v50 = vadd.f32 %v10180_v62, %v5371_v24  ;;  %v15363_v14 = vpop.f32.mrb[90].mxu0 }
 0x580   :  { %v5374_v58 = vpop.f32.mrb[91].mxu1  ;;  %11506 = vst.msk [vmem:[%s21843_s3 + $0x15c] sm:$0xf] %vm11418_vm1, %v13361_v21  ;;  %v10644_v3 = vadd.f32 %v21429_v28, %v15508_v39  ;;  %v15510_v12 = vadd.f32 %v15363_v14, %v14771_v15  ;;  %v10183_v40 = vpop.f32.mrb[91].mxu0 }
 0x581   :  { %11504 = vst.msk [vmem:[%s21843_s3 + $0x154] sm:$0xf] %vm11418_vm1, %v13359_v41  ;;  %v10642_v36 = vadd.f32 %v21429_v28, %v15509_v50  ;;  %v15511_v6 = vadd.f32 %v10183_v40, %v5374_v58 }
 0x582   :  { %v10788_v17 = vmax.f32 %v10644_v3, 0.0  ;;  %v10645_v30 = vadd.f32 %v21429_v28, %v15510_v12 }
 0x583   :  { %v10786_v53 = vmax.f32 %v10642_v36, 0.0  ;;  %v10643_v16 = vadd.f32 %v21429_v28, %v15511_v6 }
 0x584   :  { %v13364_v25 = vpack.c.bf16 %v10788_v17, %v10788_v17  ;;  %v10789_v38 = vmax.f32 %v10645_v30, 0.0 }
 0x585   :  { %v14774_v44 = vpop.f32.mrb[92].mxu1  ;;  %v13362_v54 = vpack.c.bf16 %v10786_v53, %v10786_v53  ;;  %v10787_v57 = vmax.f32 %v10643_v16, 0.0  ;;  %v15366_v49 = vpop.f32.mrb[92].mxu0 }
 0x586   :  { %v5387_v31 = vpop.f32.mrb[93].mxu1  ;;  %11509 = vst.msk [vmem:[%s21843_s3 + $0x168] sm:$0xf] %vm11418_vm1, %v13364_v25  ;;  %v13365_v9 = vpack.c.bf16 %v10789_v38, %v10789_v38  ;;  %v15512_v11 = vadd.f32 %v15366_v49, %v14774_v44  ;;  %v10196_v43 = vpop.f32.mrb[93].mxu0 }
 0x587   :  { %v14775_v52 = vpop.f32.mrb[94].mxu1  ;;  %11507 = vst.msk [vmem:[%s21843_s3 + $0x160] sm:$0xf] %vm11418_vm1, %v13362_v54  ;;  %v13363_v34 = vpack.c.bf16 %v10787_v57, %v10787_v57  ;;  %v15513_v59 = vadd.f32 %v10196_v43, %v5387_v31  ;;  %v15367_v32 = vpop.f32.mrb[94].mxu0 }
 0x588   :  { %v5390_v29 = vpop.f32.mrb[95].mxu1  ;;  %11510 = vst.msk [vmem:[%s21843_s3 + $0x16c] sm:$0xf] %vm11418_vm1, %v13365_v9  ;;  %v10648_v7 = vadd.f32 %v21429_v28, %v15512_v11  ;;  %v15514_v48 = vadd.f32 %v15367_v32, %v14775_v52  ;;  %v10199_v1 = vpop.f32.mrb[95].mxu0 }
 0x589   :  { %11508 = vst.msk [vmem:[%s21843_s3 + $0x164] sm:$0xf] %vm11418_vm1, %v13363_v34  ;;  %v10646_v18 = vadd.f32 %v21429_v28, %v15513_v59  ;;  %v15515_v19 = vadd.f32 %v10199_v1, %v5390_v29 }
 0x58a   :  { %v10792_v46 = vmax.f32 %v10648_v7, 0.0  ;;  %v10649_v5 = vadd.f32 %v21429_v28, %v15514_v48 }
 0x58b   :  { %v10790_v20 = vmax.f32 %v10646_v18, 0.0  ;;  %v10647_v26 = vadd.f32 %v21429_v28, %v15515_v19 }
 0x58c   :  { %v13368_v35 = vpack.c.bf16 %v10792_v46, %v10792_v46  ;;  %v10793_v27 = vmax.f32 %v10649_v5, 0.0 }
 0x58d   :  { %v14778_v45 = vpop.f32.mrb[96].mxu1  ;;  %v13366_v37 = vpack.c.bf16 %v10790_v20, %v10790_v20  ;;  %v10791_v0 = vmax.f32 %v10647_v26, 0.0  ;;  %v15370_v60 = vpop.f32.mrb[96].mxu0 }
 0x58e   :  { %v5403_v2 = vpop.f32.mrb[97].mxu1  ;;  %11513 = vst.msk [vmem:[%s21843_s3 + $0x178] sm:$0xf] %vm11418_vm1, %v13368_v35  ;;  %v13369_v8 = vpack.c.bf16 %v10793_v27, %v10793_v27  ;;  %v15516_v33 = vadd.f32 %v15370_v60, %v14778_v45  ;;  %v10212_v22 = vpop.f32.mrb[97].mxu0 }
 0x58f   :  { %v14779_v63 = vpop.f32.mrb[98].mxu1  ;;  %11511 = vst.msk [vmem:[%s21843_s3 + $0x170] sm:$0xf] %vm11418_vm1, %v13366_v37  ;;  %v13367_v23 = vpack.c.bf16 %v10791_v0, %v10791_v0  ;;  %v15517_v47 = vadd.f32 %v10212_v22, %v5403_v2  ;;  %v15371_v55 = vpop.f32.mrb[98].mxu0 }
 0x590   :  { %v5406_v13 = vpop.f32.mrb[99].mxu1  ;;  %11514 = vst.msk [vmem:[%s21843_s3 + $0x17c] sm:$0xf] %vm11418_vm1, %v13369_v8  ;;  %v10652_v42 = vadd.f32 %v21429_v28, %v15516_v33  ;;  %v15518_v61 = vadd.f32 %v15371_v55, %v14779_v63  ;;  %v10215_v10 = vpop.f32.mrb[99].mxu0 }
 0x591   :  { %11512 = vst.msk [vmem:[%s21843_s3 + $0x174] sm:$0xf] %vm11418_vm1, %v13367_v23  ;;  %v10650_v56 = vadd.f32 %v21429_v28, %v15517_v47  ;;  %v15519_v4 = vadd.f32 %v10215_v10, %v5406_v13 }
 0x592   :  { %v10796_v51 = vmax.f32 %v10652_v42, 0.0  ;;  %v10653_v24 = vadd.f32 %v21429_v28, %v15518_v61 }
 0x593   :  { %v10794_v21 = vmax.f32 %v10650_v56, 0.0  ;;  %v10651_v39 = vadd.f32 %v21429_v28, %v15519_v4 }
 0x594   :  { %v13372_v62 = vpack.c.bf16 %v10796_v51, %v10796_v51  ;;  %v10797_v15 = vmax.f32 %v10653_v24, 0.0 }
 0x595   :  { %v14782_v41 = vpop.f32.mrb[100].mxu1  ;;  %v13370_v50 = vpack.c.bf16 %v10794_v21, %v10794_v21  ;;  %v10795_v14 = vmax.f32 %v10651_v39, 0.0  ;;  %v15374_v58 = vpop.f32.mrb[100].mxu0 }
 0x596   :  { %v5419_v3 = vpop.f32.mrb[101].mxu1  ;;  %11517 = vst.msk [vmem:[%s21843_s3 + $0x188] sm:$0xf] %vm11418_vm1, %v13372_v62  ;;  %v13373_v12 = vpack.c.bf16 %v10797_v15, %v10797_v15  ;;  %v15520_v40 = vadd.f32 %v15374_v58, %v14782_v41  ;;  %v10228_v36 = vpop.f32.mrb[101].mxu0 }
 0x597   :  { %v14783_v6 = vpop.f32.mrb[102].mxu1  ;;  %11515 = vst.msk [vmem:[%s21843_s3 + $0x180] sm:$0xf] %vm11418_vm1, %v13370_v50  ;;  %v13371_v17 = vpack.c.bf16 %v10795_v14, %v10795_v14  ;;  %v15521_v30 = vadd.f32 %v10228_v36, %v5419_v3  ;;  %v15375_v53 = vpop.f32.mrb[102].mxu0 }
 0x598   :  { %v5422_v16 = vpop.f32.mrb[103].mxu1  ;;  %11518 = vst.msk [vmem:[%s21843_s3 + $0x18c] sm:$0xf] %vm11418_vm1, %v13373_v12  ;;  %v10656_v25 = vadd.f32 %v21429_v28, %v15520_v40  ;;  %v15522_v38 = vadd.f32 %v15375_v53, %v14783_v6  ;;  %v10231_v44 = vpop.f32.mrb[103].mxu0 }
 0x599   :  { %11516 = vst.msk [vmem:[%s21843_s3 + $0x184] sm:$0xf] %vm11418_vm1, %v13371_v17  ;;  %v10654_v54 = vadd.f32 %v21429_v28, %v15521_v30  ;;  %v15523_v57 = vadd.f32 %v10231_v44, %v5422_v16 }
 0x59a   :  { %v10800_v49 = vmax.f32 %v10656_v25, 0.0  ;;  %v10657_v31 = vadd.f32 %v21429_v28, %v15522_v38 }
 0x59b   :  { %v10798_v9 = vmax.f32 %v10654_v54, 0.0  ;;  %v10655_v11 = vadd.f32 %v21429_v28, %v15523_v57 }
 0x59c   :  { %v13376_v43 = vpack.c.bf16 %v10800_v49, %v10800_v49  ;;  %v10801_v52 = vmax.f32 %v10657_v31, 0.0 }
 0x59d   :  { %v14786_v34 = vpop.f32.mrb[104].mxu1  ;;  %v13374_v59 = vpack.c.bf16 %v10798_v9, %v10798_v9  ;;  %v10799_v32 = vmax.f32 %v10655_v11, 0.0  ;;  %v15378_v29 = vpop.f32.mrb[104].mxu0 }
 0x59e   :  { %v5435_v7 = vpop.f32.mrb[105].mxu1  ;;  %11521 = vst.msk [vmem:[%s21843_s3 + $0x198] sm:$0xf] %vm11418_vm1, %v13376_v43  ;;  %v13377_v48 = vpack.c.bf16 %v10801_v52, %v10801_v52  ;;  %v15524_v1 = vadd.f32 %v15378_v29, %v14786_v34  ;;  %v10244_v18 = vpop.f32.mrb[105].mxu0 }
 0x59f   :  { %v14787_v19 = vpop.f32.mrb[106].mxu1  ;;  %11519 = vst.msk [vmem:[%s21843_s3 + $0x190] sm:$0xf] %vm11418_vm1, %v13374_v59  ;;  %v13375_v46 = vpack.c.bf16 %v10799_v32, %v10799_v32  ;;  %v15525_v5 = vadd.f32 %v10244_v18, %v5435_v7  ;;  %v15379_v20 = vpop.f32.mrb[106].mxu0 }
 0x5a0   :  { %v5438_v26 = vpop.f32.mrb[107].mxu1  ;;  %11522 = vst.msk [vmem:[%s21843_s3 + $0x19c] sm:$0xf] %vm11418_vm1, %v13377_v48  ;;  %v10660_v35 = vadd.f32 %v21429_v28, %v15524_v1  ;;  %v15526_v27 = vadd.f32 %v15379_v20, %v14787_v19  ;;  %v10247_v45 = vpop.f32.mrb[107].mxu0 }
 0x5a1   :  { %11520 = vst.msk [vmem:[%s21843_s3 + $0x194] sm:$0xf] %vm11418_vm1, %v13375_v46  ;;  %v10658_v37 = vadd.f32 %v21429_v28, %v15525_v5  ;;  %v15527_v0 = vadd.f32 %v10247_v45, %v5438_v26 }
 0x5a2   :  { %v10804_v60 = vmax.f32 %v10660_v35, 0.0  ;;  %v10661_v2 = vadd.f32 %v21429_v28, %v15526_v27 }
 0x5a3   :  { %v10802_v8 = vmax.f32 %v10658_v37, 0.0  ;;  %v10659_v33 = vadd.f32 %v21429_v28, %v15527_v0 }
 0x5a4   :  { %v13380_v22 = vpack.c.bf16 %v10804_v60, %v10804_v60  ;;  %v10805_v63 = vmax.f32 %v10661_v2, 0.0 }
 0x5a5   :  { %v14790_v23 = vpop.f32.mrb[108].mxu1  ;;  %v13378_v47 = vpack.c.bf16 %v10802_v8, %v10802_v8  ;;  %v10803_v55 = vmax.f32 %v10659_v33, 0.0  ;;  %v15382_v13 = vpop.f32.mrb[108].mxu0 }
 0x5a6   :  { %v5451_v42 = vpop.f32.mrb[109].mxu1  ;;  %11525 = vst.msk [vmem:[%s21843_s3 + $0x1a8] sm:$0xf] %vm11418_vm1, %v13380_v22  ;;  %v13381_v61 = vpack.c.bf16 %v10805_v63, %v10805_v63  ;;  %v15528_v10 = vadd.f32 %v15382_v13, %v14790_v23  ;;  %v10260_v56 = vpop.f32.mrb[109].mxu0 }
 0x5a7   :  { %v14791_v4 = vpop.f32.mrb[110].mxu1  ;;  %11523 = vst.msk [vmem:[%s21843_s3 + $0x1a0] sm:$0xf] %vm11418_vm1, %v13378_v47  ;;  %v13379_v51 = vpack.c.bf16 %v10803_v55, %v10803_v55  ;;  %v15529_v24 = vadd.f32 %v10260_v56, %v5451_v42  ;;  %v15383_v21 = vpop.f32.mrb[110].mxu0 }
 0x5a8   :  { %v5454_v39 = vpop.f32.mrb[111].mxu1  ;;  %11526 = vst.msk [vmem:[%s21843_s3 + $0x1ac] sm:$0xf] %vm11418_vm1, %v13381_v61  ;;  %v10664_v62 = vadd.f32 %v21429_v28, %v15528_v10  ;;  %v15530_v15 = vadd.f32 %v15383_v21, %v14791_v4  ;;  %v10263_v41 = vpop.f32.mrb[111].mxu0 }
 0x5a9   :  { %11524 = vst.msk [vmem:[%s21843_s3 + $0x1a4] sm:$0xf] %vm11418_vm1, %v13379_v51  ;;  %v10662_v50 = vadd.f32 %v21429_v28, %v15529_v24  ;;  %v15531_v14 = vadd.f32 %v10263_v41, %v5454_v39 }
 0x5aa   :  { %v10808_v58 = vmax.f32 %v10664_v62, 0.0  ;;  %v10665_v3 = vadd.f32 %v21429_v28, %v15530_v15 }
 0x5ab   :  { %v10806_v12 = vmax.f32 %v10662_v50, 0.0  ;;  %v10663_v40 = vadd.f32 %v21429_v28, %v15531_v14 }
 0x5ac   :  { %v13384_v36 = vpack.c.bf16 %v10808_v58, %v10808_v58  ;;  %v10809_v6 = vmax.f32 %v10665_v3, 0.0 }
 0x5ad   :  { %v14794_v17 = vpop.f32.mrb[112].mxu1  ;;  %v13382_v30 = vpack.c.bf16 %v10806_v12, %v10806_v12  ;;  %v10807_v53 = vmax.f32 %v10663_v40, 0.0  ;;  %v15386_v16 = vpop.f32.mrb[112].mxu0 }
 0x5ae   :  { %v5467_v25 = vpop.f32.mrb[113].mxu1  ;;  %11529 = vst.msk [vmem:[%s21843_s3 + $0x1b8] sm:$0xf] %vm11418_vm1, %v13384_v36  ;;  %v13385_v38 = vpack.c.bf16 %v10809_v6, %v10809_v6  ;;  %v15532_v44 = vadd.f32 %v15386_v16, %v14794_v17  ;;  %v10276_v54 = vpop.f32.mrb[113].mxu0 }
 0x5af   :  { %v14795_v57 = vpop.f32.mrb[114].mxu1  ;;  %11527 = vst.msk [vmem:[%s21843_s3 + $0x1b0] sm:$0xf] %vm11418_vm1, %v13382_v30  ;;  %v13383_v49 = vpack.c.bf16 %v10807_v53, %v10807_v53  ;;  %v15533_v31 = vadd.f32 %v10276_v54, %v5467_v25  ;;  %v15387_v9 = vpop.f32.mrb[114].mxu0 }
 0x5b0   :  { %v5470_v11 = vpop.f32.mrb[115].mxu1  ;;  %11530 = vst.msk [vmem:[%s21843_s3 + $0x1bc] sm:$0xf] %vm11418_vm1, %v13385_v38  ;;  %v10668_v43 = vadd.f32 %v21429_v28, %v15532_v44  ;;  %v15534_v52 = vadd.f32 %v15387_v9, %v14795_v57  ;;  %v10279_v34 = vpop.f32.mrb[115].mxu0 }
 0x5b1   :  { %11528 = vst.msk [vmem:[%s21843_s3 + $0x1b4] sm:$0xf] %vm11418_vm1, %v13383_v49  ;;  %v10666_v59 = vadd.f32 %v21429_v28, %v15533_v31  ;;  %v15535_v32 = vadd.f32 %v10279_v34, %v5470_v11 }
 0x5b2   :  { %v10812_v29 = vmax.f32 %v10668_v43, 0.0  ;;  %v10669_v7 = vadd.f32 %v21429_v28, %v15534_v52 }
 0x5b3   :  { %v10810_v48 = vmax.f32 %v10666_v59, 0.0  ;;  %v10667_v1 = vadd.f32 %v21429_v28, %v15535_v32 }
 0x5b4   :  { %v13388_v18 = vpack.c.bf16 %v10812_v29, %v10812_v29  ;;  %v10813_v19 = vmax.f32 %v10669_v7, 0.0 }
 0x5b5   :  { %v14798_v46 = vpop.f32.mrb[116].mxu1  ;;  %v13386_v5 = vpack.c.bf16 %v10810_v48, %v10810_v48  ;;  %v10811_v20 = vmax.f32 %v10667_v1, 0.0  ;;  %v15390_v26 = vpop.f32.mrb[116].mxu0 }
 0x5b6   :  { %v5483_v35 = vpop.f32.mrb[117].mxu1  ;;  %11533 = vst.msk [vmem:[%s21843_s3 + $0x1c8] sm:$0xf] %vm11418_vm1, %v13388_v18  ;;  %v13389_v27 = vpack.c.bf16 %v10813_v19, %v10813_v19  ;;  %v15536_v45 = vadd.f32 %v15390_v26, %v14798_v46  ;;  %v10292_v37 = vpop.f32.mrb[117].mxu0 }
 0x5b7   :  { %v14799_v0 = vpop.f32.mrb[118].mxu1  ;;  %11531 = vst.msk [vmem:[%s21843_s3 + $0x1c0] sm:$0xf] %vm11418_vm1, %v13386_v5  ;;  %v13387_v60 = vpack.c.bf16 %v10811_v20, %v10811_v20  ;;  %v15537_v2 = vadd.f32 %v10292_v37, %v5483_v35  ;;  %v15391_v8 = vpop.f32.mrb[118].mxu0 }
 0x5b8   :  { %v5486_v33 = vpop.f32.mrb[119].mxu1  ;;  %11534 = vst.msk [vmem:[%s21843_s3 + $0x1cc] sm:$0xf] %vm11418_vm1, %v13389_v27  ;;  %v10672_v22 = vadd.f32 %v21429_v28, %v15536_v45  ;;  %v15538_v63 = vadd.f32 %v15391_v8, %v14799_v0  ;;  %v10295_v23 = vpop.f32.mrb[119].mxu0 }
 0x5b9   :  { %11532 = vst.msk [vmem:[%s21843_s3 + $0x1c4] sm:$0xf] %vm11418_vm1, %v13387_v60  ;;  %v10670_v47 = vadd.f32 %v21429_v28, %v15537_v2  ;;  %v15539_v55 = vadd.f32 %v10295_v23, %v5486_v33 }
 0x5ba   :  { %v10816_v13 = vmax.f32 %v10672_v22, 0.0  ;;  %v10673_v42 = vadd.f32 %v21429_v28, %v15538_v63 }
 0x5bb   :  { %v10814_v61 = vmax.f32 %v10670_v47, 0.0  ;;  %v10671_v10 = vadd.f32 %v21429_v28, %v15539_v55 }
 0x5bc   :  { %v13392_v56 = vpack.c.bf16 %v10816_v13, %v10816_v13  ;;  %v10817_v4 = vmax.f32 %v10673_v42, 0.0 }
 0x5bd   :  { %v14802_v51 = vpop.f32.mrb[120].mxu1  ;;  %v13390_v24 = vpack.c.bf16 %v10814_v61, %v10814_v61  ;;  %v10815_v21 = vmax.f32 %v10671_v10, 0.0  ;;  %v15394_v39 = vpop.f32.mrb[120].mxu0 }
 0x5be   :  { %v5499_v62 = vpop.f32.mrb[121].mxu1  ;;  %11537 = vst.msk [vmem:[%s21843_s3 + $0x1d8] sm:$0xf] %vm11418_vm1, %v13392_v56  ;;  %v13393_v15 = vpack.c.bf16 %v10817_v4, %v10817_v4  ;;  %v15540_v41 = vadd.f32 %v15394_v39, %v14802_v51  ;;  %v10308_v50 = vpop.f32.mrb[121].mxu0 }
 0x5bf   :  { %v14803_v14 = vpop.f32.mrb[122].mxu1  ;;  %11535 = vst.msk [vmem:[%s21843_s3 + $0x1d0] sm:$0xf] %vm11418_vm1, %v13390_v24  ;;  %v13391_v58 = vpack.c.bf16 %v10815_v21, %v10815_v21  ;;  %v15541_v3 = vadd.f32 %v10308_v50, %v5499_v62  ;;  %v15395_v12 = vpop.f32.mrb[122].mxu0 }
 0x5c0   :  { %v5502_v40 = vpop.f32.mrb[123].mxu1  ;;  %11538 = vst.msk [vmem:[%s21843_s3 + $0x1dc] sm:$0xf] %vm11418_vm1, %v13393_v15  ;;  %v10676_v36 = vadd.f32 %v21429_v28, %v15540_v41  ;;  %v15542_v6 = vadd.f32 %v15395_v12, %v14803_v14  ;;  %v10311_v17 = vpop.f32.mrb[123].mxu0 }
 0x5c1   :  { %11536 = vst.msk [vmem:[%s21843_s3 + $0x1d4] sm:$0xf] %vm11418_vm1, %v13391_v58  ;;  %v10674_v30 = vadd.f32 %v21429_v28, %v15541_v3  ;;  %v15543_v53 = vadd.f32 %v10311_v17, %v5502_v40 }
 0x5c2   :  { %v10820_v16 = vmax.f32 %v10676_v36, 0.0  ;;  %v10677_v25 = vadd.f32 %v21429_v28, %v15542_v6 }
 0x5c3   :  { %v10818_v38 = vmax.f32 %v10674_v30, 0.0  ;;  %v10675_v44 = vadd.f32 %v21429_v28, %v15543_v53 }
 0x5c4   :  { %v13396_v54 = vpack.c.bf16 %v10820_v16, %v10820_v16  ;;  %v10821_v57 = vmax.f32 %v10677_v25, 0.0 }
 0x5c5   :  { %v14806_v49 = vpop.f32.mrb[124].mxu1  ;;  %v13394_v31 = vpack.c.bf16 %v10818_v38, %v10818_v38  ;;  %v10819_v9 = vmax.f32 %v10675_v44, 0.0  ;;  %v15398_v11 = vpop.f32.mrb[124].mxu0 }
 0x5c6   :  { %v5515_v43 = vpop.f32.mrb[125].mxu1  ;;  %11541 = vst.msk [vmem:[%s21843_s3 + $0x1e8] sm:$0xf] %vm11418_vm1, %v13396_v54  ;;  %v13397_v52 = vpack.c.bf16 %v10821_v57, %v10821_v57  ;;  %v15544_v34 = vadd.f32 %v15398_v11, %v14806_v49  ;;  %v10324_v59 = vpop.f32.mrb[125].mxu0 }
 0x5c7   :  { %v14807_v32 = vpop.f32.mrb[126].mxu1  ;;  %11539 = vst.msk [vmem:[%s21843_s3 + $0x1e0] sm:$0xf] %vm11418_vm1, %v13394_v31  ;;  %v13395_v29 = vpack.c.bf16 %v10819_v9, %v10819_v9  ;;  %v15545_v7 = vadd.f32 %v10324_v59, %v5515_v43  ;;  %v15399_v48 = vpop.f32.mrb[126].mxu0 }
 0x5c8   :  { %v5518_v1 = vpop.f32.mrb[127].mxu1  ;;  %11542 = vst.msk [vmem:[%s21843_s3 + $0x1ec] sm:$0xf] %vm11418_vm1, %v13397_v52  ;;  %v10680_v18 = vadd.f32 %v21429_v28, %v15544_v34  ;;  %v15546_v19 = vadd.f32 %v15399_v48, %v14807_v32  ;;  %v10327_v46 = vpop.f32.mrb[127].mxu0 }
 0x5c9   :  { %11540 = vst.msk [vmem:[%s21843_s3 + $0x1e4] sm:$0xf] %vm11418_vm1, %v13395_v29  ;;  %v10678_v5 = vadd.f32 %v21429_v28, %v15545_v7  ;;  %v15547_v20 = vadd.f32 %v10327_v46, %v5518_v1 }
 0x5ca   :  { %v10824_v26 = vmax.f32 %v10680_v18, 0.0  ;;  %v10681_v35 = vadd.f32 %v21429_v28, %v15546_v19 }
 0x5cb   :  { %v10822_v27 = vmax.f32 %v10678_v5, 0.0  ;;  %v10679_v45 = vadd.f32 %v21429_v28, %v15547_v20 }
 0x5cc   :  { %v13400_v37 = vpack.c.bf16 %v10824_v26, %v10824_v26  ;;  %v10825_v0 = vmax.f32 %v10681_v35, 0.0 }
 0x5cd   :  { %v14810_v60 = vpop.f32.mrb[128].mxu1  ;;  %v13398_v2 = vpack.c.bf16 %v10822_v27, %v10822_v27  ;;  %v10823_v8 = vmax.f32 %v10679_v45, 0.0  ;;  %v15402_v33 = vpop.f32.mrb[128].mxu0 }
 0x5ce   :  { %v5531_v22 = vpop.f32.mrb[129].mxu1  ;;  %11545 = vst.msk [vmem:[%s21843_s3 + $0x1f8] sm:$0xf] %vm11418_vm1, %v13400_v37  ;;  %v13401_v63 = vpack.c.bf16 %v10825_v0, %v10825_v0  ;;  %v15548_v23 = vadd.f32 %v15402_v33, %v14810_v60  ;;  %v10340_v47 = vpop.f32.mrb[129].mxu0 }
 0x5cf   :  { %v14811_v55 = vpop.f32.mrb[130].mxu1  ;;  %11543 = vst.msk [vmem:[%s21843_s3 + $0x1f0] sm:$0xf] %vm11418_vm1, %v13398_v2  ;;  %v13399_v13 = vpack.c.bf16 %v10823_v8, %v10823_v8  ;;  %v15549_v42 = vadd.f32 %v10340_v47, %v5531_v22  ;;  %v15403_v61 = vpop.f32.mrb[130].mxu0 }
 0x5d0   :  { %v5534_v10 = vpop.f32.mrb[131].mxu1  ;;  %11546 = vst.msk [vmem:[%s21843_s3 + $0x1fc] sm:$0xf] %vm11418_vm1, %v13401_v63  ;;  %v10684_v56 = vadd.f32 %v21429_v28, %v15548_v23  ;;  %v15550_v4 = vadd.f32 %v15403_v61, %v14811_v55  ;;  %v10343_v51 = vpop.f32.mrb[131].mxu0 }
 0x5d1   :  { %11544 = vst.msk [vmem:[%s21843_s3 + $0x1f4] sm:$0xf] %vm11418_vm1, %v13399_v13  ;;  %v10682_v24 = vadd.f32 %v21429_v28, %v15549_v42  ;;  %v15551_v21 = vadd.f32 %v10343_v51, %v5534_v10 }
 0x5d2   :  { %v10828_v39 = vmax.f32 %v10684_v56, 0.0  ;;  %v10685_v62 = vadd.f32 %v21429_v28, %v15550_v4 }
 0x5d3   :  { %v10826_v15 = vmax.f32 %v10682_v24, 0.0  ;;  %v10683_v41 = vadd.f32 %v21429_v28, %v15551_v21 }
 0x5d4   :  { %v13404_v50 = vpack.c.bf16 %v10828_v39, %v10828_v39  ;;  %v10829_v14 = vmax.f32 %v10685_v62, 0.0 }
 0x5d5   :  { %v14814_v58 = vpop.f32.mrb[132].mxu1  ;;  %v13402_v3 = vpack.c.bf16 %v10826_v15, %v10826_v15  ;;  %v10827_v12 = vmax.f32 %v10683_v41, 0.0  ;;  %v15406_v40 = vpop.f32.mrb[132].mxu0  ;;  %v16593_v41 = vld [vmem:[%s21842_s2] ss:$0 sm:$0xff] }
 0x5d6   :  { %v5547_v36 = vpop.f32.mrb[133].mxu1  ;;  %11549 = vst.msk [vmem:[%s21843_s3 + $0x208] sm:$0xf] %vm11418_vm1, %v13404_v50  ;;  %v13405_v6 = vpack.c.bf16 %v10829_v14, %v10829_v14  ;;  %v15552_v17 = vadd.f32 %v15406_v40, %v14814_v58  ;;  %v10356_v30 = vpop.f32.mrb[133].mxu0 }
 0x5d7   :  { %v14815_v53 = vpop.f32.mrb[134].mxu1  ;;  %11547 = vst.msk [vmem:[%s21843_s3 + $0x200] sm:$0xf] %vm11418_vm1, %v13402_v3  ;;  %v13403_v16 = vpack.c.bf16 %v10827_v12, %v10827_v12  ;;  %v15553_v25 = vadd.f32 %v10356_v30, %v5547_v36  ;;  %v15407_v38 = vpop.f32.mrb[134].mxu0 }
 0x5d8   :  { %v5550_v44 = vpop.f32.mrb[135].mxu1  ;;  %11550 = vst.msk [vmem:[%s21843_s3 + $0x20c] sm:$0xf] %vm11418_vm1, %v13405_v6  ;;  %v10688_v54 = vadd.f32 %v21429_v28, %v15552_v17  ;;  %v15554_v57 = vadd.f32 %v15407_v38, %v14815_v53  ;;  %v10359_v49 = vpop.f32.mrb[135].mxu0 }
 0x5d9   :  { %11548 = vst.msk [vmem:[%s21843_s3 + $0x204] sm:$0xf] %vm11418_vm1, %v13403_v16  ;;  %v10686_v31 = vadd.f32 %v21429_v28, %v15553_v25  ;;  %v15555_v9 = vadd.f32 %v10359_v49, %v5550_v44 }
 0x5da   :  { %v10832_v11 = vmax.f32 %v10688_v54, 0.0  ;;  %v10689_v43 = vadd.f32 %v21429_v28, %v15554_v57 }
 0x5db   :  { %v10830_v52 = vmax.f32 %v10686_v31, 0.0  ;;  %v10687_v34 = vadd.f32 %v21429_v28, %v15555_v9 }
 0x5dc   :  { %v13408_v59 = vpack.c.bf16 %v10832_v11, %v10832_v11  ;;  %v10833_v32 = vmax.f32 %v10689_v43, 0.0 }
 0x5dd   :  { %v14818_v29 = vpop.f32.mrb[136].mxu1  ;;  %v13406_v7 = vpack.c.bf16 %v10830_v52, %v10830_v52  ;;  %v10831_v48 = vmax.f32 %v10687_v34, 0.0  ;;  %v15410_v1 = vpop.f32.mrb[136].mxu0 }
 0x5de   :  { %v5563_v18 = vpop.f32.mrb[137].mxu1  ;;  %11553 = vst.msk [vmem:[%s21843_s3 + $0x218] sm:$0xf] %vm11418_vm1, %v13408_v59  ;;  %v13409_v19 = vpack.c.bf16 %v10833_v32, %v10833_v32  ;;  %v15556_v46 = vadd.f32 %v15410_v1, %v14818_v29  ;;  %v10372_v5 = vpop.f32.mrb[137].mxu0 }
 0x5df   :  { %v14819_v20 = vpop.f32.mrb[138].mxu1  ;;  %11551 = vst.msk [vmem:[%s21843_s3 + $0x210] sm:$0xf] %vm11418_vm1, %v13406_v7  ;;  %v13407_v26 = vpack.c.bf16 %v10831_v48, %v10831_v48  ;;  %v15557_v35 = vadd.f32 %v10372_v5, %v5563_v18  ;;  %v15411_v27 = vpop.f32.mrb[138].mxu0 }
 0x5e0   :  { %v5566_v45 = vpop.f32.mrb[139].mxu1  ;;  %11554 = vst.msk [vmem:[%s21843_s3 + $0x21c] sm:$0xf] %vm11418_vm1, %v13409_v19  ;;  %v10692_v37 = vadd.f32 %v21429_v28, %v15556_v46  ;;  %v15558_v0 = vadd.f32 %v15411_v27, %v14819_v20  ;;  %v10375_v60 = vpop.f32.mrb[139].mxu0 }
 0x5e1   :  { %11552 = vst.msk [vmem:[%s21843_s3 + $0x214] sm:$0xf] %vm11418_vm1, %v13407_v26  ;;  %v10690_v2 = vadd.f32 %v21429_v28, %v15557_v35  ;;  %v15559_v8 = vadd.f32 %v10375_v60, %v5566_v45 }
 0x5e2   :  { %v10836_v33 = vmax.f32 %v10692_v37, 0.0  ;;  %v10693_v22 = vadd.f32 %v21429_v28, %v15558_v0 }
 0x5e3   :  { %v10834_v63 = vmax.f32 %v10690_v2, 0.0  ;;  %v10691_v23 = vadd.f32 %v21429_v28, %v15559_v8 }
 0x5e4   :  { %v13412_v47 = vpack.c.bf16 %v10836_v33, %v10836_v33  ;;  %v10837_v55 = vmax.f32 %v10693_v22, 0.0 }
 0x5e5   :  { %v14822_v13 = vpop.f32.mrb[140].mxu1  ;;  %v13410_v42 = vpack.c.bf16 %v10834_v63, %v10834_v63  ;;  %v10835_v61 = vmax.f32 %v10691_v23, 0.0  ;;  %v15414_v10 = vpop.f32.mrb[140].mxu0 }
 0x5e6   :  { %v5579_v56 = vpop.f32.mrb[141].mxu1  ;;  %11557 = vst.msk [vmem:[%s21843_s3 + $0x228] sm:$0xf] %vm11418_vm1, %v13412_v47  ;;  %v13413_v4 = vpack.c.bf16 %v10837_v55, %v10837_v55  ;;  %v15560_v51 = vadd.f32 %v15414_v10, %v14822_v13  ;;  %v10388_v24 = vpop.f32.mrb[141].mxu0 }
 0x5e7   :  { %v14823_v21 = vpop.f32.mrb[142].mxu1  ;;  %11555 = vst.msk [vmem:[%s21843_s3 + $0x220] sm:$0xf] %vm11418_vm1, %v13410_v42  ;;  %v13411_v28 = vpack.c.bf16 %v10835_v61, %v10835_v61  ;;  %v15561_v39 = vadd.f32 %v10388_v24, %v5579_v56  ;;  %v15415_v62 = vpop.f32.mrb[142].mxu0 }
 0x5e8   :  { %v5582_v15 = vpop.f32.mrb[143].mxu1  ;;  %11558 = vst.msk [vmem:[%s21843_s3 + $0x22c] sm:$0xf] %vm11418_vm1, %v13413_v4  ;;  %v10696_v50 = vadd.f32 %v16593_v41, %v15560_v51  ;;  %v15562_v14 = vadd.f32 %v15415_v62, %v14823_v21  ;;  %v10391_v58 = vpop.f32.mrb[143].mxu0 }
 0x5e9   :  { %11556 = vst.msk [vmem:[%s21843_s3 + $0x224] sm:$0xf] %vm11418_vm1, %v13411_v28  ;;  %v10694_v3 = vadd.f32 %v16593_v41, %v15561_v39  ;;  %v15563_v12 = vadd.f32 %v10391_v58, %v5582_v15 }
 0x5ea   :  { %v10840_v40 = vmax.f32 %v10696_v50, 0.0  ;;  %v10697_v36 = vadd.f32 %v16593_v41, %v15562_v14 }
 0x5eb   :  { %v10838_v6 = vmax.f32 %v10694_v3, 0.0  ;;  %v10695_v17 = vadd.f32 %v16593_v41, %v15563_v12 }
 0x5ec   :  { %v13416_v30 = vpack.c.bf16 %v10840_v40, %v10840_v40  ;;  %v10841_v53 = vmax.f32 %v10697_v36, 0.0 }
 0x5ed   :  { %v13414_v16 = vpack.c.bf16 %v10838_v6, %v10838_v6  ;;  %v10839_v25 = vmax.f32 %v10695_v17, 0.0 }
 0x5ee   :  { %11561 = vst.msk [vmem:[%s21843_s3 + $0x238] sm:$0xf] %vm11418_vm1, %v13416_v30  ;;  %v13417_v38 = vpack.c.bf16 %v10841_v53, %v10841_v53 }
 0x5ef   :  { %11559 = vst.msk [vmem:[%s21843_s3 + $0x230] sm:$0xf] %vm11418_vm1, %v13414_v16  ;;  %v13415_v44 = vpack.c.bf16 %v10839_v25, %v10839_v25 }
 0x5f0   :  { %11562 = vst.msk [vmem:[%s21843_s3 + $0x23c] sm:$0xf] %vm11418_vm1, %v13417_v38 }
 0x5f1   :  { %11560 = vst.msk [vmem:[%s21843_s3 + $0x234] sm:$0xf] %vm11418_vm1, %v13415_v44 }

</bundles_post_ra>
